<compile_context>
chip_gen: v7x
topology: tpu7x:2x2x1
jax: 0.10.0
libtpu: 0.0.40
codegen_flags: <defaults>
</compile_context>

<pallas_src>
import functools

import numpy as np
import jax
import jax.numpy as jnp
from jax import lax
from jax.experimental import pallas as pl
from jax.experimental.pallas import tpu as pltpu

EPS = 1e-5                        # BatchNorm2d default eps
VMEM_LIMIT = 48 * 1024 * 1024     # safe for v5e/v6e (128 MiB) and v7x (64 MiB)


# ----------------------------- small helpers -----------------------------

def _round_up(x, m):
    return ((x + m - 1) // m) * m


def _cp(sem):
    return pltpu.CompilerParams(dimension_semantics=sem,
                                vmem_limit_bytes=VMEM_LIMIT)


def _pick_tile_h(h, per_row_bytes, budget=8 << 20, cap=64):
    """Largest divisor of H whose per-step working set stays under `budget`."""
    cap = max(1, min(cap, h, budget // max(per_row_bytes, 1)))
    best = 1
    for d in range(1, cap + 1):
        if h % d == 0:
            best = d
    return best


def _flat_tile(m, row_bytes, target=4 << 20, cap=8192):
    """Rows per step for flat (M, C) kernels: ~target bytes, multiple of 8."""
    t = max(512, target // max(row_bytes, 1))
    t = _round_up(min(t, cap), 8)
    if t >= m:
        return m, 1, False
    return t, (m + t - 1) // t, (m % t) != 0


def _finalize_stats(psum, pssq, count):
    """Combine per-tile partial sums -> (mean, invstd), each (1, C)."""
    mean = jnp.sum(psum, axis=(0, 1)) / count
    msq = jnp.sum(pssq, axis=(0, 1)) / count
    var = jnp.maximum(msq - mean * mean, 0.0)     # clamp: E[x^2]-E[x]^2 >= 0
    invstd = lax.rsqrt(var + EPS)
    return mean.reshape(1, -1), invstd.reshape(1, -1)


# ----------------------------- Pallas kernels -----------------------------

def _halo_patches(mid_ref, top_ref, bot_ref):
    """Build bf16 3x3 im2col patches for a TILE_H-row output tile.

    mid_ref: (T, W, C)  rows [y*T, y*T+T) of the UNPADDED input
    top_ref: (1, W, C)  row y*T-1 (clamped), zeroed in-kernel at the top edge
    bot_ref: (1, W, C)  row y*T+T (clamped), zeroed at the bottom edge
    Returns (T*W, 9*C) patches in (ky, kx, cin) order (matches HWIO reshape).
    """
    yi = pl.program_id(1)
    last = pl.num_programs(1) - 1
    mid = mid_ref[...].astype(jnp.bfloat16)
    top = top_ref[...].astype(jnp.bfloat16)
    bot = bot_ref[...].astype(jnp.bfloat16)
    top = jnp.where(yi == 0, jnp.zeros_like(top), top)
    bot = jnp.where(yi == last, jnp.zeros_like(bot), bot)
    t, w, c = mid.shape
    if t > 1:
        slab_up = jnp.concatenate([top, mid[:-1]], axis=0)   # rows y-1 (ky=0)
        slab_dn = jnp.concatenate([mid[1:], bot], axis=0)    # rows y+1 (ky=2)
    else:
        slab_up, slab_dn = top, bot
    zcol = jnp.zeros((t, 1, c), jnp.bfloat16)

    def left(s):    # kx = 0 -> value at x-1, zero at x == 0
        return jnp.concatenate([zcol, s[:, :-1, :]], axis=1) if w > 1 else zcol

    def right(s):   # kx = 2 -> value at x+1, zero at x == W-1
        return jnp.concatenate([s[:, 1:, :], zcol], axis=1) if w > 1 else zcol

    taps = []
    for s in (slab_up, mid, slab_dn):           # ky = 0, 1, 2
        taps += [left(s), s, right(s)]          # kx = 0, 1, 2
    return jnp.concatenate(taps, axis=-1).reshape(t * w, 9 * c)


def _conv3x3_kernel(mid_ref, top_ref, bot_ref, w_ref, b_ref, *out_refs,
                    relu, with_stats):
    # 3x3 SAME conv on a TILE_H-row tile: bf16 im2col + one MXU matmul.
    # Optionally emits per-tile partial sum / sum-of-squares (fused BN stats).
    t, w, _ = mid_ref.shape
    patches = _halo_patches(mid_ref, top_ref, bot_ref)          # (T*W, 9*Cin)
    y = jnp.dot(patches, w_ref[...], preferred_element_type=jnp.float32)
    y = y + b_ref[...]
    if relu:
        y = jnp.maximum(y, 0.0)
    o_ref = out_refs[0]
    o_ref[...] = y.reshape(t, w, -1).astype(o_ref.dtype)
    if with_stats:
        out_refs[1][...] = jnp.sum(y, axis=0).reshape(1, 1, -1)
        out_refs[2][...] = jnp.sum(y * y, axis=0).reshape(1, 1, -1)


def _spade_mod_kernel(mid_ref, top_ref, bot_ref, w_ref, b_ref, x_ref,
                      ps_ref, pt_ref, ns_ref, nt_ref, o_ref, *, pre_relu, c):
    # Fused: gamma|beta 3x3 conv (single matmul over concatenated weights)
    # + optional pre-affine(+ReLU) on x (folds a preceding BatchNorm+ReLU)
    # + param-free BN apply + SPADE modulation.  Output stored bf16.
    t, w, _ = x_ref.shape
    patches = _halo_patches(mid_ref, top_ref, bot_ref)          # (T*W, 9*nh)
    gb = jnp.dot(patches, w_ref[...], preferred_element_type=jnp.float32)
    gb = (gb + b_ref[...]).reshape(t, w, 2 * c)
    gamma = gb[..., :c]
    beta = gb[..., c:]
    h = x_ref[...].astype(jnp.float32) * ps_ref[...] + pt_ref[...]
    if pre_relu:
        h = jnp.maximum(h, 0.0)
    normed = h * ns_ref[...] + nt_ref[...]                      # (h-mean)*invstd
    o_ref[...] = (normed * (1.0 + gamma) + beta).astype(o_ref.dtype)


def _stats_kernel(x_ref, ps_ref, pt_ref, psum_ref, pssq_ref, *,
                  m_total, pre_relu, masked):
    # Per-tile partial BN stats on a fully "parallel" grid (tiny JAX combine
    # afterwards -> two-level reduction, megacore-friendly on v7x).
    h = x_ref[...].astype(jnp.float32) * ps_ref[...] + pt_ref[...]
    if pre_relu:
        h = jnp.maximum(h, 0.0)
    if masked:
        rid = (lax.broadcasted_iota(jnp.int32, h.shape, 0)
               + pl.program_id(0) * x_ref.shape[0])
        h = jnp.where(rid < m_total, h, 0.0)
    psum_ref[...] = jnp.sum(h, axis=0).reshape(1, 1, -1)
    pssq_ref[...] = jnp.sum(h * h, axis=0).reshape(1, 1, -1)


def _residual_identity_kernel(y_ref, s_ref, t_ref, r_ref, o_ref):
    # bn2 apply (per-channel scale/shift) + identity residual add
    o_ref[...] = r_ref[...].astype(jnp.float32) + y_ref[...] * s_ref[...] + t_ref[...]


def _residual_matmul_kernel(xs_ref, w_ref, b_ref, y_ref, s_ref, t_ref, o_ref):
    # learned shortcut: 1x1 conv (bf16 MXU, f32 acc) + bn2 apply + residual add
    sc = jnp.dot(xs_ref[...].astype(jnp.bfloat16), w_ref[...],
                 preferred_element_type=jnp.float32) + b_ref[...]
    o_ref[...] = sc + y_ref[...] * s_ref[...] + t_ref[...]


# ----------------------------- Pallas wrappers -----------------------------

def conv3x3(x_nhwc, w_hwio, b, *, relu=False, out_dtype=jnp.float32,
            with_stats=False):
    B, H, W, Cin = x_nhwc.shape
    Cout = w_hwio.shape[-1]
    in_b = x_nhwc.dtype.itemsize
    out_b = jnp.dtype(out_dtype).itemsize
    per_row = W * (Cin * in_b + 9 * Cin * 2 + Cout * 4 + Cout * out_b)
    T = _pick_tile_h(H, per_row)
    HT = H // T

    w2d = w_hwio.reshape(9 * Cin, Cout).astype(jnp.bfloat16)
    b2d = b.reshape(1, Cout).astype(jnp.float32)

    mid_spec = pl.BlockSpec((None, T, W, Cin), lambda bi, y: (bi, y, 0, 0))
    top_spec = pl.BlockSpec((None, 1, W, Cin),
                            lambda bi, y: (bi, jnp.maximum(y * T - 1, 0), 0, 0))
    bot_spec = pl.BlockSpec((None, 1, W, Cin),
                            lambda bi, y: (bi, jnp.minimum(y * T + T, H - 1), 0, 0))
    o_spec = pl.BlockSpec((None, T, W, Cout), lambda bi, y: (bi, y, 0, 0))

    if with_stats:
        p_spec = pl.BlockSpec((1, 1, Cout), lambda bi, y: (bi * HT + y, 0, 0))
        out_shape = (jax.ShapeDtypeStruct((B, H, W, Cout), out_dtype),
                     jax.ShapeDtypeStruct((B * HT, 1, Cout), jnp.float32),
                     jax.ShapeDtypeStruct((B * HT, 1, Cout), jnp.float32))
        out_specs = (o_spec, p_spec, p_spec)
    else:
        out_shape = jax.ShapeDtypeStruct((B, H, W, Cout), out_dtype)
        out_specs = o_spec

    return pl.pallas_call(
        functools.partial(_conv3x3_kernel, relu=relu, with_stats=with_stats),
        out_shape=out_shape,
        grid=(B, HT),
        in_specs=[mid_spec, top_spec, bot_spec,
                  pl.BlockSpec((9 * Cin, Cout), lambda bi, y: (0, 0)),
                  pl.BlockSpec((1, Cout), lambda bi, y: (0, 0))],
        out_specs=out_specs,
        compiler_params=_cp(("parallel", "parallel")),
    )(x_nhwc, x_nhwc, x_nhwc, w2d, b2d)


def spade_modulate(actv, w_gb, b_gb, x_nhwc, pre_scale, pre_shift, pre_relu,
                   norm_scale, norm_shift):
    B, H, W, C = x_nhwc.shape
    nh = actv.shape[-1]
    per_row = W * (nh * actv.dtype.itemsize + 9 * nh * 2 + 2 * C * 4
                   + C * 4 + C * 2)
    T = _pick_tile_h(H, per_row)
    HT = H // T

    mid_spec = pl.BlockSpec((None, T, W, nh), lambda bi, y: (bi, y, 0, 0))
    top_spec = pl.BlockSpec((None, 1, W, nh),
                            lambda bi, y: (bi, jnp.maximum(y * T - 1, 0), 0, 0))
    bot_spec = pl.BlockSpec((None, 1, W, nh),
                            lambda bi, y: (bi, jnp.minimum(y * T + T, H - 1), 0, 0))
    x_spec = pl.BlockSpec((None, T, W, C), lambda bi, y: (bi, y, 0, 0))
    vec = pl.BlockSpec((1, C), lambda bi, y: (0, 0))

    return pl.pallas_call(
        functools.partial(_spade_mod_kernel, pre_relu=pre_relu, c=C),
        out_shape=jax.ShapeDtypeStruct((B, H, W, C), jnp.bfloat16),
        grid=(B, HT),
        in_specs=[mid_spec, top_spec, bot_spec,
                  pl.BlockSpec((9 * nh, 2 * C), lambda bi, y: (0, 0)),
                  pl.BlockSpec((1, 2 * C), lambda bi, y: (0, 0)),
                  x_spec, vec, vec, vec, vec],
        out_specs=x_spec,
        compiler_params=_cp(("parallel", "parallel")),
    )(actv, actv, actv, w_gb, b_gb, x_nhwc, pre_scale, pre_shift,
      norm_scale, norm_shift)


def channel_stats(x_flat, pre_scale=None, pre_shift=None, pre_relu=False):
    """Per-channel BN stats of (optionally affine(+relu)-transformed) x."""
    M, C = x_flat.shape
    if pre_scale is None:
        pre_scale = jnp.ones((1, C), jnp.float32)
        pre_shift = jnp.zeros((1, C), jnp.float32)
    tm, nt, masked = _flat_tile(M, C * x_flat.dtype.itemsize)
    vec = pl.BlockSpec((1, C), lambda i: (0, 0))
    p_spec = pl.BlockSpec((1, 1, C), lambda i: (i, 0, 0))
    psum, pssq = pl.pallas_call(
        functools.partial(_stats_kernel, m_total=M, pre_relu=pre_relu,
                          masked=masked),
        out_shape=(jax.ShapeDtypeStruct((nt, 1, C), jnp.float32),
                   jax.ShapeDtypeStruct((nt, 1, C), jnp.float32)),
        grid=(nt,),
        in_specs=[pl.BlockSpec((tm, C), lambda i: (i, 0)), vec, vec],
        out_specs=(p_spec, p_spec),
        compiler_params=_cp(("parallel",)),
    )(x_flat, pre_scale, pre_shift)
    return _finalize_stats(psum, pssq, M)


def residual_identity(y_flat, scale, shift, res_flat):
    M, C = y_flat.shape
    tm, nt, _ = _flat_tile(M, 12 * C)
    row = pl.BlockSpec((tm, C), lambda i: (i, 0))
    vec = pl.BlockSpec((1, C), lambda i: (0, 0))
    return pl.pallas_call(
        _residual_identity_kernel,
        out_shape=jax.ShapeDtypeStruct((M, C), jnp.float32),
        grid=(nt,),
        in_specs=[row, vec, vec, row],
        out_specs=row,
        compiler_params=_cp(("parallel",)),
    )(y_flat, scale, shift, res_flat)


def residual_matmul(xs_flat, w_sc, b_sc, y_flat, scale, shift):
    """out = xs @ w_sc + b_sc + y*scale + shift (1x1 conv + bn2 + residual)."""
    M, K = xs_flat.shape
    N = y_flat.shape[-1]
    tm, nt, _ = _flat_tile(M, K * xs_flat.dtype.itemsize + 8 * N)
    xs_row = pl.BlockSpec((tm, K), lambda i: (i, 0))
    y_row = pl.BlockSpec((tm, N), lambda i: (i, 0))
    vec = pl.BlockSpec((1, N), lambda i: (0, 0))
    return pl.pallas_call(
        _residual_matmul_kernel,
        out_shape=jax.ShapeDtypeStruct((M, N), jnp.float32),
        grid=(nt,),
        in_specs=[xs_row,
                  pl.BlockSpec((K, N), lambda i: (0, 0)),
                  vec, y_row, vec, vec],
        out_specs=y_row,
        compiler_params=_cp(("parallel",)),
    )(xs_flat, w_sc.astype(jnp.bfloat16),
      b_sc.reshape(1, N).astype(jnp.float32), y_flat, scale, shift)


# ----------------------------- JAX glue -----------------------------

def nearest_resize(seg, H, W):
    """F.interpolate(mode='nearest') equivalent (identity if sizes match)."""
    B, Hs, Ws, C = seg.shape
    if (Hs, Ws) == (H, W):
        return seg
    rows = (jnp.arange(H) * Hs) // H
    cols = (jnp.arange(W) * Ws) // W
    return seg[:, rows][:, :, cols]


def spade_layer(x_nhwc, seg_nhwc, p, norm_scale, norm_shift,
                pre_scale=None, pre_shift=None, pre_relu=False):
    """Canonical SPADE norm.  norm_scale/shift are precomputed batch stats of
    the (pre-affined) input (hoisted / fused by the caller).  An optional
    preceding per-channel affine+ReLU is folded into the modulation kernel."""
    B, H, W, C = x_nhwc.shape
    if pre_scale is None:
        pre_scale = jnp.ones((1, C), jnp.float32)
        pre_shift = jnp.zeros((1, C), jnp.float32)

    seg = nearest_resize(seg_nhwc, H, W)
    # shared segmap conv -> bf16 (only consumer is the bf16 gamma/beta matmul)
    actv = conv3x3(seg, p['w_shared'], p['b_shared'], relu=True,
                   out_dtype=jnp.bfloat16)

    nh = actv.shape[-1]
    w_gb = jnp.concatenate([p['w_gamma'], p['w_beta']], axis=-1)
    w_gb = w_gb.reshape(9 * nh, 2 * C).astype(jnp.bfloat16)
    b_gb = jnp.concatenate([p['b_gamma'], p['b_beta']]).reshape(1, 2 * C)
    b_gb = b_gb.astype(jnp.float32)
    return spade_modulate(actv, w_gb, b_gb, x_nhwc, pre_scale, pre_shift,
                          pre_relu, norm_scale, norm_shift)


def resnet_block(x_nhwc, seg_nhwc, params):
    """SPADE ResnetBlock forward (training-mode batch-stat BatchNorm)."""
    B, H, W, fin = x_nhwc.shape
    fout = params['conv2_w'].shape[-1]
    fmid = params['conv1_w'].shape[-1]
    M = B * H * W
    learned = 'conv_sc_w' in params

    # BN stats of x -- computed once, shared by spade1 and spade_sc (hoisted)
    x_mean, x_invstd = channel_stats(x_nhwc.reshape(M, fin))
    x_ns, x_nt = x_invstd, -x_mean * x_invstd

    # main branch
    dx = spade_layer(x_nhwc, seg_nhwc, params['spade1'], x_ns, x_nt)   # bf16
    y1, p1s, p1q = conv3x3(dx, params['conv1_w'], params['conv1_b'],
                           with_stats=True)                 # f32 + fused stats
    m1, s1 = _finalize_stats(p1s, p1q, M)
    bn1_scale = s1 * params['bn1_w'].reshape(1, fmid)
    bn1_shift = params['bn1_b'].reshape(1, fmid) - m1 * bn1_scale

    # spade2 on relu(bn1(y1)); bn1+relu folded into stats + modulation kernels
    h_mean, h_invstd = channel_stats(y1.reshape(M, fmid), bn1_scale, bn1_shift,
                                     pre_relu=True)
    h_ns, h_nt = h_invstd, -h_mean * h_invstd
    dx = spade_layer(y1, seg_nhwc, params['spade2'], h_ns, h_nt,
                     pre_scale=bn1_scale, pre_shift=bn1_shift, pre_relu=True)
    y2, p2s, p2q = conv3x3(dx, params['conv2_w'], params['conv2_b'],
                           with_stats=True)                 # f32 + fused stats
    m2, s2 = _finalize_stats(p2s, p2q, M)
    bn2_scale = s2 * params['bn2_w'].reshape(1, fout)
    bn2_shift = params['bn2_b'].reshape(1, fout) - m2 * bn2_scale

    if learned:   # shortcut: spade_sc -> 1x1 conv fused with bn2-apply + add
        x_s = spade_layer(x_nhwc, seg_nhwc, params['spade_sc'], x_ns, x_nt)
        out = residual_matmul(x_s.reshape(M, fin),
                              params['conv_sc_w'].reshape(fin, fout),
                              params['conv_sc_b'],
                              y2.reshape(M, fout), bn2_scale, bn2_shift)
    else:
        out = residual_identity(y2.reshape(M, fout), bn2_scale, bn2_shift,
                                x_nhwc.reshape(M, fout))
    return out.reshape(B, H, W, fout)


# ----------------------------- pure-JAX reference -----------------------------
# (matches the kernel's operand quantization: bf16 MXU operands, f32 accum)

def _conv3x3_ref(x, w, b, relu=False):
    y = lax.conv_general_dilated(
        x.astype(jnp.bfloat16), w.astype(jnp.bfloat16), (1, 1),
        ((1, 1), (1, 1)), dimension_numbers=('NHWC', 'HWIO', 'NHWC'),
        preferred_element_type=jnp.float32) + b
    return jnp.maximum(y, 0.0) if relu else y


def _bn_stats_ref(x):
    mean = x.mean(axis=(0, 1, 2), keepdims=True)
    var = jnp.square(x - mean).mean(axis=(0, 1, 2), keepdims=True)
    return mean, var


def _bn_ref(x, w, b):
    mean, var = _bn_stats_ref(x)
    return (x - mean) * lax.rsqrt(var + EPS) * w + b


def _spade_ref(x, seg, p):
    B, H, W, C = x.shape
    seg = nearest_resize(seg, H, W)
    actv = _conv3x3_ref(seg, p['w_shared'], p['b_shared'], relu=True)
    gamma = _conv3x3_ref(actv, p['w_gamma'], p['b_gamma'])
    beta = _conv3x3_ref(actv, p['w_beta'], p['b_beta'])
    mean, var = _bn_stats_ref(x)
    normed = (x - mean) * lax.rsqrt(var + EPS)
    return normed * (1.0 + gamma) + beta


def resnet_block_ref(x, seg, params):
    fin = x.shape[-1]
    fout = params['conv2_w'].shape[-1]
    if fin != fout:
        x_s = _spade_ref(x, seg, params['spade_sc'])
        x_s = jnp.einsum(
            'bhwc,cd->bhwd', x_s.astype(jnp.bfloat16),
            params['conv_sc_w'].reshape(fin, fout).astype(jnp.bfloat16),
            preferred_element_type=jnp.float32) + params['conv_sc_b']
    else:
        x_s = x
    dx = _spade_ref(x, seg, params['spade1'])
    dx = _conv3x3_ref(dx, params['conv1_w'], params['conv1_b'])
    dx = jnp.maximum(_bn_ref(dx, params['bn1_w'], params['bn1_b']), 0.0)
    dx = _spade_ref(dx, seg, params['spade2'])
    dx = _conv3x3_ref(dx, params['conv2_w'], params['conv2_b'])
    dx = _bn_ref(dx, params['bn2_w'], params['bn2_b'])
    return x_s + dx


# ----------------------------- params -----------------------------

def init_params(key, fin, fout, label_nc, nhidden=32):
    fmid = min(fin, fout)
    ks = list(jax.random.split(key, 32))
    ki = iter(ks)

    def conv_p(kh, kw, cin, cout):
        k = next(ki)
        scale = 1.0 / np.sqrt(kh * kw * cin)
        kw_key, kb_key = jax.random.split(k)
        w = jax.random.uniform(kw_key, (kh, kw, cin, cout), jnp.float32,
                               -scale, scale)
        b = jax.random.uniform(kb_key, (cout,), jnp.float32, -scale, scale)
        return w, b

    def spade_p(norm_nc):
        ws, bs = conv_p(3, 3, label_nc, nhidden)
        wg, bg = conv_p(3, 3, nhidden, norm_nc)
        wb, bb = conv_p(3, 3, nhidden, norm_nc)
        return {'w_shared': ws, 'b_shared': bs, 'w_gamma': wg, 'b_gamma': bg,
                'w_beta': wb, 'b_beta': bb}

    params = {}
    params['spade1'] = spade_p(fin)
    params['conv1_w'], params['conv1_b'] = conv_p(3, 3, fin, fmid)
    params['bn1_w'] = 1.0 + 0.1 * jax.random.normal(next(ki), (fmid,), jnp.float32)
    params['bn1_b'] = 0.1 * jax.random.normal(next(ki), (fmid,), jnp.float32)
    params['spade2'] = spade_p(fmid)
    params['conv2_w'], params['conv2_b'] = conv_p(3, 3, fmid, fout)
    params['bn2_w'] = 1.0 + 0.1 * jax.random.normal(next(ki), (fout,), jnp.float32)
    params['bn2_b'] = 0.1 * jax.random.normal(next(ki), (fout,), jnp.float32)
    if fin != fout:
        params['spade_sc'] = spade_p(fin)
        params['conv_sc_w'], params['conv_sc_b'] = conv_p(1, 1, fin, fout)
    return params


# ----------------------------- main -----------------------------

if __name__ == "__main__":
    key = jax.random.PRNGKey(0)
    B, fin, fout, label_nc, H, W = 2, 8, 8, 4, 16, 16  # Generator usage: fin == fout
    kx, ks_, kp = jax.random.split(key, 3)

    x_nchw = jax.random.normal(kx, (B, fin, H, W), jnp.float32)      # PyTorch NCHW
    seg_nchw = jax.random.normal(ks_, (B, label_nc, H, W), jnp.float32)
    params = init_params(kp, fin, fout, label_nc, nhidden=32)

    # NCHW -> NHWC so channels sit on the TPU lane axis
    x = jnp.transpose(x_nchw, (0, 2, 3, 1))
    seg = jnp.transpose(seg_nchw, (0, 2, 3, 1))

    out = jax.block_until_ready(jax.jit(resnet_block)(x, seg, params))
    ref = resnet_block_ref(x, seg, params)
    np.testing.assert_allclose(np.asarray(out), np.asarray(ref),
                               rtol=2e-2, atol=2e-2)
    assert out.shape == (B, H, W, fout)
    assert bool(jnp.all(jnp.isfinite(out)))

    # learned-shortcut configuration (fin != fout) exercises the fused
    # 1x1-conv + bn2 + residual kernel
    params2 = init_params(jax.random.PRNGKey(1), fin, 2 * fout, label_nc,
                          nhidden=32)
    out2 = jax.block_until_ready(jax.jit(resnet_block)(x, seg, params2))
    ref2 = resnet_block_ref(x, seg, params2)
    np.testing.assert_allclose(np.asarray(out2), np.asarray(ref2),
                               rtol=2e-2, atol=2e-2)
    assert out2.shape == (B, H, W, 2 * fout)

    print("KERNEL_OK")
</pallas_src>

<mosaic_0001>
module attributes {stable_mosaic.version = 11 : i64} {
  func.func @_conv3x3_kernel(%arg0: i32, %arg1: i32, %arg2: memref<1x16x16x4xf32, #tpu.memory_space<vmem>>, %arg3: memref<1x1x16x4xf32, #tpu.memory_space<vmem>>, %arg4: memref<1x1x16x4xf32, #tpu.memory_space<vmem>>, %arg5: memref<36x32xbf16, #tpu.memory_space<vmem>>, %arg6: memref<1x32xf32, #tpu.memory_space<vmem>>, %arg7: memref<1x16x16x32xbf16, #tpu.memory_space<vmem>>) attributes {dimension_semantics = [#tpu.dimension_semantics<parallel>, #tpu.dimension_semantics<parallel>], iteration_bounds = array<i64: 2, 1>, scalar_prefetch = 0 : i64, scratch_operands = 0 : i64, tpu.core_type = #tpu.core_type<tc>, window_params = [{transform_indices = @transform_0, window_bounds = array<i64: 1, 16, 16, 4>}, {transform_indices = @transform_1, window_bounds = array<i64: 1, 1, 16, 4>}, {transform_indices = @transform_2, window_bounds = array<i64: 1, 1, 16, 4>}, {pipeline_mode = #tpu.pipeline_mode<synchronous>, transform_indices = @transform_3, window_bounds = array<i64: 36, 32>}, {pipeline_mode = #tpu.pipeline_mode<synchronous>, transform_indices = @transform_4, window_bounds = array<i64: 1, 32>}, {transform_indices = @transform_5, window_bounds = array<i64: 1, 16, 16, 32>}]} {
    %c0 = arith.constant 0 : index
    %c0_0 = arith.constant 0 : index
    %c0_1 = arith.constant 0 : index
    %c0_2 = arith.constant 0 : index
    %0 = vector.load %arg2[%c0, %c0_0, %c0_1, %c0_2] : memref<1x16x16x4xf32, #tpu.memory_space<vmem>>, vector<1x16x16x4xf32>
    %1 = vector.shape_cast %0 : vector<1x16x16x4xf32> to vector<16x16x4xf32>
    %2 = arith.truncf %1 : vector<16x16x4xf32> to vector<16x16x4xbf16>
    %c0_3 = arith.constant 0 : index
    %c0_4 = arith.constant 0 : index
    %c0_5 = arith.constant 0 : index
    %c0_6 = arith.constant 0 : index
    %3 = vector.load %arg3[%c0_3, %c0_4, %c0_5, %c0_6] : memref<1x1x16x4xf32, #tpu.memory_space<vmem>>, vector<1x1x16x4xf32>
    %4 = vector.shape_cast %3 : vector<1x1x16x4xf32> to vector<1x16x4xf32>
    %5 = arith.truncf %4 : vector<1x16x4xf32> to vector<1x16x4xbf16>
    %c0_7 = arith.constant 0 : index
    %c0_8 = arith.constant 0 : index
    %c0_9 = arith.constant 0 : index
    %c0_10 = arith.constant 0 : index
    %6 = vector.load %arg4[%c0_7, %c0_8, %c0_9, %c0_10] : memref<1x1x16x4xf32, #tpu.memory_space<vmem>>, vector<1x1x16x4xf32>
    %7 = vector.shape_cast %6 : vector<1x1x16x4xf32> to vector<1x16x4xf32>
    %8 = arith.truncf %7 : vector<1x16x4xf32> to vector<1x16x4xbf16>
    %c0_i32 = arith.constant 0 : i32
    %9 = arith.cmpi eq, %arg1, %c0_i32 : i32
    %cst = arith.constant 0.000000e+00 : bf16
    %10 = vector.broadcast %cst : bf16 to vector<1x16x4xbf16>
    %11 = arith.select %9, %10, %5 : vector<1x16x4xbf16>
    %c0_i32_11 = arith.constant 0 : i32
    %12 = arith.cmpi eq, %arg1, %c0_i32_11 : i32
    %cst_12 = arith.constant 0.000000e+00 : bf16
    %13 = vector.broadcast %cst_12 : bf16 to vector<1x16x4xbf16>
    %14 = arith.select %12, %13, %8 : vector<1x16x4xbf16>
    %15 = vector.extract_strided_slice %2 {offsets = [0, 0, 0], sizes = [15, 16, 4], strides = [1, 1, 1]} : vector<16x16x4xbf16> to vector<15x16x4xbf16>
    %16 = tpu.concatenate %11, %15 in 0 : vector<1x16x4xbf16>, vector<15x16x4xbf16> -> vector<16x16x4xbf16>
    %17 = vector.extract_strided_slice %2 {offsets = [1, 0, 0], sizes = [15, 16, 4], strides = [1, 1, 1]} : vector<16x16x4xbf16> to vector<15x16x4xbf16>
    %18 = tpu.concatenate %17, %14 in 0 : vector<15x16x4xbf16>, vector<1x16x4xbf16> -> vector<16x16x4xbf16>
    %cst_13 = arith.constant 0.000000e+00 : bf16
    %19 = vector.broadcast %cst_13 : bf16 to vector<16x1x4xbf16>
    %20 = vector.extract_strided_slice %16 {offsets = [0, 0, 0], sizes = [16, 15, 4], strides = [1, 1, 1]} : vector<16x16x4xbf16> to vector<16x15x4xbf16>
    %21 = tpu.concatenate %19, %20 in 1 : vector<16x1x4xbf16>, vector<16x15x4xbf16> -> vector<16x16x4xbf16>
    %22 = vector.extract_strided_slice %16 {offsets = [0, 1, 0], sizes = [16, 15, 4], strides = [1, 1, 1]} : vector<16x16x4xbf16> to vector<16x15x4xbf16>
    %23 = tpu.concatenate %22, %19 in 1 : vector<16x15x4xbf16>, vector<16x1x4xbf16> -> vector<16x16x4xbf16>
    %24 = vector.extract_strided_slice %2 {offsets = [0, 0, 0], sizes = [16, 15, 4], strides = [1, 1, 1]} : vector<16x16x4xbf16> to vector<16x15x4xbf16>
    %25 = tpu.concatenate %19, %24 in 1 : vector<16x1x4xbf16>, vector<16x15x4xbf16> -> vector<16x16x4xbf16>
    %26 = vector.extract_strided_slice %2 {offsets = [0, 1, 0], sizes = [16, 15, 4], strides = [1, 1, 1]} : vector<16x16x4xbf16> to vector<16x15x4xbf16>
    %27 = tpu.concatenate %26, %19 in 1 : vector<16x15x4xbf16>, vector<16x1x4xbf16> -> vector<16x16x4xbf16>
    %28 = vector.extract_strided_slice %18 {offsets = [0, 0, 0], sizes = [16, 15, 4], strides = [1, 1, 1]} : vector<16x16x4xbf16> to vector<16x15x4xbf16>
    %29 = tpu.concatenate %19, %28 in 1 : vector<16x1x4xbf16>, vector<16x15x4xbf16> -> vector<16x16x4xbf16>
    %30 = vector.extract_strided_slice %18 {offsets = [0, 1, 0], sizes = [16, 15, 4], strides = [1, 1, 1]} : vector<16x16x4xbf16> to vector<16x15x4xbf16>
    %31 = tpu.concatenate %30, %19 in 1 : vector<16x15x4xbf16>, vector<16x1x4xbf16> -> vector<16x16x4xbf16>
    %32 = tpu.concatenate %21, %16, %23, %25, %2, %27, %29, %18, %31 in 2 : vector<16x16x4xbf16>, vector<16x16x4xbf16>, vector<16x16x4xbf16>, vector<16x16x4xbf16>, vector<16x16x4xbf16>, vector<16x16x4xbf16>, vector<16x16x4xbf16>, vector<16x16x4xbf16>, vector<16x16x4xbf16> -> vector<16x16x36xbf16>
    %33 = vector.shape_cast %32 : vector<16x16x36xbf16> to vector<256x36xbf16>
    %c0_14 = arith.constant 0 : index
    %c0_15 = arith.constant 0 : index
    %34 = vector.load %arg5[%c0_14, %c0_15] : memref<36x32xbf16, #tpu.memory_space<vmem>>, vector<36x32xbf16>
    %cst_16 = arith.constant dense<0.000000e+00> : vector<256x32xf32>
    %35 = tpu.matmul %33, %34, %cst_16 {dimension_numbers = #tpu.dot_dimension_numbers<[1], [0], [0], [1], [0, 0, 1, 1], [], []>} : vector<256x36xbf16>, vector<36x32xbf16>, vector<256x32xf32> -> vector<256x32xf32>
    %c0_17 = arith.constant 0 : index
    %c0_18 = arith.constant 0 : index
    %36 = vector.load %arg6[%c0_17, %c0_18] : memref<1x32xf32, #tpu.memory_space<vmem>>, vector<1x32xf32>
    %37 = vector.broadcast %36 : vector<1x32xf32> to vector<256x32xf32>
    %38 = arith.addf %35, %37 : vector<256x32xf32>
    %cst_19 = arith.constant 0.000000e+00 : f32
    %39 = vector.broadcast %cst_19 : f32 to vector<256x32xf32>
    %40 = arith.maximumf %38, %39 : vector<256x32xf32>
    %41 = vector.shape_cast %40 : vector<256x32xf32> to vector<16x16x32xf32>
    %42 = arith.truncf %41 : vector<16x16x32xf32> to vector<16x16x32xbf16>
    %c0_20 = arith.constant 0 : index
    %c0_21 = arith.constant 0 : index
    %c0_22 = arith.constant 0 : index
    %c0_23 = arith.constant 0 : index
    %43 = vector.load %arg7[%c0_20, %c0_21, %c0_22, %c0_23] : memref<1x16x16x32xbf16, #tpu.memory_space<vmem>>, vector<1x16x16x32xbf16>
    %44 = vector.shape_cast %43 : vector<1x16x16x32xbf16> to vector<16x16x32xbf16>
    %45 = vector.shape_cast %42 : vector<16x16x32xbf16> to vector<1x16x16x32xbf16>
    tpu.vector_store %arg7[%c0_20, %c0_21, %c0_22, %c0_23], %45 {strides = array<i32>} : memref<1x16x16x32xbf16, #tpu.memory_space<vmem>>, vector<1x16x16x32xbf16>,
    return
  }
  func.func @transform_0(%arg0: i32, %arg1: i32) -> (i32, i32, i32, i32) {
    %c0_i32 = arith.constant 0 : i32
    %c0_i32_0 = arith.constant 0 : i32
    %c0_i32_1 = arith.constant 0 : i32
    return %arg0, %arg1, %c0_i32, %c0_i32_0 : i32, i32, i32, i32
  }
  func.func @transform_1(%arg0: i32, %arg1: i32) -> (i32, i32, i32, i32) {
    %c16_i32 = arith.constant 16 : i32
    %0 = arith.muli %arg1, %c16_i32 : i32
    %c1_i32 = arith.constant 1 : i32
    %1 = arith.subi %0, %c1_i32 : i32
    %c0_i32 = arith.constant 0 : i32
    %2 = arith.maxsi %1, %c0_i32 : i32
    %c0_i32_0 = arith.constant 0 : i32
    %c0_i32_1 = arith.constant 0 : i32
    %c0_i32_2 = arith.constant 0 : i32
    return %arg0, %2, %c0_i32_0, %c0_i32_1 : i32, i32, i32, i32
  }
  func.func @transform_2(%arg0: i32, %arg1: i32) -> (i32, i32, i32, i32) {
    %c16_i32 = arith.constant 16 : i32
    %0 = arith.muli %arg1, %c16_i32 : i32
    %c16_i32_0 = arith.constant 16 : i32
    %1 = arith.addi %0, %c16_i32_0 : i32
    %c15_i32 = arith.constant 15 : i32
    %2 = arith.minsi %1, %c15_i32 : i32
    %c0_i32 = arith.constant 0 : i32
    %c0_i32_1 = arith.constant 0 : i32
    %c0_i32_2 = arith.constant 0 : i32
    return %arg0, %2, %c0_i32, %c0_i32_1 : i32, i32, i32, i32
  }
  func.func @transform_3(%arg0: i32, %arg1: i32) -> (i32, i32) {
    %c0_i32 = arith.constant 0 : i32
    %c0_i32_0 = arith.constant 0 : i32
    %c0_i32_1 = arith.constant 0 : i32
    return %c0_i32, %c0_i32_0 : i32, i32
  }
  func.func @transform_4(%arg0: i32, %arg1: i32) -> (i32, i32) {
    %c0_i32 = arith.constant 0 : i32
    %c0_i32_0 = arith.constant 0 : i32
    %c0_i32_1 = arith.constant 0 : i32
    return %c0_i32, %c0_i32_0 : i32, i32
  }
  func.func @transform_5(%arg0: i32, %arg1: i32) -> (i32, i32, i32, i32) {
    %c0_i32 = arith.constant 0 : i32
    %c0_i32_0 = arith.constant 0 : i32
    %c0_i32_1 = arith.constant 0 : i32
    return %arg0, %arg1, %c0_i32, %c0_i32_0 : i32, i32, i32, i32
  }
}

module attributes {stable_mosaic.version = 11 : i64} {
  func.func @_stats_kernel(%arg0: i32, %arg1: memref<512x8xf32, #tpu.memory_space<vmem>>, %arg2: memref<1x8xf32, #tpu.memory_space<vmem>>, %arg3: memref<1x8xf32, #tpu.memory_space<vmem>>, %arg4: memref<1x1x8xf32, #tpu.memory_space<vmem>>, %arg5: memref<1x1x8xf32, #tpu.memory_space<vmem>>) attributes {dimension_semantics = [#tpu.dimension_semantics<parallel>], iteration_bounds = array<i64: 1>, scalar_prefetch = 0 : i64, scratch_operands = 0 : i64, tpu.core_type = #tpu.core_type<tc>, window_params = [{transform_indices = @transform_0, window_bounds = array<i64: 512, 8>}, {pipeline_mode = #tpu.pipeline_mode<synchronous>, transform_indices = @transform_1, window_bounds = array<i64: 1, 8>}, {pipeline_mode = #tpu.pipeline_mode<synchronous>, transform_indices = @transform_2, window_bounds = array<i64: 1, 8>}, {transform_indices = @transform_3, window_bounds = array<i64: 1, 1, 8>}, {transform_indices = @transform_4, window_bounds = array<i64: 1, 1, 8>}]} {
    %c0 = arith.constant 0 : index
    %c0_0 = arith.constant 0 : index
    %0 = vector.load %arg1[%c0, %c0_0] : memref<512x8xf32, #tpu.memory_space<vmem>>, vector<512x8xf32>
    %c0_1 = arith.constant 0 : index
    %c0_2 = arith.constant 0 : index
    %1 = vector.load %arg2[%c0_1, %c0_2] : memref<1x8xf32, #tpu.memory_space<vmem>>, vector<1x8xf32>
    %2 = vector.broadcast %1 : vector<1x8xf32> to vector<512x8xf32>
    %3 = arith.mulf %0, %2 : vector<512x8xf32>
    %c0_3 = arith.constant 0 : index
    %c0_4 = arith.constant 0 : index
    %4 = vector.load %arg3[%c0_3, %c0_4] : memref<1x8xf32, #tpu.memory_space<vmem>>, vector<1x8xf32>
    %5 = vector.broadcast %4 : vector<1x8xf32> to vector<512x8xf32>
    %6 = arith.addf %3, %5 : vector<512x8xf32>
    %cst = arith.constant dense<0.000000e+00> : vector<8xf32>
    %7 = vector.multi_reduction <add>, %6, %cst [0] : vector<512x8xf32> to vector<8xf32>
    %8 = vector.shape_cast %7 : vector<8xf32> to vector<1x1x8xf32>
    %c0_5 = arith.constant 0 : index
    %c0_6 = arith.constant 0 : index
    %c0_7 = arith.constant 0 : index
    %9 = vector.load %arg4[%c0_5, %c0_6, %c0_7] : memref<1x1x8xf32, #tpu.memory_space<vmem>>, vector<1x1x8xf32>
    tpu.vector_store %arg4[%c0_5, %c0_6, %c0_7], %8 {strides = array<i32>} : memref<1x1x8xf32, #tpu.memory_space<vmem>>, vector<1x1x8xf32>,
    %10 = arith.mulf %6, %6 : vector<512x8xf32>
    %cst_8 = arith.constant dense<0.000000e+00> : vector<8xf32>
    %11 = vector.multi_reduction <add>, %10, %cst_8 [0] : vector<512x8xf32> to vector<8xf32>
    %12 = vector.shape_cast %11 : vector<8xf32> to vector<1x1x8xf32>
    %c0_9 = arith.constant 0 : index
    %c0_10 = arith.constant 0 : index
    %c0_11 = arith.constant 0 : index
    %13 = vector.load %arg5[%c0_9, %c0_10, %c0_11] : memref<1x1x8xf32, #tpu.memory_space<vmem>>, vector<1x1x8xf32>
    tpu.vector_store %arg5[%c0_9, %c0_10, %c0_11], %12 {strides = array<i32>} : memref<1x1x8xf32, #tpu.memory_space<vmem>>, vector<1x1x8xf32>,
    return
  }
  func.func @transform_0(%arg0: i32) -> (i32, i32) {
    %c0_i32 = arith.constant 0 : i32
    %c0_i32_0 = arith.constant 0 : i32
    return %arg0, %c0_i32 : i32, i32
  }
  func.func @transform_1(%arg0: i32) -> (i32, i32) {
    %c0_i32 = arith.constant 0 : i32
    %c0_i32_0 = arith.constant 0 : i32
    %c0_i32_1 = arith.constant 0 : i32
    return %c0_i32, %c0_i32_0 : i32, i32
  }
  func.func @transform_2(%arg0: i32) -> (i32, i32) {
    %c0_i32 = arith.constant 0 : i32
    %c0_i32_0 = arith.constant 0 : i32
    %c0_i32_1 = arith.constant 0 : i32
    return %c0_i32, %c0_i32_0 : i32, i32
  }
  func.func @transform_3(%arg0: i32) -> (i32, i32, i32) {
    %c0_i32 = arith.constant 0 : i32
    %c0_i32_0 = arith.constant 0 : i32
    %c0_i32_1 = arith.constant 0 : i32
    return %arg0, %c0_i32, %c0_i32_0 : i32, i32, i32
  }
  func.func @transform_4(%arg0: i32) -> (i32, i32, i32) {
    %c0_i32 = arith.constant 0 : i32
    %c0_i32_0 = arith.constant 0 : i32
    %c0_i32_1 = arith.constant 0 : i32
    return %arg0, %c0_i32, %c0_i32_0 : i32, i32, i32
  }
}

module attributes {stable_mosaic.version = 11 : i64} {
  func.func @_spade_mod_kernel(%arg0: i32, %arg1: i32, %arg2: memref<1x16x16x32xbf16, #tpu.memory_space<vmem>>, %arg3: memref<1x1x16x32xbf16, #tpu.memory_space<vmem>>, %arg4: memref<1x1x16x32xbf16, #tpu.memory_space<vmem>>, %arg5: memref<288x16xbf16, #tpu.memory_space<vmem>>, %arg6: memref<1x16xf32, #tpu.memory_space<vmem>>, %arg7: memref<1x16x16x8xf32, #tpu.memory_space<vmem>>, %arg8: memref<1x8xf32, #tpu.memory_space<vmem>>, %arg9: memref<1x8xf32, #tpu.memory_space<vmem>>, %arg10: memref<1x8xf32, #tpu.memory_space<vmem>>, %arg11: memref<1x8xf32, #tpu.memory_space<vmem>>, %arg12: memref<1x16x16x8xbf16, #tpu.memory_space<vmem>>) attributes {dimension_semantics = [#tpu.dimension_semantics<parallel>, #tpu.dimension_semantics<parallel>], iteration_bounds = array<i64: 2, 1>, scalar_prefetch = 0 : i64, scratch_operands = 0 : i64, tpu.core_type = #tpu.core_type<tc>, window_params = [{transform_indices = @transform_0, window_bounds = array<i64: 1, 16, 16, 32>}, {transform_indices = @transform_1, window_bounds = array<i64: 1, 1, 16, 32>}, {transform_indices = @transform_2, window_bounds = array<i64: 1, 1, 16, 32>}, {pipeline_mode = #tpu.pipeline_mode<synchronous>, transform_indices = @transform_3, window_bounds = array<i64: 288, 16>}, {pipeline_mode = #tpu.pipeline_mode<synchronous>, transform_indices = @transform_4, window_bounds = array<i64: 1, 16>}, {transform_indices = @transform_5, window_bounds = array<i64: 1, 16, 16, 8>}, {pipeline_mode = #tpu.pipeline_mode<synchronous>, transform_indices = @transform_6, window_bounds = array<i64: 1, 8>}, {pipeline_mode = #tpu.pipeline_mode<synchronous>, transform_indices = @transform_7, window_bounds = array<i64: 1, 8>}, {pipeline_mode = #tpu.pipeline_mode<synchronous>, transform_indices = @transform_8, window_bounds = array<i64: 1, 8>}, {pipeline_mode = #tpu.pipeline_mode<synchronous>, transform_indices = @transform_9, window_bounds = array<i64: 1, 8>}, {transform_indices = @transform_10, window_bounds = array<i64: 1, 16, 16, 8>}]} {
    %c0 = arith.constant 0 : index
    %c0_0 = arith.constant 0 : index
    %c0_1 = arith.constant 0 : index
    %c0_2 = arith.constant 0 : index
    %0 = vector.load %arg2[%c0, %c0_0, %c0_1, %c0_2] : memref<1x16x16x32xbf16, #tpu.memory_space<vmem>>, vector<1x16x16x32xbf16>
    %1 = vector.shape_cast %0 : vector<1x16x16x32xbf16> to vector<16x16x32xbf16>
    %c0_3 = arith.constant 0 : index
    %c0_4 = arith.constant 0 : index
    %c0_5 = arith.constant 0 : index
    %c0_6 = arith.constant 0 : index
    %2 = vector.load %arg3[%c0_3, %c0_4, %c0_5, %c0_6] : memref<1x1x16x32xbf16, #tpu.memory_space<vmem>>, vector<1x1x16x32xbf16>
    %3 = vector.shape_cast %2 : vector<1x1x16x32xbf16> to vector<1x16x32xbf16>
    %c0_7 = arith.constant 0 : index
    %c0_8 = arith.constant 0 : index
    %c0_9 = arith.constant 0 : index
    %c0_10 = arith.constant 0 : index
    %4 = vector.load %arg4[%c0_7, %c0_8, %c0_9, %c0_10] : memref<1x1x16x32xbf16, #tpu.memory_space<vmem>>, vector<1x1x16x32xbf16>
    %5 = vector.shape_cast %4 : vector<1x1x16x32xbf16> to vector<1x16x32xbf16>
    %c0_i32 = arith.constant 0 : i32
    %6 = arith.cmpi eq, %arg1, %c0_i32 : i32
    %cst = arith.constant 0.000000e+00 : bf16
    %7 = vector.broadcast %cst : bf16 to vector<1x16x32xbf16>
    %8 = arith.select %6, %7, %3 : vector<1x16x32xbf16>
    %c0_i32_11 = arith.constant 0 : i32
    %9 = arith.cmpi eq, %arg1, %c0_i32_11 : i32
    %cst_12 = arith.constant 0.000000e+00 : bf16
    %10 = vector.broadcast %cst_12 : bf16 to vector<1x16x32xbf16>
    %11 = arith.select %9, %10, %5 : vector<1x16x32xbf16>
    %12 = vector.extract_strided_slice %1 {offsets = [0, 0, 0], sizes = [15, 16, 32], strides = [1, 1, 1]} : vector<16x16x32xbf16> to vector<15x16x32xbf16>
    %13 = tpu.concatenate %8, %12 in 0 : vector<1x16x32xbf16>, vector<15x16x32xbf16> -> vector<16x16x32xbf16>
    %14 = vector.extract_strided_slice %1 {offsets = [1, 0, 0], sizes = [15, 16, 32], strides = [1, 1, 1]} : vector<16x16x32xbf16> to vector<15x16x32xbf16>
    %15 = tpu.concatenate %14, %11 in 0 : vector<15x16x32xbf16>, vector<1x16x32xbf16> -> vector<16x16x32xbf16>
    %cst_13 = arith.constant 0.000000e+00 : bf16
    %16 = vector.broadcast %cst_13 : bf16 to vector<16x1x32xbf16>
    %17 = vector.extract_strided_slice %13 {offsets = [0, 0, 0], sizes = [16, 15, 32], strides = [1, 1, 1]} : vector<16x16x32xbf16> to vector<16x15x32xbf16>
    %18 = tpu.concatenate %16, %17 in 1 : vector<16x1x32xbf16>, vector<16x15x32xbf16> -> vector<16x16x32xbf16>
    %19 = vector.extract_strided_slice %13 {offsets = [0, 1, 0], sizes = [16, 15, 32], strides = [1, 1, 1]} : vector<16x16x32xbf16> to vector<16x15x32xbf16>
    %20 = tpu.concatenate %19, %16 in 1 : vector<16x15x32xbf16>, vector<16x1x32xbf16> -> vector<16x16x32xbf16>
    %21 = vector.extract_strided_slice %1 {offsets = [0, 0, 0], sizes = [16, 15, 32], strides = [1, 1, 1]} : vector<16x16x32xbf16> to vector<16x15x32xbf16>
    %22 = tpu.concatenate %16, %21 in 1 : vector<16x1x32xbf16>, vector<16x15x32xbf16> -> vector<16x16x32xbf16>
    %23 = vector.extract_strided_slice %1 {offsets = [0, 1, 0], sizes = [16, 15, 32], strides = [1, 1, 1]} : vector<16x16x32xbf16> to vector<16x15x32xbf16>
    %24 = tpu.concatenate %23, %16 in 1 : vector<16x15x32xbf16>, vector<16x1x32xbf16> -> vector<16x16x32xbf16>
    %25 = vector.extract_strided_slice %15 {offsets = [0, 0, 0], sizes = [16, 15, 32], strides = [1, 1, 1]} : vector<16x16x32xbf16> to vector<16x15x32xbf16>
    %26 = tpu.concatenate %16, %25 in 1 : vector<16x1x32xbf16>, vector<16x15x32xbf16> -> vector<16x16x32xbf16>
    %27 = vector.extract_strided_slice %15 {offsets = [0, 1, 0], sizes = [16, 15, 32], strides = [1, 1, 1]} : vector<16x16x32xbf16> to vector<16x15x32xbf16>
    %28 = tpu.concatenate %27, %16 in 1 : vector<16x15x32xbf16>, vector<16x1x32xbf16> -> vector<16x16x32xbf16>
    %29 = tpu.concatenate %18, %13, %20, %22, %1, %24, %26, %15, %28 in 2 : vector<16x16x32xbf16>, vector<16x16x32xbf16>, vector<16x16x32xbf16>, vector<16x16x32xbf16>, vector<16x16x32xbf16>, vector<16x16x32xbf16>, vector<16x16x32xbf16>, vector<16x16x32xbf16>, vector<16x16x32xbf16> -> vector<16x16x288xbf16>
    %30 = vector.shape_cast %29 : vector<16x16x288xbf16> to vector<256x288xbf16>
    %c0_14 = arith.constant 0 : index
    %c0_15 = arith.constant 0 : index
    %31 = vector.load %arg5[%c0_14, %c0_15] : memref<288x16xbf16, #tpu.memory_space<vmem>>, vector<288x16xbf16>
    %cst_16 = arith.constant dense<0.000000e+00> : vector<256x16xf32>
    %32 = tpu.matmul %30, %31, %cst_16 {dimension_numbers = #tpu.dot_dimension_numbers<[1], [0], [0], [1], [0, 0, 1, 1], [], []>} : vector<256x288xbf16>, vector<288x16xbf16>, vector<256x16xf32> -> vector<256x16xf32>
    %c0_17 = arith.constant 0 : index
    %c0_18 = arith.constant 0 : index
    %33 = vector.load %arg6[%c0_17, %c0_18] : memref<1x16xf32, #tpu.memory_space<vmem>>, vector<1x16xf32>
    %34 = vector.broadcast %33 : vector<1x16xf32> to vector<256x16xf32>
    %35 = arith.addf %32, %34 : vector<256x16xf32>
    %36 = vector.shape_cast %35 : vector<256x16xf32> to vector<16x16x16xf32>
    %37 = vector.extract_strided_slice %36 {offsets = [0, 0, 0], sizes = [16, 16, 8], strides = [1, 1, 1]} : vector<16x16x16xf32> to vector<16x16x8xf32>
    %38 = vector.extract_strided_slice %36 {offsets = [0, 0, 8], sizes = [16, 16, 8], strides = [1, 1, 1]} : vector<16x16x16xf32> to vector<16x16x8xf32>
    %c0_19 = arith.constant 0 : index
    %c0_20 = arith.constant 0 : index
    %c0_21 = arith.constant 0 : index
    %c0_22 = arith.constant 0 : index
    %39 = vector.load %arg7[%c0_19, %c0_20, %c0_21, %c0_22] : memref<1x16x16x8xf32, #tpu.memory_space<vmem>>, vector<1x16x16x8xf32>
    %40 = vector.shape_cast %39 : vector<1x16x16x8xf32> to vector<16x16x8xf32>
    %c0_23 = arith.constant 0 : index
    %c0_24 = arith.constant 0 : index
    %41 = vector.load %arg8[%c0_23, %c0_24] : memref<1x8xf32, #tpu.memory_space<vmem>>, vector<1x8xf32>
    %42 = vector.shape_cast %41 : vector<1x8xf32> to vector<1x1x8xf32>
    %43 = vector.broadcast %42 : vector<1x1x8xf32> to vector<16x16x8xf32>
    %44 = arith.mulf %40, %43 : vector<16x16x8xf32>
    %c0_25 = arith.constant 0 : index
    %c0_26 = arith.constant 0 : index
    %45 = vector.load %arg9[%c0_25, %c0_26] : memref<1x8xf32, #tpu.memory_space<vmem>>, vector<1x8xf32>
    %46 = vector.shape_cast %45 : vector<1x8xf32> to vector<1x1x8xf32>
    %47 = vector.broadcast %46 : vector<1x1x8xf32> to vector<16x16x8xf32>
    %48 = arith.addf %44, %47 : vector<16x16x8xf32>
    %c0_27 = arith.constant 0 : index
    %c0_28 = arith.constant 0 : index
    %49 = vector.load %arg10[%c0_27, %c0_28] : memref<1x8xf32, #tpu.memory_space<vmem>>, vector<1x8xf32>
    %50 = vector.shape_cast %49 : vector<1x8xf32> to vector<1x1x8xf32>
    %51 = vector.broadcast %50 : vector<1x1x8xf32> to vector<16x16x8xf32>
    %52 = arith.mulf %48, %51 : vector<16x16x8xf32>
    %c0_29 = arith.constant 0 : index
    %c0_30 = arith.constant 0 : index
    %53 = vector.load %arg11[%c0_29, %c0_30] : memref<1x8xf32, #tpu.memory_space<vmem>>, vector<1x8xf32>
    %54 = vector.shape_cast %53 : vector<1x8xf32> to vector<1x1x8xf32>
    %55 = vector.broadcast %54 : vector<1x1x8xf32> to vector<16x16x8xf32>
    %56 = arith.addf %52, %55 : vector<16x16x8xf32>
    %cst_31 = arith.constant 1.000000e+00 : f32
    %57 = vector.broadcast %cst_31 : f32 to vector<16x16x8xf32>
    %58 = arith.addf %57, %37 : vector<16x16x8xf32>
    %59 = arith.mulf %56, %58 : vector<16x16x8xf32>
    %60 = arith.addf %59, %38 : vector<16x16x8xf32>
    %61 = arith.truncf %60 : vector<16x16x8xf32> to vector<16x16x8xbf16>
    %c0_32 = arith.constant 0 : index
    %c0_33 = arith.constant 0 : index
    %c0_34 = arith.constant 0 : index
    %c0_35 = arith.constant 0 : index
    %62 = vector.load %arg12[%c0_32, %c0_33, %c0_34, %c0_35] : memref<1x16x16x8xbf16, #tpu.memory_space<vmem>>, vector<1x16x16x8xbf16>
    %63 = vector.shape_cast %62 : vector<1x16x16x8xbf16> to vector<16x16x8xbf16>
    %64 = vector.shape_cast %61 : vector<16x16x8xbf16> to vector<1x16x16x8xbf16>
    tpu.vector_store %arg12[%c0_32, %c0_33, %c0_34, %c0_35], %64 {strides = array<i32>} : memref<1x16x16x8xbf16, #tpu.memory_space<vmem>>, vector<1x16x16x8xbf16>,
    return
  }
  func.func @transform_0(%arg0: i32, %arg1: i32) -> (i32, i32, i32, i32) {
    %c0_i32 = arith.constant 0 : i32
    %c0_i32_0 = arith.constant 0 : i32
    %c0_i32_1 = arith.constant 0 : i32
    return %arg0, %arg1, %c0_i32, %c0_i32_0 : i32, i32, i32, i32
  }
  func.func @transform_1(%arg0: i32, %arg1: i32) -> (i32, i32, i32, i32) {
    %c16_i32 = arith.constant 16 : i32
    %0 = arith.muli %arg1, %c16_i32 : i32
    %c1_i32 = arith.constant 1 : i32
    %1 = arith.subi %0, %c1_i32 : i32
    %c0_i32 = arith.constant 0 : i32
    %2 = arith.maxsi %1, %c0_i32 : i32
    %c0_i32_0 = arith.constant 0 : i32
    %c0_i32_1 = arith.constant 0 : i32
    %c0_i32_2 = arith.constant 0 : i32
    return %arg0, %2, %c0_i32_0, %c0_i32_1 : i32, i32, i32, i32
  }
  func.func @transform_2(%arg0: i32, %arg1: i32) -> (i32, i32, i32, i32) {
    %c16_i32 = arith.constant 16 : i32
    %0 = arith.muli %arg1, %c16_i32 : i32
    %c16_i32_0 = arith.constant 16 : i32
    %1 = arith.addi %0, %c16_i32_0 : i32
    %c15_i32 = arith.constant 15 : i32
    %2 = arith.minsi %1, %c15_i32 : i32
    %c0_i32 = arith.constant 0 : i32
    %c0_i32_1 = arith.constant 0 : i32
    %c0_i32_2 = arith.constant 0 : i32
    return %arg0, %2, %c0_i32, %c0_i32_1 : i32, i32, i32, i32
  }
  func.func @transform_3(%arg0: i32, %arg1: i32) -> (i32, i32) {
    %c0_i32 = arith.constant 0 : i32
    %c0_i32_0 = arith.constant 0 : i32
    %c0_i32_1 = arith.constant 0 : i32
    return %c0_i32, %c0_i32_0 : i32, i32
  }
  func.func @transform_4(%arg0: i32, %arg1: i32) -> (i32, i32) {
    %c0_i32 = arith.constant 0 : i32
    %c0_i32_0 = arith.constant 0 : i32
    %c0_i32_1 = arith.constant 0 : i32
    return %c0_i32, %c0_i32_0 : i32, i32
  }
  func.func @transform_5(%arg0: i32, %arg1: i32) -> (i32, i32, i32, i32) {
    %c0_i32 = arith.constant 0 : i32
    %c0_i32_0 = arith.constant 0 : i32
    %c0_i32_1 = arith.constant 0 : i32
    return %arg0, %arg1, %c0_i32, %c0_i32_0 : i32, i32, i32, i32
  }
  func.func @transform_6(%arg0: i32, %arg1: i32) -> (i32, i32) {
    %c0_i32 = arith.constant 0 : i32
    %c0_i32_0 = arith.constant 0 : i32
    %c0_i32_1 = arith.constant 0 : i32
    return %c0_i32, %c0_i32_0 : i32, i32
  }
  func.func @transform_7(%arg0: i32, %arg1: i32) -> (i32, i32) {
    %c0_i32 = arith.constant 0 : i32
    %c0_i32_0 = arith.constant 0 : i32
    %c0_i32_1 = arith.constant 0 : i32
    return %c0_i32, %c0_i32_0 : i32, i32
  }
  func.func @transform_8(%arg0: i32, %arg1: i32) -> (i32, i32) {
    %c0_i32 = arith.constant 0 : i32
    %c0_i32_0 = arith.constant 0 : i32
    %c0_i32_1 = arith.constant 0 : i32
    return %c0_i32, %c0_i32_0 : i32, i32
  }
  func.func @transform_9(%arg0: i32, %arg1: i32) -> (i32, i32) {
    %c0_i32 = arith.constant 0 : i32
    %c0_i32_0 = arith.constant 0 : i32
    %c0_i32_1 = arith.constant 0 : i32
    return %c0_i32, %c0_i32_0 : i32, i32
  }
  func.func @transform_10(%arg0: i32, %arg1: i32) -> (i32, i32, i32, i32) {
    %c0_i32 = arith.constant 0 : i32
    %c0_i32_0 = arith.constant 0 : i32
    %c0_i32_1 = arith.constant 0 : i32
    return %arg0, %arg1, %c0_i32, %c0_i32_0 : i32, i32, i32, i32
  }
}

module attributes {stable_mosaic.version = 11 : i64} {
  func.func @_conv3x3_kernel(%arg0: i32, %arg1: i32, %arg2: memref<1x16x16x8xbf16, #tpu.memory_space<vmem>>, %arg3: memref<1x1x16x8xbf16, #tpu.memory_space<vmem>>, %arg4: memref<1x1x16x8xbf16, #tpu.memory_space<vmem>>, %arg5: memref<72x8xbf16, #tpu.memory_space<vmem>>, %arg6: memref<1x8xf32, #tpu.memory_space<vmem>>, %arg7: memref<1x16x16x8xf32, #tpu.memory_space<vmem>>, %arg8: memref<1x1x8xf32, #tpu.memory_space<vmem>>, %arg9: memref<1x1x8xf32, #tpu.memory_space<vmem>>) attributes {dimension_semantics = [#tpu.dimension_semantics<parallel>, #tpu.dimension_semantics<parallel>], iteration_bounds = array<i64: 2, 1>, scalar_prefetch = 0 : i64, scratch_operands = 0 : i64, tpu.core_type = #tpu.core_type<tc>, window_params = [{transform_indices = @transform_0, window_bounds = array<i64: 1, 16, 16, 8>}, {transform_indices = @transform_1, window_bounds = array<i64: 1, 1, 16, 8>}, {transform_indices = @transform_2, window_bounds = array<i64: 1, 1, 16, 8>}, {pipeline_mode = #tpu.pipeline_mode<synchronous>, transform_indices = @transform_3, window_bounds = array<i64: 72, 8>}, {pipeline_mode = #tpu.pipeline_mode<synchronous>, transform_indices = @transform_4, window_bounds = array<i64: 1, 8>}, {transform_indices = @transform_5, window_bounds = array<i64: 1, 16, 16, 8>}, {transform_indices = @transform_6, window_bounds = array<i64: 1, 1, 8>}, {transform_indices = @transform_7, window_bounds = array<i64: 1, 1, 8>}]} {
    %c0 = arith.constant 0 : index
    %c0_0 = arith.constant 0 : index
    %c0_1 = arith.constant 0 : index
    %c0_2 = arith.constant 0 : index
    %0 = vector.load %arg2[%c0, %c0_0, %c0_1, %c0_2] : memref<1x16x16x8xbf16, #tpu.memory_space<vmem>>, vector<1x16x16x8xbf16>
    %1 = vector.shape_cast %0 : vector<1x16x16x8xbf16> to vector<16x16x8xbf16>
    %c0_3 = arith.constant 0 : index
    %c0_4 = arith.constant 0 : index
    %c0_5 = arith.constant 0 : index
    %c0_6 = arith.constant 0 : index
    %2 = vector.load %arg3[%c0_3, %c0_4, %c0_5, %c0_6] : memref<1x1x16x8xbf16, #tpu.memory_space<vmem>>, vector<1x1x16x8xbf16>
    %3 = vector.shape_cast %2 : vector<1x1x16x8xbf16> to vector<1x16x8xbf16>
    %c0_7 = arith.constant 0 : index
    %c0_8 = arith.constant 0 : index
    %c0_9 = arith.constant 0 : index
    %c0_10 = arith.constant 0 : index
    %4 = vector.load %arg4[%c0_7, %c0_8, %c0_9, %c0_10] : memref<1x1x16x8xbf16, #tpu.memory_space<vmem>>, vector<1x1x16x8xbf16>
    %5 = vector.shape_cast %4 : vector<1x1x16x8xbf16> to vector<1x16x8xbf16>
    %c0_i32 = arith.constant 0 : i32
    %6 = arith.cmpi eq, %arg1, %c0_i32 : i32
    %cst = arith.constant 0.000000e+00 : bf16
    %7 = vector.broadcast %cst : bf16 to vector<1x16x8xbf16>
    %8 = arith.select %6, %7, %3 : vector<1x16x8xbf16>
    %c0_i32_11 = arith.constant 0 : i32
    %9 = arith.cmpi eq, %arg1, %c0_i32_11 : i32
    %cst_12 = arith.constant 0.000000e+00 : bf16
    %10 = vector.broadcast %cst_12 : bf16 to vector<1x16x8xbf16>
    %11 = arith.select %9, %10, %5 : vector<1x16x8xbf16>
    %12 = vector.extract_strided_slice %1 {offsets = [0, 0, 0], sizes = [15, 16, 8], strides = [1, 1, 1]} : vector<16x16x8xbf16> to vector<15x16x8xbf16>
    %13 = tpu.concatenate %8, %12 in 0 : vector<1x16x8xbf16>, vector<15x16x8xbf16> -> vector<16x16x8xbf16>
    %14 = vector.extract_strided_slice %1 {offsets = [1, 0, 0], sizes = [15, 16, 8], strides = [1, 1, 1]} : vector<16x16x8xbf16> to vector<15x16x8xbf16>
    %15 = tpu.concatenate %14, %11 in 0 : vector<15x16x8xbf16>, vector<1x16x8xbf16> -> vector<16x16x8xbf16>
    %cst_13 = arith.constant 0.000000e+00 : bf16
    %16 = vector.broadcast %cst_13 : bf16 to vector<16x1x8xbf16>
    %17 = vector.extract_strided_slice %13 {offsets = [0, 0, 0], sizes = [16, 15, 8], strides = [1, 1, 1]} : vector<16x16x8xbf16> to vector<16x15x8xbf16>
    %18 = tpu.concatenate %16, %17 in 1 : vector<16x1x8xbf16>, vector<16x15x8xbf16> -> vector<16x16x8xbf16>
    %19 = vector.extract_strided_slice %13 {offsets = [0, 1, 0], sizes = [16, 15, 8], strides = [1, 1, 1]} : vector<16x16x8xbf16> to vector<16x15x8xbf16>
    %20 = tpu.concatenate %19, %16 in 1 : vector<16x15x8xbf16>, vector<16x1x8xbf16> -> vector<16x16x8xbf16>
    %21 = vector.extract_strided_slice %1 {offsets = [0, 0, 0], sizes = [16, 15, 8], strides = [1, 1, 1]} : vector<16x16x8xbf16> to vector<16x15x8xbf16>
    %22 = tpu.concatenate %16, %21 in 1 : vector<16x1x8xbf16>, vector<16x15x8xbf16> -> vector<16x16x8xbf16>
    %23 = vector.extract_strided_slice %1 {offsets = [0, 1, 0], sizes = [16, 15, 8], strides = [1, 1, 1]} : vector<16x16x8xbf16> to vector<16x15x8xbf16>
    %24 = tpu.concatenate %23, %16 in 1 : vector<16x15x8xbf16>, vector<16x1x8xbf16> -> vector<16x16x8xbf16>
    %25 = vector.extract_strided_slice %15 {offsets = [0, 0, 0], sizes = [16, 15, 8], strides = [1, 1, 1]} : vector<16x16x8xbf16> to vector<16x15x8xbf16>
    %26 = tpu.concatenate %16, %25 in 1 : vector<16x1x8xbf16>, vector<16x15x8xbf16> -> vector<16x16x8xbf16>
    %27 = vector.extract_strided_slice %15 {offsets = [0, 1, 0], sizes = [16, 15, 8], strides = [1, 1, 1]} : vector<16x16x8xbf16> to vector<16x15x8xbf16>
    %28 = tpu.concatenate %27, %16 in 1 : vector<16x15x8xbf16>, vector<16x1x8xbf16> -> vector<16x16x8xbf16>
    %29 = tpu.concatenate %18, %13, %20, %22, %1, %24, %26, %15, %28 in 2 : vector<16x16x8xbf16>, vector<16x16x8xbf16>, vector<16x16x8xbf16>, vector<16x16x8xbf16>, vector<16x16x8xbf16>, vector<16x16x8xbf16>, vector<16x16x8xbf16>, vector<16x16x8xbf16>, vector<16x16x8xbf16> -> vector<16x16x72xbf16>
    %30 = vector.shape_cast %29 : vector<16x16x72xbf16> to vector<256x72xbf16>
    %c0_14 = arith.constant 0 : index
    %c0_15 = arith.constant 0 : index
    %31 = vector.load %arg5[%c0_14, %c0_15] : memref<72x8xbf16, #tpu.memory_space<vmem>>, vector<72x8xbf16>
    %cst_16 = arith.constant dense<0.000000e+00> : vector<256x8xf32>
    %32 = tpu.matmul %30, %31, %cst_16 {dimension_numbers = #tpu.dot_dimension_numbers<[1], [0], [0], [1], [0, 0, 1, 1], [], []>} : vector<256x72xbf16>, vector<72x8xbf16>, vector<256x8xf32> -> vector<256x8xf32>
    %c0_17 = arith.constant 0 : index
    %c0_18 = arith.constant 0 : index
    %33 = vector.load %arg6[%c0_17, %c0_18] : memref<1x8xf32, #tpu.memory_space<vmem>>, vector<1x8xf32>
    %34 = vector.broadcast %33 : vector<1x8xf32> to vector<256x8xf32>
    %35 = arith.addf %32, %34 : vector<256x8xf32>
    %36 = vector.shape_cast %35 : vector<256x8xf32> to vector<16x16x8xf32>
    %c0_19 = arith.constant 0 : index
    %c0_20 = arith.constant 0 : index
    %c0_21 = arith.constant 0 : index
    %c0_22 = arith.constant 0 : index
    %37 = vector.load %arg7[%c0_19, %c0_20, %c0_21, %c0_22] : memref<1x16x16x8xf32, #tpu.memory_space<vmem>>, vector<1x16x16x8xf32>
    %38 = vector.shape_cast %37 : vector<1x16x16x8xf32> to vector<16x16x8xf32>
    %39 = vector.shape_cast %36 : vector<16x16x8xf32> to vector<1x16x16x8xf32>
    tpu.vector_store %arg7[%c0_19, %c0_20, %c0_21, %c0_22], %39 {strides = array<i32>} : memref<1x16x16x8xf32, #tpu.memory_space<vmem>>, vector<1x16x16x8xf32>,
    %cst_23 = arith.constant dense<0.000000e+00> : vector<8xf32>
    %40 = vector.multi_reduction <add>, %35, %cst_23 [0] : vector<256x8xf32> to vector<8xf32>
    %41 = vector.shape_cast %40 : vector<8xf32> to vector<1x1x8xf32>
    %c0_24 = arith.constant 0 : index
    %c0_25 = arith.constant 0 : index
    %c0_26 = arith.constant 0 : index
    %42 = vector.load %arg8[%c0_24, %c0_25, %c0_26] : memref<1x1x8xf32, #tpu.memory_space<vmem>>, vector<1x1x8xf32>
    tpu.vector_store %arg8[%c0_24, %c0_25, %c0_26], %41 {strides = array<i32>} : memref<1x1x8xf32, #tpu.memory_space<vmem>>, vector<1x1x8xf32>,
    %43 = arith.mulf %35, %35 : vector<256x8xf32>
    %cst_27 = arith.constant dense<0.000000e+00> : vector<8xf32>
    %44 = vector.multi_reduction <add>, %43, %cst_27 [0] : vector<256x8xf32> to vector<8xf32>
    %45 = vector.shape_cast %44 : vector<8xf32> to vector<1x1x8xf32>
    %c0_28 = arith.constant 0 : index
    %c0_29 = arith.constant 0 : index
    %c0_30 = arith.constant 0 : index
    %46 = vector.load %arg9[%c0_28, %c0_29, %c0_30] : memref<1x1x8xf32, #tpu.memory_space<vmem>>, vector<1x1x8xf32>
    tpu.vector_store %arg9[%c0_28, %c0_29, %c0_30], %45 {strides = array<i32>} : memref<1x1x8xf32, #tpu.memory_space<vmem>>, vector<1x1x8xf32>,
    return
  }
  func.func @transform_0(%arg0: i32, %arg1: i32) -> (i32, i32, i32, i32) {
    %c0_i32 = arith.constant 0 : i32
    %c0_i32_0 = arith.constant 0 : i32
    %c0_i32_1 = arith.constant 0 : i32
    return %arg0, %arg1, %c0_i32, %c0_i32_0 : i32, i32, i32, i32
  }
  func.func @transform_1(%arg0: i32, %arg1: i32) -> (i32, i32, i32, i32) {
    %c16_i32 = arith.constant 16 : i32
    %0 = arith.muli %arg1, %c16_i32 : i32
    %c1_i32 = arith.constant 1 : i32
    %1 = arith.subi %0, %c1_i32 : i32
    %c0_i32 = arith.constant 0 : i32
    %2 = arith.maxsi %1, %c0_i32 : i32
    %c0_i32_0 = arith.constant 0 : i32
    %c0_i32_1 = arith.constant 0 : i32
    %c0_i32_2 = arith.constant 0 : i32
    return %arg0, %2, %c0_i32_0, %c0_i32_1 : i32, i32, i32, i32
  }
  func.func @transform_2(%arg0: i32, %arg1: i32) -> (i32, i32, i32, i32) {
    %c16_i32 = arith.constant 16 : i32
    %0 = arith.muli %arg1, %c16_i32 : i32
    %c16_i32_0 = arith.constant 16 : i32
    %1 = arith.addi %0, %c16_i32_0 : i32
    %c15_i32 = arith.constant 15 : i32
    %2 = arith.minsi %1, %c15_i32 : i32
    %c0_i32 = arith.constant 0 : i32
    %c0_i32_1 = arith.constant 0 : i32
    %c0_i32_2 = arith.constant 0 : i32
    return %arg0, %2, %c0_i32, %c0_i32_1 : i32, i32, i32, i32
  }
  func.func @transform_3(%arg0: i32, %arg1: i32) -> (i32, i32) {
    %c0_i32 = arith.constant 0 : i32
    %c0_i32_0 = arith.constant 0 : i32
    %c0_i32_1 = arith.constant 0 : i32
    return %c0_i32, %c0_i32_0 : i32, i32
  }
  func.func @transform_4(%arg0: i32, %arg1: i32) -> (i32, i32) {
    %c0_i32 = arith.constant 0 : i32
    %c0_i32_0 = arith.constant 0 : i32
    %c0_i32_1 = arith.constant 0 : i32
    return %c0_i32, %c0_i32_0 : i32, i32
  }
  func.func @transform_5(%arg0: i32, %arg1: i32) -> (i32, i32, i32, i32) {
    %c0_i32 = arith.constant 0 : i32
    %c0_i32_0 = arith.constant 0 : i32
    %c0_i32_1 = arith.constant 0 : i32
    return %arg0, %arg1, %c0_i32, %c0_i32_0 : i32, i32, i32, i32
  }
  func.func @transform_6(%arg0: i32, %arg1: i32) -> (i32, i32, i32) {
    %c1_i32 = arith.constant 1 : i32
    %0 = arith.muli %arg0, %c1_i32 : i32
    %1 = arith.addi %0, %arg1 : i32
    %c0_i32 = arith.constant 0 : i32
    %c0_i32_0 = arith.constant 0 : i32
    %c0_i32_1 = arith.constant 0 : i32
    return %1, %c0_i32, %c0_i32_0 : i32, i32, i32
  }
  func.func @transform_7(%arg0: i32, %arg1: i32) -> (i32, i32, i32) {
    %c1_i32 = arith.constant 1 : i32
    %0 = arith.muli %arg0, %c1_i32 : i32
    %1 = arith.addi %0, %arg1 : i32
    %c0_i32 = arith.constant 0 : i32
    %c0_i32_0 = arith.constant 0 : i32
    %c0_i32_1 = arith.constant 0 : i32
    return %1, %c0_i32, %c0_i32_0 : i32, i32, i32
  }
}

module attributes {stable_mosaic.version = 11 : i64} {
  func.func @_stats_kernel(%arg0: i32, %arg1: memref<512x8xf32, #tpu.memory_space<vmem>>, %arg2: memref<1x8xf32, #tpu.memory_space<vmem>>, %arg3: memref<1x8xf32, #tpu.memory_space<vmem>>, %arg4: memref<1x1x8xf32, #tpu.memory_space<vmem>>, %arg5: memref<1x1x8xf32, #tpu.memory_space<vmem>>) attributes {dimension_semantics = [#tpu.dimension_semantics<parallel>], iteration_bounds = array<i64: 1>, scalar_prefetch = 0 : i64, scratch_operands = 0 : i64, tpu.core_type = #tpu.core_type<tc>, window_params = [{transform_indices = @transform_0, window_bounds = array<i64: 512, 8>}, {pipeline_mode = #tpu.pipeline_mode<synchronous>, transform_indices = @transform_1, window_bounds = array<i64: 1, 8>}, {pipeline_mode = #tpu.pipeline_mode<synchronous>, transform_indices = @transform_2, window_bounds = array<i64: 1, 8>}, {transform_indices = @transform_3, window_bounds = array<i64: 1, 1, 8>}, {transform_indices = @transform_4, window_bounds = array<i64: 1, 1, 8>}]} {
    %c0 = arith.constant 0 : index
    %c0_0 = arith.constant 0 : index
    %0 = vector.load %arg1[%c0, %c0_0] : memref<512x8xf32, #tpu.memory_space<vmem>>, vector<512x8xf32>
    %c0_1 = arith.constant 0 : index
    %c0_2 = arith.constant 0 : index
    %1 = vector.load %arg2[%c0_1, %c0_2] : memref<1x8xf32, #tpu.memory_space<vmem>>, vector<1x8xf32>
    %2 = vector.broadcast %1 : vector<1x8xf32> to vector<512x8xf32>
    %3 = arith.mulf %0, %2 : vector<512x8xf32>
    %c0_3 = arith.constant 0 : index
    %c0_4 = arith.constant 0 : index
    %4 = vector.load %arg3[%c0_3, %c0_4] : memref<1x8xf32, #tpu.memory_space<vmem>>, vector<1x8xf32>
    %5 = vector.broadcast %4 : vector<1x8xf32> to vector<512x8xf32>
    %6 = arith.addf %3, %5 : vector<512x8xf32>
    %cst = arith.constant 0.000000e+00 : f32
    %7 = vector.broadcast %cst : f32 to vector<512x8xf32>
    %8 = arith.maximumf %6, %7 : vector<512x8xf32>
    %cst_5 = arith.constant dense<0.000000e+00> : vector<8xf32>
    %9 = vector.multi_reduction <add>, %8, %cst_5 [0] : vector<512x8xf32> to vector<8xf32>
    %10 = vector.shape_cast %9 : vector<8xf32> to vector<1x1x8xf32>
    %c0_6 = arith.constant 0 : index
    %c0_7 = arith.constant 0 : index
    %c0_8 = arith.constant 0 : index
    %11 = vector.load %arg4[%c0_6, %c0_7, %c0_8] : memref<1x1x8xf32, #tpu.memory_space<vmem>>, vector<1x1x8xf32>
    tpu.vector_store %arg4[%c0_6, %c0_7, %c0_8], %10 {strides = array<i32>} : memref<1x1x8xf32, #tpu.memory_space<vmem>>, vector<1x1x8xf32>,
    %12 = arith.mulf %8, %8 : vector<512x8xf32>
    %cst_9 = arith.constant dense<0.000000e+00> : vector<8xf32>
    %13 = vector.multi_reduction <add>, %12, %cst_9 [0] : vector<512x8xf32> to vector<8xf32>
    %14 = vector.shape_cast %13 : vector<8xf32> to vector<1x1x8xf32>
    %c0_10 = arith.constant 0 : index
    %c0_11 = arith.constant 0 : index
    %c0_12 = arith.constant 0 : index
    %15 = vector.load %arg5[%c0_10, %c0_11, %c0_12] : memref<1x1x8xf32, #tpu.memory_space<vmem>>, vector<1x1x8xf32>
    tpu.vector_store %arg5[%c0_10, %c0_11, %c0_12], %14 {strides = array<i32>} : memref<1x1x8xf32, #tpu.memory_space<vmem>>, vector<1x1x8xf32>,
    return
  }
  func.func @transform_0(%arg0: i32) -> (i32, i32) {
    %c0_i32 = arith.constant 0 : i32
    %c0_i32_0 = arith.constant 0 : i32
    return %arg0, %c0_i32 : i32, i32
  }
  func.func @transform_1(%arg0: i32) -> (i32, i32) {
    %c0_i32 = arith.constant 0 : i32
    %c0_i32_0 = arith.constant 0 : i32
    %c0_i32_1 = arith.constant 0 : i32
    return %c0_i32, %c0_i32_0 : i32, i32
  }
  func.func @transform_2(%arg0: i32) -> (i32, i32) {
    %c0_i32 = arith.constant 0 : i32
    %c0_i32_0 = arith.constant 0 : i32
    %c0_i32_1 = arith.constant 0 : i32
    return %c0_i32, %c0_i32_0 : i32, i32
  }
  func.func @transform_3(%arg0: i32) -> (i32, i32, i32) {
    %c0_i32 = arith.constant 0 : i32
    %c0_i32_0 = arith.constant 0 : i32
    %c0_i32_1 = arith.constant 0 : i32
    return %arg0, %c0_i32, %c0_i32_0 : i32, i32, i32
  }
  func.func @transform_4(%arg0: i32) -> (i32, i32, i32) {
    %c0_i32 = arith.constant 0 : i32
    %c0_i32_0 = arith.constant 0 : i32
    %c0_i32_1 = arith.constant 0 : i32
    return %arg0, %c0_i32, %c0_i32_0 : i32, i32, i32
  }
}

module attributes {stable_mosaic.version = 11 : i64} {
  func.func @_spade_mod_kernel(%arg0: i32, %arg1: i32, %arg2: memref<1x16x16x32xbf16, #tpu.memory_space<vmem>>, %arg3: memref<1x1x16x32xbf16, #tpu.memory_space<vmem>>, %arg4: memref<1x1x16x32xbf16, #tpu.memory_space<vmem>>, %arg5: memref<288x16xbf16, #tpu.memory_space<vmem>>, %arg6: memref<1x16xf32, #tpu.memory_space<vmem>>, %arg7: memref<1x16x16x8xf32, #tpu.memory_space<vmem>>, %arg8: memref<1x8xf32, #tpu.memory_space<vmem>>, %arg9: memref<1x8xf32, #tpu.memory_space<vmem>>, %arg10: memref<1x8xf32, #tpu.memory_space<vmem>>, %arg11: memref<1x8xf32, #tpu.memory_space<vmem>>, %arg12: memref<1x16x16x8xbf16, #tpu.memory_space<vmem>>) attributes {dimension_semantics = [#tpu.dimension_semantics<parallel>, #tpu.dimension_semantics<parallel>], iteration_bounds = array<i64: 2, 1>, scalar_prefetch = 0 : i64, scratch_operands = 0 : i64, tpu.core_type = #tpu.core_type<tc>, window_params = [{transform_indices = @transform_0, window_bounds = array<i64: 1, 16, 16, 32>}, {transform_indices = @transform_1, window_bounds = array<i64: 1, 1, 16, 32>}, {transform_indices = @transform_2, window_bounds = array<i64: 1, 1, 16, 32>}, {pipeline_mode = #tpu.pipeline_mode<synchronous>, transform_indices = @transform_3, window_bounds = array<i64: 288, 16>}, {pipeline_mode = #tpu.pipeline_mode<synchronous>, transform_indices = @transform_4, window_bounds = array<i64: 1, 16>}, {transform_indices = @transform_5, window_bounds = array<i64: 1, 16, 16, 8>}, {pipeline_mode = #tpu.pipeline_mode<synchronous>, transform_indices = @transform_6, window_bounds = array<i64: 1, 8>}, {pipeline_mode = #tpu.pipeline_mode<synchronous>, transform_indices = @transform_7, window_bounds = array<i64: 1, 8>}, {pipeline_mode = #tpu.pipeline_mode<synchronous>, transform_indices = @transform_8, window_bounds = array<i64: 1, 8>}, {pipeline_mode = #tpu.pipeline_mode<synchronous>, transform_indices = @transform_9, window_bounds = array<i64: 1, 8>}, {transform_indices = @transform_10, window_bounds = array<i64: 1, 16, 16, 8>}]} {
    %c0 = arith.constant 0 : index
    %c0_0 = arith.constant 0 : index
    %c0_1 = arith.constant 0 : index
    %c0_2 = arith.constant 0 : index
    %0 = vector.load %arg2[%c0, %c0_0, %c0_1, %c0_2] : memref<1x16x16x32xbf16, #tpu.memory_space<vmem>>, vector<1x16x16x32xbf16>
    %1 = vector.shape_cast %0 : vector<1x16x16x32xbf16> to vector<16x16x32xbf16>
    %c0_3 = arith.constant 0 : index
    %c0_4 = arith.constant 0 : index
    %c0_5 = arith.constant 0 : index
    %c0_6 = arith.constant 0 : index
    %2 = vector.load %arg3[%c0_3, %c0_4, %c0_5, %c0_6] : memref<1x1x16x32xbf16, #tpu.memory_space<vmem>>, vector<1x1x16x32xbf16>
    %3 = vector.shape_cast %2 : vector<1x1x16x32xbf16> to vector<1x16x32xbf16>
    %c0_7 = arith.constant 0 : index
    %c0_8 = arith.constant 0 : index
    %c0_9 = arith.constant 0 : index
    %c0_10 = arith.constant 0 : index
    %4 = vector.load %arg4[%c0_7, %c0_8, %c0_9, %c0_10] : memref<1x1x16x32xbf16, #tpu.memory_space<vmem>>, vector<1x1x16x32xbf16>
    %5 = vector.shape_cast %4 : vector<1x1x16x32xbf16> to vector<1x16x32xbf16>
    %c0_i32 = arith.constant 0 : i32
    %6 = arith.cmpi eq, %arg1, %c0_i32 : i32
    %cst = arith.constant 0.000000e+00 : bf16
    %7 = vector.broadcast %cst : bf16 to vector<1x16x32xbf16>
    %8 = arith.select %6, %7, %3 : vector<1x16x32xbf16>
    %c0_i32_11 = arith.constant 0 : i32
    %9 = arith.cmpi eq, %arg1, %c0_i32_11 : i32
    %cst_12 = arith.constant 0.000000e+00 : bf16
    %10 = vector.broadcast %cst_12 : bf16 to vector<1x16x32xbf16>
    %11 = arith.select %9, %10, %5 : vector<1x16x32xbf16>
    %12 = vector.extract_strided_slice %1 {offsets = [0, 0, 0], sizes = [15, 16, 32], strides = [1, 1, 1]} : vector<16x16x32xbf16> to vector<15x16x32xbf16>
    %13 = tpu.concatenate %8, %12 in 0 : vector<1x16x32xbf16>, vector<15x16x32xbf16> -> vector<16x16x32xbf16>
    %14 = vector.extract_strided_slice %1 {offsets = [1, 0, 0], sizes = [15, 16, 32], strides = [1, 1, 1]} : vector<16x16x32xbf16> to vector<15x16x32xbf16>
    %15 = tpu.concatenate %14, %11 in 0 : vector<15x16x32xbf16>, vector<1x16x32xbf16> -> vector<16x16x32xbf16>
    %cst_13 = arith.constant 0.000000e+00 : bf16
    %16 = vector.broadcast %cst_13 : bf16 to vector<16x1x32xbf16>
    %17 = vector.extract_strided_slice %13 {offsets = [0, 0, 0], sizes = [16, 15, 32], strides = [1, 1, 1]} : vector<16x16x32xbf16> to vector<16x15x32xbf16>
    %18 = tpu.concatenate %16, %17 in 1 : vector<16x1x32xbf16>, vector<16x15x32xbf16> -> vector<16x16x32xbf16>
    %19 = vector.extract_strided_slice %13 {offsets = [0, 1, 0], sizes = [16, 15, 32], strides = [1, 1, 1]} : vector<16x16x32xbf16> to vector<16x15x32xbf16>
    %20 = tpu.concatenate %19, %16 in 1 : vector<16x15x32xbf16>, vector<16x1x32xbf16> -> vector<16x16x32xbf16>
    %21 = vector.extract_strided_slice %1 {offsets = [0, 0, 0], sizes = [16, 15, 32], strides = [1, 1, 1]} : vector<16x16x32xbf16> to vector<16x15x32xbf16>
    %22 = tpu.concatenate %16, %21 in 1 : vector<16x1x32xbf16>, vector<16x15x32xbf16> -> vector<16x16x32xbf16>
    %23 = vector.extract_strided_slice %1 {offsets = [0, 1, 0], sizes = [16, 15, 32], strides = [1, 1, 1]} : vector<16x16x32xbf16> to vector<16x15x32xbf16>
    %24 = tpu.concatenate %23, %16 in 1 : vector<16x15x32xbf16>, vector<16x1x32xbf16> -> vector<16x16x32xbf16>
    %25 = vector.extract_strided_slice %15 {offsets = [0, 0, 0], sizes = [16, 15, 32], strides = [1, 1, 1]} : vector<16x16x32xbf16> to vector<16x15x32xbf16>
    %26 = tpu.concatenate %16, %25 in 1 : vector<16x1x32xbf16>, vector<16x15x32xbf16> -> vector<16x16x32xbf16>
    %27 = vector.extract_strided_slice %15 {offsets = [0, 1, 0], sizes = [16, 15, 32], strides = [1, 1, 1]} : vector<16x16x32xbf16> to vector<16x15x32xbf16>
    %28 = tpu.concatenate %27, %16 in 1 : vector<16x15x32xbf16>, vector<16x1x32xbf16> -> vector<16x16x32xbf16>
    %29 = tpu.concatenate %18, %13, %20, %22, %1, %24, %26, %15, %28 in 2 : vector<16x16x32xbf16>, vector<16x16x32xbf16>, vector<16x16x32xbf16>, vector<16x16x32xbf16>, vector<16x16x32xbf16>, vector<16x16x32xbf16>, vector<16x16x32xbf16>, vector<16x16x32xbf16>, vector<16x16x32xbf16> -> vector<16x16x288xbf16>
    %30 = vector.shape_cast %29 : vector<16x16x288xbf16> to vector<256x288xbf16>
    %c0_14 = arith.constant 0 : index
    %c0_15 = arith.constant 0 : index
    %31 = vector.load %arg5[%c0_14, %c0_15] : memref<288x16xbf16, #tpu.memory_space<vmem>>, vector<288x16xbf16>
    %cst_16 = arith.constant dense<0.000000e+00> : vector<256x16xf32>
    %32 = tpu.matmul %30, %31, %cst_16 {dimension_numbers = #tpu.dot_dimension_numbers<[1], [0], [0], [1], [0, 0, 1, 1], [], []>} : vector<256x288xbf16>, vector<288x16xbf16>, vector<256x16xf32> -> vector<256x16xf32>
    %c0_17 = arith.constant 0 : index
    %c0_18 = arith.constant 0 : index
    %33 = vector.load %arg6[%c0_17, %c0_18] : memref<1x16xf32, #tpu.memory_space<vmem>>, vector<1x16xf32>
    %34 = vector.broadcast %33 : vector<1x16xf32> to vector<256x16xf32>
    %35 = arith.addf %32, %34 : vector<256x16xf32>
    %36 = vector.shape_cast %35 : vector<256x16xf32> to vector<16x16x16xf32>
    %37 = vector.extract_strided_slice %36 {offsets = [0, 0, 0], sizes = [16, 16, 8], strides = [1, 1, 1]} : vector<16x16x16xf32> to vector<16x16x8xf32>
    %38 = vector.extract_strided_slice %36 {offsets = [0, 0, 8], sizes = [16, 16, 8], strides = [1, 1, 1]} : vector<16x16x16xf32> to vector<16x16x8xf32>
    %c0_19 = arith.constant 0 : index
    %c0_20 = arith.constant 0 : index
    %c0_21 = arith.constant 0 : index
    %c0_22 = arith.constant 0 : index
    %39 = vector.load %arg7[%c0_19, %c0_20, %c0_21, %c0_22] : memref<1x16x16x8xf32, #tpu.memory_space<vmem>>, vector<1x16x16x8xf32>
    %40 = vector.shape_cast %39 : vector<1x16x16x8xf32> to vector<16x16x8xf32>
    %c0_23 = arith.constant 0 : index
    %c0_24 = arith.constant 0 : index
    %41 = vector.load %arg8[%c0_23, %c0_24] : memref<1x8xf32, #tpu.memory_space<vmem>>, vector<1x8xf32>
    %42 = vector.shape_cast %41 : vector<1x8xf32> to vector<1x1x8xf32>
    %43 = vector.broadcast %42 : vector<1x1x8xf32> to vector<16x16x8xf32>
    %44 = arith.mulf %40, %43 : vector<16x16x8xf32>
    %c0_25 = arith.constant 0 : index
    %c0_26 = arith.constant 0 : index
    %45 = vector.load %arg9[%c0_25, %c0_26] : memref<1x8xf32, #tpu.memory_space<vmem>>, vector<1x8xf32>
    %46 = vector.shape_cast %45 : vector<1x8xf32> to vector<1x1x8xf32>
    %47 = vector.broadcast %46 : vector<1x1x8xf32> to vector<16x16x8xf32>
    %48 = arith.addf %44, %47 : vector<16x16x8xf32>
    %cst_27 = arith.constant 0.000000e+00 : f32
    %49 = vector.broadcast %cst_27 : f32 to vector<16x16x8xf32>
    %50 = arith.maximumf %48, %49 : vector<16x16x8xf32>
    %c0_28 = arith.constant 0 : index
    %c0_29 = arith.constant 0 : index
    %51 = vector.load %arg10[%c0_28, %c0_29] : memref<1x8xf32, #tpu.memory_space<vmem>>, vector<1x8xf32>
    %52 = vector.shape_cast %51 : vector<1x8xf32> to vector<1x1x8xf32>
    %53 = vector.broadcast %52 : vector<1x1x8xf32> to vector<16x16x8xf32>
    %54 = arith.mulf %50, %53 : vector<16x16x8xf32>
    %c0_30 = arith.constant 0 : index
    %c0_31 = arith.constant 0 : index
    %55 = vector.load %arg11[%c0_30, %c0_31] : memref<1x8xf32, #tpu.memory_space<vmem>>, vector<1x8xf32>
    %56 = vector.shape_cast %55 : vector<1x8xf32> to vector<1x1x8xf32>
    %57 = vector.broadcast %56 : vector<1x1x8xf32> to vector<16x16x8xf32>
    %58 = arith.addf %54, %57 : vector<16x16x8xf32>
    %cst_32 = arith.constant 1.000000e+00 : f32
    %59 = vector.broadcast %cst_32 : f32 to vector<16x16x8xf32>
    %60 = arith.addf %59, %37 : vector<16x16x8xf32>
    %61 = arith.mulf %58, %60 : vector<16x16x8xf32>
    %62 = arith.addf %61, %38 : vector<16x16x8xf32>
    %63 = arith.truncf %62 : vector<16x16x8xf32> to vector<16x16x8xbf16>
    %c0_33 = arith.constant 0 : index
    %c0_34 = arith.constant 0 : index
    %c0_35 = arith.constant 0 : index
    %c0_36 = arith.constant 0 : index
    %64 = vector.load %arg12[%c0_33, %c0_34, %c0_35, %c0_36] : memref<1x16x16x8xbf16, #tpu.memory_space<vmem>>, vector<1x16x16x8xbf16>
    %65 = vector.shape_cast %64 : vector<1x16x16x8xbf16> to vector<16x16x8xbf16>
    %66 = vector.shape_cast %63 : vector<16x16x8xbf16> to vector<1x16x16x8xbf16>
    tpu.vector_store %arg12[%c0_33, %c0_34, %c0_35, %c0_36], %66 {strides = array<i32>} : memref<1x16x16x8xbf16, #tpu.memory_space<vmem>>, vector<1x16x16x8xbf16>,
    return
  }
  func.func @transform_0(%arg0: i32, %arg1: i32) -> (i32, i32, i32, i32) {
    %c0_i32 = arith.constant 0 : i32
    %c0_i32_0 = arith.constant 0 : i32
    %c0_i32_1 = arith.constant 0 : i32
    return %arg0, %arg1, %c0_i32, %c0_i32_0 : i32, i32, i32, i32
  }
  func.func @transform_1(%arg0: i32, %arg1: i32) -> (i32, i32, i32, i32) {
    %c16_i32 = arith.constant 16 : i32
    %0 = arith.muli %arg1, %c16_i32 : i32
    %c1_i32 = arith.constant 1 : i32
    %1 = arith.subi %0, %c1_i32 : i32
    %c0_i32 = arith.constant 0 : i32
    %2 = arith.maxsi %1, %c0_i32 : i32
    %c0_i32_0 = arith.constant 0 : i32
    %c0_i32_1 = arith.constant 0 : i32
    %c0_i32_2 = arith.constant 0 : i32
    return %arg0, %2, %c0_i32_0, %c0_i32_1 : i32, i32, i32, i32
  }
  func.func @transform_2(%arg0: i32, %arg1: i32) -> (i32, i32, i32, i32) {
    %c16_i32 = arith.constant 16 : i32
    %0 = arith.muli %arg1, %c16_i32 : i32
    %c16_i32_0 = arith.constant 16 : i32
    %1 = arith.addi %0, %c16_i32_0 : i32
    %c15_i32 = arith.constant 15 : i32
    %2 = arith.minsi %1, %c15_i32 : i32
    %c0_i32 = arith.constant 0 : i32
    %c0_i32_1 = arith.constant 0 : i32
    %c0_i32_2 = arith.constant 0 : i32
    return %arg0, %2, %c0_i32, %c0_i32_1 : i32, i32, i32, i32
  }
  func.func @transform_3(%arg0: i32, %arg1: i32) -> (i32, i32) {
    %c0_i32 = arith.constant 0 : i32
    %c0_i32_0 = arith.constant 0 : i32
    %c0_i32_1 = arith.constant 0 : i32
    return %c0_i32, %c0_i32_0 : i32, i32
  }
  func.func @transform_4(%arg0: i32, %arg1: i32) -> (i32, i32) {
    %c0_i32 = arith.constant 0 : i32
    %c0_i32_0 = arith.constant 0 : i32
    %c0_i32_1 = arith.constant 0 : i32
    return %c0_i32, %c0_i32_0 : i32, i32
  }
  func.func @transform_5(%arg0: i32, %arg1: i32) -> (i32, i32, i32, i32) {
    %c0_i32 = arith.constant 0 : i32
    %c0_i32_0 = arith.constant 0 : i32
    %c0_i32_1 = arith.constant 0 : i32
    return %arg0, %arg1, %c0_i32, %c0_i32_0 : i32, i32, i32, i32
  }
  func.func @transform_6(%arg0: i32, %arg1: i32) -> (i32, i32) {
    %c0_i32 = arith.constant 0 : i32
    %c0_i32_0 = arith.constant 0 : i32
    %c0_i32_1 = arith.constant 0 : i32
    return %c0_i32, %c0_i32_0 : i32, i32
  }
  func.func @transform_7(%arg0: i32, %arg1: i32) -> (i32, i32) {
    %c0_i32 = arith.constant 0 : i32
    %c0_i32_0 = arith.constant 0 : i32
    %c0_i32_1 = arith.constant 0 : i32
    return %c0_i32, %c0_i32_0 : i32, i32
  }
  func.func @transform_8(%arg0: i32, %arg1: i32) -> (i32, i32) {
    %c0_i32 = arith.constant 0 : i32
    %c0_i32_0 = arith.constant 0 : i32
    %c0_i32_1 = arith.constant 0 : i32
    return %c0_i32, %c0_i32_0 : i32, i32
  }
  func.func @transform_9(%arg0: i32, %arg1: i32) -> (i32, i32) {
    %c0_i32 = arith.constant 0 : i32
    %c0_i32_0 = arith.constant 0 : i32
    %c0_i32_1 = arith.constant 0 : i32
    return %c0_i32, %c0_i32_0 : i32, i32
  }
  func.func @transform_10(%arg0: i32, %arg1: i32) -> (i32, i32, i32, i32) {
    %c0_i32 = arith.constant 0 : i32
    %c0_i32_0 = arith.constant 0 : i32
    %c0_i32_1 = arith.constant 0 : i32
    return %arg0, %arg1, %c0_i32, %c0_i32_0 : i32, i32, i32, i32
  }
}

module attributes {stable_mosaic.version = 11 : i64} {
  func.func @_residual_identity_kernel(%arg0: i32, %arg1: memref<512x8xf32, #tpu.memory_space<vmem>>, %arg2: memref<1x8xf32, #tpu.memory_space<vmem>>, %arg3: memref<1x8xf32, #tpu.memory_space<vmem>>, %arg4: memref<512x8xf32, #tpu.memory_space<vmem>>, %arg5: memref<512x8xf32, #tpu.memory_space<vmem>>) attributes {dimension_semantics = [#tpu.dimension_semantics<parallel>], iteration_bounds = array<i64: 1>, scalar_prefetch = 0 : i64, scratch_operands = 0 : i64, tpu.core_type = #tpu.core_type<tc>, window_params = [{transform_indices = @transform_0, window_bounds = array<i64: 512, 8>}, {pipeline_mode = #tpu.pipeline_mode<synchronous>, transform_indices = @transform_1, window_bounds = array<i64: 1, 8>}, {pipeline_mode = #tpu.pipeline_mode<synchronous>, transform_indices = @transform_2, window_bounds = array<i64: 1, 8>}, {transform_indices = @transform_3, window_bounds = array<i64: 512, 8>}, {transform_indices = @transform_4, window_bounds = array<i64: 512, 8>}]} {
    %c0 = arith.constant 0 : index
    %c0_0 = arith.constant 0 : index
    %0 = vector.load %arg4[%c0, %c0_0] : memref<512x8xf32, #tpu.memory_space<vmem>>, vector<512x8xf32>
    %c0_1 = arith.constant 0 : index
    %c0_2 = arith.constant 0 : index
    %1 = vector.load %arg1[%c0_1, %c0_2] : memref<512x8xf32, #tpu.memory_space<vmem>>, vector<512x8xf32>
    %c0_3 = arith.constant 0 : index
    %c0_4 = arith.constant 0 : index
    %2 = vector.load %arg2[%c0_3, %c0_4] : memref<1x8xf32, #tpu.memory_space<vmem>>, vector<1x8xf32>
    %3 = vector.broadcast %2 : vector<1x8xf32> to vector<512x8xf32>
    %4 = arith.mulf %1, %3 : vector<512x8xf32>
    %5 = arith.addf %0, %4 : vector<512x8xf32>
    %c0_5 = arith.constant 0 : index
    %c0_6 = arith.constant 0 : index
    %6 = vector.load %arg3[%c0_5, %c0_6] : memref<1x8xf32, #tpu.memory_space<vmem>>, vector<1x8xf32>
    %7 = vector.broadcast %6 : vector<1x8xf32> to vector<512x8xf32>
    %8 = arith.addf %5, %7 : vector<512x8xf32>
    %c0_7 = arith.constant 0 : index
    %c0_8 = arith.constant 0 : index
    %9 = vector.load %arg5[%c0_7, %c0_8] : memref<512x8xf32, #tpu.memory_space<vmem>>, vector<512x8xf32>
    tpu.vector_store %arg5[%c0_7, %c0_8], %8 {strides = array<i32>} : memref<512x8xf32, #tpu.memory_space<vmem>>, vector<512x8xf32>,
    return
  }
  func.func @transform_0(%arg0: i32) -> (i32, i32) {
    %c0_i32 = arith.constant 0 : i32
    %c0_i32_0 = arith.constant 0 : i32
    return %arg0, %c0_i32 : i32, i32
  }
  func.func @transform_1(%arg0: i32) -> (i32, i32) {
    %c0_i32 = arith.constant 0 : i32
    %c0_i32_0 = arith.constant 0 : i32
    %c0_i32_1 = arith.constant 0 : i32
    return %c0_i32, %c0_i32_0 : i32, i32
  }
  func.func @transform_2(%arg0: i32) -> (i32, i32) {
    %c0_i32 = arith.constant 0 : i32
    %c0_i32_0 = arith.constant 0 : i32
    %c0_i32_1 = arith.constant 0 : i32
    return %c0_i32, %c0_i32_0 : i32, i32
  }
  func.func @transform_3(%arg0: i32) -> (i32, i32) {
    %c0_i32 = arith.constant 0 : i32
    %c0_i32_0 = arith.constant 0 : i32
    return %arg0, %c0_i32 : i32, i32
  }
  func.func @transform_4(%arg0: i32) -> (i32, i32) {
    %c0_i32 = arith.constant 0 : i32
    %c0_i32_0 = arith.constant 0 : i32
    return %arg0, %c0_i32 : i32, i32
  }
}

</mosaic_0001>

<bundles_post_ra>
// kernel: resnet_block.9
= control target key start
LH: loop header
LB: loop body
LE: loop exit
PB: predicated region body
PF: predicated region fallthrough
CT: control target
= control target key end

     0   :  { %vm222_vm0 = vcmask 64512   ;;  %vm356_vm1 = vcmask 57344   ;;  %s1769_s0 = inlined_call_operand.vmem [shape: f32[512,8], index: 0, kind: input, shape index: {}]   ;;  %s1770_s1 = inlined_call_operand.vmem [shape: f32[1,8], index: 1, kind: input, shape index: {}]   ;;  %s1771_s2 = inlined_call_operand.vmem [shape: f32[1,8], index: 2, kind: input, shape index: {}]   ;;  %s1772_s3 = inlined_call_operand.vmem [shape: f32[1,1,8], index: 3, kind: output, shape index: {0}]   ;;  %s1773_s4 = inlined_call_operand.vmem [shape: f32[1,1,8], index: 4, kind: output, shape index: {1}]  }
   0x1   :  { %v49_v0 = vld [vmem:[%s1769_s0 + $0x108] sm:$0xff]  ;;  %v50_v1 = vld [vmem:[%s1769_s0 + $0x110] sm:$0xff]  ;;  %v51_v2 = vld [vmem:[%s1769_s0 + $0x118] sm:$0xff] }
   0x2   :  { %v52_v3 = vld [vmem:[%s1769_s0 + $0x120] sm:$0xff]  ;;  %v53_v4 = vld [vmem:[%s1769_s0 + $0x128] sm:$0xff]  ;;  %v54_v5 = vld [vmem:[%s1769_s0 + $0x130] sm:$0xff] }
   0x3   :  { %v55_v6 = vld [vmem:[%s1769_s0 + $0x138] sm:$0xff]  ;;  %v56_v7 = vld [vmem:[%s1769_s0 + $0x140] sm:$0xff]  ;;  %v57_v8 = vld [vmem:[%s1769_s0 + $0x148] sm:$0xff] }
   0x4   :  { %v58_v9 = vld [vmem:[%s1769_s0 + $0x150] sm:$0xff]  ;;  %v59_v10 = vld [vmem:[%s1769_s0 + $0x158] sm:$0xff]  ;;  %v60_v11 = vld [vmem:[%s1769_s0 + $0x160] sm:$0xff] }
   0x5   :  { %v61_v12 = vld [vmem:[%s1769_s0 + $0x168] sm:$0xff]  ;;  %v62_v13 = vld [vmem:[%s1769_s0 + $0x170] sm:$0xff]  ;;  %v63_v14 = vld [vmem:[%s1769_s0 + $0x178] sm:$0xff] }
   0x6   :  { %v64_v15 = vld [vmem:[%s1769_s0 + $0x180] sm:$0xff]  ;;  %v65_v17 = vld [vmem:[%s1769_s0 + $0x188] sm:$0xff]  ;;  %v66_v18 = vld [vmem:[%s1769_s0 + $0x190] sm:$0xff] }
   0x7   :  { %v642_v16 = vld [vmem:[%s1770_s1] ss:$0 sm:$0xff]  ;;  %v67_v19 = vld [vmem:[%s1769_s0 + $0x198] sm:$0xff]  ;;  %v69_v24 = vld [vmem:[%s1769_s0 + $0x1a8] sm:$0xff] }
   0x8   :  { %v654_v20 = vmul.f32 %v642_v16, %v49_v0  ;;  %v657_v21 = vmul.f32 %v642_v16, %v50_v1  ;;  %v660_v22 = vmul.f32 %v642_v16, %v51_v2  ;;  %v68_v23 = vld [vmem:[%s1769_s0 + $0x1a0] sm:$0xff]  ;;  %v70_v25 = vld [vmem:[%s1769_s0 + $0x1b0] sm:$0xff]  ;;  %v672_v26 = vmul.f32 %v642_v16, %v52_v3  ;;  %v71_v30 = vld [vmem:[%s1769_s0 + $0x1b8] sm:$0xff] }
   0x9   :  { %v675_v27 = vmul.f32 %v642_v16, %v53_v4  ;;  %v678_v28 = vmul.f32 %v642_v16, %v54_v5  ;;  %v681_v29 = vmul.f32 %v642_v16, %v55_v6  ;;  %v72_v31 = vld [vmem:[%s1769_s0 + $0x1c0] sm:$0xff]  ;;  %v73_v32 = vld [vmem:[%s1769_s0 + $0x1c8] sm:$0xff]  ;;  %v693_v33 = vmul.f32 %v642_v16, %v56_v7  ;;  %v74_v37 = vld [vmem:[%s1769_s0 + $0x1d0] sm:$0xff] }
   0xa   :  { %v696_v34 = vmul.f32 %v642_v16, %v57_v8  ;;  %v699_v35 = vmul.f32 %v642_v16, %v58_v9  ;;  %v702_v36 = vmul.f32 %v642_v16, %v59_v10  ;;  %v75_v38 = vld [vmem:[%s1769_s0 + $0x1d8] sm:$0xff]  ;;  %v76_v39 = vld [vmem:[%s1769_s0 + $0x1e0] sm:$0xff]  ;;  %v714_v40 = vmul.f32 %v642_v16, %v60_v11  ;;  %v77_v44 = vld [vmem:[%s1769_s0 + $0x1e8] sm:$0xff] }
   0xb   :  { %v717_v41 = vmul.f32 %v642_v16, %v61_v12  ;;  %v720_v42 = vmul.f32 %v642_v16, %v62_v13  ;;  %v723_v43 = vmul.f32 %v642_v16, %v63_v14  ;;  %v78_v45 = vld [vmem:[%s1769_s0 + $0x1f0] sm:$0xff]  ;;  %v79_v46 = vld [vmem:[%s1769_s0 + $0x1f8] sm:$0xff]  ;;  %v735_v47 = vmul.f32 %v642_v16, %v64_v15  ;;  %v16_v51 = vld [vmem:[%s1769_s0] sm:$0xff] }
   0xc   :  { %v738_v48 = vmul.f32 %v642_v16, %v65_v17  ;;  %v741_v49 = vmul.f32 %v642_v16, %v66_v18  ;;  %v744_v50 = vmul.f32 %v642_v16, %v67_v19  ;;  %v750_v52 = vmul.f32 %v642_v16, %v68_v23  ;;  %v17_v56 = vld [vmem:[%s1769_s0 + $0x8] sm:$0xff]  ;;  %v18_v57 = vld [vmem:[%s1769_s0 + $0x10] sm:$0xff]  ;;  %v19_v58 = vld [vmem:[%s1769_s0 + $0x18] sm:$0xff] }
   0xd   :  { %v753_v53 = vmul.f32 %v642_v16, %v69_v24  ;;  %v756_v54 = vmul.f32 %v642_v16, %v70_v25  ;;  %v759_v55 = vmul.f32 %v642_v16, %v71_v30  ;;  %v771_v59 = vmul.f32 %v642_v16, %v72_v31  ;;  %v20_v63 = vld [vmem:[%s1769_s0 + $0x20] sm:$0xff]  ;;  %v21_v0 = vld [vmem:[%s1769_s0 + $0x28] sm:$0xff]  ;;  %v22_v1 = vld [vmem:[%s1769_s0 + $0x30] sm:$0xff] }
   0xe   :  { %v774_v60 = vmul.f32 %v642_v16, %v73_v32  ;;  %v777_v61 = vmul.f32 %v642_v16, %v74_v37  ;;  %v780_v62 = vmul.f32 %v642_v16, %v75_v38  ;;  %v792_v2 = vmul.f32 %v642_v16, %v76_v39  ;;  %v23_v6 = vld [vmem:[%s1769_s0 + $0x38] sm:$0xff]  ;;  %v24_v7 = vld [vmem:[%s1769_s0 + $0x40] sm:$0xff]  ;;  %v25_v8 = vld [vmem:[%s1769_s0 + $0x48] sm:$0xff] }
   0xf   :  { %v795_v3 = vmul.f32 %v642_v16, %v77_v44  ;;  %v798_v4 = vmul.f32 %v642_v16, %v78_v45  ;;  %v801_v5 = vmul.f32 %v642_v16, %v79_v46  ;;  %v26_v9 = vld [vmem:[%s1769_s0 + $0x50] sm:$0xff]  ;;  %v27_v10 = vld [vmem:[%s1769_s0 + $0x58] sm:$0xff]  ;;  %v28_v11 = vld [vmem:[%s1769_s0 + $0x60] sm:$0xff]  ;;  %v87_v15 = vmul.f32 %v642_v16, %v16_v51 }
  0x10   :  { %v29_v12 = vld [vmem:[%s1769_s0 + $0x68] sm:$0xff]  ;;  %v30_v13 = vld [vmem:[%s1769_s0 + $0x70] sm:$0xff]  ;;  %v31_v14 = vld [vmem:[%s1769_s0 + $0x78] sm:$0xff]  ;;  %v88_v17 = vmul.f32 %v642_v16, %v17_v56  ;;  %v89_v18 = vmul.f32 %v642_v16, %v18_v57  ;;  %v843_v25 = vmul.f32 %v642_v16, %v19_v58  ;;  %v846_v30 = vmul.f32 %v642_v16, %v20_v63 }
  0x11   :  { %v32_v19 = vld [vmem:[%s1769_s0 + $0x80] sm:$0xff]  ;;  %v33_v23 = vld [vmem:[%s1769_s0 + $0x88] sm:$0xff]  ;;  %v34_v24 = vld [vmem:[%s1769_s0 + $0x90] sm:$0xff]  ;;  %v849_v31 = vmul.f32 %v642_v16, %v21_v0  ;;  %v852_v32 = vmul.f32 %v642_v16, %v22_v1  ;;  %v861_v39 = vmul.f32 %v642_v16, %v23_v6  ;;  %v864_v44 = vmul.f32 %v642_v16, %v24_v7 }
  0x12   :  { %v35_v37 = vld [vmem:[%s1769_s0 + $0x98] sm:$0xff]  ;;  %v36_v38 = vld [vmem:[%s1769_s0 + $0xa0] sm:$0xff]  ;;  %v867_v45 = vmul.f32 %v642_v16, %v25_v8  ;;  %v870_v46 = vmul.f32 %v642_v16, %v26_v9  ;;  %v878_v56 = vmul.f32 %v642_v16, %v27_v10  ;;  %v881_v57 = vmul.f32 %v642_v16, %v28_v11 }
  0x13   :  { %v875_v51 = vld [vmem:[%s1771_s2] ss:$0 sm:$0xff]  ;;  %v884_v58 = vmul.f32 %v642_v16, %v29_v12  ;;  %v887_v63 = vmul.f32 %v642_v16, %v30_v13  ;;  %v890_v0 = vmul.f32 %v642_v16, %v31_v14  ;;  %v893_v1 = vmul.f32 %v642_v16, %v32_v19 }
  0x14   :  { %v896_v6 = vmul.f32 %v642_v16, %v33_v23  ;;  %v899_v7 = vmul.f32 %v642_v16, %v34_v24  ;;  %v902_v8 = vmul.f32 %v642_v16, %v35_v37  ;;  %v905_v9 = vmul.f32 %v642_v16, %v36_v38  ;;  %v40_v24 = vld [vmem:[%s1769_s0 + $0xc0] sm:$0xff]  ;;  %v42_v38 = vld [vmem:[%s1769_s0 + $0xd0] sm:$0xff] }
  0x15   :  { %1801 = vst [vmem:[#allocation2_spill] sm:$0xff] %v890_v0  ;;  %1802 = vst [vmem:[#allocation3_spill] sm:$0xff] %v893_v1  ;;  %v908_v10 = vadd.f32 %v875_v51, %v87_v15  ;;  %v911_v11 = vadd.f32 %v875_v51, %v88_v17  ;;  %v914_v12 = vadd.f32 %v875_v51, %v89_v18  ;;  %v48_v0 = vld [vmem:[%s1769_s0 + $0x100] sm:$0xff] }
  0x16   :  { %1803 = vst [vmem:[#allocation4_spill] sm:$0xff] %v896_v6  ;;  %1804 = vst [vmem:[#allocation5_spill] sm:$0xff] %v899_v7  ;;  %v918_v13 = vadd.f32 %v875_v51, %v654_v20  ;;  %v922_v14 = vadd.f32 %v875_v51, %v657_v21  ;;  %v926_v19 = vadd.f32 %v875_v51, %v660_v22  ;;  %v45_v7 = vld [vmem:[%s1769_s0 + $0xe8] sm:$0xff]  ;;  %v46_v6 = vld [vmem:[%s1769_s0 + $0xf0] sm:$0xff] }
  0x17   :  { %1805 = vst [vmem:[#allocation6_spill] sm:$0xff] %v902_v8  ;;  %1806 = vst [vmem:[#allocation7_spill] sm:$0xff] %v905_v9  ;;  %v930_v15 = vadd.f32 %v875_v51, %v672_v26  ;;  %v934_v17 = vadd.f32 %v875_v51, %v675_v27  ;;  %v938_v20 = vadd.f32 %v875_v51, %v678_v28  ;;  %v224_v9 = vsel %vm222_vm0, %v911_v11, 0.0 }
  0x18   :  { %1807 = vst [vmem:[#allocation8_spill] sm:$0xff] %v908_v10  ;;  %1808 = vst [vmem:[#allocation9_spill] sm:$0xff] %v911_v11  ;;  %v942_v21 = vadd.f32 %v875_v51, %v681_v29  ;;  %v946_v22 = vadd.f32 %v875_v51, %v693_v33  ;;  %v950_v26 = vadd.f32 %v875_v51, %v696_v34  ;;  %v226_v8 = vsel %vm222_vm0, %v914_v12, 0.0 }
  0x19   :  { %1809 = vst [vmem:[#allocation10_spill] sm:$0xff] %v914_v12  ;;  %v954_v27 = vadd.f32 %v875_v51, %v699_v35  ;;  %v958_v28 = vadd.f32 %v875_v51, %v702_v36  ;;  %v962_v29 = vadd.f32 %v875_v51, %v714_v40  ;;  %v966_v33 = vadd.f32 %v875_v51, %v717_v41  ;;  %v47_v12 = vld [vmem:[%s1769_s0 + $0xf8] sm:$0xff] }
  0x1a   :  { %v970_v34 = vadd.f32 %v875_v51, %v720_v42  ;;  %v974_v35 = vadd.f32 %v875_v51, %v723_v43  ;;  %v978_v36 = vadd.f32 %v875_v51, %v735_v47  ;;  %v982_v40 = vadd.f32 %v875_v51, %v738_v48 }
  0x1b   :  { %v986_v41 = vadd.f32 %v875_v51, %v741_v49  ;;  %v990_v42 = vadd.f32 %v875_v51, %v744_v50  ;;  %v994_v43 = vadd.f32 %v875_v51, %v750_v52  ;;  %v998_v47 = vadd.f32 %v875_v51, %v753_v53  ;;  %v37_v50 = vld [vmem:[%s1769_s0 + $0xa8] sm:$0xff]  ;;  %v38_v52 = vld [vmem:[%s1769_s0 + $0xb0] sm:$0xff]  ;;  %v39_v53 = vld [vmem:[%s1769_s0 + $0xb8] sm:$0xff] }
  0x1c   :  { %v1002_v48 = vadd.f32 %v875_v51, %v756_v54  ;;  %v1006_v49 = vadd.f32 %v875_v51, %v759_v55  ;;  %v1019_v54 = vadd.f32 %v875_v51, %v771_v59  ;;  %v1023_v55 = vadd.f32 %v875_v51, %v774_v60  ;;  %v41_v59 = vld [vmem:[%s1769_s0 + $0xc8] sm:$0xff] }
  0x1d   :  { %v1027_v18 = vadd.f32 %v875_v51, %v777_v61  ;;  %v1031_v23 = vadd.f32 %v875_v51, %v780_v62  ;;  %v1041_v60 = vadd.f32 %v875_v51, %v792_v2  ;;  %v1045_v61 = vadd.f32 %v875_v51, %v795_v3  ;;  %v43_v2 = vld [vmem:[%s1769_s0 + $0xd8] sm:$0xff]  ;;  %v44_v3 = vld [vmem:[%s1769_s0 + $0xe0] sm:$0xff] }
  0x1e   :  { %1810 = vst [vmem:[#allocation11_spill] sm:$0xff] %v1019_v54  ;;  %1811 = vst [vmem:[#allocation12_spill] sm:$0xff] %v1023_v55  ;;  %v1049_v62 = vadd.f32 %v875_v51, %v798_v4  ;;  %v1053_v37 = vadd.f32 %v875_v51, %v801_v5  ;;  %v1066_v4 = vadd.f32 %v875_v51, %v843_v25  ;;  %v223_v5 = vsel %vm222_vm0, %v908_v10, 0.0 }
  0x1f   :  { %1812 = vst [vmem:[#allocation13_spill] sm:$0xff] %v1027_v18  ;;  %1813 = vst [vmem:[#allocation14_spill] sm:$0xff] %v1031_v23  ;;  %v1081_v25 = vmul.f32 %v642_v16, %v37_v50  ;;  %v1084_v1 = vmul.f32 %v642_v16, %v38_v52  ;;  %v1087_v10 = vmul.f32 %v642_v16, %v39_v53 }
  0x20   :  { %1814 = vst [vmem:[#allocation15_spill] sm:$0xff] %v1041_v60  ;;  %1815 = vst [vmem:[#allocation16_spill] sm:$0xff] %v1045_v61  ;;  %v225_v11 = vadd.f32 %v224_v9, %v223_v5  ;;  %v1099_v50 = vmul.f32 %v642_v16, %v41_v59  ;;  %v1103_v52 = vadd.f32 %v875_v51, %v846_v30  ;;  %v228_v9 = vsel %vm222_vm0, %v1066_v4, 0.0 }
  0x21   :  { %1816 = vst [vmem:[#allocation17_spill] sm:$0xff] %v1049_v62  ;;  %1817 = vst [vmem:[#allocation18_spill] sm:$0xff] %v1053_v37  ;;  %v1096_v37 = vmul.f32 %v642_v16, %v40_v24  ;;  %v1108_v53 = vmul.f32 %v642_v16, %v42_v38  ;;  %v1111_v5 = vmul.f32 %v642_v16, %v43_v2 }
  0x22   :  { %1818 = vst [vmem:[#allocation19_spill] sm:$0xff] %v1087_v10  ;;  %1819 = vst [vmem:[#allocation20_spill] sm:$0xff] %v1099_v50  ;;  %v1114_v10 = vmul.f32 %v642_v16, %v44_v3  ;;  %v227_v24 = vadd.f32 %v226_v8, %v225_v11  ;;  %v1117_v59 = vmul.f32 %v642_v16, %v45_v7  ;;  %v230_v38 = vsel %vm222_vm0, %v1103_v52, 0.0 }
  0x23   :  { %v1120_v50 = vmul.f32 %v642_v16, %v46_v6  ;;  %v1124_v30 = vadd.f32 %v875_v51, %v849_v31  ;;  %v1129_v2 = vmul.f32 %v642_v16, %v47_v12  ;;  %v1132_v3 = vmul.f32 %v642_v16, %v48_v0 }
  0x24   :  { %v1136_v7 = vadd.f32 %v875_v51, %v852_v32  ;;  %v229_v8 = vadd.f32 %v228_v9, %v227_v24  ;;  %v1140_v6 = vadd.f32 %v875_v51, %v861_v39  ;;  %v1144_v31 = vadd.f32 %v875_v51, %v864_v44 }
  0x25   :  { %1820 = vst [vmem:[#allocation21_spill] sm:$0xff] %v1132_v3  ;;  %v1148_v11 = vadd.f32 %v875_v51, %v867_v45  ;;  %v232_v16 = vsel %vm222_vm0, %v1124_v30, 0.0  ;;  %v1154_v32 = vadd.f32 %v875_v51, %v870_v46  ;;  %v1158_v0 = vadd.f32 %v875_v51, %v878_v56 }
  0x26   :  { %v1162_v39 = vadd.f32 %v875_v51, %v881_v57  ;;  %v231_v44 = vadd.f32 %v230_v38, %v229_v8  ;;  %v234_v45 = vsel %vm222_vm0, %v1136_v7, 0.0  ;;  %v236_v12 = vsel %vm222_vm0, %v1140_v6, 0.0 }
  0x27   :  { %v238_v9 = vsel %vm222_vm0, %v1144_v31, 0.0  ;;  %v240_v46 = vsel %vm222_vm0, %v1148_v11, 0.0  ;;  %v242_v56 = vsel %vm222_vm0, %v1154_v32, 0.0  ;;  %v1176_v57 = vsel %vm222_vm0, %v918_v13, 0.0 }
  0x28   :  { %v233_v24 = vadd.f32 %v232_v16, %v231_v44  ;;  %1821 = vst [vmem:[#allocation22_spill] sm:$0xff] %v1176_v57  ;;  %v1180_v38 = vsel %vm222_vm0, %v922_v14, 0.0  ;;  %v1184_v8 = vsel %vm222_vm0, %v926_v19, 0.0  ;;  %v1188_v3 = vsel %vm222_vm0, %v930_v15, 0.0 }
  0x29   :  { %1822 = vst [vmem:[#allocation23_spill] sm:$0xff] %v1180_v38  ;;  %1823 = vst [vmem:[#allocation24_spill] sm:$0xff] %v1184_v8  ;;  %v1192_v16 = vsel %vm222_vm0, %v934_v17, 0.0  ;;  %v1196_v44 = vsel %vm222_vm0, %v938_v20, 0.0  ;;  %v1200_v38 = vsel %vm222_vm0, %v942_v21, 0.0  ;;  %v1204_v8 = vsel %vm222_vm0, %v946_v22, 0.0 }
  0x2a   :  { %1824 = vst [vmem:[#allocation25_spill] sm:$0xff] %v1188_v3  ;;  %1825 = vst [vmem:[#allocation26_spill] sm:$0xff] %v1192_v16  ;;  %v235_v57 = vadd.f32 %v234_v45, %v233_v24  ;;  %v1208_v3 = vsel %vm222_vm0, %v950_v26, 0.0  ;;  %v1212_v16 = vsel %vm222_vm0, %v954_v27, 0.0  ;;  %v1220_v45 = vsel %vm222_vm0, %v962_v29, 0.0 }
  0x2b   :  { %1826 = vst [vmem:[#allocation27_spill] sm:$0xff] %v1196_v44  ;;  %1827 = vst [vmem:[#allocation28_spill] sm:$0xff] %v1200_v38  ;;  %v1216_v44 = vsel %vm222_vm0, %v958_v28, 0.0  ;;  %v1224_v24 = vsel %vm222_vm0, %v966_v33, 0.0  ;;  %v1857_v38 = vld [vmem:[#allocation4_spill] sm:$0xff] }
  0x2c   :  { %1828 = vst [vmem:[#allocation29_spill] sm:$0xff] %v1204_v8  ;;  %1829 = vst [vmem:[#allocation30_spill] sm:$0xff] %v1208_v3  ;;  %v237_v8 = vadd.f32 %v236_v12, %v235_v57  ;;  %v1228_v3 = vsel %vm222_vm0, %v970_v34, 0.0  ;;  %v1248_v12 = vsel %vm222_vm0, %v990_v42, 0.0  ;;  %v1252_v57 = vsel %vm222_vm0, %v994_v43, 0.0 }
  0x2d   :  { %1830 = vst [vmem:[#allocation31_spill] sm:$0xff] %v1212_v16  ;;  %1831 = vst [vmem:[#allocation32_spill] sm:$0xff] %v1216_v44  ;;  %v1232_v16 = vsel %vm222_vm0, %v974_v35, 0.0  ;;  %v1236_v44 = vsel %vm222_vm0, %v978_v36, 0.0 }
  0x2e   :  { %1832 = vst [vmem:[#allocation33_spill] sm:$0xff] %v1220_v45  ;;  %1833 = vst [vmem:[#allocation34_spill] sm:$0xff] %v1224_v24  ;;  %v1240_v45 = vsel %vm222_vm0, %v982_v40, 0.0  ;;  %v1244_v24 = vsel %vm222_vm0, %v986_v41, 0.0 }
  0x2f   :  { %1834 = vst [vmem:[#allocation35_spill] sm:$0xff] %v1228_v3  ;;  %1835 = vst [vmem:[#allocation36_spill] sm:$0xff] %v1232_v16  ;;  %v239_v16 = vadd.f32 %v238_v9, %v237_v8  ;;  %v1276_v9 = vsel %vm222_vm0, %v1027_v18, 0.0  ;;  %v1280_v8 = vsel %vm222_vm0, %v1031_v23, 0.0  ;;  %v1855_v3 = vld [vmem:[#allocation3_spill] sm:$0xff]  ;;  %v1870_v23 = vld [vmem:[#allocation20_spill] sm:$0xff] }
  0x30   :  { %1836 = vst [vmem:[#allocation37_spill] sm:$0xff] %v1236_v44  ;;  %1837 = vst [vmem:[#allocation38_spill] sm:$0xff] %v1240_v45  ;;  %v1256_v44 = vsel %vm222_vm0, %v998_v47, 0.0  ;;  %v1260_v45 = vsel %vm222_vm0, %v1002_v48, 0.0  ;;  %v1348_v18 = vadd.f32 %v875_v51, %v1870_v23 }
  0x31   :  { %1838 = vst [vmem:[#allocation39_spill] sm:$0xff] %v1244_v24  ;;  %1839 = vst [vmem:[#allocation40_spill] sm:$0xff] %v1248_v12  ;;  %v1264_v24 = vsel %vm222_vm0, %v1006_v49, 0.0  ;;  %v1268_v12 = vsel %vm222_vm0, %v1019_v54, 0.0 }
  0x32   :  { %1840 = vst [vmem:[#allocation41_spill] sm:$0xff] %v1252_v57  ;;  %1841 = vst [vmem:[#allocation42_spill] sm:$0xff] %v1256_v44  ;;  %v1272_v57 = vsel %vm222_vm0, %v1023_v55, 0.0  ;;  %v172_v44 = vadd.f32 %v875_v51, %v887_v63  ;;  %v1357_v55 = vadd.f32 %v875_v51, %v1111_v5 }
  0x33   :  { %1842 = vst [vmem:[#allocation43_spill] sm:$0xff] %v1260_v45  ;;  %1843 = vst [vmem:[#allocation44_spill] sm:$0xff] %v1264_v24  ;;  %v241_v45 = vadd.f32 %v240_v46, %v239_v16  ;;  %v1284_v24 = vsel %vm222_vm0, %v1041_v60, 0.0  ;;  %v244_v46 = vsel %vm222_vm0, %v1158_v0, 0.0  ;;  %v1851_v16 = vld [vmem:[#allocation18_spill] sm:$0xff] }
  0x34   :  { %1844 = vst [vmem:[#allocation45_spill] sm:$0xff] %v1268_v12  ;;  %1845 = vst [vmem:[#allocation46_spill] sm:$0xff] %v1272_v57  ;;  %v1288_v12 = vsel %vm222_vm0, %v1045_v61, 0.0  ;;  %v1292_v57 = vsel %vm222_vm0, %v1049_v62, 0.0  ;;  %v1859_v62 = vld [vmem:[#allocation5_spill] sm:$0xff]  ;;  %v1861_v60 = vld [vmem:[#allocation6_spill] sm:$0xff] }
  0x35   :  { %1846 = vst [vmem:[#allocation47_spill] sm:$0xff] %v1276_v9  ;;  %1847 = vst [vmem:[#allocation48_spill] sm:$0xff] %v1280_v8  ;;  %v171_v9 = vadd.f32 %v875_v51, %v884_v58  ;;  %v1853_v8 = vld [vmem:[#allocation2_spill] sm:$0xff]  ;;  %v1314_v58 = vadd.f32 %v875_v51, %v1857_v38  ;;  %v243_v63 = vadd.f32 %v242_v56, %v241_v45  ;;  %v250_v5 = vsel %vm222_vm0, %v172_v44, 0.0 }
  0x36   :  { %1848 = vst [vmem:[#allocation49_spill] sm:$0xff] %v1284_v24  ;;  %1849 = vst [vmem:[#allocation50_spill] sm:$0xff] %v1288_v12  ;;  %v1302_v24 = vsel %vm222_vm0, %v1851_v16, 0.0  ;;  %v1306_v12 = vadd.f32 %v875_v51, %v1853_v8  ;;  %v1318_v61 = vadd.f32 %v875_v51, %v1859_v62  ;;  %v1863_v16 = vld [vmem:[#allocation7_spill] sm:$0xff]  ;;  %v1332_v38 = vadd.f32 %v875_v51, %v1081_v25 }
  0x37   :  { %1850 = vst [vmem:[#allocation51_spill] sm:$0xff] %v1292_v57  ;;  %1852 = vst [vmem:[#allocation52_spill] sm:$0xff] %v1302_v24  ;;  %v1310_v57 = vadd.f32 %v875_v51, %v1855_v3  ;;  %v1322_v24 = vadd.f32 %v875_v51, %v1861_v60  ;;  %v1326_v8 = vadd.f32 %v875_v51, %v1863_v16  ;;  %v246_v3 = vsel %vm222_vm0, %v1162_v39, 0.0  ;;  %v1867_v62 = vld [vmem:[#allocation19_spill] sm:$0xff] }
  0x38   :  { %1854 = vst [vmem:[#allocation2_spill] sm:$0xff] %v1306_v12  ;;  %1858 = vst [vmem:[#allocation4_spill] sm:$0xff] %v1314_v58  ;;  %v1336_v56 = vadd.f32 %v875_v51, %v1084_v1  ;;  %v1340_v45 = vadd.f32 %v875_v51, %v1867_v62  ;;  %v245_v60 = vadd.f32 %v244_v46, %v243_v63  ;;  %v248_v1 = vsel %vm222_vm0, %v171_v9, 0.0 }
  0x39   :  { %1856 = vst [vmem:[#allocation3_spill] sm:$0xff] %v1310_v57  ;;  %1860 = vst [vmem:[#allocation5_spill] sm:$0xff] %v1318_v61  ;;  %v1344_v16 = vadd.f32 %v875_v51, %v1096_v37  ;;  %v1352_v25 = vadd.f32 %v875_v51, %v1108_v53  ;;  %v1361_v46 = vadd.f32 %v875_v51, %v1114_v10  ;;  %v252_v62 = vsel %vm222_vm0, %v1306_v12, 0.0 }
  0x3a   :  { %1862 = vst [vmem:[#allocation6_spill] sm:$0xff] %v1322_v24  ;;  %1864 = vst [vmem:[#allocation7_spill] sm:$0xff] %v1326_v8  ;;  %v1365_v37 = vadd.f32 %v875_v51, %v1117_v59  ;;  %v247_v23 = vadd.f32 %v246_v3, %v245_v60  ;;  %v1369_v63 = vadd.f32 %v875_v51, %v1120_v50  ;;  %v254_v54 = vsel %vm222_vm0, %v1310_v57, 0.0  ;;  %v1879_v57 = vld [vmem:[#allocation10_spill] sm:$0xff] }
  0x3b   :  { %1865 = vst [vmem:[#allocation53_spill] sm:$0xff] %v1332_v38  ;;  %1866 = vst [vmem:[#allocation54_spill] sm:$0xff] %v1336_v56  ;;  %v1373_v53 = vadd.f32 %v875_v51, %v1129_v2  ;;  %v256_v59 = vsel %vm222_vm0, %v1314_v58, 0.0  ;;  %v258_v50 = vsel %vm222_vm0, %v1318_v61, 0.0  ;;  %v260_v3 = vsel %vm222_vm0, %v1322_v24, 0.0 }
  0x3c   :  { %1868 = vst [vmem:[#allocation19_spill] sm:$0xff] %v1340_v45  ;;  %1869 = vst [vmem:[#allocation55_spill] sm:$0xff] %v1344_v16  ;;  %v249_v10 = vadd.f32 %v248_v1, %v247_v23  ;;  %v262_v2 = vsel %vm222_vm0, %v1326_v8, 0.0  ;;  %v264_v60 = vsel %vm222_vm0, %v1332_v38, 0.0  ;;  %v1392_v1 = vsel %vm222_vm0, %v1336_v56, 0.0  ;;  %v1878_v8 = vld [vmem:[#allocation9_spill] sm:$0xff] }
  0x3d   :  { %1871 = vst [vmem:[#allocation20_spill] sm:$0xff] %v1348_v18  ;;  %1872 = vst [vmem:[#allocation56_spill] sm:$0xff] %v1352_v25  ;;  %v1396_v58 = vsel %vm222_vm0, %v1340_v45, 0.0  ;;  %v1400_v61 = vsel %vm222_vm0, %v1344_v16, 0.0  ;;  %v1404_v24 = vsel %vm222_vm0, %v1348_v18, 0.0  ;;  %v1408_v38 = vsel %vm222_vm0, %v1352_v25, 0.0 }
  0x3e   :  { %1873 = vst [vmem:[#allocation57_spill] sm:$0xff] %v1357_v55  ;;  %1874 = vst [vmem:[#allocation58_spill] sm:$0xff] %v1361_v46  ;;  %v251_v23 = vadd.f32 %v250_v5, %v249_v10  ;;  %v1412_v56 = vsel %vm222_vm0, %v1357_v55, 0.0  ;;  %v1416_v5 = vsel %vm222_vm0, %v1361_v46, 0.0  ;;  %v1420_v10 = vsel %vm222_vm0, %v1365_v37, 0.0  ;;  %v1877_v45 = vld [vmem:[#allocation8_spill] sm:$0xff] }
  0x3f   :  { %1875 = vst [vmem:[#allocation59_spill] sm:$0xff] %v1365_v37  ;;  %1876 = vst [vmem:[#allocation60_spill] sm:$0xff] %v1369_v63  ;;  %v1424_v18 = vsel %vm222_vm0, %v1369_v63, 0.0  ;;  %v358_v25 = vmul.f32 %v1877_v45, %v1877_v45  ;;  %v359_v55 = vmul.f32 %v1878_v8, %v1878_v8  ;;  %v360_v12 = vmul.f32 %v1879_v57, %v1879_v57 }
  0x40   :  { %v253_v16 = vadd.f32 %v252_v62, %v251_v23  ;;  %v361_v46 = vmul.f32 %v1066_v4, %v1066_v4  ;;  %v362_v37 = vmul.f32 %v1103_v52, %v1103_v52  ;;  %v363_v62 = vmul.f32 %v1124_v30, %v1124_v30 }
  0x41   :  { %v364_v63 = vmul.f32 %v1136_v7, %v1136_v7  ;;  %v365_v45 = vmul.f32 %v1140_v6, %v1140_v6  ;;  %v366_v8 = vmul.f32 %v1144_v31, %v1144_v31  ;;  %v367_v57 = vmul.f32 %v1148_v11, %v1148_v11 }
  0x42   :  { %v255_v23 = vadd.f32 %v254_v54, %v253_v16  ;;  %v368_v4 = vmul.f32 %v1154_v32, %v1154_v32  ;;  %v369_v52 = vmul.f32 %v1158_v0, %v1158_v0  ;;  %v370_v54 = vmul.f32 %v1162_v39, %v1162_v39 }
  0x43   :  { %v1452_v7 = vmul.f32 %v171_v9, %v171_v9  ;;  %v1454_v16 = vmul.f32 %v172_v44, %v172_v44  ;;  %v391_v6 = vmul.f32 %v918_v13, %v918_v13  ;;  %v392_v31 = vmul.f32 %v922_v14, %v922_v14 }
  0x44   :  { %v257_v30 = vadd.f32 %v256_v59, %v255_v23  ;;  %v393_v11 = vmul.f32 %v926_v19, %v926_v19  ;;  %v394_v32 = vmul.f32 %v930_v15, %v930_v15  ;;  %v395_v0 = vmul.f32 %v934_v17, %v934_v17 }
  0x45   :  { %1880 = vst [vmem:[#allocation8_spill] sm:$0xff] %v1454_v16  ;;  %v396_v44 = vmul.f32 %v938_v20, %v938_v20  ;;  %v397_v9 = vmul.f32 %v942_v21, %v942_v21  ;;  %v398_v13 = vmul.f32 %v946_v22, %v946_v22  ;;  %v399_v14 = vmul.f32 %v950_v26, %v950_v26 }
  0x46   :  { %v259_v39 = vadd.f32 %v258_v50, %v257_v30  ;;  %v400_v19 = vmul.f32 %v954_v27, %v954_v27  ;;  %v401_v15 = vmul.f32 %v958_v28, %v958_v28  ;;  %v422_v17 = vsel %vm222_vm0, %v358_v25, 0.0 }
  0x47   :  { %v402_v20 = vmul.f32 %v962_v29, %v962_v29  ;;  %v423_v21 = vsel %vm222_vm0, %v359_v55, 0.0  ;;  %v425_v50 = vsel %vm222_vm0, %v360_v12, 0.0  ;;  %v403_v22 = vmul.f32 %v966_v33, %v966_v33 }
  0x48   :  { %v261_v59 = vadd.f32 %v260_v3, %v259_v39  ;;  %v404_v26 = vmul.f32 %v970_v34, %v970_v34  ;;  %v405_v27 = vmul.f32 %v974_v35, %v974_v35  ;;  %v424_v28 = vadd.f32 %v423_v21, %v422_v17  ;;  %v1883_v17 = vld [vmem:[#allocation13_spill] sm:$0xff]  ;;  %v1885_v21 = vld [vmem:[#allocation15_spill] sm:$0xff] }
  0x49   :  { %v406_v25 = vmul.f32 %v978_v36, %v978_v36  ;;  %v407_v29 = vmul.f32 %v982_v40, %v982_v40  ;;  %v427_v55 = vsel %vm222_vm0, %v361_v46, 0.0  ;;  %v408_v12 = vmul.f32 %v986_v41, %v986_v41  ;;  %v1881_v41 = vld [vmem:[#allocation11_spill] sm:$0xff] }
  0x4a   :  { %v263_v23 = vadd.f32 %v262_v2, %v261_v59  ;;  %v409_v33 = vmul.f32 %v990_v42, %v990_v42  ;;  %v410_v34 = vmul.f32 %v994_v43, %v994_v43  ;;  %v426_v35 = vadd.f32 %v425_v50, %v424_v28  ;;  %v1882_v42 = vld [vmem:[#allocation12_spill] sm:$0xff]  ;;  %v1884_v59 = vld [vmem:[#allocation14_spill] sm:$0xff] }
  0x4b   :  { %v411_v2 = vmul.f32 %v998_v47, %v998_v47  ;;  %v412_v36 = vmul.f32 %v1002_v48, %v1002_v48  ;;  %v429_v40 = vsel %vm222_vm0, %v362_v37, 0.0  ;;  %v413_v46 = vmul.f32 %v1006_v49, %v1006_v49  ;;  %v1886_v50 = vld [vmem:[#allocation16_spill] sm:$0xff] }
  0x4c   :  { %v265_v3 = vadd.f32 %v264_v60, %v263_v23  ;;  %v414_v30 = vmul.f32 %v1881_v41, %v1881_v41  ;;  %v415_v39 = vmul.f32 %v1882_v42, %v1882_v42  ;;  %v428_v43 = vadd.f32 %v427_v55, %v426_v35  ;;  %v1887_v23 = vld [vmem:[#allocation17_spill] sm:$0xff]  ;;  %v1888_v35 = vld [vmem:[#allocation18_spill] sm:$0xff] }
  0x4d   :  { %v416_v47 = vmul.f32 %v1883_v17, %v1883_v17  ;;  %v417_v48 = vmul.f32 %v1884_v59, %v1884_v59  ;;  %v431_v37 = vsel %vm222_vm0, %v363_v62, 0.0  ;;  %v418_v49 = vmul.f32 %v1885_v21, %v1885_v21 }
  0x4e   :  { %v267_v60 = vadd.f32 %v1392_v1, %v265_v3  ;;  %v419_v28 = vmul.f32 %v1886_v50, %v1886_v50  ;;  %v420_v41 = vmul.f32 %v1887_v23, %v1887_v23  ;;  %v430_v55 = vadd.f32 %v429_v40, %v428_v43  ;;  %v1889_v23 = vld [vmem:[#allocation21_spill] sm:$0xff] }
  0x4f   :  { %v421_v3 = vmul.f32 %v1888_v35, %v1888_v35  ;;  %v433_v42 = vsel %vm222_vm0, %v364_v63, 0.0  ;;  %v435_v17 = vsel %vm222_vm0, %v365_v45, 0.0  ;;  %v437_v59 = vsel %vm222_vm0, %v366_v8, 0.0 }
  0x50   :  { %v269_v1 = vadd.f32 %v1396_v58, %v267_v60  ;;  %v432_v62 = vadd.f32 %v431_v37, %v430_v55  ;;  %v439_v21 = vsel %vm222_vm0, %v367_v57, 0.0  ;;  %v441_v50 = vsel %vm222_vm0, %v368_v4, 0.0 }
  0x51   :  { %v443_v40 = vsel %vm222_vm0, %v369_v52, 0.0  ;;  %v445_v58 = vsel %vm222_vm0, %v370_v54, 0.0  ;;  %v1535_v43 = vsel %vm222_vm0, %v391_v6, 0.0  ;;  %v1538_v63 = vsel %vm222_vm0, %v392_v31, 0.0 }
  0x52   :  { %v271_v16 = vadd.f32 %v1400_v61, %v269_v1  ;;  %v434_v60 = vadd.f32 %v433_v42, %v432_v62  ;;  %v1541_v45 = vsel %vm222_vm0, %v393_v11, 0.0  ;;  %v1544_v8 = vsel %vm222_vm0, %v394_v32, 0.0  ;;  %v1891_v42 = vld [vmem:[#allocation3_spill] sm:$0xff] }
  0x53   :  { %v1548_v61 = vsel %vm222_vm0, %v395_v0, 0.0  ;;  %v1551_v4 = vsel %vm222_vm0, %v396_v44, 0.0  ;;  %v1554_v52 = vsel %vm222_vm0, %v397_v9, 0.0  ;;  %v1557_v6 = vsel %vm222_vm0, %v398_v13, 0.0 }
  0x54   :  { %v273_v57 = vadd.f32 %v1404_v24, %v271_v16  ;;  %v436_v54 = vadd.f32 %v435_v17, %v434_v60  ;;  %v1560_v31 = vsel %vm222_vm0, %v399_v14, 0.0  ;;  %v1563_v11 = vsel %vm222_vm0, %v400_v19, 0.0  ;;  %v1892_v17 = vld [vmem:[#allocation8_spill] sm:$0xff] }
  0x55   :  { %v1567_v16 = vsel %vm222_vm0, %v401_v15, 0.0  ;;  %v1570_v32 = vsel %vm222_vm0, %v402_v20, 0.0  ;;  %v1573_v0 = vsel %vm222_vm0, %v403_v22, 0.0  ;;  %v1576_v9 = vsel %vm222_vm0, %v404_v26, 0.0 }
  0x56   :  { %v275_v24 = vadd.f32 %v1408_v38, %v273_v57  ;;  %v438_v44 = vadd.f32 %v437_v59, %v436_v54  ;;  %v1579_v13 = vsel %vm222_vm0, %v405_v27, 0.0  ;;  %v1582_v14 = vsel %vm222_vm0, %v406_v25, 0.0  ;;  %v1895_v54 = vld [vmem:[#allocation5_spill] sm:$0xff] }
  0x57   :  { %v1586_v19 = vsel %vm222_vm0, %v407_v29, 0.0  ;;  %v1589_v15 = vsel %vm222_vm0, %v408_v12, 0.0  ;;  %v1592_v20 = vsel %vm222_vm0, %v409_v33, 0.0  ;;  %v1595_v26 = vsel %vm222_vm0, %v410_v34, 0.0 }
  0x58   :  { %v277_v38 = vadd.f32 %v1412_v56, %v275_v24  ;;  %v440_v22 = vadd.f32 %v439_v21, %v438_v44  ;;  %v1598_v27 = vsel %vm222_vm0, %v411_v2, 0.0  ;;  %v1601_v25 = vsel %vm222_vm0, %v412_v36, 0.0 }
  0x59   :  { %v1605_v29 = vsel %vm222_vm0, %v413_v46, 0.0  ;;  %v1608_v12 = vsel %vm222_vm0, %v414_v30, 0.0  ;;  %v1611_v33 = vsel %vm222_vm0, %v415_v39, 0.0  ;;  %v1614_v34 = vsel %vm222_vm0, %v416_v47, 0.0 }
  0x5a   :  { %v279_v56 = vadd.f32 %v1416_v5, %v277_v38  ;;  %v442_v37 = vadd.f32 %v441_v50, %v440_v22  ;;  %v1617_v2 = vsel %vm222_vm0, %v417_v48, 0.0  ;;  %v1620_v36 = vsel %vm222_vm0, %v418_v49, 0.0  ;;  %v1896_v38 = vld [vmem:[#allocation23_spill] sm:$0xff] }
  0x5b   :  { %v1624_v46 = vsel %vm222_vm0, %v419_v28, 0.0  ;;  %v1627_v30 = vsel %vm222_vm0, %v420_v41, 0.0  ;;  %v1630_v39 = vsel %vm222_vm0, %v421_v3, 0.0  ;;  %v1634_v47 = vadd.f32 %v875_v51, %v1889_v23 }
  0x5c   :  { %v281_v5 = vadd.f32 %v1420_v10, %v279_v56  ;;  %v284_v48 = vsel %vm222_vm0, %v1373_v53, 0.0  ;;  %v444_v49 = vadd.f32 %v443_v40, %v442_v37  ;;  %v1890_v10 = vld [vmem:[#allocation2_spill] sm:$0xff]  ;;  %v447_v41 = vsel %vm222_vm0, %v1452_v7, 0.0 }
  0x5d   :  { %v373_v28 = vmul.f32 %v1890_v10, %v1890_v10  ;;  %v286_v1 = vsel %vm222_vm0, %v1634_v47, 0.0  ;;  %v374_v51 = vmul.f32 %v1891_v42, %v1891_v42  ;;  %v449_v62 = vsel %vm222_vm0, %v1892_v17, 0.0  ;;  %v1894_v7 = vld [vmem:[#allocation22_spill] sm:$0xff] }
  0x5e   :  { %v283_v55 = vadd.f32 %v1424_v18, %v281_v5  ;;  %v446_v35 = vadd.f32 %v445_v58, %v444_v49  ;;  %v1893_v18 = vld [vmem:[#allocation4_spill] sm:$0xff]  ;;  %v376_v58 = vmul.f32 %v1895_v54, %v1895_v54  ;;  %v1897_v56 = vld [vmem:[#allocation6_spill] sm:$0xff] }
  0x5f   :  { %v375_v50 = vmul.f32 %v1893_v18, %v1893_v18  ;;  %v451_v40 = vsel %vm222_vm0, %v373_v28, 0.0  ;;  %v453_v24 = vsel %vm222_vm0, %v374_v51, 0.0  ;;  %v377_v37 = vmul.f32 %v1897_v56, %v1897_v56 }
  0x60   :  { %v285_v3 = vadd.f32 %v284_v48, %v283_v55  ;;  %v448_v59 = vadd.f32 %v447_v41, %v446_v35  ;;  %v1898_v48 = vld [vmem:[#allocation24_spill] sm:$0xff]  ;;  %v1899_v55 = vld [vmem:[#allocation7_spill] sm:$0xff]  ;;  %v457_v28 = vsel %vm222_vm0, %v376_v58, 0.0 }
  0x61   :  { %v455_v5 = vsel %vm222_vm0, %v375_v50, 0.0  ;;  %v378_v10 = vmul.f32 %v1899_v55, %v1899_v55  ;;  %v459_v51 = vsel %vm222_vm0, %v377_v37, 0.0 }
  0x62   :  { %v287_v21 = vadd.f32 %v286_v1, %v285_v3  ;;  %v450_v60 = vadd.f32 %v449_v62, %v448_v59  ;;  %v1900_v1 = vld [vmem:[#allocation25_spill] sm:$0xff]  ;;  %v1902_v62 = vld [vmem:[#allocation26_spill] sm:$0xff] }
  0x63   :  { %v1901_v3 = vld [vmem:[#allocation53_spill] sm:$0xff]  ;;  %v461_v50 = vsel %vm222_vm0, %v378_v10, 0.0 }
  0x64   :  { %v289_v57 = vadd.f32 %v1894_v7, %v287_v21  ;;  %v452_v44 = vadd.f32 %v451_v40, %v450_v60  ;;  %v379_v42 = vmul.f32 %v1901_v3, %v1901_v3  ;;  %v1903_v21 = vld [vmem:[#allocation54_spill] sm:$0xff]  ;;  %v1904_v60 = vld [vmem:[#allocation27_spill] sm:$0xff] }
  0x65   :  { %v380_v18 = vmul.f32 %v1903_v21, %v1903_v21 }
  0x66   :  { %v291_v22 = vadd.f32 %v1896_v38, %v289_v57  ;;  %v454_v23 = vadd.f32 %v453_v24, %v452_v44  ;;  %v1905_v57 = vld [vmem:[#allocation19_spill] sm:$0xff]  ;;  %v463_v58 = vsel %vm222_vm0, %v379_v42, 0.0  ;;  %v1906_v44 = vld [vmem:[#allocation28_spill] sm:$0xff] }
  0x67   :  { %v381_v54 = vmul.f32 %v1905_v57, %v1905_v57  ;;  %v465_v37 = vsel %vm222_vm0, %v380_v18, 0.0 }
  0x68   :  { %v293_v49 = vadd.f32 %v1898_v48, %v291_v22  ;;  %v456_v41 = vadd.f32 %v455_v5, %v454_v23  ;;  %v1907_v22 = vld [vmem:[#allocation55_spill] sm:$0xff]  ;;  %v1908_v23 = vld [vmem:[#allocation29_spill] sm:$0xff] }
  0x69   :  { %v382_v56 = vmul.f32 %v1907_v22, %v1907_v22  ;;  %v467_v10 = vsel %vm222_vm0, %v381_v54, 0.0 }
  0x6a   :  { %v295_v35 = vadd.f32 %v1900_v1, %v293_v49  ;;  %v458_v17 = vadd.f32 %v457_v28, %v456_v41  ;;  %v1909_v49 = vld [vmem:[#allocation20_spill] sm:$0xff]  ;;  %v1910_v41 = vld [vmem:[#allocation30_spill] sm:$0xff] }
  0x6b   :  { %v383_v55 = vmul.f32 %v1909_v49, %v1909_v49  ;;  %v469_v42 = vsel %vm222_vm0, %v382_v56, 0.0 }
  0x6c   :  { %v297_v59 = vadd.f32 %v1902_v62, %v295_v35  ;;  %v460_v40 = vadd.f32 %v459_v51, %v458_v17  ;;  %v1911_v35 = vld [vmem:[#allocation56_spill] sm:$0xff]  ;;  %v1912_v17 = vld [vmem:[#allocation31_spill] sm:$0xff] }
  0x6d   :  { %v384_v3 = vmul.f32 %v1911_v35, %v1911_v35  ;;  %v471_v18 = vsel %vm222_vm0, %v383_v55, 0.0 }
  0x6e   :  { %v299_v7 = vadd.f32 %v1904_v60, %v297_v59  ;;  %v462_v24 = vadd.f32 %v461_v50, %v460_v40  ;;  %v1913_v59 = vld [vmem:[#allocation57_spill] sm:$0xff]  ;;  %v1914_v40 = vld [vmem:[#allocation32_spill] sm:$0xff] }
  0x6f   :  { %v385_v21 = vmul.f32 %v1913_v59, %v1913_v59  ;;  %v473_v54 = vsel %vm222_vm0, %v384_v3, 0.0 }
  0x70   :  { %v301_v38 = vadd.f32 %v1906_v44, %v299_v7  ;;  %v464_v5 = vadd.f32 %v463_v58, %v462_v24  ;;  %v1915_v7 = vld [vmem:[#allocation58_spill] sm:$0xff]  ;;  %v1916_v24 = vld [vmem:[#allocation33_spill] sm:$0xff] }
  0x71   :  { %v386_v57 = vmul.f32 %v1915_v7, %v1915_v7  ;;  %v475_v56 = vsel %vm222_vm0, %v385_v21, 0.0  ;;  %v1922_v21 = vld [vmem:[#allocation37_spill] sm:$0xff] }
  0x72   :  { %v303_v48 = vadd.f32 %v1908_v23, %v301_v38  ;;  %v466_v28 = vadd.f32 %v465_v37, %v464_v5  ;;  %v1917_v38 = vld [vmem:[#allocation59_spill] sm:$0xff]  ;;  %v1918_v5 = vld [vmem:[#allocation34_spill] sm:$0xff] }
  0x73   :  { %v387_v22 = vmul.f32 %v1917_v38, %v1917_v38  ;;  %v477_v55 = vsel %vm222_vm0, %v386_v57, 0.0 }
  0x74   :  { %v305_v1 = vadd.f32 %v1910_v41, %v303_v48  ;;  %v468_v51 = vadd.f32 %v467_v10, %v466_v28  ;;  %v1919_v48 = vld [vmem:[#allocation60_spill] sm:$0xff]  ;;  %v1920_v28 = vld [vmem:[#allocation35_spill] sm:$0xff] }
  0x75   :  { %v388_v49 = vmul.f32 %v1919_v48, %v1919_v48  ;;  %v479_v35 = vsel %vm222_vm0, %v387_v22, 0.0  ;;  %v1926_v22 = vld [vmem:[#allocation41_spill] sm:$0xff] }
  0x76   :  { %v307_v62 = vadd.f32 %v1912_v17, %v305_v1  ;;  %v470_v50 = vadd.f32 %v469_v42, %v468_v51  ;;  %v389_v1 = vmul.f32 %v1373_v53, %v1373_v53  ;;  %v1921_v42 = vld [vmem:[#allocation36_spill] sm:$0xff]  ;;  %v390_v17 = vmul.f32 %v1634_v47, %v1634_v47 }
  0x78   :  { %v309_v60 = vadd.f32 %v1914_v40, %v307_v62  ;;  %v472_v58 = vadd.f32 %v471_v18, %v470_v50  ;;  %v481_v62 = vsel %vm222_vm0, %v388_v49, 0.0  ;;  %v483_v50 = vsel %vm222_vm0, %v389_v1, 0.0  ;;  %v1928_v49 = vld [vmem:[#allocation43_spill] sm:$0xff] }
  0x79   :  { %v485_v53 = vsel %vm222_vm0, %v390_v17, 0.0  ;;  %v1932_v17 = vld [vmem:[#allocation47_spill] sm:$0xff] }
  0x7a   :  { %v311_v44 = vadd.f32 %v1916_v24, %v309_v60  ;;  %v474_v37 = vadd.f32 %v473_v54, %v472_v58  ;;  %v1923_v60 = vld [vmem:[#allocation38_spill] sm:$0xff]  ;;  %v1924_v54 = vld [vmem:[#allocation39_spill] sm:$0xff] }
  0x7c   :  { %v313_v23 = vadd.f32 %v1918_v5, %v311_v44  ;;  %v476_v10 = vadd.f32 %v475_v56, %v474_v37  ;;  %v1925_v44 = vld [vmem:[#allocation40_spill] sm:$0xff]  ;;  %v1927_v5 = vld [vmem:[#allocation42_spill] sm:$0xff] }
  0x7e   :  { %v315_v41 = vadd.f32 %v1920_v28, %v313_v23  ;;  %v478_v3 = vadd.f32 %v477_v55, %v476_v10  ;;  %v1929_v28 = vld [vmem:[#allocation44_spill] sm:$0xff] }
  0x80   :  { %v317_v51 = vadd.f32 %v1921_v42, %v315_v41  ;;  %v480_v59 = vadd.f32 %v479_v35, %v478_v3  ;;  %v1930_v35 = vld [vmem:[#allocation45_spill] sm:$0xff]  ;;  %v1931_v42 = vld [vmem:[#allocation46_spill] sm:$0xff] }
  0x82   :  { %v319_v18 = vadd.f32 %v1922_v21, %v317_v51  ;;  %v482_v40 = vadd.f32 %v481_v62, %v480_v59  ;;  %v1933_v59 = vld [vmem:[#allocation48_spill] sm:$0xff] }
  0x84   :  { %v321_v7 = vadd.f32 %v1923_v60, %v319_v18  ;;  %v484_v57 = vadd.f32 %v483_v50, %v482_v40  ;;  %v1934_v18 = vld [vmem:[#allocation49_spill] sm:$0xff]  ;;  %v1935_v40 = vld [vmem:[#allocation50_spill] sm:$0xff] }
  0x86   :  { %v323_v58 = vadd.f32 %v1924_v54, %v321_v7  ;;  %v486_v24 = vadd.f32 %v485_v53, %v484_v57  ;;  %v1936_v7 = vld [vmem:[#allocation51_spill] sm:$0xff]  ;;  %v1937_v57 = vld [vmem:[#allocation52_spill] sm:$0xff] }
  0x88   :  { %v325_v38 = vadd.f32 %v1925_v44, %v323_v58  ;;  %v488_v47 = vadd.f32 %v1535_v43, %v486_v24 }
  0x8a   :  { %v327_v56 = vadd.f32 %v1926_v22, %v325_v38  ;;  %v490_v37 = vadd.f32 %v1538_v63, %v488_v47 }
  0x8c   :  { %v329_v23 = vadd.f32 %v1927_v5, %v327_v56  ;;  %v492_v48 = vadd.f32 %v1541_v45, %v490_v37 }
  0x8e   :  { %v331_v55 = vadd.f32 %v1928_v49, %v329_v23  ;;  %v494_v10 = vadd.f32 %v1544_v8, %v492_v48 }
  0x90   :  { %v333_v41 = vadd.f32 %v1929_v28, %v331_v55  ;;  %v496_v1 = vadd.f32 %v1548_v61, %v494_v10 }
  0x92   :  { %v335_v3 = vadd.f32 %v1930_v35, %v333_v41  ;;  %v498_v43 = vadd.f32 %v1551_v4, %v496_v1 }
  0x94   :  { %v337_v51 = vadd.f32 %v1931_v42, %v335_v3  ;;  %v500_v63 = vadd.f32 %v1554_v52, %v498_v43 }
  0x96   :  { %v339_v62 = vadd.f32 %v1932_v17, %v337_v51  ;;  %v502_v45 = vadd.f32 %v1557_v6, %v500_v63 }
  0x98   :  { %v341_v21 = vadd.f32 %v1933_v59, %v339_v62  ;;  %v504_v8 = vadd.f32 %v1560_v31, %v502_v45 }
  0x9a   :  { %v343_v50 = vadd.f32 %v1934_v18, %v341_v21  ;;  %v506_v61 = vadd.f32 %v1563_v11, %v504_v8 }
  0x9c   :  { %v345_v60 = vadd.f32 %v1935_v40, %v343_v50  ;;  %v508_v4 = vadd.f32 %v1567_v16, %v506_v61 }
  0x9e   :  { %v347_v53 = vadd.f32 %v1936_v7, %v345_v60  ;;  %v510_v52 = vadd.f32 %v1570_v32, %v508_v4 }
  0xa0   :  { %v349_v54 = vadd.f32 %v1937_v57, %v347_v53  ;;  %v512_v6 = vadd.f32 %v1573_v0, %v510_v52 }
  0xa2   :  { %v350_v58 = vrot.slane %v349_v54, 4  ;;  %v514_v24 = vadd.f32 %v1576_v9, %v512_v6 }
  0xa4   :  { %v351_v31 = vadd.f32 %v350_v58, %v349_v54  ;;  %v516_v44 = vadd.f32 %v1579_v13, %v514_v24 }
  0xa6   :  { %v352_v38 = vrot.slane %v351_v31, 2  ;;  %v518_v11 = vadd.f32 %v1582_v14, %v516_v44 }
  0xa8   :  { %v353_v47 = vadd.f32 %v352_v38, %v351_v31  ;;  %v520_v16 = vadd.f32 %v1586_v19, %v518_v11 }
  0xaa   :  { %v354_v22 = vrot.slane %v353_v47, 1  ;;  %v522_v32 = vadd.f32 %v1589_v15, %v520_v16 }
  0xac   :  { %v355_v56 = vadd.f32 %v354_v22, %v353_v47  ;;  %v524_v37 = vadd.f32 %v1592_v20, %v522_v32 }
  0xae   :  { %357 = vst.msk [vmem:[%s1772_s3] sm:$0x1] %vm356_vm1, %v355_v56  ;;  %v526_v0 = vadd.f32 %v1595_v26, %v524_v37 }
  0xb0   :  { %v528_v9 = vadd.f32 %v1598_v27, %v526_v0 }
  0xb2   :  { %v530_v13 = vadd.f32 %v1601_v25, %v528_v9 }
  0xb4   :  { %v532_v14 = vadd.f32 %v1605_v29, %v530_v13 }
  0xb6   :  { %v534_v19 = vadd.f32 %v1608_v12, %v532_v14 }
  0xb8   :  { %v536_v15 = vadd.f32 %v1611_v33, %v534_v19 }
  0xba   :  { %v538_v5 = vadd.f32 %v1614_v34, %v536_v15 }
  0xbc   :  { %v540_v20 = vadd.f32 %v1617_v2, %v538_v5 }
  0xbe   :  { %v542_v23 = vadd.f32 %v1620_v36, %v540_v20 }
  0xc0   :  { %v544_v48 = vadd.f32 %v1624_v46, %v542_v23 }
  0xc2   :  { %v546_v26 = vadd.f32 %v1627_v30, %v544_v48 }
  0xc4   :  { %v548_v27 = vadd.f32 %v1630_v39, %v546_v26 }
  0xc6   :  { %v549_v49 = vrot.slane %v548_v27, 4 }
  0xc8   :  { %v550_v25 = vadd.f32 %v549_v49, %v548_v27 }
  0xca   :  { %v551_v55 = vrot.slane %v550_v25, 2 }
  0xcc   :  { %v552_v29 = vadd.f32 %v551_v55, %v550_v25 }
  0xce   :  { %v553_v10 = vrot.slane %v552_v29, 1 }
  0xd0   :  { %v554_v12 = vadd.f32 %v553_v10, %v552_v29 }
  0xd2   :  { %555 = vst.msk [vmem:[%s1773_s4] sm:$0x1] %vm356_vm1, %v554_v12 }

// kernel: resnet_block.14
= control target key start
LH: loop header
LB: loop body
LE: loop exit
PB: predicated region body
PF: predicated region fallthrough
CT: control target
= control target key end

     0   :  { %s2107_s18 = smov 0   ;;  %s2109_s19 = smov 0   ;;  %s2972_s0 = inlined_call_operand.vmem [shape: f32[2,16,16,4], index: 0, kind: input, shape index: {}, may-alias: {0,1,2}]   ;;  %s2973_s1 = inlined_call_operand.vmem [shape: f32[2,16,16,4], index: 1, kind: input, shape index: {}, may-alias: {0,1,2}]   ;;  %s2974_s2 = inlined_call_operand.vmem [shape: f32[2,16,16,4], index: 2, kind: input, shape index: {}, may-alias: {0,1,2}]   ;;  %s2975_s3 = inlined_call_operand.vmem [shape: bf16[36,32], index: 3, kind: input, shape index: {}]   ;;  %s2976_s4 = inlined_call_operand.vmem [shape: f32[1,32], index: 4, kind: input, shape index: {}]   ;;  %s2977_s5 = inlined_call_operand.vmem [shape: bf16[2,16,16,32], index: 5, kind: output, shape index: {}]  }
   0x1   :  { %s2111_s20 = smov 0  }
   0x2 LB: > { %s27_s1 = sadd.s32 1, %s2062_s19  ;;  %p1843_p0 = scmp.ge.s32.totalorder %s2066_s20, 1  ;;  %s2066_s20 = sphi %s2111_s20, %s15_s20   ;;  %s2062_s19 = sphi %s2109_s19, %s2985_s19   ;;  %s2058_s18 = sphi %s2107_s18, %s2984_s18  }
   0x3   : > { %p29_p1 = scmp.ge.s32.totalorder %s27_s1, 2  ;;  %p273_p2 = scmp.lt.s32.totalorder %s2066_s20, 3 }
   0x5   : > { %s2987_s1 = smov (%p29_p1, %s27_s1), 0  ;;  %p274_p3 = pnand %p1843_p0, %p273_p2 }
   0x6   : > { %vm649_vm0 = vcmask (!%p274_p3), 1047552   ;;  %vm650_vm1 = vsmask.f32 (!%p274_p3), 7424  ;;  %v2978_v0 = vmov (!%p274_p3), 0   ;;  %s2069_s2 = smov (!%p274_p3), 4   ;;  %p338_p4 = scmp.lt.s32.totalorder (!%p274_p3), %s2058_s18, 1 }
   0x7   : > { %277 = sbr.rel (%p274_p3) target bundleno = 610 (0x262), region = 40  ;;  %710 = vrot.lane.b32.xlu0 (!%p274_p3), %v2978_v0, %s2069_s2  ;;  %v601_v1 = vrot.slane (!%p274_p3), %v2978_v0, 1  ;;  %vm2128_vm2 = vmand (!%p274_p3), %vm649_vm0, %vm650_vm1  ;;  %s2070_s21 = smov (!%p274_p3), 8   ;;  %vm582_vm3 = vcmask (!%p274_p3), 1040384   ;;  %vm583_vm4 = vsmask.f32 (!%p274_p3), 256 }
   0x8   : > { %vm2176_vm5 = vmand (!%p274_p3), %vm582_vm3, %vm583_vm4  ;;  %s2071_s26 = smov (!%p274_p3), 12   ;;  %s2072_s27 = smov (!%p274_p3), 16   ;;  %vm1343_vm6 = vcmask (!%p274_p3), 1041408   ;;  %vm1003_vm7 = vcmask (!%p274_p3), 31744   ;;  %vm1052_vm8 = vcmask (!%p274_p3), 64512   ;;  %vm1085_vm9 = vcmask (!%p274_p3), 97280  }
   0x9   : > { %v2134_v3 = vsel (!%p274_p3), %vm2128_vm2, %v601_v1, 0  ;;  %s2073_s28 = smov (!%p274_p3), 20   ;;  %s2074_s6 = smov (!%p274_p3), 24   ;;  %vm1118_vm10 = vcmask (!%p274_p3), 130048   ;;  %vm1151_vm11 = vcmask (!%p274_p3), 162816   ;;  %vm1184_vm12 = vcmask (!%p274_p3), 195584  }
   0xa   : > { %s2075_s11 = smov (!%p274_p3), 28   ;;  %s2076_s12 = smov (!%p274_p3), 32   ;;  %vm1217_vm13 = vcmask (!%p274_p3), 228352   ;;  %vm1250_vm14 = vcmask (!%p274_p3), 261120   ;;  %vm1310_vm15 = vcmask (!%p274_p3), 293888   ;;  %vm1668_vm0 = vcmask (!%p274_p3), 257024  }
   0xb   : > { %758 = vrot.lane.b32.xlu0 (!%p274_p3), %v2134_v3, %s2070_s21 }
   0xe   : > { %s2989_s18 = smov (!%p338_p4, %s2058_s18), 1 }
   0xf   : > { %s1906_s22 = sshll.u32 %s2989_s18, 8  ;;  %s1910_s15 = sshll.u32 %s2989_s18, 7 }
  0x10   : > { %s2144_s25 = scalar_lea.vmem %s2972_s0, %s1906_s22 }
  0x11   : > { %v394_v4 = vld [vmem:[%s2144_s25] sm:$0xff]  ;;  %v395_v5 = vld [vmem:[%s2144_s25 + $0x8] sm:$0xff]  ;;  %v408_v6 = vld [vmem:[%s2144_s25 + $0x70] sm:$0xff] }
  0x12   : > { %v426_v7 = vpack.c.bf16 %v395_v5, %v394_v4  ;;  %v409_v8 = vld [vmem:[%s2144_s25 + $0x78] sm:$0xff]  ;;  %v410_v9 = vld [vmem:[%s2144_s25 + $0x80] sm:$0xff]  ;;  %v411_v10 = vld [vmem:[%s2144_s25 + $0x88] sm:$0xff] }
  0x13   : > { %v2152_v11 = vpack.c.bf16 %v409_v8, %v408_v6  ;;  %v2154_v12 = vpack.c.bf16 %v411_v10, %v410_v9  ;;  %v396_v13 = vld [vmem:[%s2144_s25 + $0x10] sm:$0xff]  ;;  %v397_v14 = vld [vmem:[%s2144_s25 + $0x18] sm:$0xff]  ;;  %v398_v52 = vld [vmem:[%s2144_s25 + $0x20] sm:$0xff] }
  0x14   : > { %712 = vrot.lane.b32.xlu1 %v426_v7, %s2069_s2  ;;  %v462_v15 = vshrl.u32 %v426_v7, 16  ;;  %v465_v16 = vshll.u32 %v426_v7, 16  ;;  %v2159_v17 = vpack.c.bf16 %v397_v14, %v396_v13  ;;  %v412_v22 = vld [vmem:[%s2144_s25 + $0x90] sm:$0xff]  ;;  %v413_v23 = vld [vmem:[%s2144_s25 + $0x98] sm:$0xff]  ;;  %v399_v53 = vld [vmem:[%s2144_s25 + $0x28] sm:$0xff] }
  0x15   : > { %726 = vrot.lane.b32.xlu0 %v2152_v11, %s2069_s2  ;;  %v511_v18 = vshrl.u32 %v2152_v11, 16  ;;  %v514_v19 = vshll.u32 %v2152_v11, 16  ;;  %v518_v20 = vshrl.u32 %v2154_v12, 16  ;;  %v521_v21 = vshll.u32 %v2154_v12, 16  ;;  %v414_v57 = vld [vmem:[%s2144_s25 + $0xa0] sm:$0xff]  ;;  %v415_v58 = vld [vmem:[%s2144_s25 + $0xa8] sm:$0xff] }
  0x16   : > { %v603_v24 = vrot.slane %v465_v16, 1  ;;  %v464_v25 = vrot.slane %v462_v15, 7  ;;  %v469_v26 = vshrl.u32 %v2159_v17, 16  ;;  %v472_v29 = vshll.u32 %v2159_v17, 16  ;;  %v2041_v13 = vld [vmem:[%s2975_s3] sm:$0xff]  }
  0x17   : > { %v617_v27 = vrot.slane %v514_v19, 1  ;;  %v619_v28 = vrot.slane %v521_v21, 1  ;;  %v2173_v33 = vpack.c.bf16 %v413_v23, %v412_v22  ;;  %v520_v37 = vrot.slane %v518_v20, 7  ;;  %1962 = vmatprep.subr.bf16.mxu0 %v2041_v13  ;;  %2000 = vmatprep.subr.bf16.mxu1 %v2041_v13 }
  0x18   : > { %728 = vrot.lane.b32.xlu1 %v2154_v12, %s2069_s2  ;;  %v604_v30 = vor.u32 %v603_v24, %v462_v15  ;;  %v467_v31 = vor.u32 %v465_v16, %v464_v25  ;;  %v471_v32 = vrot.slane %v469_v26, 7  ;;  %v513_v50 = vrot.slane %v511_v18, 7  ;;  %1963 = vmatpush3.bf16.msra.mxu0 %v2041_v13  ;;  %v2042_v16 = vld [vmem:[%s2975_s3 + $0x8] sm:$0xff]  }
  0x19   : > { %v618_v34 = vor.u32 %v617_v27, %v511_v18  ;;  %v620_v36 = vor.u32 %v619_v28, %v518_v20  ;;  %v525_v39 = vshrl.u32 %v2173_v33, 16  ;;  %v523_v44 = vor.u32 %v521_v21, %v520_v37  ;;  %2003 = vmatpush3.bf16.msra.mxu1 %v2041_v13  ;;  %1964 = vmatprep.subr.bf16.mxu0 %v2042_v16  ;;  %v401_v27 = vld [vmem:[%s2144_s25 + $0x38] sm:$0xff] }
  0x1a   : > { %v653_v38 = vsel %vm2128_vm2, %v604_v30, 0  ;;  %v2192_v41 = vsel %vm2176_vm5, 0, %v467_v31  ;;  %v474_v42 = vor.u32 %v472_v29, %v471_v32  ;;  %v528_v46 = vshll.u32 %v2173_v33, 16  ;;  %2001 = vmatprep.subr.bf16.mxu1 %v2042_v16  ;;  %v416_v30 = vld [vmem:[%s2144_s25 + $0xb0] sm:$0xff] }
  0x1b   : > { %760 = vrot.lane.b32.xlu0 %v653_v38, %s2070_s21  ;;  %v2186_v40 = vsel %vm2128_vm2, %v618_v34, 0  ;;  %v2196_v43 = vsel %vm2128_vm2, %v620_v36, 0  ;;  %v527_v45 = vrot.slane %v525_v39, 7  ;;  %v2209_v48 = vsel %vm2176_vm5, 0, %v523_v44 }
  0x1c   : > { %774 = vrot.lane.b32.xlu1 %v2186_v40, %s2070_s21  ;;  %v2205_v47 = vsel %vm2176_vm5, 0, %v474_v42  ;;  %v2222_v54 = vor.u32 %v514_v19, %v513_v50  ;;  %v605_v55 = vrot.slane %v472_v29, 1  ;;  %v2226_v56 = vpack.c.bf16 %v399_v53, %v398_v52  ;;  %1965 = vmatpush3.bf16.msra.mxu0 %v2042_v16  ;;  %v2043_v19 = vld [vmem:[%s2975_s3 + $0x10] ss:$0 sps:$4 sm:$0x33]   ;;  %v418_v53 = vld [vmem:[%s2144_s25 + $0xc0] sm:$0xff] }
  0x1d   : > { %v530_v49 = vor.u32 %v528_v46, %v527_v45  ;;  %v621_v61 = vrot.slane %v528_v46, 1  ;;  %v2235_v62 = vpack.c.bf16 %v415_v58, %v414_v57  ;;  %2004 = vmatpush3.bf16.msra.mxu1 %v2042_v16  ;;  %2006 = vmatprep.subr.msk.bf16.mxu0 %vm1343_vm6, %v2043_v19  ;;  %v1345_v20 = vsel %vm1343_vm6, %v2043_v19, 0  ;;  %v402_v46 = vld [vmem:[%s2144_s25 + $0x40] sm:$0xff] }
  0x1e   : > { %v606_v59 = vor.u32 %v605_v55, %v469_v26  ;;  %v476_v60 = vshrl.u32 %v2226_v56, 16  ;;  %v479_v4 = vshll.u32 %v2226_v56, 16  ;;  %2007 = vmatprep.subr.msk.bf16.mxu1 %vm1343_vm6, %v2043_v19  ;;  %v400_v26 = vld [vmem:[%s2144_s25 + $0x30] sm:$0xff]  ;;  %v419_v55 = vld [vmem:[%s2144_s25 + $0xc8] sm:$0xff] }
  0x1f   : > { %806 = vrot.lane.b32.xlu0 %v2192_v41, %s2071_s26  ;;  %v2217_v51 = vsel %vm2176_vm5, 0, %v530_v49  ;;  %v622_v5 = vor.u32 %v621_v61, %v525_v39  ;;  %v532_v6 = vshrl.u32 %v2235_v62, 16  ;;  %v535_v10 = vshll.u32 %v2235_v62, 16  ;;  %v403_v49 = vld [vmem:[%s2144_s25 + $0x48] sm:$0xff] }
  0x20   : > { %776 = vrot.lane.b32.xlu1 %v2196_v43, %s2070_s21  ;;  %v2242_v63 = vsel %vm2128_vm2, %v606_v59, 0  ;;  %v478_v1 = vrot.slane %v476_v60, 7  ;;  %1967 = vmatpush3.bf16.msra.mxu0 %v1345_v20  ;;  %v607_v21 = vrot.slane %v479_v4, 1  ;;  %v2299_v28 = vpack.c.bf16 %v401_v27, %v400_v26  ;;  %v404_v27 = vld [vmem:[%s2144_s25 + $0x50] sm:$0xff] }
  0x21   : > { %v662_v8 = vsel %vm2128_vm2, %v622_v5, 0  ;;  %v534_v9 = vrot.slane %v532_v6, 7  ;;  %2005 = vmatpush3.bf16.msra.mxu1 %v1345_v20  ;;  %v623_v23 = vrot.slane %v535_v10, 1  ;;  %v2341_v52 = vpack.c.bf16 %v403_v49, %v402_v46 }
  0x22   : > { %v608_v22 = vor.u32 %v607_v21, %v476_v60  ;;  %v483_v31 = vshrl.u32 %v2299_v28, 16  ;;  %v486_v34 = vshll.u32 %v2299_v28, 16  ;;  %v2350_v60 = vpack.c.bf16 %v419_v55, %v418_v53 }
  0x23   : > { %808 = vrot.lane.b32.xlu0 %v2205_v47, %s2071_s26  ;;  %v537_v15 = vor.u32 %v535_v10, %v534_v9  ;;  %v624_v25 = vor.u32 %v623_v23, %v532_v6  ;;  %v490_v58 = vshrl.u32 %v2341_v52, 16 }
  0x24   : > { %822 = vrot.lane.b32.xlu1 %v2209_v48, %s2071_s26  ;;  %v655_v24 = vsel %vm2128_vm2, %v608_v22, 0  ;;  %v609_v50 = vrot.slane %v486_v34, 1 }
  0x25   : > { %v2272_v18 = vsel %vm2176_vm5, 0, %v537_v15  ;;  %v663_v29 = vsel %vm2128_vm2, %v624_v25, 0  ;;  %v492_v61 = vrot.slane %v490_v58, 7 }
  0x26   : > { %v610_v57 = vor.u32 %v609_v50, %v483_v31 }
  0x27   : > { %839 = vrot.lane.b32.xlu0 %v426_v7, %s2072_s27  ;;  %v481_v7 = vor.u32 %v479_v4, %v478_v1 }
  0x28   : > { %824 = vrot.lane.b32.xlu1 %v2217_v51, %s2071_s26 }
  0x29   : > { %v2261_v14 = vsel %vm2176_vm5, 0, %v481_v7  ;;  %v549_v7 = vshll.u32 %v2350_v60, 16 }
  0x2b   : > { %841 = vrot.lane.b32.xlu0 %v2159_v17, %s2072_s27  ;;  %v627_v22 = vrot.slane %v549_v7, 1 }
  0x2c   : > { %855 = vrot.lane.b32.xlu1 %v2154_v12, %s2072_s27 }
  0x2f   : > { %872 = vrot.lane.b32.xlu0 %v653_v38, %s2073_s28 }
  0x30   : > { %857 = vrot.lane.b32.xlu1 %v2173_v33, %s2072_s27 }
  0x33   : > { %874 = vrot.lane.b32.xlu0 %v2242_v63, %s2073_s28 }
  0x34   : > { %888 = vrot.lane.b32.xlu1 %v2196_v43, %s2073_s28 }
  0x37   : > { %905 = vrot.lane.b32.xlu0 %v2205_v47, %s2074_s6 }
  0x38   : > { %890 = vrot.lane.b32.xlu1 %v662_v8, %s2073_s28 }
  0x3b   : > { %907 = vrot.lane.b32.xlu0 %v2261_v14, %s2074_s6 }
  0x3c   : > { %921 = vrot.lane.b32.xlu1 %v2217_v51, %s2074_s6 }
  0x3f   : > { %938 = vrot.lane.b32.xlu0 %v2159_v17, %s2075_s11 }
  0x40   : > { %923 = vrot.lane.b32.xlu1 %v2272_v18, %s2074_s6 }
  0x43   : > { %940 = vrot.lane.b32.xlu0 %v2226_v56, %s2075_s11 }
  0x44   : > { %954 = vrot.lane.b32.xlu1 %v2173_v33, %s2075_s11 }
  0x47   : > { %971 = vrot.lane.b32.xlu0 %v2242_v63, %s2076_s12 }
  0x48   : > { %956 = vrot.lane.b32.xlu1 %v2235_v62, %s2075_s11 }
  0x4b   : > { %714 = vrot.lane.b32.xlu0 %v2159_v17, %s2069_s2  ;;  %v417_v17 = vld [vmem:[%s2144_s25 + $0xb8] sm:$0xff] }
  0x4c   : > { %987 = vrot.lane.b32.xlu1 %v662_v8, %s2076_s12  ;;  %v2309_v32 = vpack.c.bf16 %v417_v17, %v416_v30 }
  0x4e   : > { %v539_v36 = vshrl.u32 %v2309_v32, 16  ;;  %v542_v39 = vshll.u32 %v2309_v32, 16 }
  0x4f   : > { %973 = vrot.lane.b32.xlu0 %v655_v24, %s2076_s12 }
  0x50   : > { %730 = vrot.lane.b32.xlu1 %v2173_v33, %s2069_s2  ;;  %v485_v33 = vrot.slane %v483_v31, 7  ;;  %v541_v38 = vrot.slane %v539_v36, 7  ;;  %v625_v59 = vrot.slane %v542_v39, 1 }
  0x52   : > { %v488_v37 = vor.u32 %v486_v34, %v485_v33  ;;  %v544_v44 = vor.u32 %v542_v39, %v541_v38  ;;  %v626_v1 = vor.u32 %v625_v59, %v539_v36  ;;  %v420_v34 = vld [vmem:[%s2144_s25 + $0xd0] sm:$0xff]  ;;  %v421_v36 = vld [vmem:[%s2144_s25 + $0xd8] sm:$0xff] }
  0x53   : > { %716 = vrot.lane.b32.xlu0 %v2226_v56, %s2069_s2  ;;  %v2436_v38 = vpack.c.bf16 %v421_v36, %v420_v34  ;;  %v423_v34 = vld [vmem:[%s2144_s25 + $0xe8] sm:$0xff] }
  0x54   : > { %989 = vrot.lane.b32.xlu1 %v663_v29, %s2076_s12  ;;  %v2325_v42 = vsel %vm2176_vm5, 0, %v488_v37  ;;  %v2333_v45 = vsel %vm2176_vm5, 0, %v544_v44  ;;  %v664_v5 = vsel %vm2128_vm2, %v626_v1, 0 }
  0x55   : > { %v553_v50 = vshrl.u32 %v2436_v38, 16  ;;  %v556_v59 = vshll.u32 %v2436_v38, 16 }
  0x57   : > { %762 = vrot.lane.b32.xlu0 %v2242_v63, %s2070_s21  ;;  %v493_v63 = vshll.u32 %v2341_v52, 16 }
  0x58   : > { %732 = vrot.lane.b32.xlu1 %v2235_v62, %s2069_s2 }
  0x59   : > { %v495_v4 = vor.u32 %v493_v63, %v492_v61  ;;  %v611_v16 = vrot.slane %v493_v63, 1 }
  0x5b   : > { %764 = vrot.lane.b32.xlu0 %v655_v24, %s2070_s21  ;;  %v612_v21 = vor.u32 %v611_v16, %v490_v58  ;;  %v555_v58 = vrot.slane %v553_v50, 7 }
  0x5c   : > { %778 = vrot.lane.b32.xlu1 %v662_v8, %s2070_s21  ;;  %v2369_v8 = vsel %vm2176_vm5, 0, %v495_v4 }
  0x5d   : > { %v558_v1 = vor.u32 %v556_v59, %v555_v58 }
  0x5f   : > { %810 = vrot.lane.b32.xlu0 %v2261_v14, %s2071_s26 }
  0x60   : > { %780 = vrot.lane.b32.xlu1 %v663_v29, %s2070_s21 }
  0x63   : > { %812 = vrot.lane.b32.xlu0 %v2325_v42, %s2071_s26 }
  0x64   : > { %826 = vrot.lane.b32.xlu1 %v2272_v18, %s2071_s26 }
  0x67   : > { %843 = vrot.lane.b32.xlu0 %v2226_v56, %s2072_s27  ;;  %v656_v56 = vsel %vm2128_vm2, %v610_v57, 0 }
  0x68   : > { %828 = vrot.lane.b32.xlu1 %v2333_v45, %s2071_s26 }
  0x6b   : > { %845 = vrot.lane.b32.xlu0 %v2299_v28, %s2072_s27 }
  0x6c   : > { %859 = vrot.lane.b32.xlu1 %v2235_v62, %s2072_s27  ;;  %v546_v62 = vshrl.u32 %v2350_v60, 16 }
  0x6e   : > { %v548_v6 = vrot.slane %v546_v62, 7  ;;  %v628_v26 = vor.u32 %v627_v22, %v546_v62 }
  0x6f   : > { %876 = vrot.lane.b32.xlu0 %v655_v24, %s2073_s28  ;;  %v2405_v24 = vsel %vm2128_vm2, %v612_v21, 0 }
  0x70   : > { %861 = vrot.lane.b32.xlu1 %v2309_v32, %s2072_s27  ;;  %v551_v9 = vor.u32 %v549_v7, %v548_v6  ;;  %v2423_v31 = vsel %vm2128_vm2, %v628_v26, 0  ;;  %v406_v6 = vld [vmem:[%s2144_s25 + $0x60] sm:$0xff]  ;;  %v407_v7 = vld [vmem:[%s2144_s25 + $0x68] sm:$0xff]  ;;  %v457_v26 = vrot.slane %v2978_v0, 7 }
  0x71   : > { %v2485_v21 = vpack.c.bf16 %v407_v7, %v406_v6 }
  0x72   : > { %v2377_v10 = vsel %vm2176_vm5, 0, %v551_v9  ;;  %v2503_v58 = vsel %vm2176_vm5, 0, %v457_v26 }
  0x73   : > { %878 = vrot.lane.b32.xlu0 %v656_v56, %s2073_s28  ;;  %v504_v36 = vshrl.u32 %v2485_v21, 16 }
  0x74   : > { %892 = vrot.lane.b32.xlu1 %v663_v29, %s2073_s28  ;;  %v405_v29 = vld [vmem:[%s2144_s25 + $0x58] sm:$0xff] }
  0x77   : > { %909 = vrot.lane.b32.xlu0 %v2325_v42, %s2074_s6 }
  0x78   : > { %894 = vrot.lane.b32.xlu1 %v664_v5, %s2073_s28 }
  0x79   : > { %v2379_v13 = vpop.permute.xlu0 %710 }
  0x7a   : > { %v1006_v6 = vsel %vm1003_vm7, %v2503_v58, %v2379_v13 }
  0x7b   : > { %911 = vrot.lane.b32.xlu0 %v2369_v8, %s2074_s6 }
  0x7c   : > { %925 = vrot.lane.b32.xlu1 %v2333_v45, %s2074_s6 }
  0x7d   : > { %v2385_v15 = vpop.permute.xlu0 %758 }
  0x7e   : > { %v1054_v13 = vsel %vm1052_vm8, %v1006_v6, %v2385_v15 }
  0x7f   : > { %942 = vrot.lane.b32.xlu0 %v2299_v28, %s2075_s11 }
  0x80   : > { %927 = vrot.lane.b32.xlu1 %v2377_v10, %s2074_s6 }
  0x83   : > { %944 = vrot.lane.b32.xlu0 %v2341_v52, %s2075_s11 }
  0x84   : > { %958 = vrot.lane.b32.xlu1 %v2309_v32, %s2075_s11 }
  0x86   : > { %v2391_v19 = vpop.permute.xlu1 %712 }
  0x87   : > { %975 = vrot.lane.b32.xlu0 %v656_v56, %s2076_s12  ;;  %v2394_v20 = vpop.permute.xlu0 %726 }
  0x88   : > { %960 = vrot.lane.b32.xlu1 %v2350_v60, %s2075_s11 }
  0x8a   : > { %v2398_v23 = vpop.permute.xlu1 %728 }
  0x8b   : > { %718 = vrot.lane.b32.xlu0 %v2299_v28, %s2069_s2  ;;  %v2417_v28 = vpack.c.bf16 %v405_v29, %v404_v27  ;;  %v422_v29 = vld [vmem:[%s2144_s25 + $0xe0] sm:$0xff] }
  0x8c   : > { %991 = vrot.lane.b32.xlu1 %v664_v5, %s2076_s12 }
  0x8d   : > { %v2407_v25 = vpop.permute.xlu0 %760  ;;  %v500_v46 = vshll.u32 %v2417_v28, 16 }
  0x8e   : > { %v2411_v30 = vpop.permute.xlu1 %774 }
  0x8f   : > { %977 = vrot.lane.b32.xlu0 %v2405_v24, %s2076_s12  ;;  %v613_v16 = vrot.slane %v500_v46, 1 }
  0x90   : > { %734 = vrot.lane.b32.xlu1 %v2309_v32, %s2069_s2  ;;  %v497_v32 = vshrl.u32 %v2417_v28, 16 }
  0x91   : > { %v2419_v17 = vpop.permute.xlu0 %806 }
  0x92   : > { %v2425_v33 = vpop.permute.xlu1 %776  ;;  %v499_v44 = vrot.slane %v497_v32, 7 }
  0x93   : > { %720 = vrot.lane.b32.xlu0 %v2341_v52, %s2069_s2 }
  0x94   : > { %993 = vrot.lane.b32.xlu1 %v2423_v31, %s2076_s12  ;;  %v502_v55 = vor.u32 %v500_v46, %v499_v44  ;;  %v629_v46 = vrot.slane %v556_v59, 1  ;;  %v507_v59 = vshll.u32 %v2485_v21, 16 }
  0x95   : > { %v2434_v37 = vpop.permute.xlu0 %808 }
  0x96   : > { %v2438_v39 = vpop.permute.xlu1 %822  ;;  %v2463_v61 = vsel %vm2176_vm5, 0, %v502_v55  ;;  %v2499_v55 = vpack.c.bf16 %v423_v34, %v422_v29  ;;  %v2525_v29 = vsel %vm2176_vm5, 0, %v2222_v54  ;;  %v1087_v34 = vsel %vm1085_vm9, %v1054_v13, %v2419_v17 }
  0x97   : > { %766 = vrot.lane.b32.xlu0 %v656_v56, %s2070_s21 }
  0x98   : > { %736 = vrot.lane.b32.xlu1 %v2350_v60, %s2069_s2  ;;  %v563_v15 = vshll.u32 %v2499_v55, 16 }
  0x99   : > { %v2444_v49 = vpop.permute.xlu0 %839 }
  0x9a   : > { %v2447_v53 = vpop.permute.xlu1 %824 }
  0x9b   : > { %768 = vrot.lane.b32.xlu0 %v2405_v24, %s2070_s21 }
  0x9c   : > { %782 = vrot.lane.b32.xlu1 %v664_v5, %s2070_s21  ;;  %v2475_v5 = vsel %vm2176_vm5, 0, %v558_v1 }
  0x9d   : > { %v2452_v57 = vpop.permute.xlu0 %841 }
  0x9e   : > { %v2455_v56 = vpop.permute.xlu1 %855 }
  0x9f   : > { %814 = vrot.lane.b32.xlu0 %v2369_v8, %s2071_s26 }
  0xa0   : > { %784 = vrot.lane.b32.xlu1 %v2423_v31, %s2070_s21 }
  0xa1   : > { %v873_v63 = vpop.permute.xlu0 %872 }
  0xa2   : > { %v2465_v62 = vpop.permute.xlu1 %857 }
  0xa3   : > { %816 = vrot.lane.b32.xlu0 %v2463_v61, %s2071_s26 }
  0xa4   : > { %830 = vrot.lane.b32.xlu1 %v2377_v10, %s2071_s26 }
  0xa5   : > { %v2471_v4 = vpop.permute.xlu0 %874 }
  0xa6   : > { %v2479_v9 = vpop.permute.xlu1 %888 }
  0xa7   : > { %847 = vrot.lane.b32.xlu0 %v2341_v52, %s2072_s27  ;;  %v614_v52 = vor.u32 %v613_v16, %v497_v32  ;;  %v506_v32 = vrot.slane %v504_v36, 7  ;;  %v630_v16 = vor.u32 %v629_v46, %v553_v50 }
  0xa8   : > { %832 = vrot.lane.b32.xlu1 %v2475_v5, %s2071_s26 }
  0xa9   : > { %v906_v22 = vpop.permute.xlu0 %905  ;;  %v509_v50 = vor.u32 %v507_v59, %v506_v32  ;;  %v1120_v32 = vsel %vm1118_vm10, %v1087_v34, %v2444_v49 }
  0xaa   : > { %v2488_v27 = vpop.permute.xlu1 %890  ;;  %v1153_v17 = vsel %vm1151_vm11, %v1120_v32, %v873_v63 }
  0xab   : > { %849 = vrot.lane.b32.xlu0 %v2417_v28, %s2072_s27  ;;  %v2557_v13 = vsel %vm2176_vm5, 0, %v509_v50 }
  0xac   : > { %863 = vrot.lane.b32.xlu1 %v2350_v60, %s2072_s27  ;;  %v2511_v60 = vsel %vm2128_vm2, %v614_v52, 0  ;;  %v2539_v52 = vsel %vm2128_vm2, %v630_v16, 0  ;;  %v1186_v16 = vsel %vm1184_vm12, %v1153_v17, %v906_v22  ;;  %v1009_v17 = vsel %vm1003_vm7, %v2192_v41, %v2391_v19 }
  0xad   : > { %v2497_v44 = vpop.permute.xlu0 %907 }
  0xae   : > { %v922_v1 = vpop.permute.xlu1 %921 }
  0xaf   : > { %880 = vrot.lane.b32.xlu0 %v2405_v24, %s2073_s28  ;;  %v560_v24 = vshrl.u32 %v2499_v55, 16 }
  0xb0   : > { %865 = vrot.lane.b32.xlu1 %v2436_v38, %s2072_s27 }
  0xb1   : > { %v939_v7 = vpop.permute.xlu0 %938  ;;  %v562_v46 = vrot.slane %v560_v24, 7 }
  0xb2   : > { %v2520_v26 = vpop.permute.xlu1 %923  ;;  %v1219_v49 = vsel %vm1217_vm13, %v1186_v16, %v939_v7 }
  0xb3   : > { %882 = vrot.lane.b32.xlu0 %v2511_v60, %s2073_s28  ;;  %v565_v34 = vor.u32 %v563_v15, %v562_v46 }
  0xb4   : > { %896 = vrot.lane.b32.xlu1 %v2423_v31, %s2073_s28  ;;  %v1030_v31 = vsel %vm1003_vm7, %v2525_v29, %v2394_v20 }
  0xb5   : > { %v941_v54 = vpop.permute.xlu0 %940  ;;  %v1070_v20 = vsel %vm1052_vm8, %v1030_v31, %v2411_v30  ;;  %v1056_v30 = vsel %vm1052_vm8, %v1009_v17, %v2407_v25  ;;  %v2586_v7 = vsel %vm2176_vm5, 0, %v565_v34 }
  0xb6   : > { %v955_v6 = vpop.permute.xlu1 %954  ;;  %v1103_v32 = vsel %vm1085_vm9, %v1070_v20, %v2438_v39  ;;  %v1089_v41 = vsel %vm1085_vm9, %v1056_v30, %v2434_v37 }
  0xb7   : > { %913 = vrot.lane.b32.xlu0 %v2463_v61, %s2074_s6  ;;  %v1136_v50 = vsel %vm1118_vm10, %v1103_v32, %v2455_v56  ;;  %v1122_v25 = vsel %vm1118_vm10, %v1089_v41, %v2452_v57  ;;  %v425_v41 = vld [vmem:[%s2144_s25 + $0xf8] sm:$0xff] }
  0xb8   : > { %898 = vrot.lane.b32.xlu1 %v2539_v52, %s2073_s28  ;;  %v1169_v39 = vsel %vm1151_vm11, %v1136_v50, %v2479_v9  ;;  %v1155_v31 = vsel %vm1151_vm11, %v1122_v25, %v2471_v4 }
  0xb9   : > { %v972_v63 = vpop.permute.xlu0 %971  ;;  %v1202_v19 = vsel %vm1184_vm12, %v1169_v39, %v922_v1  ;;  %v1033_v1 = vsel %vm1003_vm7, %v2209_v48, %v2398_v23  ;;  %v1188_v16 = vsel %vm1184_vm12, %v1155_v31, %v2497_v44  ;;  %v424_v39 = vld [vmem:[%s2144_s25 + $0xf0] sm:$0xff] }
  0xba   : > { %v957_v0 = vpop.permute.xlu1 %956  ;;  %v1252_v22 = vsel %vm1250_vm14, %v1219_v49, %v972_v63  ;;  %v1235_v46 = vsel %vm1217_vm13, %v1202_v19, %v955_v6  ;;  %v1072_v57 = vsel %vm1052_vm8, %v1033_v1, %v2425_v33  ;;  %v1221_v4 = vsel %vm1217_vm13, %v1188_v16, %v941_v54 }
  0xbb   : > { %915 = vrot.lane.b32.xlu0 %v2557_v13, %s2074_s6  ;;  %1968 = vmatprep.mubr.msk.bf16.mxu0 %vm1310_vm15, %v1252_v22  ;;  %v1105_v20 = vsel %vm1085_vm9, %v1072_v57, %v2447_v53  ;;  %v615_v53 = vrot.slane %v507_v59, 1  ;;  %v2664_v19 = vpack.c.bf16 %v425_v41, %v424_v39 }
  0xbc   : > { %929 = vrot.lane.b32.xlu1 %v2475_v5, %s2074_s6  ;;  %v1138_v44 = vsel %vm1118_vm10, %v1105_v20, %v2465_v62 }
  0xbd   : > { %v2582_v56 = vpop.permute.xlu0 %714  ;;  %v1171_v33 = vsel %vm1151_vm11, %v1138_v44, %v2488_v27  ;;  %v616_v27 = vor.u32 %v615_v53, %v504_v36  ;;  %v672_v1 = vshll.u32 %v2664_v19, 16 }
  0xbe   : > { %v988_v9 = vpop.permute.xlu1 %987  ;;  %v1204_v54 = vsel %vm1184_vm12, %v1171_v33, %v2520_v26  ;;  %v631_v26 = vrot.slane %v563_v15, 1 }
  0xbf   : > { %946 = vrot.lane.b32.xlu0 %v2417_v28, %s2075_s11  ;;  %v1268_v37 = vsel %vm1250_vm14, %v1235_v46, %v988_v9  ;;  %v1237_v62 = vsel %vm1217_vm13, %v1204_v54, %v957_v0  ;;  %v659_v0 = vsel %vm2128_vm2, %v616_v27, 0  ;;  %v669_v46 = vshrl.u32 %v2664_v19, 16 }
  0xc0   : > { %931 = vrot.lane.b32.xlu1 %v2586_v7, %s2074_s6  ;;  %1984 = vmatprep.mubr.msk.bf16.mxu1 %vm1310_vm15, %v1268_v37  ;;  %v632_v50 = vor.u32 %v631_v26, %v560_v24  ;;  %v677_v53 = vrot.slane %v672_v1, 1 }
  0xc1   : > { %v974_v6 = vpop.permute.xlu0 %973  ;;  %v671_v37 = vrot.slane %v669_v46, 7 }
  0xc2   : > { %v1254_v49 = vsel %vm1250_vm14, %v1221_v4, %v974_v6  ;;  %v2610_v23 = vpop.permute.xlu1 %730 }
  0xc3   : > { %948 = vrot.lane.b32.xlu0 %v2485_v21, %s2075_s11  ;;  %1969 = vmatmul.mubr.msk.bf16.vlgmr.msra.gmra.mrb[0].mxu0 %vm1310_vm15, %v1254_v49  ;;  %v674_v57 = vor.u32 %v672_v1, %v671_v37 }
  0xc4   : > { %962 = vrot.lane.b32.xlu1 %v2436_v38, %s2075_s11 }
  0xc5   : > { %v2625_v63 = vpop.permute.xlu0 %716  ;;  %v676_v6 = vsel %vm2176_vm5, 0, %v674_v57 }
  0xc6   : > { %v990_v34 = vpop.permute.xlu1 %989 }
  0xc7   : > { %v1270_v32 = vsel %vm1250_vm14, %v1237_v62, %v990_v34  ;;  %979 = vrot.lane.b32.xlu0 %v2511_v60, %s2076_s12  ;;  %v1012_v34 = vsel %vm1003_vm7, %v2205_v47, %v2582_v56  ;;  %v1036_v47 = vsel %vm1003_vm7, %v2217_v51, %v2610_v23 }
  0xc8   : > { %964 = vrot.lane.b32.xlu1 %v2499_v55, %s2075_s11  ;;  %1985 = vmatmul.mubr.msk.bf16.vlgmr.msra.gmra.mrb[0].mxu1 %vm1310_vm15, %v1270_v32 }
  0xc9   : > { %v763_v59 = vpop.permute.xlu0 %762 }
  0xca   : > { %v2636_v22 = vpop.permute.xlu1 %732 }
  0xcb   : > { %722 = vrot.lane.b32.xlu0 %v2417_v28, %s2069_s2  ;;  %v667_v28 = vsel %vm2128_vm2, %v632_v50, 0 }
  0xcc   : > { %995 = vrot.lane.b32.xlu1 %v2539_v52, %s2076_s12 }
  0xcd   : > { %v2644_v17 = vpop.permute.xlu0 %764 }
  0xce   : > { %v2648_v36 = vpop.permute.xlu1 %778 }
  0xcf   : > { %981 = vrot.lane.b32.xlu0 %v659_v0, %s2076_s12  ;;  %v1074_v2 = vsel %vm1052_vm8, %v1036_v47, %v2648_v36 }
  0xd0   : > { %738 = vrot.lane.b32.xlu1 %v2436_v38, %s2069_s2 }
  0xd1   : > { %v811_v15 = vpop.permute.xlu0 %810 }
  0xd2   : > { %v2655_v30 = vpop.permute.xlu1 %780 }
  0xd3   : > { %724 = vrot.lane.b32.xlu0 %v2485_v21, %s2069_s2 }
  0xd4   : > { %997 = vrot.lane.b32.xlu1 %v667_v28, %s2076_s12 }
  0xd5   : > { %v2662_v24 = vpop.permute.xlu0 %812 }
  0xd6   : > { %v827_v25 = vpop.permute.xlu1 %826 }
  0xd7   : > { %770 = vrot.lane.b32.xlu0 %v2511_v60, %s2070_s21 }
  0xd8   : > { %740 = vrot.lane.b32.xlu1 %v2499_v55, %s2069_s2  ;;  %s2868_s2 = scalar_lea.vmem %s2977_s5, %s1910_s15 }
  0xd9   : > { %v844_v38 = vpop.permute.xlu0 %843 }
  0xda   : > { %v2671_v9 = vpop.permute.xlu1 %828 }
  0xdb   : > { %772 = vrot.lane.b32.xlu0 %v659_v0, %s2070_s21 }
  0xdc   : > { %786 = vrot.lane.b32.xlu1 %v2539_v52, %s2070_s21 }
  0xdd   : > { %v846_v31 = vpop.permute.xlu0 %845 }
  0xde   : > { %v860_v16 = vpop.permute.xlu1 %859 }
  0xdf   : > { %818 = vrot.lane.b32.xlu0 %v2557_v13, %s2071_s26 }
  0xe0   : > { %788 = vrot.lane.b32.xlu1 %v667_v28, %s2070_s21 }
  0xe1   : > { %v877_v60 = vpop.permute.xlu0 %876 }
  0xe2   : > { %v2680_v4 = vpop.permute.xlu1 %861 }
  0xe3   : > { %820 = vrot.lane.b32.xlu0 %v2525_v29, %s2071_s26 }
  0xe4   : > { %834 = vrot.lane.b32.xlu1 %v2586_v7, %s2071_s26 }
  0xe5   : > { %v879_v52 = vpop.permute.xlu0 %878 }
  0xe6   : > { %v893_v20 = vpop.permute.xlu1 %892 }
  0xe7   : > { %851 = vrot.lane.b32.xlu0 %v2485_v21, %s2072_s27  ;;  %v678_v21 = vor.u32 %v677_v53, %v669_v46 }
  0xe8   : > { %836 = vrot.lane.b32.xlu1 %v676_v6, %s2071_s26 }
  0xe9   : > { %v910_v49 = vpop.permute.xlu0 %909  ;;  %v680_v26 = vsel %vm2128_vm2, %v678_v21, 0 }
  0xea   : > { %v895_v44 = vpop.permute.xlu1 %894 }
  0xeb   : > { %853 = vrot.lane.b32.xlu0 %v2152_v11, %s2072_s27 }
  0xec   : > { %867 = vrot.lane.b32.xlu1 %v2499_v55, %s2072_s27  ;;  %v1058_v55 = vsel %vm1052_vm8, %v1012_v34, %v763_v59 }
  0xed   : > { %v912_v33 = vpop.permute.xlu0 %911  ;;  %v1091_v32 = vsel %vm1085_vm9, %v1058_v55, %v811_v15 }
  0xee   : > { %v926_v54 = vpop.permute.xlu1 %925 }
  0xef   : > { %884 = vrot.lane.b32.xlu0 %v659_v0, %s2073_s28  ;;  %v1124_v0 = vsel %vm1118_vm10, %v1091_v32, %v844_v38 }
  0xf0   : > { %869 = vrot.lane.b32.xlu1 %v2664_v19, %s2072_s27  ;;  %v1157_v39 = vsel %vm1151_vm11, %v1124_v0, %v877_v60 }
  0xf1   : > { %v943_v35 = vpop.permute.xlu0 %942  ;;  %v1190_v56 = vsel %vm1184_vm12, %v1157_v39, %v910_v49 }
  0xf2   : > { %v928_v62 = vpop.permute.xlu1 %927  ;;  %v1223_v59 = vsel %vm1217_vm13, %v1190_v56, %v943_v35 }
  0xf3   : > { %886 = vrot.lane.b32.xlu0 %v2186_v40, %s2073_s28 }
  0xf4   : > { %900 = vrot.lane.b32.xlu1 %v667_v28, %s2073_s28  ;;  %v1107_v28 = vsel %vm1085_vm9, %v1074_v2, %v827_v25 }
  0xf5   : > { %v945_v27 = vpop.permute.xlu0 %944  ;;  %v1140_v51 = vsel %vm1118_vm10, %v1107_v28, %v860_v16 }
  0xf6   : > { %v959_v50 = vpop.permute.xlu1 %958  ;;  %v1173_v36 = vsel %vm1151_vm11, %v1140_v51, %v893_v20 }
  0xf7   : > { %917 = vrot.lane.b32.xlu0 %v2525_v29, %s2074_s6  ;;  %v1015_v29 = vsel %vm1003_vm7, %v2261_v14, %v2625_v63  ;;  %v1206_v46 = vsel %vm1184_vm12, %v1173_v36, %v926_v54 }
  0xf8   : > { %902 = vrot.lane.b32.xlu1 %v680_v26, %s2073_s28  ;;  %v1060_v23 = vsel %vm1052_vm8, %v1015_v29, %v2644_v17  ;;  %v1239_v37 = vsel %vm1217_vm13, %v1206_v46, %v959_v50  ;;  %v1039_v17 = vsel %vm1003_vm7, %v2272_v18, %v2636_v22 }
  0xf9   : > { %v976_v15 = vpop.permute.xlu0 %975  ;;  %v1093_v25 = vsel %vm1085_vm9, %v1060_v23, %v2662_v24 }
  0xfa   : > { %v1256_v41 = vsel %vm1250_vm14, %v1223_v59, %v976_v15  ;;  %v961_v38 = vpop.permute.xlu1 %960  ;;  %v1126_v63 = vsel %vm1118_vm10, %v1093_v25, %v846_v31  ;;  %v1076_v31 = vsel %vm1052_vm8, %v1039_v17, %v2655_v30 }
  0xfb   : > { %919 = vrot.lane.b32.xlu0 %v2209_v48, %s2074_s6  ;;  %1972 = vmatprep.mubr.msk.bf16.mxu0 %vm1310_vm15, %v1256_v41  ;;  %v1159_v1 = vsel %vm1151_vm11, %v1126_v63, %v879_v52 }
  0xfc   : > { %933 = vrot.lane.b32.xlu1 %v676_v6, %s2074_s6  ;;  %v1192_v24 = vsel %vm1184_vm12, %v1159_v1, %v912_v33 }
  0xfd   : > { %v719_v14 = vpop.permute.xlu0 %718  ;;  %v1225_v60 = vsel %vm1217_vm13, %v1192_v24, %v945_v27 }
  0xfe   : > { %v992_v48 = vpop.permute.xlu1 %991 }
  0xff   : > { %v1272_v16 = vsel %vm1250_vm14, %v1239_v37, %v992_v48  ;;  %950 = vrot.lane.b32.xlu0 %v2152_v11, %s2075_s11  ;;  %v1109_v11 = vsel %vm1085_vm9, %v1076_v31, %v2671_v9 }
 0x100   : > { %935 = vrot.lane.b32.xlu1 %v2503_v58, %s2074_s6  ;;  %1988 = vmatprep.mubr.msk.bf16.mxu1 %vm1310_vm15, %v1272_v16  ;;  %v1142_v18 = vsel %vm1118_vm10, %v1109_v11, %v2680_v4 }
 0x101   : > { %v978_v57 = vpop.permute.xlu0 %977  ;;  %v1175_v58 = vsel %vm1151_vm11, %v1142_v18, %v895_v44 }
 0x102   : > { %v1258_v52 = vsel %vm1250_vm14, %v1225_v60, %v978_v57  ;;  %v735_v6 = vpop.permute.xlu1 %734  ;;  %v1208_v22 = vsel %vm1184_vm12, %v1175_v58, %v928_v62 }
 0x103   : > { %952 = vrot.lane.b32.xlu0 %v2154_v12, %s2075_s11  ;;  %1973 = vmatmul.mubr.msk.bf16.gmra.mrb[4].mxu0 %vm1310_vm15, %v1258_v52  ;;  %v1241_v9 = vsel %vm1217_vm13, %v1208_v22, %v961_v38  ;;  %v2983_v12 = vmov 0   ;;  %v1042_v51 = vsel %vm1003_vm7, %v2333_v45, %v735_v6 }
 0x104   : > { %966 = vrot.lane.b32.xlu1 %v2664_v19, %s2075_s11 }
 0x105   : > { %v721_v30 = vpop.permute.xlu0 %720 }
 0x106   : > { %v994_v20 = vpop.permute.xlu1 %993  ;;  %v1021_v37 = vsel %vm1003_vm7, %v2369_v8, %v721_v30 }
 0x107   : > { %v1274_v49 = vsel %vm1250_vm14, %v1241_v9, %v994_v20  ;;  %983 = vrot.lane.b32.xlu0 %v2186_v40, %s2076_s12 }
 0x108   : > { %968 = vrot.lane.b32.xlu1 %v2983_v12, %s2075_s11  ;;  %1989 = vmatmul.mubr.msk.bf16.gmra.mrb[4].mxu1 %vm1310_vm15, %v1274_v49 }
 0x109   : > { %v767_v4 = vpop.permute.xlu0 %766 }
 0x10a   : > { %v737_v44 = vpop.permute.xlu1 %736 }
 0x10b   : > { %985 = vrot.lane.b32.xlu0 %v2196_v43, %s2076_s12  ;;  %v1045_v52 = vsel %vm1003_vm7, %v2377_v10, %v737_v44 }
 0x10c   : > { %999 = vrot.lane.b32.xlu1 %v680_v26, %s2076_s12 }
 0x10d   : > { %v769_v19 = vpop.permute.xlu0 %768 }
 0x10e   : > { %v783_v33 = vpop.permute.xlu1 %782  ;;  %v1064_v45 = vsel %vm1052_vm8, %v1021_v37, %v769_v19 }
 0x10f   : > { %v1078_v36 = vsel %vm1052_vm8, %v1042_v51, %v783_v33 }
 0x110   : > { %1001 = vrot.lane.b32.xlu1 %v2134_v3, %s2076_s12  ;;  %v1018_v3 = vsel %vm1003_vm7, %v2325_v42, %v719_v14 }
 0x111   : > { %v815_v53 = vpop.permute.xlu0 %814  ;;  %v1062_v59 = vsel %vm1052_vm8, %v1018_v3, %v767_v4 }
 0x112   : > { %v785_v54 = vpop.permute.xlu1 %784  ;;  %v1095_v15 = vsel %vm1085_vm9, %v1062_v59, %v815_v53 }
 0x113   : > { %v1080_v18 = vsel %vm1052_vm8, %v1045_v52, %v785_v54 }
 0x115   : > { %v817_v40 = vpop.permute.xlu0 %816 }
 0x116   : > { %v831_v35 = vpop.permute.xlu1 %830  ;;  %v1097_v16 = vsel %vm1085_vm9, %v1064_v45, %v817_v40 }
 0x117   : > { %v1111_v46 = vsel %vm1085_vm9, %v1078_v36, %v831_v35 }
 0x119   : > { %v848_v21 = vpop.permute.xlu0 %847 }
 0x11a   : > { %v833_v62 = vpop.permute.xlu1 %832  ;;  %v1128_v41 = vsel %vm1118_vm10, %v1095_v15, %v848_v21 }
 0x11b   : > { %v1113_v30 = vsel %vm1085_vm9, %v1080_v18, %v833_v62 }
 0x11d   : > { %v850_v34 = vpop.permute.xlu0 %849 }
 0x11e   : > { %v864_v55 = vpop.permute.xlu1 %863  ;;  %v1130_v31 = vsel %vm1118_vm10, %v1097_v16, %v850_v34 }
 0x11f   : > { %v1144_v48 = vsel %vm1118_vm10, %v1111_v46, %v864_v55 }
 0x121   : > { %v881_v32 = vpop.permute.xlu0 %880 }
 0x122   : > { %v866_v27 = vpop.permute.xlu1 %865  ;;  %v1161_v29 = vsel %vm1151_vm11, %v1128_v41, %v881_v32 }
 0x123   : > { %v1146_v49 = vsel %vm1118_vm10, %v1113_v30, %v866_v27 }
 0x125   : > { %v883_v0 = vpop.permute.xlu0 %882 }
 0x126   : > { %v897_v50 = vpop.permute.xlu1 %896  ;;  %v1163_v8 = vsel %vm1151_vm11, %v1130_v31, %v883_v0 }
 0x127   : > { %v1177_v1 = vsel %vm1151_vm11, %v1144_v48, %v897_v50 }
 0x129   : > { %v914_v43 = vpop.permute.xlu0 %913 }
 0x12a   : > { %v899_v39 = vpop.permute.xlu1 %898  ;;  %v1194_v23 = vsel %vm1184_vm12, %v1161_v29, %v914_v43 }
 0x12b   : > { %v1179_v10 = vsel %vm1151_vm11, %v1146_v49, %v899_v39 }
 0x12d   : > { %v916_v26 = vpop.permute.xlu0 %915 }
 0x12e   : > { %v930_v47 = vpop.permute.xlu1 %929  ;;  %v1196_v6 = vsel %vm1184_vm12, %v1163_v8, %v916_v26 }
 0x12f   : > { %v1210_v17 = vsel %vm1184_vm12, %v1177_v1, %v930_v47 }
 0x131   : > { %v947_v56 = vpop.permute.xlu0 %946 }
 0x132   : > { %v932_v2 = vpop.permute.xlu1 %931  ;;  %v1227_v25 = vsel %vm1217_vm13, %v1194_v23, %v947_v56 }
 0x133   : > { %v1212_v12 = vsel %vm1184_vm12, %v1179_v10, %v932_v2 }
 0x135   : > { %v949_v28 = vpop.permute.xlu0 %948 }
 0x136   : > { %v963_v38 = vpop.permute.xlu1 %962  ;;  %v1229_v58 = vsel %vm1217_vm13, %v1196_v6, %v949_v28 }
 0x137   : > { %v1243_v60 = vsel %vm1217_vm13, %v1210_v17, %v963_v38 }
 0x139   : > { %v980_v42 = vpop.permute.xlu0 %979 }
 0x13a   : > { %v1260_v14 = vsel %vm1250_vm14, %v1227_v25, %v980_v42  ;;  %v965_v63 = vpop.permute.xlu1 %964 }
 0x13b   : > { %1976 = vmatprep.mubr.msk.bf16.mxu0 %vm1310_vm15, %v1260_v14  ;;  %v1245_v44 = vsel %vm1217_vm13, %v1212_v12, %v965_v63 }
 0x13d   : > { %v723_v24 = vpop.permute.xlu0 %722 }
 0x13e   : > { %v996_v57 = vpop.permute.xlu1 %995  ;;  %v1024_v41 = vsel %vm1003_vm7, %v2463_v61, %v723_v24 }
 0x13f   : > { %v1276_v11 = vsel %vm1250_vm14, %v1243_v60, %v996_v57 }
 0x140   : > { %1992 = vmatprep.mubr.msk.bf16.mxu1 %vm1310_vm15, %v1276_v11 }
 0x141   : > { %v982_v22 = vpop.permute.xlu0 %981 }
 0x142   : > { %v1262_v9 = vsel %vm1250_vm14, %v1229_v58, %v982_v22  ;;  %v739_v20 = vpop.permute.xlu1 %738 }
 0x143   : > { %1977 = vmatmul.mubr.msk.bf16.gmra.mrb[8].mxu0 %vm1310_vm15, %v1262_v9  ;;  %v1048_v46 = vsel %vm1003_vm7, %v2475_v5, %v739_v20 }
 0x145   : > { %v725_v4 = vpop.permute.xlu0 %724 }
 0x146   : > { %v998_v19 = vpop.permute.xlu1 %997  ;;  %v1027_v25 = vsel %vm1003_vm7, %v2557_v13, %v725_v4 }
 0x147   : > { %v1278_v33 = vsel %vm1250_vm14, %v1245_v44, %v998_v19  ;;  %v2859_v44 = vld [vmem:[%s2976_s4] ss:$0 sm:$0xff] }
 0x148   : > { %1993 = vmatmul.mubr.msk.bf16.gmra.mrb[8].mxu1 %vm1310_vm15, %v1278_v33 }
 0x149   : > { %v771_v53 = vpop.permute.xlu0 %770 }
 0x14a   : > { %v741_v54 = vpop.permute.xlu1 %740  ;;  %v1066_v38 = vsel %vm1052_vm8, %v1024_v41, %v771_v53 }
 0x14b   : > { %v1051_v31 = vsel %vm1003_vm7, %v2586_v7, %v741_v54 }
 0x14d   : > { %v773_v40 = vpop.permute.xlu0 %772 }
 0x14e   : > { %v787_v35 = vpop.permute.xlu1 %786  ;;  %v1068_v14 = vsel %vm1052_vm8, %v1027_v25, %v773_v40 }
 0x14f   : > { %v1082_v63 = vsel %vm1052_vm8, %v1048_v46, %v787_v35 }
 0x151   : > { %v819_v21 = vpop.permute.xlu0 %818 }
 0x152   : > { %v789_v62 = vpop.permute.xlu1 %788  ;;  %v1099_v29 = vsel %vm1085_vm9, %v1066_v38, %v819_v21 }
 0x153   : > { %v1084_v8 = vsel %vm1052_vm8, %v1051_v31, %v789_v62 }
 0x155   : > { %v821_v34 = vpop.permute.xlu0 %820 }
 0x156   : > { %v835_v55 = vpop.permute.xlu1 %834  ;;  %v1101_v37 = vsel %vm1085_vm9, %v1068_v14, %v821_v34 }
 0x157   : > { %v1115_v1 = vsel %vm1085_vm9, %v1082_v63, %v835_v55 }
 0x159   : > { %v852_v32 = vpop.permute.xlu0 %851 }
 0x15a   : > { %v837_v27 = vpop.permute.xlu1 %836  ;;  %v1132_v23 = vsel %vm1118_vm10, %v1099_v29, %v852_v32 }
 0x15b   : > { %v1117_v18 = vsel %vm1085_vm9, %v1084_v8, %v837_v27 }
 0x15d   : > { %v854_v0 = vpop.permute.xlu0 %853 }
 0x15e   : > { %v868_v50 = vpop.permute.xlu1 %867  ;;  %v1134_v13 = vsel %vm1118_vm10, %v1101_v37, %v854_v0 }
 0x15f   : > { %v1148_v5 = vsel %vm1118_vm10, %v1115_v1, %v868_v50 }
 0x161   : > { %v885_v43 = vpop.permute.xlu0 %884 }
 0x162   : > { %v870_v39 = vpop.permute.xlu1 %869  ;;  %v1165_v42 = vsel %vm1151_vm11, %v1132_v23, %v885_v43 }
 0x163   : > { %v1150_v7 = vsel %vm1118_vm10, %v1117_v18, %v870_v39 }
 0x165   : > { %v887_v26 = vpop.permute.xlu0 %886 }
 0x166   : > { %v901_v47 = vpop.permute.xlu1 %900  ;;  %v1167_v24 = vsel %vm1151_vm11, %v1134_v13, %v887_v26 }
 0x167   : > { %v1181_v60 = vsel %vm1151_vm11, %v1148_v5, %v901_v47 }
 0x169   : > { %v918_v56 = vpop.permute.xlu0 %917 }
 0x16a   : > { %v903_v2 = vpop.permute.xlu1 %902  ;;  %v1198_v61 = vsel %vm1184_vm12, %v1165_v42, %v918_v56 }
 0x16b   : > { %v1183_v20 = vsel %vm1151_vm11, %v1150_v7, %v903_v2 }
 0x16d   : > { %v920_v3 = vpop.permute.xlu0 %919 }
 0x16e   : > { %v934_v59 = vpop.permute.xlu1 %933  ;;  %v1200_v57 = vsel %vm1184_vm12, %v1167_v24, %v920_v3 }
 0x16f   : > { %v1214_v11 = vsel %vm1184_vm12, %v1181_v60, %v934_v59 }
 0x171   : > { %v951_v15 = vpop.permute.xlu0 %950 }
 0x172   : > { %v936_v28 = vpop.permute.xlu1 %935  ;;  %v1231_v48 = vsel %vm1217_vm13, %v1198_v61, %v951_v15 }
 0x173   : > { %v1216_v49 = vsel %vm1184_vm12, %v1183_v20, %v936_v28 }
 0x175   : > { %v953_v51 = vpop.permute.xlu0 %952 }
 0x176   : > { %v967_v36 = vpop.permute.xlu1 %966  ;;  %v1233_v52 = vsel %vm1217_vm13, %v1200_v57, %v953_v51 }
 0x177   : > { %v1247_v58 = vsel %vm1217_vm13, %v1214_v11, %v967_v36 }
 0x179   : > { %v984_v45 = vpop.permute.xlu0 %983 }
 0x17a   : > { %v1264_v16 = vsel %vm1250_vm14, %v1231_v48, %v984_v45  ;;  %v969_v17 = vpop.permute.xlu1 %968 }
 0x17b   : > { %1980 = vmatprep.mubr.msk.bf16.mxu0 %vm1310_vm15, %v1264_v16  ;;  %v1249_v10 = vsel %vm1217_vm13, %v1216_v49, %v969_v17 }
 0x17d   : > { %v986_v6 = vpop.permute.xlu0 %985 }
 0x17e   : > { %v1266_v22 = vsel %vm1250_vm14, %v1233_v52, %v986_v6  ;;  %v1000_v30 = vpop.permute.xlu1 %999 }
 0x17f   : > { %v1280_v9 = vsel %vm1250_vm14, %v1247_v58, %v1000_v30  ;;  %1981 = vmatmul.mubr.msk.bf16.gmra.mrb[12].mxu0 %vm1310_vm15, %v1266_v22 }
 0x180   : > { %1996 = vmatprep.mubr.msk.bf16.mxu1 %vm1310_vm15, %v1280_v9 }
 0x182   : > { %v1002_v12 = vpop.permute.xlu1 %1001 }
 0x183   : > { %v1282_v4 = vsel %vm1250_vm14, %v1249_v10, %v1002_v12 }
 0x184   : > { %1997 = vmatmul.mubr.msk.bf16.gmra.mrb[12].mxu1 %vm1310_vm15, %v1282_v4 }
 0x196   : > { %v1970_v19 = vpop.f32.mrb[0].mxu0 }
 0x197   : > { %v1390_v33 = vadd.f32 %v1970_v19, %v2859_v44  ;;  %v1381_v53 = vpop.f32.mrb[1].mxu0 }
 0x198   : > { %v1382_v54 = vadd.f32 %v2859_v44, %v1381_v53  ;;  %v1971_v40 = vpop.f32.mrb[2].mxu0 }
 0x199   : > { %v1510_v35 = vmax.f32 %v1390_v33, 0.0  ;;  %v1393_v21 = vadd.f32 %v1971_v40, %v2859_v44  ;;  %v1384_v62 = vpop.f32.mrb[3].mxu0 }
 0x19a   : > { %v1508_v34 = vmax.f32 %v1382_v54, 0.0  ;;  %v1385_v55 = vadd.f32 %v2859_v44, %v1384_v62 }
 0x19b   : > { %v1913_v32 = vpack.c.bf16 %v1510_v35, %v1510_v35  ;;  %v1511_v27 = vmax.f32 %v1393_v21, 0.0  ;;  %v1986_v0 = vpop.f32.mrb[0].mxu1 }
 0x19c   : > { %v1911_v50 = vpack.c.bf16 %v1508_v34, %v1508_v34  ;;  %v1509_v43 = vmax.f32 %v1385_v55, 0.0  ;;  %v1454_v39 = vadd.f32 %v1986_v0, %v2859_v44  ;;  %v1445_v26 = vpop.f32.mrb[1].mxu1 }
 0x19d   : > { %1671 = vst.msk [vmem:[%s2868_s2 + $0x8] sm:$0xf] %vm1668_vm0, %v1913_v32  ;;  %v1914_v47 = vpack.c.bf16 %v1511_v27, %v1511_v27  ;;  %v1446_v56 = vadd.f32 %v2859_v44, %v1445_v26  ;;  %v1987_v2 = vpop.f32.mrb[2].mxu1 }
 0x19e   : > { %1669 = vst.msk [vmem:[%s2868_s2] sm:$0xf] %vm1668_vm0, %v1911_v50  ;;  %v1912_v3 = vpack.c.bf16 %v1509_v43, %v1509_v43  ;;  %v1526_v59 = vmax.f32 %v1454_v39, 0.0  ;;  %v1457_v15 = vadd.f32 %v1987_v2, %v2859_v44  ;;  %v1448_v28 = vpop.f32.mrb[3].mxu1 }
 0x19f   : > { %1672 = vst.msk [vmem:[%s2868_s2 + $0xc] sm:$0xf] %vm1668_vm0, %v1914_v47  ;;  %v1524_v41 = vmax.f32 %v1446_v56, 0.0  ;;  %v1449_v38 = vadd.f32 %v2859_v44, %v1448_v28 }
 0x1a0   : > { %1670 = vst.msk [vmem:[%s2868_s2 + $0x4] sm:$0xf] %vm1668_vm0, %v1912_v3  ;;  %v1929_v29 = vpack.c.bf16 %v1526_v59, %v1526_v59  ;;  %v1527_v51 = vmax.f32 %v1457_v15, 0.0 }
 0x1a1   : > { %v1927_v23 = vpack.c.bf16 %v1524_v41, %v1524_v41  ;;  %v1525_v36 = vmax.f32 %v1449_v38, 0.0 }
 0x1a2   : > { %1687 = vst.msk [vmem:[%s2868_s2 + $0x48] sm:$0xf] %vm1668_vm0, %v1929_v29  ;;  %v1930_v25 = vpack.c.bf16 %v1527_v51, %v1527_v51 }
 0x1a3   : > { %1685 = vst.msk [vmem:[%s2868_s2 + $0x40] sm:$0xf] %vm1668_vm0, %v1927_v23  ;;  %v1928_v42 = vpack.c.bf16 %v1525_v36, %v1525_v36 }
 0x1a4   : > { %1688 = vst.msk [vmem:[%s2868_s2 + $0x4c] sm:$0xf] %vm1668_vm0, %v1930_v25 }
 0x1a5   : > { %1686 = vst.msk [vmem:[%s2868_s2 + $0x44] sm:$0xf] %vm1668_vm0, %v1928_v42 }
 0x1d6   : > { %v1974_v46 = vpop.f32.mrb[4].mxu0 }
 0x1d7   : > { %v1406_v14 = vadd.f32 %v1974_v46, %v2859_v44  ;;  %v1397_v61 = vpop.f32.mrb[5].mxu0 }
 0x1d8   : > { %v1398_v63 = vadd.f32 %v2859_v44, %v1397_v61  ;;  %v1975_v37 = vpop.f32.mrb[6].mxu0 }
 0x1d9   : > { %v1514_v48 = vmax.f32 %v1406_v14, 0.0  ;;  %v1409_v45 = vadd.f32 %v1975_v37, %v2859_v44  ;;  %v1400_v1 = vpop.f32.mrb[7].mxu0 }
 0x1da   : > { %v1512_v13 = vmax.f32 %v1398_v63, 0.0  ;;  %v1401_v16 = vadd.f32 %v2859_v44, %v1400_v1 }
 0x1db   : > { %v1917_v17 = vpack.c.bf16 %v1514_v48, %v1514_v48  ;;  %v1515_v5 = vmax.f32 %v1409_v45, 0.0  ;;  %v1990_v24 = vpop.f32.mrb[4].mxu1 }
 0x1dc   : > { %v1915_v31 = vpack.c.bf16 %v1512_v13, %v1512_v13  ;;  %v1513_v60 = vmax.f32 %v1401_v16, 0.0  ;;  %v1470_v57 = vadd.f32 %v1990_v24, %v2859_v44  ;;  %v1461_v8 = vpop.f32.mrb[5].mxu1 }
 0x1dd   : > { %1675 = vst.msk [vmem:[%s2868_s2 + $0x18] sm:$0xf] %vm1668_vm0, %v1917_v17  ;;  %v1918_v11 = vpack.c.bf16 %v1515_v5, %v1515_v5  ;;  %v1462_v52 = vadd.f32 %v2859_v44, %v1461_v8  ;;  %v1991_v6 = vpop.f32.mrb[6].mxu1 }
 0x1de   : > { %1673 = vst.msk [vmem:[%s2868_s2 + $0x10] sm:$0xf] %vm1668_vm0, %v1915_v31  ;;  %v1916_v18 = vpack.c.bf16 %v1513_v60, %v1513_v60  ;;  %v1530_v58 = vmax.f32 %v1470_v57, 0.0  ;;  %v1473_v22 = vadd.f32 %v1991_v6, %v2859_v44  ;;  %v1464_v30 = vpop.f32.mrb[7].mxu1 }
 0x1df   : > { %1676 = vst.msk [vmem:[%s2868_s2 + $0x1c] sm:$0xf] %vm1668_vm0, %v1918_v11  ;;  %v1528_v7 = vmax.f32 %v1462_v52, 0.0  ;;  %v1465_v9 = vadd.f32 %v2859_v44, %v1464_v30 }
 0x1e0   : > { %1674 = vst.msk [vmem:[%s2868_s2 + $0x14] sm:$0xf] %vm1668_vm0, %v1916_v18  ;;  %v1933_v20 = vpack.c.bf16 %v1530_v58, %v1530_v58  ;;  %v1531_v49 = vmax.f32 %v1473_v22, 0.0 }
 0x1e1   : > { %v1931_v10 = vpack.c.bf16 %v1528_v7, %v1528_v7  ;;  %v1529_v12 = vmax.f32 %v1465_v9, 0.0 }
 0x1e2   : > { %1691 = vst.msk [vmem:[%s2868_s2 + $0x58] sm:$0xf] %vm1668_vm0, %v1933_v20  ;;  %v1934_v4 = vpack.c.bf16 %v1531_v49, %v1531_v49 }
 0x1e3   : > { %1689 = vst.msk [vmem:[%s2868_s2 + $0x50] sm:$0xf] %vm1668_vm0, %v1931_v10  ;;  %v1932_v19 = vpack.c.bf16 %v1529_v12, %v1529_v12 }
 0x1e4   : > { %1692 = vst.msk [vmem:[%s2868_s2 + $0x5c] sm:$0xf] %vm1668_vm0, %v1934_v4 }
 0x1e5   : > { %1690 = vst.msk [vmem:[%s2868_s2 + $0x54] sm:$0xf] %vm1668_vm0, %v1932_v19 }
 0x216   : > { %v1978_v33 = vpop.f32.mrb[8].mxu0 }
 0x217   : > { %v1422_v53 = vadd.f32 %v1978_v33, %v2859_v44  ;;  %v1413_v54 = vpop.f32.mrb[9].mxu0 }
 0x218   : > { %v1414_v40 = vadd.f32 %v2859_v44, %v1413_v54  ;;  %v1979_v35 = vpop.f32.mrb[10].mxu0 }
 0x219   : > { %v1518_v21 = vmax.f32 %v1422_v53, 0.0  ;;  %v1425_v62 = vadd.f32 %v1979_v35, %v2859_v44  ;;  %v1416_v34 = vpop.f32.mrb[11].mxu0 }
 0x21a   : > { %v1516_v55 = vmax.f32 %v1414_v40, 0.0  ;;  %v1417_v32 = vadd.f32 %v2859_v44, %v1416_v34 }
 0x21b   : > { %v1921_v27 = vpack.c.bf16 %v1518_v21, %v1518_v21  ;;  %v1519_v0 = vmax.f32 %v1425_v62, 0.0  ;;  %v1994_v50 = vpop.f32.mrb[8].mxu1 }
 0x21c   : > { %v1919_v43 = vpack.c.bf16 %v1516_v55, %v1516_v55  ;;  %v1517_v39 = vmax.f32 %v1417_v32, 0.0  ;;  %v1486_v26 = vadd.f32 %v1994_v50, %v2859_v44  ;;  %v1477_v47 = vpop.f32.mrb[9].mxu1 }
 0x21d   : > { %1679 = vst.msk [vmem:[%s2868_s2 + $0x28] sm:$0xf] %vm1668_vm0, %v1921_v27  ;;  %v1922_v56 = vpack.c.bf16 %v1519_v0, %v1519_v0  ;;  %v1478_v2 = vadd.f32 %v2859_v44, %v1477_v47  ;;  %v1995_v3 = vpop.f32.mrb[10].mxu1 }
 0x21e   : > { %1677 = vst.msk [vmem:[%s2868_s2 + $0x20] sm:$0xf] %vm1668_vm0, %v1919_v43  ;;  %v1920_v59 = vpack.c.bf16 %v1517_v39, %v1517_v39  ;;  %v1534_v15 = vmax.f32 %v1486_v26, 0.0  ;;  %v1489_v28 = vadd.f32 %v1995_v3, %v2859_v44  ;;  %v1480_v41 = vpop.f32.mrb[11].mxu1 }
 0x21f   : > { %1680 = vst.msk [vmem:[%s2868_s2 + $0x2c] sm:$0xf] %vm1668_vm0, %v1922_v56  ;;  %v1532_v38 = vmax.f32 %v1478_v2, 0.0  ;;  %v1481_v29 = vadd.f32 %v2859_v44, %v1480_v41 }
 0x220   : > { %1678 = vst.msk [vmem:[%s2868_s2 + $0x24] sm:$0xf] %vm1668_vm0, %v1920_v59  ;;  %v1937_v51 = vpack.c.bf16 %v1534_v15, %v1534_v15  ;;  %v1535_v23 = vmax.f32 %v1489_v28, 0.0 }
 0x221   : > { %v1935_v36 = vpack.c.bf16 %v1532_v38, %v1532_v38  ;;  %v1533_v25 = vmax.f32 %v1481_v29, 0.0 }
 0x222   : > { %1695 = vst.msk [vmem:[%s2868_s2 + $0x68] sm:$0xf] %vm1668_vm0, %v1937_v51  ;;  %v1938_v42 = vpack.c.bf16 %v1535_v23, %v1535_v23 }
 0x223   : > { %1693 = vst.msk [vmem:[%s2868_s2 + $0x60] sm:$0xf] %vm1668_vm0, %v1935_v36  ;;  %v1936_v46 = vpack.c.bf16 %v1533_v25, %v1533_v25 }
 0x224   : > { %1696 = vst.msk [vmem:[%s2868_s2 + $0x6c] sm:$0xf] %vm1668_vm0, %v1938_v42 }
 0x225   : > { %1694 = vst.msk [vmem:[%s2868_s2 + $0x64] sm:$0xf] %vm1668_vm0, %v1936_v46 }
 0x252   : > { %v1982_v14 = vpop.f32.mrb[12].mxu0 }
 0x253   : > { %v1438_v61 = vadd.f32 %v1982_v14, %v2859_v44  ;;  %v1429_v63 = vpop.f32.mrb[13].mxu0 }
 0x254   : > { %v1430_v37 = vadd.f32 %v2859_v44, %v1429_v63  ;;  %v1983_v48 = vpop.f32.mrb[14].mxu0 }
 0x255   : > { %v1522_v45 = vmax.f32 %v1438_v61, 0.0  ;;  %v1441_v1 = vadd.f32 %v1983_v48, %v2859_v44  ;;  %v1432_v13 = vpop.f32.mrb[15].mxu0 }
 0x256   : > { %v1520_v16 = vmax.f32 %v1430_v37, 0.0  ;;  %v1433_v17 = vadd.f32 %v2859_v44, %v1432_v13 }
 0x257   : > { %v1925_v5 = vpack.c.bf16 %v1522_v45, %v1522_v45  ;;  %v1523_v24 = vmax.f32 %v1441_v1, 0.0  ;;  %v1998_v31 = vpop.f32.mrb[12].mxu1 }
 0x258   : > { %v1923_v60 = vpack.c.bf16 %v1520_v16, %v1520_v16  ;;  %v1521_v57 = vmax.f32 %v1433_v17, 0.0  ;;  %v1502_v8 = vadd.f32 %v1998_v31, %v2859_v44  ;;  %v1493_v11 = vpop.f32.mrb[13].mxu1 }
 0x259   : > { %1683 = vst.msk [vmem:[%s2868_s2 + $0x38] sm:$0xf] %vm1668_vm0, %v1925_v5  ;;  %v1926_v52 = vpack.c.bf16 %v1523_v24, %v1523_v24  ;;  %v1494_v6 = vadd.f32 %v2859_v44, %v1493_v11  ;;  %v1999_v18 = vpop.f32.mrb[14].mxu1 }
 0x25a   : > { %1681 = vst.msk [vmem:[%s2868_s2 + $0x30] sm:$0xf] %vm1668_vm0, %v1923_v60  ;;  %v1924_v58 = vpack.c.bf16 %v1521_v57, %v1521_v57  ;;  %v1538_v22 = vmax.f32 %v1502_v8, 0.0  ;;  %v1505_v30 = vadd.f32 %v1999_v18, %v2859_v44  ;;  %v1496_v7 = vpop.f32.mrb[15].mxu1 }
 0x25b   : > { %1684 = vst.msk [vmem:[%s2868_s2 + $0x3c] sm:$0xf] %vm1668_vm0, %v1926_v52  ;;  %v1536_v9 = vmax.f32 %v1494_v6, 0.0  ;;  %v1497_v20 = vadd.f32 %v2859_v44, %v1496_v7 }
 0x25c   : > { %1682 = vst.msk [vmem:[%s2868_s2 + $0x34] sm:$0xf] %vm1668_vm0, %v1924_v58  ;;  %v1941_v49 = vpack.c.bf16 %v1538_v22, %v1538_v22  ;;  %v1539_v10 = vmax.f32 %v1505_v30, 0.0 }
 0x25d   : > { %v1939_v12 = vpack.c.bf16 %v1536_v9, %v1536_v9  ;;  %v1537_v4 = vmax.f32 %v1497_v20, 0.0 }
 0x25e   : > { %1699 = vst.msk [vmem:[%s2868_s2 + $0x78] sm:$0xf] %vm1668_vm0, %v1941_v49  ;;  %v1942_v19 = vpack.c.bf16 %v1539_v10, %v1539_v10 }
 0x25f   : > { %1697 = vst.msk [vmem:[%s2868_s2 + $0x70] sm:$0xf] %vm1668_vm0, %v1939_v12  ;;  %v1940_v33 = vpack.c.bf16 %v1537_v4, %v1537_v4 }
 0x260   : > { %1700 = vst.msk [vmem:[%s2868_s2 + $0x7c] sm:$0xf] %vm1668_vm0, %v1942_v19 }
 0x261   : > { %1698 = vst.msk [vmem:[%s2868_s2 + $0x74] sm:$0xf] %vm1668_vm0, %v1940_v33 }
 0x262 PF: > { %s15_s20 = sadd.s32 1, %s2066_s20   ;;  %s2984_s18 = smov %s2062_s19 }
 0x263   : > { %p12_p5 = scmp.ge.s32.totalorder %s15_s20, 4   ;;  %s2985_s19 = smov %s2987_s1 }
 0x265   :  { %14 = sbr.rel (!%p12_p5) target bundleno = 2 (0x2), region = 76 }

// kernel: resnet_block.12
= control target key start
LH: loop header
LB: loop body
LE: loop exit
PB: predicated region body
PF: predicated region fallthrough
CT: control target
= control target key end

     0   :  { %s2322_s24 = smov 0   ;;  %s2324_s1 = smov 0   ;;  %s3071_s0 = inlined_call_operand.vmem [shape: bf16[2,16,16,8], index: 0, kind: input, shape index: {}, may-alias: {0,1,2}]   ;;  %s3072_s1 = inlined_call_operand.vmem [shape: bf16[2,16,16,8], index: 1, kind: input, shape index: {}, may-alias: {0,1,2}]   ;;  %s3073_s2 = inlined_call_operand.vmem [shape: bf16[2,16,16,8], index: 2, kind: input, shape index: {}, may-alias: {0,1,2}]   ;;  %s3074_s3 = inlined_call_operand.vmem [shape: bf16[72,8], index: 3, kind: input, shape index: {}]   ;;  %s3075_s4 = inlined_call_operand.vmem [shape: f32[1,8], index: 4, kind: input, shape index: {}]   ;;  %s3076_s5 = inlined_call_operand.vmem [shape: f32[2,16,16,8], index: 5, kind: output, shape index: {0}]   ;;  %s3077_s6 = inlined_call_operand.vmem [shape: f32[2,1,8], index: 6, kind: output, shape index: {1}]   ;;  %s3078_s7 = inlined_call_operand.vmem [shape: f32[2,1,8], index: 7, kind: output, shape index: {2}]  }
   0x1   :  { %s2326_s2 = smov 0  }
   0x2 LB: > { %s30_s25 = sadd.s32 1, %s2267_s1  ;;  %p2064_p0 = scmp.ge.s32.totalorder %s2271_s2, 1  ;;  %s2271_s2 = sphi %s2326_s2, %s18_s2   ;;  %s2267_s1 = sphi %s2324_s1, %s3084_s1   ;;  %s2263_s24 = sphi %s2322_s24, %s3083_s24  }
   0x3   : > { %p32_p1 = scmp.ge.s32.totalorder %s30_s25, 2  ;;  %p332_p2 = scmp.lt.s32.totalorder %s2271_s2, 3 }
   0x5   : > { %s3086_s25 = smov (%p32_p1, %s30_s25), 0  ;;  %p333_p3 = pnand %p2064_p0, %p332_p2 }
   0x6   : > { %p409_p4 = scmp.lt.s32.totalorder (!%p333_p3), %s2263_s24, 1  ;;  %v2273_v0 = vmov (!%p333_p3), 0   ;;  %vm795_vm0 = vsmask.f32 (!%p333_p3), 7424  ;;  %vm794_vm1 = vcmask (!%p333_p3), 1047552   ;;  %s2274_s26 = smov (!%p333_p3), 8  }
   0x7   : > { %336 = sbr.rel (%p333_p3) target bundleno = 625 (0x271), region = 40  ;;  %v2340_v1 = vcombine.low (!%p333_p3), %v2273_v0, %v2273_v0  ;;  %v2237_v4 = vld [vmem:[%s3074_s3] sm:$0xff] (!%p333_p3)   ;;  %vm2357_vm2 = vmand (!%p333_p3), %vm794_vm1, %vm795_vm0  ;;  %vm728_vm3 = vsmask.f32 (!%p333_p3), 256  ;;  %vm727_vm4 = vcmask (!%p333_p3), 1040384   ;;  %s2275_s10 = smov (!%p333_p3), 32  }
   0x8   : > { %2141 = vmatprep.subr.bf16.mxu0 (!%p333_p3), %v2237_v4  ;;  %2183 = vmatprep.subr.bf16.mxu1 (!%p333_p3), %v2237_v4  ;;  %s2276_s11 = smov (!%p333_p3), 16   ;;  %vm2383_vm5 = vmand (!%p333_p3), %vm727_vm4, %vm728_vm3  ;;  %s2277_s12 = smov (!%p333_p3), 24   ;;  %v2238_v33 = vld [vmem:[%s3074_s3 + $0x8] sm:$0xff] (!%p333_p3)   ;;  %v2239_v34 = vld [vmem:[%s3074_s3 + $0x10] sm:$0xff] (!%p333_p3)   ;;  %vm1496_vm6 = vcmask (!%p333_p3), 1043456   ;;  %vm1140_vm7 = vcmask (!%p333_p3), 64512  }
   0x9   : > { %849 = vrot.lane.b32.xlu0 (!%p333_p3), %v2340_v1, %s2274_s26  ;;  %v600_v2 = vshrl.u32 (!%p333_p3), %v2340_v1, 16  ;;  %v603_v3 = vshll.u32 (!%p333_p3), %v2340_v1, 16  ;;  %2142 = vmatpush3.bf16.msra.mxu0 (!%p333_p3), %v2237_v4  ;;  %s2278_s17 = smov (!%p333_p3), 40   ;;  %v2240_v37 = vld [vmem:[%s3074_s3 + $0x18] sm:$0xff] (!%p333_p3)   ;;  %s2279_s20 = smov (!%p333_p3), 48   ;;  %vm1189_vm8 = vcmask (!%p333_p3), 130048  }
   0xa   : > { %2188 = vmatpush3.bf16.msra.mxu1 (!%p333_p3), %v2237_v4  ;;  %2143 = vmatprep.subr.bf16.mxu0 (!%p333_p3), %v2238_v33  ;;  %v2242_v40 = vld [vmem:[%s3074_s3 + $0x20] ss:$0 sps:$4 sm:$0xff] (!%p333_p3)   ;;  %s2280_s23 = smov (!%p333_p3), 56   ;;  %s2281_s27 = smov (!%p333_p3), 64   ;;  %vm1222_vm9 = vcmask (!%p333_p3), 195584   ;;  %vm1255_vm10 = vcmask (!%p333_p3), 261120  }
   0xb   : > { %v602_v5 = vrot.slane (!%p333_p3), %v600_v2, 7  ;;  %v746_v6 = vrot.slane (!%p333_p3), %v603_v3, 1  ;;  %2184 = vmatprep.subr.bf16.mxu1 (!%p333_p3), %v2238_v33  ;;  %v1498_v43 = vsel (!%p333_p3), %vm1496_vm6, %v2242_v40, 0  ;;  %vm1288_vm11 = vcmask (!%p333_p3), 326656  }
   0xc   : > { %vm1321_vm12 = vcmask (!%p333_p3), 392192   ;;  %vm1354_vm13 = vcmask (!%p333_p3), 457728   ;;  %vm1387_vm14 = vcmask (!%p333_p3), 523264   ;;  %vm1463_vm15 = vcmask (!%p333_p3), 588800  }
   0xd   : > { %v747_v10 = vor.u32 (!%p333_p3), %v746_v6, %v600_v2  ;;  %v2365_v11 = vor.u32 (!%p333_p3), %v603_v3, %v602_v5  ;;  %2144 = vmatpush3.bf16.msra.mxu0 (!%p333_p3), %v2238_v33  ;;  %vm1762_vm0 = vcmask (!%p333_p3), 57344  }
   0xe   : > { %s3088_s24 = smov (!%p409_p4, %s2263_s24), 1  ;;  %2145 = vmatprep.subr.bf16.mxu0 %v2239_v34  ;;  %2189 = vmatpush3.bf16.msra.mxu1 %v2238_v33 }
   0xf   : > { %s2115_s29 = sshll.u32 %s3088_s24, 7  ;;  %v2374_v14 = vsel %vm2357_vm2, %v747_v10, 0  ;;  %2185 = vmatprep.subr.bf16.mxu1 %v2239_v34  ;;  %s472_s15 = scalar_lea.vmem %s3078_s7, %s3088_s24 }
  0x10   : > { %s2355_s9 = scalar_lea.vmem %s3071_s0, %s2115_s29 }
  0x11   : > { %v2362_v8 = vld [vmem:[%s2355_s9 + $0x8] sm:$0xff]   ;;  %v2229_v9 = vld [vmem:[%s2355_s9] sm:$0xff]   ;;  %v2377_v17 = vld [vmem:[%s2355_s9 + $0x10] sm:$0xff]   ;;  %2146 = vmatpush3.bf16.msra.mxu0 %v2239_v34 }
  0x12   : > { %979 = vrot.lane.b32.xlu1 %v2362_v8, %s2275_s10  ;;  %v614_v12 = vshrl.u32 %v2362_v8, 16  ;;  %v617_v13 = vshll.u32 %v2362_v8, 16  ;;  %851 = vrot.lane.b32.xlu0 %v2229_v9, %s2274_s26  ;;  %v607_v15 = vshrl.u32 %v2229_v9, 16  ;;  %v610_v16 = vshll.u32 %v2229_v9, 16  ;;  %v2231_v41 = vld [vmem:[%s2355_s9 + $0x18] sm:$0xff]   ;;  %v2232_v49 = vld [vmem:[%s2355_s9 + $0x20] sm:$0xff]  }
  0x13   : > { %v621_v26 = vshrl.u32 %v2377_v17, 16  ;;  %v624_v32 = vshll.u32 %v2377_v17, 16  ;;  %2147 = vmatprep.subr.bf16.mxu0 %v2240_v37  ;;  %2190 = vmatpush3.bf16.msra.mxu1 %v2239_v34  ;;  %v628_v44 = vshrl.u32 %v2231_v41, 16  ;;  %v631_v47 = vshll.u32 %v2231_v41, 16  ;;  %v2233_v60 = vld [vmem:[%s2355_s9 + $0x28] sm:$0xff]   ;;  %v2234_v4 = vld [vmem:[%s2355_s9 + $0x30] sm:$0xff]  }
  0x14   : > { %v616_v18 = vrot.slane %v614_v12, 7  ;;  %v748_v19 = vrot.slane %v610_v16, 1  ;;  %v609_v20 = vrot.slane %v607_v15, 7  ;;  %v750_v22 = vrot.slane %v617_v13, 1  ;;  %2186 = vmatprep.subr.bf16.mxu1 %v2240_v37 }
  0x15   : > { %v623_v31 = vrot.slane %v621_v26, 7  ;;  %v752_v39 = vrot.slane %v624_v32, 1  ;;  %2148 = vmatpush3.bf16.msra.mxu0 %v2240_v37  ;;  %v630_v46 = vrot.slane %v628_v44, 7  ;;  %v754_v51 = vrot.slane %v631_v47, 1 }
  0x16   : > { %897 = vrot.lane.b32.xlu1 %v2374_v14, %s2276_s11  ;;  %977 = vrot.lane.b32.xlu0 %v2229_v9, %s2275_s10  ;;  %v749_v23 = vor.u32 %v748_v19, %v607_v15  ;;  %v612_v24 = vor.u32 %v610_v16, %v609_v20  ;;  %v619_v25 = vor.u32 %v617_v13, %v616_v18  ;;  %v635_v52 = vshrl.u32 %v2232_v49, 16  ;;  %v2235_v18 = vld [vmem:[%s2355_s9 + $0x38] sm:$0xff]  }
  0x17   : > { %v751_v30 = vor.u32 %v750_v22, %v614_v12  ;;  %v626_v36 = vor.u32 %v624_v32, %v623_v31  ;;  %v753_v42 = vor.u32 %v752_v39, %v621_v26  ;;  %2193 = vmatprep.subr.msk.bf16.mxu0 %vm1496_vm6, %v2242_v40  ;;  %2191 = vmatpush3.bf16.msra.mxu1 %v2240_v37  ;;  %v638_v55 = vshll.u32 %v2232_v49, 16  ;;  %v2513_v26 = vld [vmem:[%s2355_s9 + $0x40] sm:$0xff]  }
  0x18   : > { %v798_v27 = vsel %vm2357_vm2, %v749_v23, 0  ;;  %v2393_v28 = vsel %vm2383_vm5, 0, %v612_v24  ;;  %v2400_v29 = vsel %vm2383_vm5, 0, %v619_v25  ;;  %2194 = vmatprep.subr.msk.bf16.mxu1 %vm1496_vm6, %v2242_v40  ;;  %v633_v48 = vor.u32 %v631_v47, %v630_v46 }
  0x19   : > { %v799_v35 = vsel %vm2357_vm2, %v751_v30, 0  ;;  %v2422_v38 = vsel %vm2383_vm5, 0, %v626_v36  ;;  %v800_v45 = vsel %vm2357_vm2, %v753_v42, 0  ;;  %2150 = vmatpush3.bf16.msra.mxu0 %v1498_v43  ;;  %v755_v53 = vor.u32 %v754_v51, %v628_v44 }
  0x1a   : > { %899 = vrot.lane.b32.xlu1 %v798_v27, %s2276_s11  ;;  %945 = vrot.lane.b32.xlu0 %v2393_v28, %s2277_s12  ;;  %v2449_v50 = vsel %vm2383_vm5, 0, %v633_v48  ;;  %v637_v54 = vrot.slane %v635_v52, 7  ;;  %v756_v59 = vrot.slane %v638_v55, 1  ;;  %v642_v62 = vshrl.u32 %v2233_v60, 16 }
  0x1b   : > { %2192 = vmatpush3.bf16.msra.mxu1 %v1498_v43  ;;  %v801_v56 = vsel %vm2357_vm2, %v755_v53, 0  ;;  %v645_v2 = vshll.u32 %v2233_v60, 16  ;;  %v652_v12 = vshll.u32 %v2234_v4, 16  ;;  %v656_v20 = vshrl.u32 %v2235_v18, 16  ;;  %v2542_v43 = vld [vmem:[%s2355_s9 + $0x48] sm:$0xff]  }
  0x1c   : > { %v640_v57 = vor.u32 %v638_v55, %v637_v54  ;;  %v757_v61 = vor.u32 %v756_v59, %v635_v52  ;;  %v644_v0 = vrot.slane %v642_v62, 7  ;;  %v659_v24 = vshll.u32 %v2235_v18, 16  ;;  %v2562_v59 = vld [vmem:[%s2355_s9 + $0x50] sm:$0xff]  }
  0x1d   : > { %v758_v6 = vrot.slane %v645_v2, 1  ;;  %v658_v23 = vrot.slane %v656_v20, 7  ;;  %v663_v31 = vshrl.u32 %v2513_v26, 16  ;;  %v666_v34 = vshll.u32 %v2513_v26, 16 }
  0x1e   : > { %947 = vrot.lane.b32.xlu1 %v2400_v29, %s2277_s12  ;;  %1010 = vrot.lane.b32.xlu0 %v798_v27, %s2278_s17  ;;  %v2464_v58 = vsel %vm2383_vm5, 0, %v640_v57  ;;  %v802_v63 = vsel %vm2357_vm2, %v757_v61, 0  ;;  %v647_v3 = vor.u32 %v645_v2, %v644_v0  ;;  %v762_v30 = vrot.slane %v659_v24, 1 }
  0x1f   : > { %v759_v9 = vor.u32 %v758_v6, %v642_v62  ;;  %v661_v25 = vor.u32 %v659_v24, %v658_v23  ;;  %v665_v33 = vrot.slane %v663_v31, 7  ;;  %v670_v47 = vshrl.u32 %v2542_v43, 16 }
  0x20   : > { %v2484_v5 = vsel %vm2383_vm5, 0, %v647_v3  ;;  %v763_v32 = vor.u32 %v762_v30, %v656_v20  ;;  %v673_v53 = vshll.u32 %v2542_v43, 16  ;;  %v677_v3 = vshrl.u32 %v2562_v59, 16 }
  0x21   : > { %v803_v13 = vsel %vm2357_vm2, %v759_v9, 0  ;;  %v2520_v27 = vsel %vm2383_vm5, 0, %v661_v25  ;;  %v668_v37 = vor.u32 %v666_v34, %v665_v33  ;;  %v672_v52 = vrot.slane %v670_v47, 7 }
  0x22   : > { %1012 = vrot.lane.b32.xlu1 %v799_v35, %s2278_s17  ;;  %1043 = vrot.lane.b32.xlu0 %v2400_v29, %s2279_s20  ;;  %v805_v36 = vsel %vm2357_vm2, %v763_v32, 0  ;;  %v766_v2 = vrot.slane %v673_v53, 1 }
  0x23   : > { %v2536_v39 = vsel %vm2383_vm5, 0, %v668_v37  ;;  %v675_v57 = vor.u32 %v673_v53, %v672_v52 }
  0x25   : > { %v2573_v0 = vsel %vm2383_vm5, 0, %v675_v57 }
  0x26   : > { %1045 = vrot.lane.b32.xlu1 %v2422_v38, %s2279_s20  ;;  %1075 = vrot.lane.b32.xlu0 %v2362_v8, %s2280_s23 }
  0x2a   : > { %1077 = vrot.lane.b32.xlu1 %v2377_v17, %s2280_s23  ;;  %1108 = vrot.lane.b32.xlu0 %v799_v35, %s2281_s27 }
  0x2e   : > { %853 = vrot.lane.b32.xlu1 %v2362_v8, %s2274_s26  ;;  %1110 = vrot.lane.b32.xlu0 %v800_v45, %s2281_s27  ;;  %v649_v8 = vshrl.u32 %v2234_v4, 16 }
  0x30   : > { %v651_v10 = vrot.slane %v649_v8, 7 }
  0x32   : > { %855 = vrot.lane.b32.xlu1 %v2377_v17, %s2274_s26  ;;  %901 = vrot.lane.b32.xlu0 %v799_v35, %s2276_s11  ;;  %v654_v15 = vor.u32 %v652_v12, %v651_v10 }
  0x34   : > { %v2498_v16 = vsel %vm2383_vm5, 0, %v654_v15 }
  0x36   : > { %903 = vrot.lane.b32.xlu1 %v800_v45, %s2276_s11  ;;  %949 = vrot.lane.b32.xlu0 %v2422_v38, %s2277_s12 }
  0x3a   : > { %951 = vrot.lane.b32.xlu1 %v2449_v50, %s2277_s12  ;;  %981 = vrot.lane.b32.xlu0 %v2377_v17, %s2275_s10  ;;  %v760_v17 = vrot.slane %v652_v12, 1  ;;  %v680_v12 = vshll.u32 %v2562_v59, 16 }
  0x3c   : > { %v761_v19 = vor.u32 %v760_v17, %v649_v8  ;;  %v679_v17 = vrot.slane %v677_v3, 7 }
  0x3e   : > { %983 = vrot.lane.b32.xlu1 %v2231_v41, %s2275_s10  ;;  %1014 = vrot.lane.b32.xlu0 %v800_v45, %s2278_s17  ;;  %v804_v22 = vsel %vm2357_vm2, %v761_v19, 0  ;;  %v682_v30 = vor.u32 %v680_v12, %v679_v17 }
  0x42   : > { %1016 = vrot.lane.b32.xlu1 %v801_v56, %s2278_s17  ;;  %1047 = vrot.lane.b32.xlu0 %v2449_v50, %s2279_s20 }
  0x46   : > { %1049 = vrot.lane.b32.xlu1 %v2464_v58, %s2279_s20  ;;  %1079 = vrot.lane.b32.xlu0 %v2231_v41, %s2280_s23 }
  0x4a   : > { %1081 = vrot.lane.b32.xlu1 %v2232_v49, %s2280_s23  ;;  %1112 = vrot.lane.b32.xlu0 %v801_v56, %s2281_s27 }
  0x4e   : > { %857 = vrot.lane.b32.xlu1 %v2231_v41, %s2274_s26  ;;  %1114 = vrot.lane.b32.xlu0 %v802_v63, %s2281_s27  ;;  %v764_v41 = vrot.slane %v666_v34, 1 }
  0x50   : > { %v765_v45 = vor.u32 %v764_v41, %v663_v31 }
  0x52   : > { %859 = vrot.lane.b32.xlu1 %v2232_v49, %s2274_s26  ;;  %905 = vrot.lane.b32.xlu0 %v801_v56, %s2276_s11  ;;  %v2556_v56 = vsel %vm2383_vm5, 0, %v2365_v11 }
  0x56   : > { %907 = vrot.lane.b32.xlu1 %v802_v63, %s2276_s11  ;;  %953 = vrot.lane.b32.xlu0 %v2464_v58, %s2277_s12 }
  0x5a   : > { %955 = vrot.lane.b32.xlu1 %v2484_v5, %s2277_s12  ;;  %985 = vrot.lane.b32.xlu0 %v2232_v49, %s2275_s10  ;;  %v806_v49 = vsel %vm2357_vm2, %v765_v45, 0 }
  0x5e   : > { %987 = vrot.lane.b32.xlu1 %v2233_v60, %s2275_s10  ;;  %1018 = vrot.lane.b32.xlu0 %v802_v63, %s2278_s17 }
  0x62   : > { %1020 = vrot.lane.b32.xlu1 %v803_v13, %s2278_s17  ;;  %1051 = vrot.lane.b32.xlu0 %v2484_v5, %s2279_s20 }
  0x66   : > { %1053 = vrot.lane.b32.xlu1 %v2498_v16, %s2279_s20  ;;  %1083 = vrot.lane.b32.xlu0 %v2233_v60, %s2280_s23 }
  0x6a   : > { %1085 = vrot.lane.b32.xlu1 %v2234_v4, %s2280_s23  ;;  %1116 = vrot.lane.b32.xlu0 %v803_v13, %s2281_s27 }
  0x6e   : > { %861 = vrot.lane.b32.xlu1 %v2233_v60, %s2274_s26  ;;  %1118 = vrot.lane.b32.xlu0 %v804_v22, %s2281_s27 }
  0x72   : > { %863 = vrot.lane.b32.xlu1 %v2234_v4, %s2274_s26  ;;  %909 = vrot.lane.b32.xlu0 %v803_v13, %s2276_s11 }
  0x76   : > { %911 = vrot.lane.b32.xlu1 %v804_v22, %s2276_s11  ;;  %957 = vrot.lane.b32.xlu0 %v2498_v16, %s2277_s12 }
  0x7a   : > { %959 = vrot.lane.b32.xlu1 %v2520_v27, %s2277_s12  ;;  %989 = vrot.lane.b32.xlu0 %v2234_v4, %s2275_s10 }
  0x7b   : > { %v850_v35 = vpop.permute.xlu0 %849 }
  0x7c   : > { %v1143_v61 = vsel %vm1140_vm7, %v2556_v56, %v850_v35 }
  0x7e   : > { %991 = vrot.lane.b32.xlu1 %v2235_v18, %s2275_s10  ;;  %1022 = vrot.lane.b32.xlu0 %v804_v22, %s2278_s17 }
  0x82   : > { %1024 = vrot.lane.b32.xlu1 %v805_v36, %s2278_s17  ;;  %1055 = vrot.lane.b32.xlu0 %v2520_v27, %s2279_s20 }
  0x84   : > { %v980_v40 = vpop.permute.xlu1 %979  ;;  %v852_v42 = vpop.permute.xlu0 %851 }
  0x85   : > { %v1146_v6 = vsel %vm1140_vm7, %v2393_v28, %v852_v42  ;;  %v767_v28 = vor.u32 %v766_v2, %v670_v47  ;;  %v2614_v42 = vld [vmem:[%s2355_s9 + $0x58] sm:$0xff]  }
  0x86   : > { %1057 = vrot.lane.b32.xlu1 %v2536_v39, %s2279_s20  ;;  %1087 = vrot.lane.b32.xlu0 %v2235_v18, %s2280_s23  ;;  %v684_v47 = vshrl.u32 %v2614_v42, 16  ;;  %v687_v53 = vshll.u32 %v2614_v42, 16 }
  0x88   : > { %v898_v44 = vpop.permute.xlu1 %897  ;;  %v978_v46 = vpop.permute.xlu0 %977  ;;  %v686_v52 = vrot.slane %v684_v47, 7 }
  0x89   : > { %v1191_v63 = vsel %vm1189_vm8, %v1143_v61, %v898_v44 }
  0x8a   : > { %1089 = vrot.lane.b32.xlu1 %v2513_v26, %s2280_s23  ;;  %1120 = vrot.lane.b32.xlu0 %v805_v36, %s2281_s27  ;;  %v689_v57 = vor.u32 %v687_v53, %v686_v52 }
  0x8c   : > { %v900_v48 = vpop.permute.xlu1 %899  ;;  %v946_v51 = vpop.permute.xlu0 %945 }
  0x8d   : > { %v1224_v11 = vsel %vm1222_vm9, %v1191_v63, %v946_v51  ;;  %v1193_v9 = vsel %vm1189_vm8, %v1146_v6, %v900_v48 }
  0x8e   : > { %865 = vrot.lane.b32.xlu1 %v2235_v18, %s2274_s26  ;;  %1122 = vrot.lane.b32.xlu0 %v806_v49, %s2281_s27  ;;  %v1257_v10 = vsel %vm1255_vm10, %v1224_v11, %v978_v46  ;;  %v2639_v11 = vsel %vm2383_vm5, 0, %v689_v57 }
  0x90   : > { %v948_v54 = vpop.permute.xlu1 %947  ;;  %v1011_v55 = vpop.permute.xlu0 %1010 }
  0x91   : > { %v1226_v13 = vsel %vm1222_vm9, %v1193_v9, %v948_v54  ;;  %v1290_v15 = vsel %vm1288_vm11, %v1257_v10, %v1011_v55 }
  0x92   : > { %867 = vrot.lane.b32.xlu1 %v2513_v26, %s2274_s26  ;;  %913 = vrot.lane.b32.xlu0 %v805_v36, %s2276_s11  ;;  %v1259_v23 = vsel %vm1255_vm10, %v1226_v13, %v980_v40  ;;  %v2607_v36 = vsel %vm2383_vm5, 0, %v682_v30  ;;  %v768_v40 = vrot.slane %v680_v12, 1 }
  0x94   : > { %v1013_v60 = vpop.permute.xlu1 %1012  ;;  %v1044_v62 = vpop.permute.xlu0 %1043  ;;  %v769_v45 = vor.u32 %v768_v40, %v677_v3 }
  0x95   : > { %v1323_v18 = vsel %vm1321_vm12, %v1290_v15, %v1044_v62  ;;  %v1292_v25 = vsel %vm1288_vm11, %v1259_v23, %v1013_v60  ;;  %v2630_v60 = vld [vmem:[%s2355_s9 + $0x60] sm:$0xff]  }
  0x96   : > { %915 = vrot.lane.b32.xlu1 %v806_v49, %s2276_s11  ;;  %961 = vrot.lane.b32.xlu0 %v2536_v39, %s2277_s12  ;;  %v691_v2 = vshrl.u32 %v2630_v60, 16  ;;  %v694_v15 = vshll.u32 %v2630_v60, 16 }
  0x98   : > { %v1046_v4 = vpop.permute.xlu1 %1045  ;;  %v1076_v8 = vpop.permute.xlu0 %1075  ;;  %v693_v13 = vrot.slane %v691_v2, 7 }
  0x99   : > { %v1356_v20 = vsel %vm1354_vm13, %v1323_v18, %v1076_v8  ;;  %v1325_v31 = vsel %vm1321_vm12, %v1292_v25, %v1046_v4 }
  0x9a   : > { %963 = vrot.lane.b32.xlu1 %v2573_v0, %s2277_s12  ;;  %993 = vrot.lane.b32.xlu0 %v2513_v26, %s2275_s10  ;;  %v807_v26 = vsel %vm2357_vm2, %v767_v28, 0  ;;  %v696_v25 = vor.u32 %v694_v15, %v693_v13 }
  0x9c   : > { %v1078_v19 = vpop.permute.xlu1 %1077  ;;  %v1109_v22 = vpop.permute.xlu0 %1108 }
  0x9d   : > { %v1389_v24 = vsel %vm1387_vm14, %v1356_v20, %v1109_v22  ;;  %v1358_v33 = vsel %vm1354_vm13, %v1325_v31, %v1078_v19 }
  0x9e   : > { %995 = vrot.lane.b32.xlu1 %v2542_v43, %s2275_s10  ;;  %1026 = vrot.lane.b32.xlu0 %v806_v49, %s2278_s17  ;;  %v808_v49 = vsel %vm2357_vm2, %v769_v45, 0 }
  0x9f   : > { %2151 = vmatprep.mubr.msk.bf16.mxu0 %vm1463_vm15, %v1389_v24 }
  0xa0   : > { %v854_v32 = vpop.permute.xlu1 %853  ;;  %v1111_v34 = vpop.permute.xlu0 %1110 }
  0xa1   : > { %v1391_v35 = vsel %vm1387_vm14, %v1358_v33, %v1111_v34  ;;  %v1149_v63 = vsel %vm1140_vm7, %v2400_v29, %v854_v32  ;;  %v2675_v34 = vsel %vm2383_vm5, 0, %v696_v25 }
  0xa2   : > { %1028 = vrot.lane.b32.xlu1 %v807_v26, %s2278_s17  ;;  %1059 = vrot.lane.b32.xlu0 %v2573_v0, %s2279_s20 }
  0xa3   : > { %2152 = vmatmul.mubr.msk.bf16.vlgmr.msra.gmra.mrb[0].mxu0 %vm1463_vm15, %v1391_v35 }
  0xa4   : > { %v856_v37 = vpop.permute.xlu1 %855  ;;  %v902_v41 = vpop.permute.xlu0 %901 }
  0xa5   : > { %v1195_v3 = vsel %vm1189_vm8, %v1149_v63, %v902_v41  ;;  %v1152_v10 = vsel %vm1140_vm7, %v2422_v38, %v856_v37  ;;  %v772_v37 = vrot.slane %v694_v15, 1  ;;  %v2682_v41 = vld [vmem:[%s2355_s9 + $0x68] sm:$0xff]  }
  0xa6   : > { %1061 = vrot.lane.b32.xlu1 %v2607_v36, %s2279_s20  ;;  %1091 = vrot.lane.b32.xlu0 %v2542_v43, %s2280_s23 }
  0xa7   : > { %v773_v45 = vor.u32 %v772_v37, %v691_v2 }
  0xa8   : > { %v904_v44 = vpop.permute.xlu1 %903  ;;  %v950_v46 = vpop.permute.xlu0 %949 }
  0xa9   : > { %v1228_v6 = vsel %vm1222_vm9, %v1195_v3, %v950_v46  ;;  %v1197_v28 = vsel %vm1189_vm8, %v1152_v10, %v904_v44 }
  0xaa   : > { %1093 = vrot.lane.b32.xlu1 %v2562_v59, %s2280_s23  ;;  %1124 = vrot.lane.b32.xlu0 %v807_v26, %s2281_s27 }
  0xac   : > { %v952_v48 = vpop.permute.xlu1 %951  ;;  %v982_v51 = vpop.permute.xlu0 %981 }
  0xad   : > { %v1261_v9 = vsel %vm1255_vm10, %v1228_v6, %v982_v51  ;;  %v1230_v19 = vsel %vm1222_vm9, %v1197_v28, %v952_v48 }
  0xae   : > { %869 = vrot.lane.b32.xlu1 %v2542_v43, %s2274_s26  ;;  %1126 = vrot.lane.b32.xlu0 %v808_v49, %s2281_s27  ;;  %v770_v43 = vrot.slane %v687_v53, 1  ;;  %v701_v53 = vshll.u32 %v2682_v41, 16 }
  0xb0   : > { %v984_v54 = vpop.permute.xlu1 %983  ;;  %v1015_v55 = vpop.permute.xlu0 %1014  ;;  %v771_v29 = vor.u32 %v770_v43, %v684_v47  ;;  %v698_v47 = vshrl.u32 %v2682_v41, 16 }
  0xb1   : > { %v1294_v12 = vsel %vm1288_vm11, %v1261_v9, %v1015_v55  ;;  %v1263_v38 = vsel %vm1255_vm10, %v1230_v19, %v984_v54 }
  0xb2   : > { %871 = vrot.lane.b32.xlu1 %v2562_v59, %s2274_s26  ;;  %917 = vrot.lane.b32.xlu0 %v807_v26, %s2276_s11  ;;  %v809_v24 = vsel %vm2357_vm2, %v771_v29, 0  ;;  %v700_v52 = vrot.slane %v698_v47, 7 }
  0xb4   : > { %v1017_v61 = vpop.permute.xlu1 %1016  ;;  %v1048_v62 = vpop.permute.xlu0 %1047  ;;  %v703_v57 = vor.u32 %v701_v53, %v700_v52 }
  0xb5   : > { %v1327_v17 = vsel %vm1321_vm12, %v1294_v12, %v1048_v62 }
  0xb6   : > { %919 = vrot.lane.b32.xlu1 %v808_v49, %s2276_s11  ;;  %965 = vrot.lane.b32.xlu0 %v2607_v36, %s2277_s12  ;;  %v2707_v2 = vsel %vm2383_vm5, 0, %v703_v57 }
  0xb8   : > { %v1050_v4 = vpop.permute.xlu1 %1049  ;;  %v1080_v8 = vpop.permute.xlu0 %1079 }
  0xb9   : > { %v1360_v20 = vsel %vm1354_vm13, %v1327_v17, %v1080_v8 }
  0xba   : > { %967 = vrot.lane.b32.xlu1 %v2639_v11, %s2277_s12  ;;  %997 = vrot.lane.b32.xlu0 %v2562_v59, %s2275_s10  ;;  %v1296_v59 = vsel %vm1288_vm11, %v1263_v38, %v1017_v61  ;;  %v2698_v61 = vld [vmem:[%s2355_s9 + $0x70] sm:$0xff]  }
  0xbb   : > { %v1329_v26 = vsel %vm1321_vm12, %v1296_v59, %v1050_v4  ;;  %v705_v3 = vshrl.u32 %v2698_v61, 16  ;;  %v708_v15 = vshll.u32 %v2698_v61, 16 }
  0xbc   : > { %v1082_v18 = vpop.permute.xlu1 %1081  ;;  %v1113_v22 = vpop.permute.xlu0 %1112 }
  0xbd   : > { %v1393_v23 = vsel %vm1387_vm14, %v1360_v20, %v1113_v22  ;;  %v1362_v31 = vsel %vm1354_vm13, %v1329_v26, %v1082_v18  ;;  %v707_v13 = vrot.slane %v705_v3, 7 }
  0xbe   : > { %999 = vrot.lane.b32.xlu1 %v2614_v42, %s2275_s10  ;;  %1030 = vrot.lane.b32.xlu0 %v808_v49, %s2278_s17  ;;  %v810_v49 = vsel %vm2357_vm2, %v773_v45, 0 }
  0xbf   : > { %2155 = vmatprep.mubr.msk.bf16.mxu0 %vm1463_vm15, %v1393_v23  ;;  %v710_v59 = vor.u32 %v708_v15, %v707_v13 }
  0xc0   : > { %v858_v30 = vpop.permute.xlu1 %857  ;;  %v1115_v32 = vpop.permute.xlu0 %1114 }
  0xc1   : > { %v1395_v33 = vsel %vm1387_vm14, %v1362_v31, %v1115_v32  ;;  %v1155_v63 = vsel %vm1140_vm7, %v2449_v50, %v858_v30  ;;  %v2743_v32 = vsel %vm2383_vm5, 0, %v710_v59 }
  0xc2   : > { %1032 = vrot.lane.b32.xlu1 %v809_v24, %s2278_s17  ;;  %1063 = vrot.lane.b32.xlu0 %v2639_v11, %s2279_s20 }
  0xc3   : > { %2156 = vmatmul.mubr.msk.bf16.gmra.mrb[4].mxu0 %vm1463_vm15, %v1395_v33 }
  0xc4   : > { %v860_v35 = vpop.permute.xlu1 %859  ;;  %v906_v40 = vpop.permute.xlu0 %905 }
  0xc5   : > { %v1199_v4 = vsel %vm1189_vm8, %v1155_v63, %v906_v40  ;;  %v1158_v10 = vsel %vm1140_vm7, %v2464_v58, %v860_v35  ;;  %v776_v35 = vrot.slane %v708_v15, 1  ;;  %v2248_v40 = vld [vmem:[%s2355_s9 + $0x78] sm:$0xff]  }
  0xc6   : > { %1065 = vrot.lane.b32.xlu1 %v2675_v34, %s2279_s20  ;;  %1095 = vrot.lane.b32.xlu0 %v2614_v42, %s2280_s23 }
  0xc7   : > { %v777_v45 = vor.u32 %v776_v35, %v705_v3 }
  0xc8   : > { %v908_v44 = vpop.permute.xlu1 %907  ;;  %v954_v46 = vpop.permute.xlu0 %953 }
  0xc9   : > { %v1232_v8 = vsel %vm1222_vm9, %v1199_v4, %v954_v46  ;;  %v1201_v28 = vsel %vm1189_vm8, %v1158_v10, %v908_v44 }
  0xca   : > { %1097 = vrot.lane.b32.xlu1 %v2630_v60, %s2280_s23  ;;  %1128 = vrot.lane.b32.xlu0 %v809_v24, %s2281_s27 }
  0xcc   : > { %v956_v48 = vpop.permute.xlu1 %955  ;;  %v986_v51 = vpop.permute.xlu0 %985 }
  0xcd   : > { %v1265_v29 = vsel %vm1255_vm10, %v1232_v8, %v986_v51  ;;  %v1234_v19 = vsel %vm1222_vm9, %v1201_v28, %v956_v48 }
  0xce   : > { %873 = vrot.lane.b32.xlu1 %v2614_v42, %s2274_s26  ;;  %1130 = vrot.lane.b32.xlu0 %v810_v49, %s2281_s27  ;;  %v774_v42 = vrot.slane %v701_v53, 1  ;;  %v822_v53 = vshll.u32 %v2248_v40, 16 }
  0xd0   : > { %v988_v54 = vpop.permute.xlu1 %987  ;;  %v1019_v55 = vpop.permute.xlu0 %1018  ;;  %v775_v50 = vor.u32 %v774_v42, %v698_v47  ;;  %v819_v47 = vshrl.u32 %v2248_v40, 16  ;;  %v827_v63 = vrot.slane %v822_v53, 1 }
  0xd1   : > { %v1298_v12 = vsel %vm1288_vm11, %v1265_v29, %v1019_v55  ;;  %v1267_v58 = vsel %vm1255_vm10, %v1234_v19, %v988_v54 }
  0xd2   : > { %875 = vrot.lane.b32.xlu1 %v2630_v60, %s2274_s26  ;;  %921 = vrot.lane.b32.xlu0 %v809_v24, %s2276_s11  ;;  %v811_v23 = vsel %vm2357_vm2, %v775_v50, 0  ;;  %v821_v52 = vrot.slane %v819_v47, 7  ;;  %v828_v21 = vor.u32 %v827_v63, %v819_v47 }
  0xd4   : > { %v1021_v62 = vpop.permute.xlu1 %1020  ;;  %v1052_v43 = vpop.permute.xlu0 %1051  ;;  %v824_v57 = vor.u32 %v822_v53, %v821_v52 }
  0xd5   : > { %v1331_v17 = vsel %vm1321_vm12, %v1298_v12, %v1052_v43 }
  0xd6   : > { %923 = vrot.lane.b32.xlu1 %v810_v49, %s2276_s11  ;;  %969 = vrot.lane.b32.xlu0 %v2675_v34, %s2277_s12 }
  0xd8   : > { %v1054_v6 = vpop.permute.xlu1 %1053  ;;  %v1084_v9 = vpop.permute.xlu0 %1083 }
  0xd9   : > { %v1364_v20 = vsel %vm1354_vm13, %v1331_v17, %v1084_v9 }
  0xda   : > { %971 = vrot.lane.b32.xlu1 %v2707_v2, %s2277_s12  ;;  %1001 = vrot.lane.b32.xlu0 %v2630_v60, %s2275_s10  ;;  %v1300_v60 = vsel %vm1288_vm11, %v1267_v58, %v1021_v62 }
  0xdb   : > { %v1333_v24 = vsel %vm1321_vm12, %v1300_v60, %v1054_v6 }
  0xdc   : > { %v1086_v18 = vpop.permute.xlu1 %1085  ;;  %v1117_v22 = vpop.permute.xlu0 %1116 }
  0xdd   : > { %v1397_v38 = vsel %vm1387_vm14, %v1364_v20, %v1117_v22  ;;  %v1366_v26 = vsel %vm1354_vm13, %v1333_v24, %v1086_v18 }
  0xde   : > { %1003 = vrot.lane.b32.xlu1 %v2682_v41, %s2275_s10  ;;  %1034 = vrot.lane.b32.xlu0 %v810_v49, %s2278_s17  ;;  %v812_v49 = vsel %vm2357_vm2, %v777_v45, 0 }
  0xdf   : > { %2159 = vmatprep.mubr.msk.bf16.mxu0 %vm1463_vm15, %v1397_v38 }
  0xe0   : > { %v862_v25 = vpop.permute.xlu1 %861  ;;  %v1119_v30 = vpop.permute.xlu0 %1118 }
  0xe1   : > { %v1399_v31 = vsel %vm1387_vm14, %v1366_v26, %v1119_v30  ;;  %v1161_v42 = vsel %vm1140_vm7, %v2484_v5, %v862_v25 }
  0xe2   : > { %1036 = vrot.lane.b32.xlu1 %v811_v23, %s2278_s17  ;;  %1067 = vrot.lane.b32.xlu0 %v2707_v2, %s2279_s20 }
  0xe3   : > { %2160 = vmatmul.mubr.msk.bf16.gmra.mrb[8].mxu0 %vm1463_vm15, %v1399_v31 }
  0xe4   : > { %v864_v33 = vpop.permute.xlu1 %863  ;;  %v910_v37 = vpop.permute.xlu0 %909 }
  0xe5   : > { %v1203_v3 = vsel %vm1189_vm8, %v1161_v42, %v910_v37  ;;  %v1164_v5 = vsel %vm1140_vm7, %v2498_v16, %v864_v33 }
  0xe6   : > { %1069 = vrot.lane.b32.xlu1 %v2743_v32, %s2279_s20  ;;  %1099 = vrot.lane.b32.xlu0 %v2682_v41, %s2280_s23 }
  0xe8   : > { %v912_v44 = vpop.permute.xlu1 %911  ;;  %v958_v46 = vpop.permute.xlu0 %957 }
  0xe9   : > { %v1236_v6 = vsel %vm1222_vm9, %v1203_v3, %v958_v46  ;;  %v1205_v50 = vsel %vm1189_vm8, %v1164_v5, %v912_v44 }
  0xea   : > { %1101 = vrot.lane.b32.xlu1 %v2698_v61, %s2280_s23  ;;  %1132 = vrot.lane.b32.xlu0 %v811_v23, %s2281_s27 }
  0xec   : > { %v960_v48 = vpop.permute.xlu1 %959  ;;  %v990_v51 = vpop.permute.xlu0 %989 }
  0xed   : > { %v1269_v9 = vsel %vm1255_vm10, %v1236_v6, %v990_v51  ;;  %v1238_v13 = vsel %vm1222_vm9, %v1205_v50, %v960_v48 }
  0xee   : > { %877 = vrot.lane.b32.xlu1 %v2682_v41, %s2274_s26  ;;  %1134 = vrot.lane.b32.xlu0 %v812_v49, %s2281_s27  ;;  %v826_v41 = vsel %vm2383_vm5, 0, %v824_v57 }
  0xf0   : > { %v992_v54 = vpop.permute.xlu1 %991  ;;  %v1023_v55 = vpop.permute.xlu0 %1022 }
  0xf1   : > { %v1302_v29 = vsel %vm1288_vm11, %v1269_v9, %v1023_v55  ;;  %v1271_v17 = vsel %vm1255_vm10, %v1238_v13, %v992_v54 }
  0xf2   : > { %879 = vrot.lane.b32.xlu1 %v2698_v61, %s2274_s26  ;;  %925 = vrot.lane.b32.xlu0 %v811_v23, %s2276_s11  ;;  %s2119_s26 = sshll.u32 %s3088_s24, 8 }
  0xf3   : > { %s2874_s9 = scalar_lea.vmem %s3076_s5, %s2119_s26 }
  0xf4   : > { %v1025_v62 = vpop.permute.xlu1 %1024  ;;  %v1056_v43 = vpop.permute.xlu0 %1055 }
  0xf5   : > { %v1335_v10 = vsel %vm1321_vm12, %v1302_v29, %v1056_v43  ;;  %v1304_v18 = vsel %vm1288_vm11, %v1271_v17, %v1025_v62 }
  0xf6   : > { %927 = vrot.lane.b32.xlu1 %v812_v49, %s2276_s11  ;;  %973 = vrot.lane.b32.xlu0 %v2743_v32, %s2277_s12 }
  0xf8   : > { %v1058_v4 = vpop.permute.xlu1 %1057  ;;  %v1088_v8 = vpop.permute.xlu0 %1087 }
  0xf9   : > { %v1368_v15 = vsel %vm1354_vm13, %v1335_v10, %v1088_v8  ;;  %v1337_v19 = vsel %vm1321_vm12, %v1304_v18, %v1058_v4 }
  0xfa   : > { %975 = vrot.lane.b32.xlu1 %v826_v41, %s2277_s12  ;;  %1005 = vrot.lane.b32.xlu0 %v2698_v61, %s2275_s10  ;;  %v830_v61 = vsel %vm2357_vm2, %v828_v21, 0  ;;  %s467_s12 = scalar_lea.vmem %s3077_s6, %s3088_s24 }
  0xfc   : > { %v1090_v12 = vpop.permute.xlu1 %1089  ;;  %v1121_v28 = vpop.permute.xlu0 %1120 }
  0xfd   : > { %v1401_v16 = vsel %vm1387_vm14, %v1368_v15, %v1121_v28  ;;  %v1370_v22 = vsel %vm1354_vm13, %v1337_v19, %v1090_v12 }
  0xfe   : > { %1007 = vrot.lane.b32.xlu1 %v2248_v40, %s2275_s10  ;;  %1038 = vrot.lane.b32.xlu0 %v812_v49, %s2278_s17 }
  0xff   : > { %2163 = vmatprep.mubr.msk.bf16.mxu0 %vm1463_vm15, %v1401_v16 }
 0x100   : > { %v866_v20 = vpop.permute.xlu1 %865  ;;  %v1123_v58 = vpop.permute.xlu0 %1122 }
 0x101   : > { %v1403_v38 = vsel %vm1387_vm14, %v1370_v22, %v1123_v58 }
 0x102   : > { %1040 = vrot.lane.b32.xlu1 %v830_v61, %s2278_s17  ;;  %1071 = vrot.lane.b32.xlu0 %v826_v41, %s2279_s20 }
 0x103   : > { %2164 = vmatmul.mubr.msk.bf16.gmra.mrb[12].mxu0 %vm1463_vm15, %v1403_v38 }
 0x104   : > { %v868_v60 = vpop.permute.xlu1 %867  ;;  %v914_v23 = vpop.permute.xlu0 %913 }
 0x105   : > { %v1170_v45 = vsel %vm1140_vm7, %v2536_v39, %v868_v60 }
 0x106   : > { %1073 = vrot.lane.b32.xlu1 %v2556_v56, %s2279_s20  ;;  %1103 = vrot.lane.b32.xlu0 %v2248_v40, %s2280_s23  ;;  %v1167_v56 = vsel %vm1140_vm7, %v2520_v27, %v866_v20 }
 0x107   : > { %v1207_v35 = vsel %vm1189_vm8, %v1167_v56, %v914_v23 }
 0x108   : > { %v916_v7 = vpop.permute.xlu1 %915  ;;  %v962_v59 = vpop.permute.xlu0 %961 }
 0x109   : > { %v1240_v40 = vsel %vm1222_vm9, %v1207_v35, %v962_v59  ;;  %v1209_v46 = vsel %vm1189_vm8, %v1170_v45, %v916_v7 }
 0x10a   : > { %1105 = vrot.lane.b32.xlu1 %v2340_v1, %s2280_s23  ;;  %1136 = vrot.lane.b32.xlu0 %v830_v61, %s2281_s27 }
 0x10c   : > { %v964_v24 = vpop.permute.xlu1 %963  ;;  %v994_v25 = vpop.permute.xlu0 %993 }
 0x10d   : > { %v1273_v44 = vsel %vm1255_vm10, %v1240_v40, %v994_v25  ;;  %v1242_v27 = vsel %vm1222_vm9, %v1209_v46, %v964_v24 }
 0x10e   : > { %1138 = vrot.lane.b32.xlu1 %v2374_v14, %s2281_s27 }
 0x110   : > { %v996_v26 = vpop.permute.xlu1 %995  ;;  %v1027_v30 = vpop.permute.xlu0 %1026 }
 0x111   : > { %v1306_v14 = vsel %vm1288_vm11, %v1273_v44, %v1027_v30  ;;  %v1275_v52 = vsel %vm1255_vm10, %v1242_v27, %v996_v26 }
 0x114   : > { %v1029_v31 = vpop.permute.xlu1 %1028  ;;  %v1060_v33 = vpop.permute.xlu0 %1059 }
 0x115   : > { %v1339_v47 = vsel %vm1321_vm12, %v1306_v14, %v1060_v33  ;;  %v1308_v54 = vsel %vm1288_vm11, %v1275_v52, %v1029_v31 }
 0x118   : > { %v1062_v37 = vpop.permute.xlu1 %1061  ;;  %v1092_v1 = vpop.permute.xlu0 %1091 }
 0x119   : > { %v1372_v49 = vsel %vm1354_vm13, %v1339_v47, %v1092_v1  ;;  %v1341_v39 = vsel %vm1321_vm12, %v1308_v54, %v1062_v37 }
 0x11c   : > { %v1094_v48 = vpop.permute.xlu1 %1093  ;;  %v1125_v51 = vpop.permute.xlu0 %1124 }
 0x11d   : > { %v1405_v53 = vsel %vm1387_vm14, %v1372_v49, %v1125_v51  ;;  %v1374_v57 = vsel %vm1354_vm13, %v1341_v39, %v1094_v48 }
 0x11e   : > { %2167 = vmatprep.mubr.msk.bf16.mxu1 %vm1463_vm15, %v1405_v53 }
 0x120   : > { %v870_v55 = vpop.permute.xlu1 %869  ;;  %v1127_v62 = vpop.permute.xlu0 %1126 }
 0x121   : > { %v1407_v43 = vsel %vm1387_vm14, %v1374_v57, %v1127_v62  ;;  %v1173_v21 = vsel %vm1140_vm7, %v2573_v0, %v870_v55 }
 0x122   : > { %2168 = vmatmul.mubr.msk.bf16.vlgmr.msra.gmra.mrb[0].mxu1 %vm1463_vm15, %v1407_v43 }
 0x124   : > { %v872_v42 = vpop.permute.xlu1 %871  ;;  %v918_v41 = vpop.permute.xlu0 %917 }
 0x125   : > { %v1211_v50 = vsel %vm1189_vm8, %v1173_v21, %v918_v41  ;;  %v1176_v28 = vsel %vm1140_vm7, %v2607_v36, %v872_v42 }
 0x128   : > { %v920_v63 = vpop.permute.xlu1 %919  ;;  %v966_v3 = vpop.permute.xlu0 %965 }
 0x129   : > { %v1244_v12 = vsel %vm1222_vm9, %v1211_v50, %v966_v3  ;;  %v1213_v16 = vsel %vm1189_vm8, %v1176_v28, %v920_v63  ;;  %v2867_v50 = vld [vmem:[%s3075_s4] ss:$0 sm:$0xff] }
 0x12c   : > { %v968_v4 = vpop.permute.xlu1 %967  ;;  %v998_v6 = vpop.permute.xlu0 %997 }
 0x12d   : > { %v1277_v15 = vsel %vm1255_vm10, %v1244_v12, %v998_v6  ;;  %v1246_v0 = vsel %vm1222_vm9, %v1213_v16, %v968_v4 }
 0x130   : > { %v1000_v8 = vpop.permute.xlu1 %999  ;;  %v1031_v9 = vpop.permute.xlu0 %1030 }
 0x131   : > { %v1310_v17 = vsel %vm1288_vm11, %v1277_v15, %v1031_v9  ;;  %v1279_v22 = vsel %vm1255_vm10, %v1246_v0, %v1000_v8 }
 0x134   : > { %v1033_v5 = vpop.permute.xlu1 %1032  ;;  %v1064_v29 = vpop.permute.xlu0 %1063 }
 0x135   : > { %v1343_v18 = vsel %vm1321_vm12, %v1310_v17, %v1064_v29  ;;  %v1312_v38 = vsel %vm1288_vm11, %v1279_v22, %v1033_v5 }
 0x138   : > { %v1066_v10 = vpop.permute.xlu1 %1065  ;;  %v1096_v13 = vpop.permute.xlu0 %1095 }
 0x139   : > { %v1376_v19 = vsel %vm1354_vm13, %v1343_v18, %v1096_v13  ;;  %v1345_v36 = vsel %vm1321_vm12, %v1312_v38, %v1066_v10 }
 0x13c   : > { %v1098_v61 = vpop.permute.xlu1 %1097  ;;  %v1129_v20 = vpop.permute.xlu0 %1128 }
 0x13d   : > { %v1409_v58 = vsel %vm1387_vm14, %v1376_v19, %v1129_v20  ;;  %v1378_v23 = vsel %vm1354_vm13, %v1345_v36, %v1098_v61 }
 0x13e   : > { %2171 = vmatprep.mubr.msk.bf16.mxu1 %vm1463_vm15, %v1409_v58 }
 0x140   : > { %v874_v60 = vpop.permute.xlu1 %873  ;;  %v1131_v7 = vpop.permute.xlu0 %1130 }
 0x141   : > { %v1411_v59 = vsel %vm1387_vm14, %v1378_v23, %v1131_v7  ;;  %v1179_v1 = vsel %vm1140_vm7, %v2639_v11, %v874_v60 }
 0x142   : > { %2172 = vmatmul.mubr.msk.bf16.gmra.mrb[4].mxu1 %vm1463_vm15, %v1411_v59 }
 0x144   : > { %v876_v24 = vpop.permute.xlu1 %875  ;;  %v922_v25 = vpop.permute.xlu0 %921 }
 0x145   : > { %v1215_v44 = vsel %vm1189_vm8, %v1179_v1, %v922_v25  ;;  %v1182_v48 = vsel %vm1140_vm7, %v2675_v34, %v876_v24 }
 0x148   : > { %v924_v26 = vpop.permute.xlu1 %923  ;;  %v970_v30 = vpop.permute.xlu0 %969 }
 0x149   : > { %v1248_v14 = vsel %vm1222_vm9, %v1215_v44, %v970_v30  ;;  %v1217_v49 = vsel %vm1189_vm8, %v1182_v48, %v924_v26 }
 0x14c   : > { %v972_v31 = vpop.permute.xlu1 %971  ;;  %v1002_v33 = vpop.permute.xlu0 %1001 }
 0x14d   : > { %v1281_v47 = vsel %vm1255_vm10, %v1248_v14, %v1002_v33  ;;  %v1250_v11 = vsel %vm1222_vm9, %v1217_v49, %v972_v31 }
 0x150   : > { %v1004_v56 = vpop.permute.xlu1 %1003  ;;  %v1035_v35 = vpop.permute.xlu0 %1034 }
 0x151   : > { %v1314_v27 = vsel %vm1288_vm11, %v1281_v47, %v1035_v35  ;;  %v1283_v39 = vsel %vm1255_vm10, %v1250_v11, %v1004_v56 }
 0x154   : > { %v1037_v37 = vpop.permute.xlu1 %1036  ;;  %v1068_v40 = vpop.permute.xlu0 %1067 }
 0x155   : > { %v1347_v51 = vsel %vm1321_vm12, %v1314_v27, %v1068_v40  ;;  %v1316_v57 = vsel %vm1288_vm11, %v1283_v39, %v1037_v37 }
 0x158   : > { %v1070_v45 = vpop.permute.xlu1 %1069  ;;  %v1100_v46 = vpop.permute.xlu0 %1099 }
 0x159   : > { %v1380_v53 = vsel %vm1354_vm13, %v1347_v51, %v1100_v46  ;;  %v1349_v34 = vsel %vm1321_vm12, %v1316_v57, %v1070_v45 }
 0x15c   : > { %v1102_v52 = vpop.permute.xlu1 %1101  ;;  %v1133_v54 = vpop.permute.xlu0 %1132 }
 0x15d   : > { %v1413_v55 = vsel %vm1387_vm14, %v1380_v53, %v1133_v54  ;;  %v1382_v43 = vsel %vm1354_vm13, %v1349_v34, %v1102_v52 }
 0x15e   : > { %2175 = vmatprep.mubr.msk.bf16.mxu1 %vm1463_vm15, %v1413_v55 }
 0x160   : > { %v878_v62 = vpop.permute.xlu1 %877  ;;  %v1135_v42 = vpop.permute.xlu0 %1134 }
 0x161   : > { %v1415_v41 = vsel %vm1387_vm14, %v1382_v43, %v1135_v42  ;;  %v1185_v12 = vsel %vm1140_vm7, %v2707_v2, %v878_v62 }
 0x162   : > { %2176 = vmatmul.mubr.msk.bf16.gmra.mrb[8].mxu1 %vm1463_vm15, %v1415_v41 }
 0x164   : > { %v880_v63 = vpop.permute.xlu1 %879  ;;  %v926_v3 = vpop.permute.xlu0 %925 }
 0x165   : > { %v1219_v15 = vsel %vm1189_vm8, %v1185_v12, %v926_v3  ;;  %v1188_v16 = vsel %vm1140_vm7, %v2743_v32, %v880_v63 }
 0x168   : > { %v928_v4 = vpop.permute.xlu1 %927  ;;  %v974_v6 = vpop.permute.xlu0 %973 }
 0x169   : > { %v1252_v18 = vsel %vm1222_vm9, %v1219_v15, %v974_v6  ;;  %v1221_v19 = vsel %vm1189_vm8, %v1188_v16, %v928_v4 }
 0x16c   : > { %v976_v8 = vpop.permute.xlu1 %975  ;;  %v1006_v9 = vpop.permute.xlu0 %1005 }
 0x16d   : > { %v1285_v20 = vsel %vm1255_vm10, %v1252_v18, %v1006_v9  ;;  %v1254_v32 = vsel %vm1222_vm9, %v1221_v19, %v976_v8 }
 0x170   : > { %v1008_v5 = vpop.permute.xlu1 %1007  ;;  %v1039_v29 = vpop.permute.xlu0 %1038 }
 0x171   : > { %v1318_v36 = vsel %vm1288_vm11, %v1285_v20, %v1039_v29  ;;  %v1287_v7 = vsel %vm1255_vm10, %v1254_v32, %v1008_v5 }
 0x174   : > { %v1041_v21 = vpop.permute.xlu1 %1040  ;;  %v1072_v10 = vpop.permute.xlu0 %1071 }
 0x175   : > { %v1351_v59 = vsel %vm1321_vm12, %v1318_v36, %v1072_v10  ;;  %v1320_v33 = vsel %vm1288_vm11, %v1287_v7, %v1041_v21 }
 0x176   : > { %v2153_v13 = vpop.f32.mrb[0].mxu0 }
 0x177   : > { %v1543_v28 = vadd.f32 %v2153_v13, %v2867_v50  ;;  %v1534_v17 = vpop.f32.mrb[1].mxu0 }
 0x178   : > { %v1535_v2 = vadd.f32 %v2867_v50, %v1534_v17  ;;  %v2154_v61 = vpop.f32.mrb[2].mxu0  ;;  %v1074_v0 = vpop.permute.xlu1 %1073 }
 0x179   : > { %1663 = vst.msk [vmem:[%s2874_s9 + $0x10] sm:$0xff] %vm1140_vm7, %v1543_v28  ;;  %v1546_v22 = vadd.f32 %v2154_v61, %v2867_v50  ;;  %v1104_v58 = vpop.permute.xlu0 %1103  ;;  %v1537_v38 = vpop.f32.mrb[3].mxu0  ;;  %v1766_v24 = vmul.f32 %v1543_v28, %v1543_v28  ;;  %v1696_v56 = vsel %vm1140_vm7, %v1543_v28, 0.0  ;;  %v1353_v46 = vsel %vm1321_vm12, %v1320_v33, %v1074_v0 }
 0x17a   : > { %1661 = vst.msk [vmem:[%s2874_s9] sm:$0xff] %vm1140_vm7, %v1535_v2  ;;  %v1764_v60 = vmul.f32 %v1535_v2, %v1535_v2  ;;  %v1538_v23 = vadd.f32 %v2867_v50, %v1537_v38  ;;  %v1693_v25 = vsel %vm1140_vm7, %v1535_v2, 0.0  ;;  %v1384_v35 = vsel %vm1354_vm13, %v1351_v59, %v1104_v58 }
 0x17b   : > { %1664 = vst.msk [vmem:[%s2874_s9 + $0x18] sm:$0xff] %vm1140_vm7, %v1546_v22  ;;  %v1767_v44 = vmul.f32 %v1546_v22, %v1546_v22  ;;  %v1799_v27 = vsel %vm1140_vm7, %v1766_v24, 0.0  ;;  %v1698_v49 = vsel %vm1140_vm7, %v1546_v22, 0.0 }
 0x17c   : > { %1662 = vst.msk [vmem:[%s2874_s9 + $0x8] sm:$0xff] %vm1140_vm7, %v1538_v23  ;;  %v1694_v26 = vsel %vm1140_vm7, %v1538_v23, 0.0  ;;  %v1765_v30 = vmul.f32 %v1538_v23, %v1538_v23  ;;  %v1106_v31 = vpop.permute.xlu1 %1105  ;;  %v1796_v1 = vsel %vm1140_vm7, %v1764_v60, 0.0 }
 0x17d   : > { %v1695_v37 = vadd.f32 %v1694_v26, %v1693_v25  ;;  %v1137_v40 = vpop.permute.xlu0 %1136  ;;  %v1386_v51 = vsel %vm1354_vm13, %v1353_v46, %v1106_v31  ;;  %v1801_v39 = vsel %vm1140_vm7, %v1767_v44, 0.0 }
 0x17e   : > { %v1797_v45 = vsel %vm1140_vm7, %v1765_v30, 0.0  ;;  %v1417_v14 = vsel %vm1387_vm14, %v1384_v35, %v1137_v40 }
 0x17f   : > { %v1697_v47 = vadd.f32 %v1696_v56, %v1695_v37  ;;  %v1798_v48 = vadd.f32 %v1797_v45, %v1796_v1  ;;  %2179 = vmatprep.mubr.msk.bf16.mxu1 %vm1463_vm15, %v1417_v14 }
 0x180   : > { %v1139_v52 = vpop.permute.xlu1 %1138 }
 0x181   : > { %v1800_v11 = vadd.f32 %v1799_v27, %v1798_v48  ;;  %v1419_v53 = vsel %vm1387_vm14, %v1386_v51, %v1139_v52  ;;  %v1699_v54 = vadd.f32 %v1698_v49, %v1697_v47 }
 0x182   : > { %2180 = vmatmul.mubr.msk.bf16.gmra.mrb[12].mxu1 %vm1463_vm15, %v1419_v53 }
 0x183   : > { %v1802_v55 = vadd.f32 %v1801_v39, %v1800_v11 }
 0x196   : > { %v2157_v57 = vpop.f32.mrb[4].mxu0 }
 0x197   : > { %v1559_v34 = vadd.f32 %v2157_v57, %v2867_v50  ;;  %v1550_v62 = vpop.f32.mrb[5].mxu0 }
 0x198   : > { %v1551_v43 = vadd.f32 %v2867_v50, %v1550_v62  ;;  %v2158_v42 = vpop.f32.mrb[6].mxu0 }
 0x199   : > { %1667 = vst.msk [vmem:[%s2874_s9 + $0x30] sm:$0xff] %vm1140_vm7, %v1559_v34  ;;  %v1562_v41 = vadd.f32 %v2158_v42, %v2867_v50  ;;  %v1553_v63 = vpop.f32.mrb[7].mxu0  ;;  %v1770_v9 = vmul.f32 %v1559_v34, %v1559_v34  ;;  %v1704_v13 = vsel %vm1140_vm7, %v1559_v34, 0.0 }
 0x19a   : > { %1665 = vst.msk [vmem:[%s2874_s9 + $0x20] sm:$0xff] %vm1140_vm7, %v1551_v43  ;;  %v1700_v3 = vsel %vm1140_vm7, %v1551_v43, 0.0  ;;  %v1768_v4 = vmul.f32 %v1551_v43, %v1551_v43  ;;  %v1554_v6 = vadd.f32 %v2867_v50, %v1553_v63 }
 0x19b   : > { %v1701_v8 = vadd.f32 %v1700_v3, %v1699_v54  ;;  %1668 = vst.msk [vmem:[%s2874_s9 + $0x38] sm:$0xff] %vm1140_vm7, %v1562_v41  ;;  %v1771_v15 = vmul.f32 %v1562_v41, %v1562_v41  ;;  %v1807_v18 = vsel %vm1140_vm7, %v1770_v9, 0.0  ;;  %v1706_v2 = vsel %vm1140_vm7, %v1562_v41, 0.0 }
 0x19c   : > { %v1803_v5 = vsel %vm1140_vm7, %v1768_v4, 0.0  ;;  %1666 = vst.msk [vmem:[%s2874_s9 + $0x28] sm:$0xff] %vm1140_vm7, %v1554_v6  ;;  %v1702_v29 = vsel %vm1140_vm7, %v1554_v6, 0.0  ;;  %v1769_v21 = vmul.f32 %v1554_v6, %v1554_v6 }
 0x19d   : > { %v1804_v10 = vadd.f32 %v1803_v5, %v1802_v55  ;;  %v1703_v12 = vadd.f32 %v1702_v29, %v1701_v8  ;;  %v1809_v19 = vsel %vm1140_vm7, %v1771_v15, 0.0 }
 0x19e   : > { %v1805_v28 = vsel %vm1140_vm7, %v1769_v21, 0.0 }
 0x19f   : > { %v1705_v17 = vadd.f32 %v1704_v13, %v1703_v12  ;;  %v1806_v16 = vadd.f32 %v1805_v28, %v1804_v10 }
 0x1a1   : > { %v1808_v61 = vadd.f32 %v1807_v18, %v1806_v16  ;;  %v1707_v0 = vadd.f32 %v1706_v2, %v1705_v17 }
 0x1a3   : > { %v1810_v20 = vadd.f32 %v1809_v19, %v1808_v61 }
 0x1b6   : > { %v2161_v22 = vpop.f32.mrb[8].mxu0 }
 0x1b7   : > { %v1575_v58 = vadd.f32 %v2161_v22, %v2867_v50  ;;  %v1566_v38 = vpop.f32.mrb[9].mxu0 }
 0x1b8   : > { %v1567_v32 = vadd.f32 %v2867_v50, %v1566_v38  ;;  %v2162_v36 = vpop.f32.mrb[10].mxu0 }
 0x1b9   : > { %1671 = vst.msk [vmem:[%s2874_s9 + $0x50] sm:$0xff] %vm1140_vm7, %v1575_v58  ;;  %v1578_v60 = vadd.f32 %v2162_v36, %v2867_v50  ;;  %v1569_v23 = vpop.f32.mrb[11].mxu0  ;;  %v1774_v26 = vmul.f32 %v1575_v58, %v1575_v58  ;;  %v1712_v37 = vsel %vm1140_vm7, %v1575_v58, 0.0 }
 0x1ba   : > { %1669 = vst.msk [vmem:[%s2874_s9 + $0x40] sm:$0xff] %vm1140_vm7, %v1567_v32  ;;  %v1708_v7 = vsel %vm1140_vm7, %v1567_v32, 0.0  ;;  %v1772_v59 = vmul.f32 %v1567_v32, %v1567_v32  ;;  %v1570_v24 = vadd.f32 %v2867_v50, %v1569_v23 }
 0x1bb   : > { %v1709_v25 = vadd.f32 %v1708_v7, %v1707_v0  ;;  %1672 = vst.msk [vmem:[%s2874_s9 + $0x58] sm:$0xff] %vm1140_vm7, %v1578_v60  ;;  %v1775_v40 = vmul.f32 %v1578_v60, %v1578_v60  ;;  %v1815_v14 = vsel %vm1140_vm7, %v1774_v26, 0.0  ;;  %v1714_v46 = vsel %vm1140_vm7, %v1578_v60, 0.0 }
 0x1bc   : > { %v1811_v30 = vsel %vm1140_vm7, %v1772_v59, 0.0  ;;  %1670 = vst.msk [vmem:[%s2874_s9 + $0x48] sm:$0xff] %vm1140_vm7, %v1570_v24  ;;  %v1710_v31 = vsel %vm1140_vm7, %v1570_v24, 0.0  ;;  %v1773_v33 = vmul.f32 %v1570_v24, %v1570_v24 }
 0x1bd   : > { %v1812_v56 = vadd.f32 %v1811_v30, %v1810_v20  ;;  %v1711_v35 = vadd.f32 %v1710_v31, %v1709_v25  ;;  %v1817_v27 = vsel %vm1140_vm7, %v1775_v40, 0.0 }
 0x1be   : > { %v1813_v1 = vsel %vm1140_vm7, %v1773_v33, 0.0 }
 0x1bf   : > { %v1713_v44 = vadd.f32 %v1712_v37, %v1711_v35  ;;  %v1814_v45 = vadd.f32 %v1813_v1, %v1812_v56 }
 0x1c1   : > { %v1816_v47 = vadd.f32 %v1815_v14, %v1814_v45  ;;  %v1715_v48 = vadd.f32 %v1714_v46, %v1713_v44 }
 0x1c3   : > { %v1818_v49 = vadd.f32 %v1817_v27, %v1816_v47 }
 0x1d6   : > { %v2165_v51 = vpop.f32.mrb[12].mxu0 }
 0x1d7   : > { %v1591_v52 = vadd.f32 %v2165_v51, %v2867_v50  ;;  %v1582_v11 = vpop.f32.mrb[13].mxu0 }
 0x1d8   : > { %v1583_v53 = vadd.f32 %v2867_v50, %v1582_v11  ;;  %v2166_v54 = vpop.f32.mrb[14].mxu0 }
 0x1d9   : > { %1675 = vst.msk [vmem:[%s2874_s9 + $0x70] sm:$0xff] %vm1140_vm7, %v1591_v52  ;;  %v1594_v39 = vadd.f32 %v2166_v54, %v2867_v50  ;;  %v1585_v55 = vpop.f32.mrb[15].mxu0  ;;  %v1778_v42 = vmul.f32 %v1591_v52, %v1591_v52  ;;  %v1720_v8 = vsel %vm1140_vm7, %v1591_v52, 0.0 }
 0x1da   : > { %1673 = vst.msk [vmem:[%s2874_s9 + $0x60] sm:$0xff] %vm1140_vm7, %v1583_v53  ;;  %v1716_v57 = vsel %vm1140_vm7, %v1583_v53, 0.0  ;;  %v1776_v34 = vmul.f32 %v1583_v53, %v1583_v53  ;;  %v1586_v62 = vadd.f32 %v2867_v50, %v1585_v55 }
 0x1db   : > { %v1717_v43 = vadd.f32 %v1716_v57, %v1715_v48  ;;  %1676 = vst.msk [vmem:[%s2874_s9 + $0x78] sm:$0xff] %vm1140_vm7, %v1594_v39  ;;  %v1779_v9 = vmul.f32 %v1594_v39, %v1594_v39  ;;  %v1823_v10 = vsel %vm1140_vm7, %v1778_v42, 0.0  ;;  %v1722_v12 = vsel %vm1140_vm7, %v1594_v39, 0.0 }
 0x1dc   : > { %v1819_v41 = vsel %vm1140_vm7, %v1776_v34, 0.0  ;;  %1674 = vst.msk [vmem:[%s2874_s9 + $0x68] sm:$0xff] %vm1140_vm7, %v1586_v62  ;;  %v1718_v63 = vsel %vm1140_vm7, %v1586_v62, 0.0  ;;  %v1777_v3 = vmul.f32 %v1586_v62, %v1586_v62 }
 0x1dd   : > { %v1820_v4 = vadd.f32 %v1819_v41, %v1818_v49  ;;  %v1719_v6 = vadd.f32 %v1718_v63, %v1717_v43  ;;  %v1825_v28 = vsel %vm1140_vm7, %v1779_v9, 0.0 }
 0x1de   : > { %v1821_v5 = vsel %vm1140_vm7, %v1777_v3, 0.0 }
 0x1df   : > { %v1721_v29 = vadd.f32 %v1720_v8, %v1719_v6  ;;  %v1822_v21 = vadd.f32 %v1821_v5, %v1820_v4 }
 0x1e1   : > { %v1824_v13 = vadd.f32 %v1823_v10, %v1822_v21  ;;  %v1723_v15 = vadd.f32 %v1722_v12, %v1721_v29 }
 0x1e3   : > { %v1826_v17 = vadd.f32 %v1825_v28, %v1824_v13 }
 0x1f5   : > { %v2169_v16 = vpop.f32.mrb[0].mxu1 }
 0x1f6   : > { %v1607_v18 = vadd.f32 %v2169_v16, %v2867_v50  ;;  %v1598_v2 = vpop.f32.mrb[1].mxu1 }
 0x1f7   : > { %v1599_v61 = vadd.f32 %v2867_v50, %v1598_v2  ;;  %v2170_v0 = vpop.f32.mrb[2].mxu1 }
 0x1f8   : > { %1679 = vst.msk [vmem:[%s2874_s9 + $0x90] sm:$0xff] %vm1140_vm7, %v1607_v18  ;;  %v1610_v19 = vadd.f32 %v2170_v0, %v2867_v50  ;;  %v1601_v20 = vpop.f32.mrb[3].mxu1  ;;  %v1782_v36 = vmul.f32 %v1607_v18, %v1607_v18  ;;  %v1728_v25 = vsel %vm1140_vm7, %v1607_v18, 0.0 }
 0x1f9   : > { %1677 = vst.msk [vmem:[%s2874_s9 + $0x80] sm:$0xff] %vm1140_vm7, %v1599_v61  ;;  %v1724_v22 = vsel %vm1140_vm7, %v1599_v61, 0.0  ;;  %v1780_v58 = vmul.f32 %v1599_v61, %v1599_v61  ;;  %v1602_v38 = vadd.f32 %v2867_v50, %v1601_v20 }
 0x1fa   : > { %v1725_v32 = vadd.f32 %v1724_v22, %v1723_v15  ;;  %1680 = vst.msk [vmem:[%s2874_s9 + $0x98] sm:$0xff] %vm1140_vm7, %v1610_v19  ;;  %v1783_v26 = vmul.f32 %v1610_v19, %v1610_v19  ;;  %v1831_v56 = vsel %vm1140_vm7, %v1782_v36, 0.0  ;;  %v1730_v35 = vsel %vm1140_vm7, %v1610_v19, 0.0 }
 0x1fb   : > { %v1827_v60 = vsel %vm1140_vm7, %v1780_v58, 0.0  ;;  %1678 = vst.msk [vmem:[%s2874_s9 + $0x88] sm:$0xff] %vm1140_vm7, %v1602_v38  ;;  %v1726_v23 = vsel %vm1140_vm7, %v1602_v38, 0.0  ;;  %v1781_v7 = vmul.f32 %v1602_v38, %v1602_v38 }
 0x1fc   : > { %v1828_v59 = vadd.f32 %v1827_v60, %v1826_v17  ;;  %v1727_v24 = vadd.f32 %v1726_v23, %v1725_v32  ;;  %v1833_v1 = vsel %vm1140_vm7, %v1783_v26, 0.0 }
 0x1fd   : > { %v1829_v30 = vsel %vm1140_vm7, %v1781_v7, 0.0 }
 0x1fe   : > { %v1729_v31 = vadd.f32 %v1728_v25, %v1727_v24  ;;  %v1830_v33 = vadd.f32 %v1829_v30, %v1828_v59 }
 0x200   : > { %v1832_v37 = vadd.f32 %v1831_v56, %v1830_v33  ;;  %v1731_v40 = vadd.f32 %v1730_v35, %v1729_v31 }
 0x202   : > { %v1834_v44 = vadd.f32 %v1833_v1, %v1832_v37 }
 0x215   : > { %v2173_v45 = vpop.f32.mrb[4].mxu1 }
 0x216   : > { %v1623_v14 = vadd.f32 %v2173_v45, %v2867_v50  ;;  %v1614_v46 = vpop.f32.mrb[5].mxu1 }
 0x217   : > { %v1615_v47 = vadd.f32 %v2867_v50, %v1614_v46  ;;  %v2174_v48 = vpop.f32.mrb[6].mxu1 }
 0x218   : > { %1683 = vst.msk [vmem:[%s2874_s9 + $0xb0] sm:$0xff] %vm1140_vm7, %v1623_v14  ;;  %v1626_v27 = vadd.f32 %v2174_v48, %v2867_v50  ;;  %v1617_v49 = vpop.f32.mrb[7].mxu1  ;;  %v1786_v54 = vmul.f32 %v1623_v14, %v1623_v14  ;;  %v1736_v43 = vsel %vm1140_vm7, %v1623_v14, 0.0 }
 0x219   : > { %1681 = vst.msk [vmem:[%s2874_s9 + $0xa0] sm:$0xff] %vm1140_vm7, %v1615_v47  ;;  %v1732_v51 = vsel %vm1140_vm7, %v1615_v47, 0.0  ;;  %v1784_v52 = vmul.f32 %v1615_v47, %v1615_v47  ;;  %v1618_v11 = vadd.f32 %v2867_v50, %v1617_v49 }
 0x21a   : > { %v1733_v53 = vadd.f32 %v1732_v51, %v1731_v40  ;;  %1684 = vst.msk [vmem:[%s2874_s9 + $0xb8] sm:$0xff] %vm1140_vm7, %v1626_v27  ;;  %v1787_v42 = vmul.f32 %v1626_v27, %v1626_v27  ;;  %v1839_v4 = vsel %vm1140_vm7, %v1786_v54, 0.0  ;;  %v1738_v6 = vsel %vm1140_vm7, %v1626_v27, 0.0 }
 0x21b   : > { %v1835_v39 = vsel %vm1140_vm7, %v1784_v52, 0.0  ;;  %1682 = vst.msk [vmem:[%s2874_s9 + $0xa8] sm:$0xff] %vm1140_vm7, %v1618_v11  ;;  %v1734_v55 = vsel %vm1140_vm7, %v1618_v11, 0.0  ;;  %v1785_v57 = vmul.f32 %v1618_v11, %v1618_v11 }
 0x21c   : > { %v1836_v34 = vadd.f32 %v1835_v39, %v1834_v44  ;;  %v1735_v62 = vadd.f32 %v1734_v55, %v1733_v53  ;;  %v1841_v5 = vsel %vm1140_vm7, %v1787_v42, 0.0 }
 0x21d   : > { %v1837_v41 = vsel %vm1140_vm7, %v1785_v57, 0.0 }
 0x21e   : > { %v1737_v63 = vadd.f32 %v1736_v43, %v1735_v62  ;;  %v1838_v3 = vadd.f32 %v1837_v41, %v1836_v34 }
 0x220   : > { %v1840_v8 = vadd.f32 %v1839_v4, %v1838_v3  ;;  %v1739_v9 = vadd.f32 %v1738_v6, %v1737_v63 }
 0x222   : > { %v1842_v29 = vadd.f32 %v1841_v5, %v1840_v8 }
 0x235   : > { %v2177_v21 = vpop.f32.mrb[8].mxu1 }
 0x236   : > { %v1639_v10 = vadd.f32 %v2177_v21, %v2867_v50  ;;  %v1630_v12 = vpop.f32.mrb[9].mxu1 }
 0x237   : > { %v1631_v13 = vadd.f32 %v2867_v50, %v1630_v12  ;;  %v2178_v15 = vpop.f32.mrb[10].mxu1 }
 0x238   : > { %1687 = vst.msk [vmem:[%s2874_s9 + $0xd0] sm:$0xff] %vm1140_vm7, %v1639_v10  ;;  %v1642_v28 = vadd.f32 %v2178_v15, %v2867_v50  ;;  %v1633_v17 = vpop.f32.mrb[11].mxu1  ;;  %v1790_v0 = vmul.f32 %v1639_v10, %v1639_v10  ;;  %v1744_v32 = vsel %vm1140_vm7, %v1639_v10, 0.0 }
 0x239   : > { %1685 = vst.msk [vmem:[%s2874_s9 + $0xc0] sm:$0xff] %vm1140_vm7, %v1631_v13  ;;  %v1740_v16 = vsel %vm1140_vm7, %v1631_v13, 0.0  ;;  %v1788_v18 = vmul.f32 %v1631_v13, %v1631_v13  ;;  %v1634_v2 = vadd.f32 %v2867_v50, %v1633_v17 }
 0x23a   : > { %v1741_v61 = vadd.f32 %v1740_v16, %v1739_v9  ;;  %1688 = vst.msk [vmem:[%s2874_s9 + $0xd8] sm:$0xff] %vm1140_vm7, %v1642_v28  ;;  %v1791_v36 = vmul.f32 %v1642_v28, %v1642_v28  ;;  %v1847_v59 = vsel %vm1140_vm7, %v1790_v0, 0.0  ;;  %v1746_v24 = vsel %vm1140_vm7, %v1642_v28, 0.0 }
 0x23b   : > { %v1843_v19 = vsel %vm1140_vm7, %v1788_v18, 0.0  ;;  %1686 = vst.msk [vmem:[%s2874_s9 + $0xc8] sm:$0xff] %vm1140_vm7, %v1634_v2  ;;  %v1742_v20 = vsel %vm1140_vm7, %v1634_v2, 0.0  ;;  %v1789_v22 = vmul.f32 %v1634_v2, %v1634_v2 }
 0x23c   : > { %v1844_v58 = vadd.f32 %v1843_v19, %v1842_v29  ;;  %v1743_v38 = vadd.f32 %v1742_v20, %v1741_v61  ;;  %v1849_v30 = vsel %vm1140_vm7, %v1791_v36, 0.0 }
 0x23d   : > { %v1845_v60 = vsel %vm1140_vm7, %v1789_v22, 0.0 }
 0x23e   : > { %v1745_v23 = vadd.f32 %v1744_v32, %v1743_v38  ;;  %v1846_v7 = vadd.f32 %v1845_v60, %v1844_v58 }
 0x240   : > { %v1848_v25 = vadd.f32 %v1847_v59, %v1846_v7  ;;  %v1747_v26 = vadd.f32 %v1746_v24, %v1745_v23 }
 0x242   : > { %v1850_v31 = vadd.f32 %v1849_v30, %v1848_v25 }
 0x255   : > { %v2181_v33 = vpop.f32.mrb[12].mxu1 }
 0x256   : > { %v1655_v56 = vadd.f32 %v2181_v33, %v2867_v50  ;;  %v1646_v35 = vpop.f32.mrb[13].mxu1 }
 0x257   : > { %v1647_v37 = vadd.f32 %v2867_v50, %v1646_v35  ;;  %v2182_v40 = vpop.f32.mrb[14].mxu1 }
 0x258   : > { %1691 = vst.msk [vmem:[%s2874_s9 + $0xf0] sm:$0xff] %vm1140_vm7, %v1655_v56  ;;  %v1658_v1 = vadd.f32 %v2182_v40, %v2867_v50  ;;  %v1649_v44 = vpop.f32.mrb[15].mxu1  ;;  %v1794_v48 = vmul.f32 %v1655_v56, %v1655_v56  ;;  %v1752_v53 = vsel %vm1140_vm7, %v1655_v56, 0.0 }
 0x259   : > { %1689 = vst.msk [vmem:[%s2874_s9 + $0xe0] sm:$0xff] %vm1140_vm7, %v1647_v37  ;;  %v1748_v45 = vsel %vm1140_vm7, %v1647_v37, 0.0  ;;  %v1792_v14 = vmul.f32 %v1647_v37, %v1647_v37  ;;  %v1650_v46 = vadd.f32 %v2867_v50, %v1649_v44 }
 0x25a   : > { %v1749_v47 = vadd.f32 %v1748_v45, %v1747_v26  ;;  %1692 = vst.msk [vmem:[%s2874_s9 + $0xf8] sm:$0xff] %vm1140_vm7, %v1658_v1  ;;  %v1795_v54 = vmul.f32 %v1658_v1, %v1658_v1  ;;  %v1855_v57 = vsel %vm1140_vm7, %v1794_v48, 0.0  ;;  %v1754_v34 = vsel %vm1140_vm7, %v1658_v1, 0.0 }
 0x25b   : > { %v1851_v27 = vsel %vm1140_vm7, %v1792_v14, 0.0  ;;  %1690 = vst.msk [vmem:[%s2874_s9 + $0xe8] sm:$0xff] %vm1140_vm7, %v1650_v46  ;;  %v1750_v49 = vsel %vm1140_vm7, %v1650_v46, 0.0  ;;  %v1793_v51 = vmul.f32 %v1650_v46, %v1650_v46 }
 0x25c   : > { %v1852_v52 = vadd.f32 %v1851_v27, %v1850_v31  ;;  %v1751_v11 = vadd.f32 %v1750_v49, %v1749_v47  ;;  %v1857_v42 = vsel %vm1140_vm7, %v1795_v54, 0.0 }
 0x25d   : > { %v1853_v39 = vsel %vm1140_vm7, %v1793_v51, 0.0 }
 0x25e   : > { %v1753_v55 = vadd.f32 %v1752_v53, %v1751_v11  ;;  %v1854_v50 = vadd.f32 %v1853_v39, %v1852_v52 }
 0x260   : > { %v1755_v62 = vadd.f32 %v1754_v34, %v1753_v55  ;;  %v1856_v43 = vadd.f32 %v1855_v57, %v1854_v50 }
 0x262   : > { %v1756_v41 = vrot.slane %v1755_v62, 4  ;;  %v1858_v63 = vadd.f32 %v1857_v42, %v1856_v43 }
 0x264   : > { %v1757_v3 = vadd.f32 %v1756_v41, %v1755_v62  ;;  %v1859_v4 = vrot.slane %v1858_v63, 4 }
 0x266   : > { %v1758_v6 = vrot.slane %v1757_v3, 2  ;;  %v1860_v8 = vadd.f32 %v1859_v4, %v1858_v63 }
 0x268   : > { %v1759_v9 = vadd.f32 %v1758_v6, %v1757_v3  ;;  %v1861_v5 = vrot.slane %v1860_v8, 2 }
 0x26a   : > { %v1760_v29 = vrot.slane %v1759_v9, 1  ;;  %v1862_v21 = vadd.f32 %v1861_v5, %v1860_v8 }
 0x26c   : > { %v1761_v10 = vadd.f32 %v1760_v29, %v1759_v9  ;;  %v1863_v12 = vrot.slane %v1862_v21, 1 }
 0x26e   : > { %1763 = vst.msk [vmem:[%s467_s12] sm:$0x1] %vm1762_vm0, %v1761_v10  ;;  %v1864_v13 = vadd.f32 %v1863_v12, %v1862_v21 }
 0x270   : > { %1865 = vst.msk [vmem:[%s472_s15] sm:$0x1] %vm1762_vm0, %v1864_v13 }
 0x271 PF: > { %s18_s2 = sadd.s32 1, %s2271_s2   ;;  %s3083_s24 = smov %s2267_s1 }
 0x272   : > { %p15_p5 = scmp.ge.s32.totalorder %s18_s2, 4   ;;  %s3084_s1 = smov %s3086_s25 }
 0x274   :  { %17 = sbr.rel (!%p15_p5) target bundleno = 2 (0x2), region = 100 }

// kernel: resnet_block.11
= control target key start
LH: loop header
LB: loop body
LE: loop exit
PB: predicated region body
PF: predicated region fallthrough
CT: control target
= control target key end

     0   :  { %s3138_s11 = smov 0   ;;  %s3140_s12 = smov 0   ;;  %s4314_s0 = inlined_call_operand.vmem [shape: bf16[2,16,16,32], index: 0, kind: input, shape index: {}, may-alias: {0,1,2}]   ;;  %s4315_s1 = inlined_call_operand.vmem [shape: bf16[2,16,16,32], index: 1, kind: input, shape index: {}, may-alias: {0,1,2}]   ;;  %s4316_s2 = inlined_call_operand.vmem [shape: bf16[2,16,16,32], index: 2, kind: input, shape index: {}, may-alias: {0,1,2}]   ;;  %s4317_s3 = inlined_call_operand.vmem [shape: bf16[288,16], index: 3, kind: input, shape index: {}]   ;;  %s4318_s4 = inlined_call_operand.vmem [shape: f32[1,16], index: 4, kind: input, shape index: {}]   ;;  %s4319_s5 = inlined_call_operand.vmem [shape: f32[2,16,16,8], index: 5, kind: input, shape index: {}]   ;;  %s4320_s6 = inlined_call_operand.vmem [shape: f32[1,8], index: 6, kind: input, shape index: {}]   ;;  %s4321_s7 = inlined_call_operand.vmem [shape: f32[1,8], index: 7, kind: input, shape index: {}]   ;;  %s4322_s8 = inlined_call_operand.vmem [shape: f32[1,8], index: 8, kind: input, shape index: {}]   ;;  %s4323_s9 = inlined_call_operand.vmem [shape: f32[1,8], index: 9, kind: input, shape index: {}]   ;;  %s4324_s10 = inlined_call_operand.vmem [shape: bf16[2,16,16,8], index: 10, kind: output, shape index: {}]  }
   0x1   :  { %s3142_s13 = smov 0  }
   0x2 LB: > { %s32_s14 = sadd.s32 1, %s3072_s12  ;;  %p2668_p0 = scmp.ge.s32.totalorder %s3076_s13, 1  ;;  %s3076_s13 = sphi %s3142_s13, %s20_s13   ;;  %s3072_s12 = sphi %s3140_s12, %s4330_s12   ;;  %s3068_s11 = sphi %s3138_s11, %s4329_s11  }
   0x3   : > { %p34_p1 = scmp.ge.s32.totalorder %s32_s14, 2  ;;  %p416_p2 = scmp.lt.s32.totalorder %s3076_s13, 3 }
   0x5   : > { %s4332_s14 = smov (%p34_p1, %s32_s14), 0  ;;  %p417_p3 = pnand %p2668_p0, %p416_p2 }
   0x6   : > { %p501_p4 = scmp.lt.s32.totalorder (!%p417_p3), %s3068_s11, 1  ;;  %vm887_vm0 = vcmask (!%p417_p3), 1047552   ;;  %vm888_vm1 = vsmask.f32 (!%p417_p3), 7424  ;;  %v3078_v0 = vmov (!%p417_p3), 0   ;;  %v3029_v2 = vld [vmem:[%s4317_s3 + $0x40] sm:$0xff] (!%p417_p3)  }
   0x7   : > { %420 = sbr.rel (%p417_p3) target bundleno = 667 (0x29b), region = 60  ;;  %v3156_v1 = vcombine.low (!%p417_p3), %v3078_v0, %v3078_v0  ;;  %vm821_vm2 = vsmask.f32 (!%p417_p3), 256  ;;  %s3079_s17 = smov (!%p417_p3), 32   ;;  %vm3167_vm3 = vmand (!%p417_p3), %vm887_vm0, %vm888_vm1  ;;  %2808 = vmatprep.subr.bf16.mxu0 (!%p417_p3), %v3029_v2  ;;  %v3030_v6 = vld [vmem:[%s4317_s3] sm:$0xff] (!%p417_p3)   ;;  %2974 = vmatprep.subr.bf16.mxu1 (!%p417_p3), %v3029_v2  ;;  %v3032_v9 = vld [vmem:[%s4317_s3 + $0x48] sm:$0xff] (!%p417_p3)  }
   0x8   : > { %v3033_v10 = vld [vmem:[%s4317_s3 + $0x8] sm:$0xff] (!%p417_p3)   ;;  %2809 = vmatpush3.bf16.msra.mxu0 (!%p417_p3), %v3030_v6  ;;  %2982 = vmatpush3.bf16.msra.mxu1 (!%p417_p3), %v3030_v6  ;;  %vm820_vm4 = vcmask (!%p417_p3), 1040384   ;;  %s3080_s1 = smov (!%p417_p3), 96   ;;  %s3081_s28 = smov (!%p417_p3), 64   ;;  %v3034_v53 = vld [vmem:[%s4317_s3 + $0x50] sm:$0xff] (!%p417_p3)   ;;  %v3036_v57 = vld [vmem:[%s4317_s3 + $0x58] sm:$0xff] (!%p417_p3)  }
   0x9   : > { %942 = vrot.lane.b32.xlu0 (!%p417_p3), %v3156_v1, %s3079_s17  ;;  %v693_v3 = vshrl.u32 (!%p417_p3), %v3156_v1, 16  ;;  %v696_v4 = vshll.u32 (!%p417_p3), %v3156_v1, 16  ;;  %2810 = vmatprep.subr.bf16.mxu0 (!%p417_p3), %v3032_v9  ;;  %vm3223_vm5 = vmand (!%p417_p3), %vm820_vm4, %vm821_vm2  ;;  %v3035_v54 = vld [vmem:[%s4317_s3 + $0x10] sm:$0xff] (!%p417_p3)   ;;  %v3037_v61 = vld [vmem:[%s4317_s3 + $0x18] sm:$0xff] (!%p417_p3)   ;;  %vm1168_vm6 = vcmask (!%p417_p3), 261120   ;;  %vm1217_vm7 = vcmask (!%p417_p3), 523264  }
   0xa   : > { %2975 = vmatprep.subr.bf16.mxu1 (!%p417_p3), %v3032_v9  ;;  %v3041_v9 = vld [vmem:[%s4317_s3 + $0x68] sm:$0xff] (!%p417_p3)   ;;  %vm1250_vm8 = vcmask (!%p417_p3), 785408   ;;  %vm2472_vm9 = vcmask (!%p417_p3), 60416  }
   0xb   : > { %v839_v7 = vrot.slane (!%p417_p3), %v696_v4, 1  ;;  %v695_v8 = vrot.slane (!%p417_p3), %v693_v3, 7 }
   0xc   : > { %2811 = vmatpush3.bf16.msra.mxu0 (!%p417_p3), %v3033_v10  ;;  %2983 = vmatpush3.bf16.msra.mxu1 (!%p417_p3), %v3033_v10 }
   0xd   : > { %v840_v13 = vor.u32 (!%p417_p3), %v839_v7, %v693_v3  ;;  %v3194_v14 = vor.u32 (!%p417_p3), %v696_v4, %v695_v8  ;;  %2812 = vmatprep.subr.bf16.mxu0 (!%p417_p3), %v3034_v53  ;;  %2976 = vmatprep.subr.bf16.mxu1 (!%p417_p3), %v3034_v53  ;;  %v3039_v4 = vld [vmem:[%s4317_s3 + $0x60] sm:$0xff] (!%p417_p3)  }
   0xe   : > { %s4334_s11 = smov (!%p501_p4, %s3068_s11), 1  ;;  %v3040_v7 = vld [vmem:[%s4317_s3 + $0x20] sm:$0xff]  }
   0xf   : > { %s2770_s18 = sshll.u32 %s4334_s11, 7  ;;  %v3205_v16 = vsel %vm3167_vm3, %v840_v13, 0  ;;  %v3292_v62 = vsel %vm3223_vm5, 0, %v3194_v14  ;;  %v3042_v14 = vld [vmem:[%s4317_s3 + $0x28] sm:$0xff]  }
  0x10   : > { %s3180_s23 = scalar_lea.vmem %s4314_s0, %s2770_s18  ;;  %2813 = vmatpush3.bf16.msra.mxu0 %v3035_v54  ;;  %2984 = vmatpush3.bf16.msra.mxu1 %v3035_v54 }
  0x11   : > { %v3189_v11 = vld [vmem:[%s3180_s23 + $0x58] sm:$0xff]   ;;  %v3192_v12 = vld [vmem:[%s3180_s23 + $0x8] sm:$0xff]   ;;  %v3199_v15 = vld [vmem:[%s3180_s23] sm:$0xff]   ;;  %2814 = vmatprep.subr.bf16.mxu0 %v3036_v57  ;;  %2977 = vmatprep.subr.bf16.mxu1 %v3036_v57 }
  0x12   : > { %966 = vrot.lane.b32.xlu1 %v3189_v11, %s3079_s17  ;;  %1136 = vrot.lane.b32.xlu0 %v3192_v12, %s3080_s1  ;;  %v707_v17 = vshrl.u32 %v3192_v12, 16  ;;  %v710_v18 = vshll.u32 %v3192_v12, 16  ;;  %v3210_v19 = vld [vmem:[%s3180_s23 + $0x60] sm:$0xff]   ;;  %v700_v20 = vshrl.u32 %v3199_v15, 16  ;;  %v703_v21 = vshll.u32 %v3199_v15, 16  ;;  %v3217_v25 = vld [vmem:[%s3180_s23 + $0x68] sm:$0xff]  }
  0x13   : > { %v784_v23 = vshrl.u32 %v3210_v19, 16  ;;  %v787_v24 = vshll.u32 %v3210_v19, 16  ;;  %v780_v29 = vshll.u32 %v3189_v11, 16  ;;  %v791_v32 = vshrl.u32 %v3217_v25, 16  ;;  %v3251_v47 = vld [vmem:[%s3180_s23 + $0x10] sm:$0xff]   ;;  %v3409_v53 = vld [vmem:[%s3180_s23 + $0x20] sm:$0xff]  }
  0x14   : > { %v709_v22 = vrot.slane %v707_v17, 7  ;;  %v841_v26 = vrot.slane %v703_v21, 1  ;;  %v702_v28 = vrot.slane %v700_v20, 7  ;;  %v777_v33 = vshrl.u32 %v3189_v11, 16  ;;  %2815 = vmatpush3.bf16.msra.mxu0 %v3037_v61  ;;  %v3303_v3 = vld [vmem:[%s3180_s23 + $0x70] sm:$0xff]   ;;  %2985 = vmatpush3.bf16.msra.mxu1 %v3037_v61 }
  0x15   : > { %v865_v31 = vrot.slane %v787_v24, 1  ;;  %v794_v36 = vshll.u32 %v3217_v25, 16  ;;  %v863_v37 = vrot.slane %v780_v29, 1  ;;  %v793_v40 = vrot.slane %v791_v32, 7  ;;  %2816 = vmatprep.subr.bf16.mxu0 %v3039_v4  ;;  %2978 = vmatprep.subr.bf16.mxu1 %v3039_v4 }
  0x16   : > { %990 = vrot.lane.b32.xlu1 %v3205_v16, %s3081_s28  ;;  %v712_v30 = vor.u32 %v710_v18, %v709_v22  ;;  %v842_v34 = vor.u32 %v841_v26, %v700_v20  ;;  %v705_v35 = vor.u32 %v703_v21, %v702_v28  ;;  %v786_v44 = vrot.slane %v784_v23, 7  ;;  %v3044_v22 = vld [vmem:[%s4317_s3 + $0x30] sm:$0xff]   ;;  %v3354_v28 = vld [vmem:[%s3180_s23 + $0x18] sm:$0xff]  }
  0x17   : > { %v866_v39 = vor.u32 %v865_v31, %v784_v23  ;;  %v864_v43 = vor.u32 %v863_v37, %v777_v33  ;;  %v796_v46 = vor.u32 %v794_v36, %v793_v40  ;;  %v843_v51 = vrot.slane %v710_v18, 1  ;;  %v3046_v23 = vld [vmem:[%s4317_s3 + $0x78] sm:$0xff]  }
  0x18   : > { %v3233_v38 = vsel %vm3223_vm5, 0, %v712_v30  ;;  %v891_v41 = vsel %vm3167_vm3, %v842_v34, 0  ;;  %v3244_v42 = vsel %vm3223_vm5, 0, %v705_v35  ;;  %v789_v49 = vor.u32 %v787_v24, %v786_v44  ;;  %2817 = vmatpush3.bf16.msra.mxu0 %v3040_v7  ;;  %2986 = vmatpush3.bf16.msra.mxu1 %v3040_v7  ;;  %v3447_v7 = vld [vmem:[%s4317_s3 + $0x80] sm:$0xff]  }
  0x19   : > { %1071 = vrot.lane.b32.xlu0 %v891_v41, %s3079_s17  ;;  %v3248_v45 = vsel %vm3167_vm3, %v866_v39, 0  ;;  %v3259_v48 = vsel %vm3167_vm3, %v864_v43, 0  ;;  %v3263_v50 = vsel %vm3223_vm5, 0, %v796_v46  ;;  %v714_v52 = vshrl.u32 %v3251_v47, 16  ;;  %2818 = vmatprep.subr.bf16.mxu0 %v3041_v9  ;;  %v3384_v39 = vld [vmem:[%s3180_s23 + $0x78] sm:$0xff]  }
  0x1a   : > { %1104 = vrot.lane.b32.xlu1 %v3233_v38, %s3081_s28  ;;  %v779_v55 = vrot.slane %v777_v33, 7  ;;  %v3278_v56 = vsel %vm3223_vm5, 0, %v789_v49  ;;  %v844_v58 = vor.u32 %v843_v51, %v707_v17  ;;  %v717_v60 = vshll.u32 %v3251_v47, 16  ;;  %v3043_v17 = vld [vmem:[%s4317_s3 + $0x70] sm:$0xff]   ;;  %2979 = vmatprep.subr.bf16.mxu1 %v3041_v9 }
  0x1b   : > { %v716_v59 = vrot.slane %v714_v52, 7  ;;  %v867_v6 = vrot.slane %v794_v36, 1  ;;  %v798_v13 = vshrl.u32 %v3303_v3, 16  ;;  %v801_v18 = vshll.u32 %v3303_v3, 16 }
  0x1c   : > { %v782_v63 = vor.u32 %v780_v29, %v779_v55  ;;  %v3300_v0 = vsel %vm3167_vm3, %v844_v58, 0  ;;  %2819 = vmatpush3.bf16.msra.mxu0 %v3042_v14  ;;  %2987 = vmatpush3.bf16.msra.mxu1 %v3042_v14  ;;  %v3047_v29 = vld [vmem:[%s4317_s3 + $0x38] sm:$0xff]   ;;  %v845_v31 = vrot.slane %v717_v60, 1  ;;  %v724_v35 = vshll.u32 %v3354_v28, 16 }
  0x1d   : > { %1095 = vrot.lane.b32.xlu0 %v3248_v45, %s3079_s17  ;;  %v719_v2 = vor.u32 %v717_v60, %v716_v59  ;;  %v868_v20 = vor.u32 %v867_v6, %v791_v32  ;;  %v800_v21 = vrot.slane %v798_v13, 7  ;;  %2820 = vmatprep.subr.bf16.mxu0 %v3043_v17  ;;  %v721_v32 = vshrl.u32 %v3354_v28, 16 }
  0x1e   : > { %1038 = vrot.lane.b32.xlu1 %v3244_v42, %s3080_s1  ;;  %v3317_v8 = vsel %vm3223_vm5, 0, %v782_v63  ;;  %2980 = vmatprep.subr.bf16.mxu1 %v3043_v17  ;;  %v846_v33 = vor.u32 %v845_v31, %v714_v52  ;;  %v912_v43 = vshrl.u32 %v3384_v39, 16  ;;  %v915_v49 = vshll.u32 %v3384_v39, 16 }
  0x1f   : > { %v3324_v10 = vsel %vm3223_vm5, 0, %v719_v2  ;;  %v3351_v24 = vsel %vm3167_vm3, %v868_v20, 0  ;;  %v803_v26 = vor.u32 %v801_v18, %v800_v21  ;;  %v723_v34 = vrot.slane %v721_v32, 7 }
  0x20   : > { %2821 = vmatpush3.bf16.msra.mxu0 %v3044_v22  ;;  %2988 = vmatpush3.bf16.msra.mxu1 %v3044_v22  ;;  %v3381_v36 = vsel %vm3167_vm3, %v846_v33, 0  ;;  %v914_v46 = vrot.slane %v912_v43, 7  ;;  %v847_v55 = vrot.slane %v724_v35, 1  ;;  %v728_v57 = vshrl.u32 %v3409_v53, 16 }
  0x21   : > { %1128 = vrot.lane.b32.xlu0 %v3263_v50, %s3081_s28  ;;  %2822 = vmatprep.subr.bf16.mxu0 %v3046_v23  ;;  %v3365_v30 = vsel %vm3223_vm5, 0, %v803_v26  ;;  %v726_v37 = vor.u32 %v724_v35, %v723_v34  ;;  %v731_v60 = vshll.u32 %v3409_v53, 16  ;;  %v920_v4 = vrot.slane %v915_v49, 1  ;;  %v3477_v26 = vld [vmem:[%s3180_s23 + $0x30] sm:$0xff]  }
  0x22   : > { %1014 = vrot.lane.b32.xlu1 %v3259_v48, %s3081_s28  ;;  %2981 = vmatprep.subr.bf16.mxu1 %v3046_v23  ;;  %v917_v52 = vor.u32 %v915_v49, %v914_v46  ;;  %v848_v58 = vor.u32 %v847_v55, %v721_v32  ;;  %v730_v59 = vrot.slane %v728_v57, 7  ;;  %v745_v34 = vshll.u32 %v3477_v26, 16 }
  0x23   : > { %v3392_v40 = vsel %vm3223_vm5, 0, %v726_v37  ;;  %v921_v6 = vor.u32 %v920_v4, %v912_v43  ;;  %v849_v14 = vrot.slane %v731_v60, 1  ;;  %v3527_v4 = vld [vmem:[%s3180_s23 + $0x40] sm:$0xff]  }
  0x24   : > { %2823 = vmatpush3.bf16.msra.mxu0 %v3047_v29  ;;  %2989 = vmatpush3.bf16.msra.mxu1 %v3047_v29  ;;  %v919_v54 = vsel %vm3223_vm5, 0, %v917_v52  ;;  %v3428_v61 = vsel %vm3167_vm3, %v848_v58, 0  ;;  %v733_v63 = vor.u32 %v731_v60, %v730_v59 }
  0x25   : > { %1160 = vrot.lane.b32.xlu0 %v3217_v25, %s3080_s1  ;;  %v3453_v9 = vsel %vm3167_vm3, %v921_v6, 0  ;;  %2938 = vmatprep.subr.bf16.mxu1 %v3447_v7 }
  0x26   : > { %1062 = vrot.lane.b32.xlu1 %v3278_v56, %s3080_s1  ;;  %v3436_v2 = vsel %vm3223_vm5, 0, %v733_v63 }
  0x29   : > { %1073 = vrot.lane.b32.xlu0 %v3300_v0, %s3079_s17 }
  0x2a   : > { %944 = vrot.lane.b32.xlu1 %v3199_v15, %s3079_s17 }
  0x2d   : > { %1106 = vrot.lane.b32.xlu0 %v3324_v10, %s3081_s28 }
  0x2e   : > { %992 = vrot.lane.b32.xlu1 %v891_v41, %s3081_s28  ;;  %v869_v41 = vrot.slane %v801_v18, 1  ;;  %v850_v18 = vor.u32 %v849_v14, %v728_v57 }
  0x30   : > { %v870_v44 = vor.u32 %v869_v41, %v798_v13  ;;  %v3456_v13 = vld [vmem:[%s3180_s23 + $0x28] sm:$0xff]   ;;  %v3474_v22 = vsel %vm3167_vm3, %v850_v18, 0  ;;  %v3502_v41 = vld [vmem:[%s3180_s23 + $0x38] sm:$0xff]   ;;  %v756_v18 = vshrl.u32 %v3527_v4, 16 }
  0x31   : > { %1138 = vrot.lane.b32.xlu0 %v3251_v47, %s3080_s1  ;;  %v735_v17 = vshrl.u32 %v3456_v13, 16  ;;  %v738_v21 = vshll.u32 %v3456_v13, 16  ;;  %v749_v46 = vshrl.u32 %v3502_v41, 16  ;;  %v752_v57 = vshll.u32 %v3502_v41, 16 }
  0x32   : > { %1040 = vrot.lane.b32.xlu1 %v3233_v38, %s3080_s1  ;;  %v3406_v51 = vsel %vm3167_vm3, %v870_v44, 0  ;;  %v853_v44 = vrot.slane %v745_v34, 1 }
  0x33   : > { %v737_v20 = vrot.slane %v735_v17, 7  ;;  %v851_v31 = vrot.slane %v738_v21, 1  ;;  %v751_v55 = vrot.slane %v749_v46, 7 }
  0x35   : > { %1097 = vrot.lane.b32.xlu0 %v3351_v24, %s3079_s17  ;;  %v740_v23 = vor.u32 %v738_v21, %v737_v20  ;;  %v852_v32 = vor.u32 %v851_v31, %v735_v17  ;;  %v754_v63 = vor.u32 %v752_v57, %v751_v55  ;;  %v855_v17 = vrot.slane %v752_v57, 1  ;;  %v3560_v57 = vld [vmem:[%s3180_s23 + $0x48] sm:$0xff]  }
  0x36   : > { %968 = vrot.lane.b32.xlu1 %v3210_v19, %s3079_s17 }
  0x37   : > { %v3485_v29 = vsel %vm3223_vm5, 0, %v740_v23  ;;  %v3499_v35 = vsel %vm3167_vm3, %v852_v32, 0  ;;  %v3535_v14 = vsel %vm3223_vm5, 0, %v754_v63 }
  0x39   : > { %1130 = vrot.lane.b32.xlu0 %v3365_v30, %s3081_s28 }
  0x3a   : > { %1016 = vrot.lane.b32.xlu1 %v3248_v45, %s3081_s28 }
  0x3d   : > { %1162 = vrot.lane.b32.xlu0 %v3303_v3, %s3080_s1 }
  0x3e   : > { %1064 = vrot.lane.b32.xlu1 %v3263_v50, %s3080_s1 }
  0x41   : > { %1075 = vrot.lane.b32.xlu0 %v3381_v36, %s3079_s17 }
  0x42   : > { %946 = vrot.lane.b32.xlu1 %v3192_v12, %s3079_s17 }
  0x45   : > { %1108 = vrot.lane.b32.xlu0 %v3392_v40, %s3081_s28 }
  0x46   : > { %994 = vrot.lane.b32.xlu1 %v3300_v0, %s3081_s28 }
  0x49   : > { %1140 = vrot.lane.b32.xlu0 %v3354_v28, %s3080_s1 }
  0x4a   : > { %1042 = vrot.lane.b32.xlu1 %v3324_v10, %s3080_s1 }
  0x4d   : > { %1099 = vrot.lane.b32.xlu0 %v3406_v51, %s3079_s17 }
  0x4e   : > { %970 = vrot.lane.b32.xlu1 %v3217_v25, %s3079_s17 }
  0x51   : > { %1132 = vrot.lane.b32.xlu0 %v919_v54, %s3081_s28 }
  0x52   : > { %1018 = vrot.lane.b32.xlu1 %v3351_v24, %s3081_s28 }
  0x55   : > { %1164 = vrot.lane.b32.xlu0 %v3384_v39, %s3080_s1 }
  0x56   : > { %1066 = vrot.lane.b32.xlu1 %v3365_v30, %s3080_s1 }
  0x59   : > { %1077 = vrot.lane.b32.xlu0 %v3428_v61, %s3079_s17 }
  0x5a   : > { %948 = vrot.lane.b32.xlu1 %v3251_v47, %s3079_s17 }
  0x5d   : > { %1110 = vrot.lane.b32.xlu0 %v3436_v2, %s3081_s28 }
  0x5e   : > { %996 = vrot.lane.b32.xlu1 %v3381_v36, %s3081_s28 }
  0x61   : > { %1142 = vrot.lane.b32.xlu0 %v3409_v53, %s3080_s1 }
  0x62   : > { %1044 = vrot.lane.b32.xlu1 %v3392_v40, %s3080_s1 }
  0x65   : > { %1101 = vrot.lane.b32.xlu0 %v3453_v9, %s3079_s17 }
  0x66   : > { %972 = vrot.lane.b32.xlu1 %v3303_v3, %s3079_s17 }
  0x69   : > { %1134 = vrot.lane.b32.xlu0 %v3292_v62, %s3081_s28 }
  0x6a   : > { %1020 = vrot.lane.b32.xlu1 %v3406_v51, %s3081_s28 }
  0x6d   : > { %1166 = vrot.lane.b32.xlu0 %v3156_v1, %s3080_s1  ;;  %v742_v1 = vshrl.u32 %v3477_v26, 16 }
  0x6e   : > { %1068 = vrot.lane.b32.xlu1 %v919_v54, %s3080_s1 }
  0x6f   : > { %v744_v33 = vrot.slane %v742_v1, 7  ;;  %v854_v54 = vor.u32 %v853_v44, %v742_v1  ;;  %v759_v1 = vshll.u32 %v3527_v4, 16 }
  0x71   : > { %1079 = vrot.lane.b32.xlu0 %v3474_v22, %s3079_s17  ;;  %v747_v37 = vor.u32 %v745_v34, %v744_v33  ;;  %v3524_v60 = vsel %vm3167_vm3, %v854_v54, 0 }
  0x72   : > { %950 = vrot.lane.b32.xlu1 %v3354_v28, %s3079_s17 }
  0x73   : > { %v3510_v43 = vsel %vm3223_vm5, 0, %v747_v37  ;;  %v758_v37 = vrot.slane %v756_v18, 7 }
  0x75   : > { %1112 = vrot.lane.b32.xlu0 %v3485_v29, %s3081_s28  ;;  %v761_v55 = vor.u32 %v759_v1, %v758_v37  ;;  %v766_v37 = vshll.u32 %v3560_v57, 16 }
  0x76   : > { %998 = vrot.lane.b32.xlu1 %v3428_v61, %s3081_s28 }
  0x79   : > { %1144 = vrot.lane.b32.xlu0 %v3456_v13, %s3080_s1 }
  0x7a   : > { %1046 = vrot.lane.b32.xlu1 %v3436_v2, %s3080_s1 }
  0x7b   : > { %v943_v49 = vpop.permute.xlu0 %942 }
  0x7c   : > { %v1171_v23 = vsel %vm1168_vm6, %v3292_v62, %v943_v49 }
  0x7d   : > { %1081 = vrot.lane.b32.xlu0 %v3499_v35, %s3079_s17 }
  0x7e   : > { %952 = vrot.lane.b32.xlu1 %v3409_v53, %s3079_s17 }
  0x81   : > { %1114 = vrot.lane.b32.xlu0 %v3510_v43, %s3081_s28 }
  0x82   : > { %1000 = vrot.lane.b32.xlu1 %v3474_v22, %s3081_s28 }
  0x84   : > { %v967_v52 = vpop.permute.xlu1 %966  ;;  %v1137_v58 = vpop.permute.xlu0 %1136 }
  0x85   : > { %1146 = vrot.lane.b32.xlu0 %v3477_v26, %s3080_s1 }
  0x86   : > { %1048 = vrot.lane.b32.xlu1 %v3485_v29, %s3080_s1 }
  0x88   : > { %v991_v59 = vpop.permute.xlu1 %990 }
  0x89   : > { %1083 = vrot.lane.b32.xlu0 %v3524_v60, %s3079_s17  ;;  %v1219_v32 = vsel %vm1217_vm7, %v1171_v23, %v991_v59  ;;  %v857_v59 = vrot.slane %v759_v1, 1 }
  0x8a   : > { %954 = vrot.lane.b32.xlu1 %v3456_v13, %s3079_s17 }
  0x8b   : > { %v1072_v20 = vpop.permute.xlu0 %1071 }
  0x8c   : > { %v1105_v6 = vpop.permute.xlu1 %1104  ;;  %v1300_v21 = vsel %vm1168_vm6, %v3199_v15, %v1072_v20  ;;  %v856_v15 = vor.u32 %v855_v17, %v749_v46  ;;  %v3573_v20 = vsel %vm3223_vm5, 0, %v761_v55 }
  0x8d   : > { %v1332_v31 = vsel %vm1217_vm7, %v1300_v21, %v1105_v6  ;;  %1116 = vrot.lane.b32.xlu0 %v3535_v14, %s3081_s28  ;;  %v763_v21 = vshrl.u32 %v3560_v57, 16 }
  0x8e   : > { %1002 = vrot.lane.b32.xlu1 %v3499_v35, %s3081_s28  ;;  %v1364_v33 = vsel %vm1250_vm8, %v1332_v31, %v1137_v58  ;;  %v3557_v49 = vsel %vm3167_vm3, %v856_v15, 0  ;;  %v1207_v58 = vsel %vm1168_vm6, %v3317_v8, %v967_v52 }
  0x8f   : > { %1642 = vmatprep.mubr.bf16.mxu0 %v1364_v33  ;;  %v1096_v44 = vpop.permute.xlu0 %1095  ;;  %v765_v15 = vrot.slane %v763_v21, 7 }
  0x90   : > { %v1039_v34 = vpop.permute.xlu1 %1038  ;;  %v1324_v63 = vsel %vm1168_vm6, %v3210_v19, %v1096_v44 }
  0x91   : > { %v1252_v54 = vsel %vm1250_vm8, %v1219_v32, %v1039_v34  ;;  %1148 = vrot.lane.b32.xlu0 %v3502_v41, %s3080_s1  ;;  %v3052_v32 = vld [vmem:[%s4317_s3 + $0x88] sm:$0xff]   ;;  %v858_v34 = vor.u32 %v857_v59, %v756_v18  ;;  %v768_v18 = vor.u32 %v766_v37, %v765_v15 }
  0x92   : > { %1050 = vrot.lane.b32.xlu1 %v3510_v43, %s3080_s1  ;;  %1643 = vmatmul.mubr.bf16.vlgmr.msra.gmra.mrb[0].mxu0 %v1252_v54  ;;  %v3593_v54 = vld [vmem:[%s3180_s23 + $0x50] sm:$0xff]  }
  0x93   : > { %v1129_v46 = vpop.permute.xlu0 %1128  ;;  %v3597_v55 = vsel %vm3167_vm3, %v858_v34, 0  ;;  %v773_v34 = vshll.u32 %v3593_v54, 16 }
  0x94   : > { %v1015_v62 = vpop.permute.xlu1 %1014  ;;  %v1356_v23 = vsel %vm1217_vm7, %v1324_v63, %v1129_v46 }
  0x95   : > { %1085 = vrot.lane.b32.xlu0 %v3557_v49, %s3079_s17  ;;  %v1243_v6 = vsel %vm1217_vm7, %v1207_v58, %v1015_v62  ;;  %v770_v58 = vshrl.u32 %v3593_v54, 16 }
  0x96   : > { %956 = vrot.lane.b32.xlu1 %v3477_v26, %s3079_s17 }
  0x97   : > { %v1161_v31 = vpop.permute.xlu0 %1160 }
  0x98   : > { %v1063_v17 = vpop.permute.xlu1 %1062  ;;  %v1400_v1 = vsel %vm1250_vm8, %v1356_v23, %v1161_v31  ;;  %v859_v23 = vrot.slane %v766_v37, 1 }
  0x99   : > { %v1288_v52 = vsel %vm1250_vm8, %v1243_v6, %v1063_v17  ;;  %1118 = vrot.lane.b32.xlu0 %v3573_v20, %s3081_s28  ;;  %1738 = vmatprep.mubr.bf16.mxu1 %v1400_v1  ;;  %v3611_v17 = vsel %vm3223_vm5, 0, %v768_v18 }
  0x9a   : > { %1004 = vrot.lane.b32.xlu1 %v3524_v60, %s3081_s28  ;;  %1739 = vmatmul.mubr.bf16.vlgmr.msra.gmra.mrb[0].mxu1 %v1288_v52 }
  0x9b   : > { %v1074_v44 = vpop.permute.xlu0 %1073  ;;  %2939 = vmatpush3.bf16.msra.mxu1 %v3447_v7 }
  0x9c   : > { %v945_v33 = vpop.permute.xlu1 %944  ;;  %2940 = vmatprep.subr.bf16.mxu1 %v3052_v32  ;;  %v1302_v59 = vsel %vm1168_vm6, %v3192_v12, %v1074_v44 }
  0x9d   : > { %1150 = vrot.lane.b32.xlu0 %v3527_v4, %s3080_s1  ;;  %v1174_v7 = vsel %vm1168_vm6, %v3244_v42, %v945_v33  ;;  %v772_v33 = vrot.slane %v770_v58, 7 }
  0x9e   : > { %1052 = vrot.lane.b32.xlu1 %v3535_v14, %s3080_s1 }
  0x9f   : > { %v1107_v46 = vpop.permute.xlu0 %1106  ;;  %2941 = vmatpush3.bf16.msra.mxu1 %v3052_v32  ;;  %v860_v32 = vor.u32 %v859_v23, %v763_v21 }
  0xa0   : > { %v993_v62 = vpop.permute.xlu1 %992  ;;  %v1334_v31 = vsel %vm1217_vm7, %v1302_v59, %v1107_v46 }
  0xa1   : > { %1087 = vrot.lane.b32.xlu0 %v3597_v55, %s3079_s17  ;;  %v1221_v63 = vsel %vm1217_vm7, %v1174_v7, %v993_v62  ;;  %v3627_v44 = vsel %vm3167_vm3, %v860_v32, 0  ;;  %v775_v62 = vor.u32 %v773_v34, %v772_v33 }
  0xa2   : > { %958 = vrot.lane.b32.xlu1 %v3502_v41, %s3079_s17 }
  0xa3   : > { %v1139_v52 = vpop.permute.xlu0 %1138 }
  0xa4   : > { %v1041_v6 = vpop.permute.xlu1 %1040  ;;  %v1367_v1 = vsel %vm1250_vm8, %v1334_v31, %v1139_v52 }
  0xa5   : > { %v1255_v42 = vsel %vm1250_vm8, %v1221_v63, %v1041_v6  ;;  %1120 = vrot.lane.b32.xlu0 %v3611_v17, %s3081_s28  ;;  %1650 = vmatprep.mubr.bf16.mxu0 %v1367_v1  ;;  %v3640_v63 = vsel %vm3223_vm5, 0, %v775_v62  ;;  %v861_v6 = vrot.slane %v773_v34, 1 }
  0xa6   : > { %1006 = vrot.lane.b32.xlu1 %v3557_v49, %s3081_s28  ;;  %1651 = vmatmul.mubr.bf16.gmra.mrb[4].mxu0 %v1255_v42 }
  0xa7   : > { %v1098_v15 = vpop.permute.xlu0 %1097  ;;  %v862_v27 = vor.u32 %v861_v6, %v770_v58 }
  0xa8   : > { %v969_v12 = vpop.permute.xlu1 %968  ;;  %v1326_v46 = vsel %vm1168_vm6, %v3217_v25, %v1098_v15 }
  0xa9   : > { %1152 = vrot.lane.b32.xlu0 %v3560_v57, %s3080_s1  ;;  %v1210_v21 = vsel %vm1168_vm6, %v3278_v56, %v969_v12  ;;  %v3655_v32 = vsel %vm3167_vm3, %v862_v27, 0 }
  0xaa   : > { %1054 = vrot.lane.b32.xlu1 %v3573_v20, %s3080_s1 }
  0xab   : > { %v1131_v18 = vpop.permute.xlu0 %1130 }
  0xac   : > { %v1017_v37 = vpop.permute.xlu1 %1016  ;;  %v1358_v23 = vsel %vm1217_vm7, %v1326_v46, %v1131_v18 }
  0xad   : > { %1089 = vrot.lane.b32.xlu0 %v3627_v44, %s3079_s17  ;;  %v1245_v7 = vsel %vm1217_vm7, %v1210_v21, %v1017_v37 }
  0xae   : > { %960 = vrot.lane.b32.xlu1 %v3527_v4, %s3079_s17 }
  0xaf   : > { %v1163_v31 = vpop.permute.xlu0 %1162 }
  0xb0   : > { %v1065_v59 = vpop.permute.xlu1 %1064  ;;  %v1403_v42 = vsel %vm1250_vm8, %v1358_v23, %v1163_v31 }
  0xb1   : > { %v1291_v52 = vsel %vm1250_vm8, %v1245_v7, %v1065_v59  ;;  %1122 = vrot.lane.b32.xlu0 %v3640_v63, %s3081_s28  ;;  %1746 = vmatprep.mubr.bf16.mxu1 %v1403_v42 }
  0xb2   : > { %1008 = vrot.lane.b32.xlu1 %v3597_v55, %s3081_s28  ;;  %1747 = vmatmul.mubr.bf16.gmra.mrb[4].mxu1 %v1291_v52 }
  0xb3   : > { %v1076_v1 = vpop.permute.xlu0 %1075 }
  0xb4   : > { %v947_v25 = vpop.permute.xlu1 %946  ;;  %v1304_v58 = vsel %vm1168_vm6, %v3251_v47, %v1076_v1 }
  0xb5   : > { %1154 = vrot.lane.b32.xlu0 %v3593_v54, %s3080_s1  ;;  %v1177_v34 = vsel %vm1168_vm6, %v3233_v38, %v947_v25 }
  0xb6   : > { %1056 = vrot.lane.b32.xlu1 %v3611_v17, %s3080_s1 }
  0xb7   : > { %v1109_v33 = vpop.permute.xlu0 %1108 }
  0xb8   : > { %v995_v12 = vpop.permute.xlu1 %994  ;;  %v1336_v5 = vsel %vm1217_vm7, %v1304_v58, %v1109_v33 }
  0xb9   : > { %1091 = vrot.lane.b32.xlu0 %v3655_v32, %s3079_s17  ;;  %v1223_v15 = vsel %vm1217_vm7, %v1177_v34, %v995_v12 }
  0xba   : > { %962 = vrot.lane.b32.xlu1 %v3560_v57, %s3079_s17 }
  0xbb   : > { %v1141_v62 = vpop.permute.xlu0 %1140 }
  0xbc   : > { %v1043_v37 = vpop.permute.xlu1 %1042  ;;  %v1370_v21 = vsel %vm1250_vm8, %v1336_v5, %v1141_v62 }
  0xbd   : > { %v1258_v18 = vsel %vm1250_vm8, %v1223_v15, %v1043_v37  ;;  %1124 = vrot.lane.b32.xlu0 %v3317_v8, %s3081_s28  ;;  %1658 = vmatprep.mubr.bf16.mxu0 %v1370_v21 }
  0xbe   : > { %1010 = vrot.lane.b32.xlu1 %v3627_v44, %s3081_s28  ;;  %1659 = vmatmul.mubr.bf16.gmra.mrb[8].mxu0 %v1258_v18 }
  0xbf   : > { %v1100_v47 = vpop.permute.xlu0 %1099 }
  0xc0   : > { %v971_v38 = vpop.permute.xlu1 %970  ;;  %v1328_v6 = vsel %vm1168_vm6, %v3303_v3, %v1100_v47 }
  0xc1   : > { %1156 = vrot.lane.b32.xlu0 %v3189_v11, %s3080_s1  ;;  %v1213_v59 = vsel %vm1168_vm6, %v3263_v50, %v971_v38 }
  0xc2   : > { %1058 = vrot.lane.b32.xlu1 %v3640_v63, %s3080_s1 }
  0xc3   : > { %v1133_v7 = vpop.permute.xlu0 %1132 }
  0xc4   : > { %v1019_v46 = vpop.permute.xlu1 %1018  ;;  %v1360_v52 = vsel %vm1217_vm7, %v1328_v6, %v1133_v7 }
  0xc5   : > { %1093 = vrot.lane.b32.xlu0 %v3259_v48, %s3079_s17  ;;  %v1247_v23 = vsel %vm1217_vm7, %v1213_v59, %v1019_v46 }
  0xc6   : > { %964 = vrot.lane.b32.xlu1 %v3593_v54, %s3079_s17  ;;  %s4086_s17 = scalar_lea.vmem %s4324_s10, %s2770_s18 }
  0xc7   : > { %v1165_v11 = vpop.permute.xlu0 %1164 }
  0xc8   : > { %v1067_v31 = vpop.permute.xlu1 %1066  ;;  %v1406_v25 = vsel %vm1250_vm8, %v1360_v52, %v1165_v11 }
  0xc9   : > { %v1294_v42 = vsel %vm1250_vm8, %v1247_v23, %v1067_v31  ;;  %1126 = vrot.lane.b32.xlu0 %v3278_v56, %s3081_s28  ;;  %1754 = vmatprep.mubr.bf16.mxu1 %v1406_v25 }
  0xca   : > { %1012 = vrot.lane.b32.xlu1 %v3655_v32, %s3081_s28  ;;  %1755 = vmatmul.mubr.bf16.gmra.mrb[8].mxu1 %v1294_v42  ;;  %s2774_s28 = sshll.u32 %s4334_s11, 8 }
  0xcb   : > { %v1078_v3 = vpop.permute.xlu0 %1077  ;;  %s4009_s16 = scalar_lea.vmem %s4319_s5, %s2774_s28 }
  0xcc   : > { %v949_v50 = vpop.permute.xlu1 %948  ;;  %v1306_v33 = vsel %vm1168_vm6, %v3354_v28, %v1078_v3 }
  0xcd   : > { %1158 = vrot.lane.b32.xlu0 %v3210_v19, %s3080_s1  ;;  %v1180_v12 = vsel %vm1168_vm6, %v3324_v10, %v949_v50 }
  0xce   : > { %1060 = vrot.lane.b32.xlu1 %v3317_v8, %s3080_s1  ;;  %s3082_s1 = smov 120  }
  0xcf   : > { %v1111_v1 = vpop.permute.xlu0 %1110 }
  0xd0   : > { %v997_v27 = vpop.permute.xlu1 %996  ;;  %v1338_v58 = vsel %vm1217_vm7, %v1306_v33, %v1111_v1 }
  0xd1   : > { %v1225_v56 = vsel %vm1217_vm7, %v1180_v12, %v997_v27 }
  0xd3   : > { %v1143_v15 = vpop.permute.xlu0 %1142 }
  0xd4   : > { %v1045_v34 = vpop.permute.xlu1 %1044  ;;  %v1373_v8 = vsel %vm1250_vm8, %v1338_v58, %v1143_v15 }
  0xd5   : > { %v1261_v37 = vsel %vm1250_vm8, %v1225_v56, %v1045_v34  ;;  %1666 = vmatprep.mubr.bf16.mxu0 %v1373_v8 }
  0xd6   : > { %1667 = vmatmul.mubr.bf16.gmra.mrb[12].mxu0 %v1261_v37 }
  0xd7   : > { %v1102_v5 = vpop.permute.xlu0 %1101 }
  0xd8   : > { %v973_v19 = vpop.permute.xlu1 %972  ;;  %v1330_v28 = vsel %vm1168_vm6, %v3384_v39, %v1102_v5 }
  0xd9   : > { %v1216_v10 = vsel %vm1168_vm6, %v3365_v30, %v973_v19 }
  0xdb   : > { %v1135_v18 = vpop.permute.xlu0 %1134 }
  0xdc   : > { %v1021_v62 = vpop.permute.xlu1 %1020  ;;  %v1362_v47 = vsel %vm1217_vm7, %v1330_v28, %v1135_v18 }
  0xdd   : > { %v1249_v21 = vsel %vm1217_vm7, %v1216_v10, %v1021_v62 }
  0xdf   : > { %v1167_v46 = vpop.permute.xlu0 %1166 }
  0xe0   : > { %v1069_v38 = vpop.permute.xlu1 %1068  ;;  %v1409_v59 = vsel %vm1250_vm8, %v1362_v47, %v1167_v46 }
  0xe1   : > { %v1297_v7 = vsel %vm1250_vm8, %v1249_v21, %v1069_v38  ;;  %1762 = vmatprep.mubr.bf16.mxu1 %v1409_v59 }
  0xe2   : > { %1763 = vmatmul.mubr.bf16.gmra.mrb[12].mxu1 %v1297_v7 }
  0xe3   : > { %v1080_v23 = vpop.permute.xlu0 %1079  ;;  %2942 = vmatprep.mubr.msk.bf16.mxu1 %vm1168_vm6, %v3300_v0 }
  0xe4   : > { %v951_v6 = vpop.permute.xlu1 %950  ;;  %v1308_v52 = vsel %vm1168_vm6, %v3409_v53, %v1080_v23 }
  0xe5   : > { %v1183_v39 = vsel %vm1168_vm6, %v3392_v40, %v951_v6 }
  0xe7   : > { %v1113_v31 = vpop.permute.xlu0 %1112 }
  0xe8   : > { %v999_v30 = vpop.permute.xlu1 %998  ;;  %v1340_v25 = vsel %vm1217_vm7, %v1308_v52, %v1113_v31 }
  0xe9   : > { %v1227_v11 = vsel %vm1217_vm7, %v1183_v39, %v999_v30 }
  0xea   : > { %2943 = vmatmul.mubr.msk.bf16.vlgmr.msra.gmra.mrb[16].mxu1 %vm1168_vm6, %v3381_v36 }
  0xeb   : > { %v1145_v50 = vpop.permute.xlu0 %1144  ;;  %2946 = vmatprep.mubr.msk.bf16.mxu1 %vm1168_vm6, %v3428_v61 }
  0xec   : > { %v1047_v42 = vpop.permute.xlu1 %1046  ;;  %v1376_v0 = vsel %vm1250_vm8, %v1340_v25, %v1145_v50 }
  0xed   : > { %v1264_v3 = vsel %vm1250_vm8, %v1227_v11, %v1047_v42  ;;  %1674 = vmatprep.mubr.bf16.mxu0 %v1376_v0 }
  0xee   : > { %1675 = vmatmul.mubr.bf16.gmra.mrb[16].mxu0 %v1264_v3 }
  0xef   : > { %v1082_v53 = vpop.permute.xlu0 %1081 }
  0xf0   : > { %v953_v40 = vpop.permute.xlu1 %952  ;;  %v1310_v61 = vsel %vm1168_vm6, %v3456_v13, %v1082_v53 }
  0xf1   : > { %v1186_v1 = vsel %vm1168_vm6, %v3436_v2, %v953_v40 }
  0xf2   : > { %2947 = vmatmul.mubr.msk.bf16.gmra.mrb[20].mxu1 %vm1168_vm6, %v3474_v22 }
  0xf3   : > { %v1115_v36 = vpop.permute.xlu0 %1114  ;;  %2950 = vmatprep.mubr.msk.bf16.mxu1 %vm1168_vm6, %v3499_v35 }
  0xf4   : > { %v1001_v27 = vpop.permute.xlu1 %1000  ;;  %v1342_v56 = vsel %vm1217_vm7, %v1310_v61, %v1115_v36 }
  0xf5   : > { %v1229_v12 = vsel %vm1217_vm7, %v1186_v1, %v1001_v27 }
  0xf7   : > { %v1147_v34 = vpop.permute.xlu0 %1146 }
  0xf8   : > { %v1049_v33 = vpop.permute.xlu1 %1048  ;;  %v1379_v22 = vsel %vm1250_vm8, %v1342_v56, %v1147_v34 }
  0xf9   : > { %v1267_v58 = vsel %vm1250_vm8, %v1229_v12, %v1049_v33  ;;  %1682 = vmatprep.mubr.bf16.mxu0 %v1379_v22 }
  0xfa   : > { %1683 = vmatmul.mubr.bf16.gmra.mrb[20].mxu0 %v1267_v58  ;;  %2951 = vmatmul.mubr.msk.bf16.gmra.mrb[24].mxu1 %vm1168_vm6, %v3524_v60 }
  0xfb   : > { %v1084_v2 = vpop.permute.xlu0 %1083  ;;  %2954 = vmatprep.mubr.msk.bf16.mxu1 %vm1168_vm6, %v3557_v49 }
  0xfc   : > { %v955_v35 = vpop.permute.xlu1 %954  ;;  %v1312_v8 = vsel %vm1168_vm6, %v3477_v26, %v1084_v2 }
  0xfd   : > { %v1189_v37 = vsel %vm1168_vm6, %v3485_v29, %v955_v35 }
  0xff   : > { %v1117_v15 = vpop.permute.xlu0 %1116 }
 0x100   : > { %v1003_v13 = vpop.permute.xlu1 %1002  ;;  %v1344_v60 = vsel %vm1217_vm7, %v1312_v8, %v1117_v15 }
 0x101   : > { %v1231_v19 = vsel %vm1217_vm7, %v1189_v37, %v1003_v13 }
 0x102   : > { %2955 = vmatmul.mubr.msk.bf16.gmra.mrb[28].mxu1 %vm1168_vm6, %v3597_v55 }
 0x103   : > { %v1149_v62 = vpop.permute.xlu0 %1148  ;;  %2958 = vmatprep.mubr.msk.bf16.mxu1 %vm1168_vm6, %v3627_v44 }
 0x104   : > { %v1051_v5 = vpop.permute.xlu1 %1050  ;;  %v1382_v49 = vsel %vm1250_vm8, %v1344_v60, %v1149_v62 }
 0x105   : > { %v1270_v18 = vsel %vm1250_vm8, %v1231_v19, %v1051_v5  ;;  %1690 = vmatprep.mubr.bf16.mxu0 %v1382_v49 }
 0x106   : > { %1691 = vmatmul.mubr.bf16.gmra.mrb[24].mxu0 %v1270_v18 }
 0x107   : > { %v1086_v26 = vpop.permute.xlu0 %1085 }
 0x108   : > { %v957_v29 = vpop.permute.xlu1 %956  ;;  %v1314_v44 = vsel %vm1168_vm6, %v3502_v41, %v1086_v26 }
 0x109   : > { %v1192_v28 = vsel %vm1168_vm6, %v3510_v43, %v957_v29 }
 0x10a   : > { %2959 = vmatmul.mubr.msk.bf16.gmra.mrb[32].mxu1 %vm1168_vm6, %v3655_v32 }
 0x10b   : > { %v1119_v55 = vpop.permute.xlu0 %1118  ;;  %2962 = vmatprep.mubr.msk.bf16.mxu1 %vm1168_vm6, %v3259_v48 }
 0x10c   : > { %v1005_v10 = vpop.permute.xlu1 %1004  ;;  %v1346_v47 = vsel %vm1217_vm7, %v1314_v44, %v1119_v55 }
 0x10d   : > { %v1233_v21 = vsel %vm1217_vm7, %v1192_v28, %v1005_v10 }
 0x10f   : > { %v1151_v46 = vpop.permute.xlu0 %1150 }
 0x110   : > { %v1053_v38 = vpop.permute.xlu1 %1052  ;;  %v1385_v32 = vsel %vm1250_vm8, %v1346_v47, %v1151_v46 }
 0x111   : > { %v1273_v7 = vsel %vm1250_vm8, %v1233_v21, %v1053_v38  ;;  %1698 = vmatprep.mubr.bf16.mxu0 %v1385_v32 }
 0x112   : > { %1699 = vmatmul.mubr.bf16.gmra.mrb[28].mxu0 %v1273_v7  ;;  %2963 = vmatmul.mubr.msk.bf16.gmra.mrb[36].mxu1 %vm1168_vm6, %v3248_v45 }
 0x113   : > { %v1088_v43 = vpop.permute.xlu0 %1087  ;;  %2966 = vmatprep.mubr.msk.bf16.mxu1 %vm1168_vm6, %v3351_v24 }
 0x114   : > { %v959_v48 = vpop.permute.xlu1 %958  ;;  %v1316_v23 = vsel %vm1168_vm6, %v3527_v4, %v1088_v43 }
 0x115   : > { %v1195_v6 = vsel %vm1168_vm6, %v3535_v14, %v959_v48 }
 0x117   : > { %v1121_v59 = vpop.permute.xlu0 %1120 }
 0x118   : > { %v1007_v41 = vpop.permute.xlu1 %1006  ;;  %v1348_v45 = vsel %vm1217_vm7, %v1316_v23, %v1121_v59 }
 0x119   : > { %v1235_v30 = vsel %vm1217_vm7, %v1195_v6, %v1007_v41 }
 0x11a   : > { %2967 = vmatmul.mubr.msk.bf16.gmra.mrb[40].mxu1 %vm1168_vm6, %v3406_v51 }
 0x11b   : > { %v1153_v39 = vpop.permute.xlu0 %1152  ;;  %2970 = vmatprep.mubr.msk.bf16.mxu1 %vm1168_vm6, %v3453_v9 }
 0x11c   : > { %v1055_v31 = vpop.permute.xlu1 %1054  ;;  %v1388_v24 = vsel %vm1250_vm8, %v1348_v45, %v1153_v39 }
 0x11d   : > { %v1276_v52 = vsel %vm1250_vm8, %v1235_v30, %v1055_v31  ;;  %1706 = vmatprep.mubr.bf16.mxu0 %v1388_v24 }
 0x11e   : > { %1707 = vmatmul.mubr.bf16.gmra.mrb[32].mxu0 %v1276_v52 }
 0x11f   : > { %v1090_v4 = vpop.permute.xlu0 %1089 }
 0x120   : > { %v961_v14 = vpop.permute.xlu1 %960  ;;  %v1318_v25 = vsel %vm1168_vm6, %v3560_v57, %v1090_v4 }
 0x121   : > { %v1198_v42 = vsel %vm1168_vm6, %v3573_v20, %v961_v14 }
 0x122   : > { %2971 = vmatmul.mubr.msk.bf16.gmra.mrb[44].mxu1 %vm1168_vm6, %v3205_v16 }
 0x123   : > { %v1123_v51 = vpop.permute.xlu0 %1122 }
 0x124   : > { %v1009_v11 = vpop.permute.xlu1 %1008  ;;  %v1350_v3 = vsel %vm1217_vm7, %v1318_v25, %v1123_v51 }
 0x125   : > { %v1237_v50 = vsel %vm1217_vm7, %v1198_v42, %v1009_v11 }
 0x127   : > { %v1155_v0 = vpop.permute.xlu0 %1154 }
 0x128   : > { %v1057_v9 = vpop.permute.xlu1 %1056  ;;  %v1391_v53 = vsel %vm1250_vm8, %v1350_v3, %v1155_v0 }
 0x129   : > { %v1279_v40 = vsel %vm1250_vm8, %v1237_v50, %v1057_v9  ;;  %1714 = vmatprep.mubr.bf16.mxu0 %v1391_v53 }
 0x12a   : > { %1715 = vmatmul.mubr.bf16.gmra.mrb[36].mxu0 %v1279_v40 }
 0x12b   : > { %v1092_v27 = vpop.permute.xlu0 %1091 }
 0x12c   : > { %v963_v16 = vpop.permute.xlu1 %962  ;;  %v1320_v20 = vsel %vm1168_vm6, %v3593_v54, %v1092_v27  ;;  %v3053_v54 = vld [vmem:[%s3180_s23 + $0x58] sm:$0xff]  }
 0x12d   : > { %v1201_v57 = vsel %vm1168_vm6, %v3611_v17, %v963_v16 }
 0x12f   : > { %v1125_v1 = vpop.permute.xlu0 %1124 }
 0x130   : > { %v1011_v36 = vpop.permute.xlu1 %1010  ;;  %v1352_v33 = vsel %vm1217_vm7, %v1320_v20, %v1125_v1 }
 0x131   : > { %v1239_v61 = vsel %vm1217_vm7, %v1201_v57, %v1011_v36 }
 0x133   : > { %v1157_v56 = vpop.permute.xlu0 %1156 }
 0x134   : > { %v1059_v12 = vpop.permute.xlu1 %1058  ;;  %v1394_v58 = vsel %vm1250_vm8, %v1352_v33, %v1157_v56  ;;  %v3828_v56 = vld [vmem:[%s4318_s4] ss:$0 sm:$0xff] }
 0x135   : > { %v1282_v34 = vsel %vm1250_vm8, %v1239_v61, %v1059_v12  ;;  %1722 = vmatprep.mubr.bf16.mxu0 %v1394_v58 }
 0x136   : > { %1723 = vmatmul.mubr.bf16.gmra.mrb[40].mxu0 %v1282_v34 }
 0x137   : > { %v1094_v35 = vpop.permute.xlu0 %1093 }
 0x138   : > { %v965_v22 = vpop.permute.xlu1 %964  ;;  %v1322_v15 = vsel %vm1168_vm6, %v3053_v54, %v1094_v35 }
 0x139   : > { %v1204_v17 = vsel %vm1168_vm6, %v3640_v63, %v965_v22 }
 0x13b   : > { %v1127_v13 = vpop.permute.xlu0 %1126 }
 0x13c   : > { %v1013_v2 = vpop.permute.xlu1 %1012  ;;  %v1354_v19 = vsel %vm1217_vm7, %v1322_v15, %v1127_v13 }
 0x13d   : > { %v1241_v37 = vsel %vm1217_vm7, %v1204_v17, %v1013_v2 }
 0x13f   : > { %v1159_v5 = vpop.permute.xlu0 %1158 }
 0x140   : > { %v1061_v8 = vpop.permute.xlu1 %1060  ;;  %v1397_v62 = vsel %vm1250_vm8, %v1354_v19, %v1159_v5 }
 0x141   : > { %v1285_v60 = vsel %vm1250_vm8, %v1241_v37, %v1061_v8  ;;  %1730 = vmatprep.mubr.bf16.mxu0 %v1397_v62 }
 0x142   : > { %1731 = vmatmul.mubr.bf16.gmra.mrb[44].mxu0 %v1285_v60 }
 0x165   : > { %v2824_v18 = vpop.f32.mrb[0].mxu0 }
 0x166   : > { %v2825_v49 = vpop.f32.mrb[1].mxu0 }
 0x167   : > { %v2826_v29 = vadd.f32 %v2825_v49, %v2824_v18  ;;  %v2827_v26 = vpop.f32.mrb[2].mxu0 }
 0x168   : > { %v2828_v63 = vpop.f32.mrb[3].mxu0 }
 0x169   : > { %v2829_v10 = vadd.f32 %v2828_v63, %v2827_v26  ;;  %v1645_v22 = vadd.f32 %v2826_v29, %v3828_v56 }
 0x16b   : > { %v1648_v15 = vadd.f32 %v2829_v10, %v3828_v56 }
 0x16d   : > { %v2896_v55 = vpop.f32.mrb[0].mxu1 }
 0x16e   : > { %v2897_v28 = vpop.f32.mrb[1].mxu1 }
 0x16f   : > { %v3809_v44 = vadd.f32 %v2897_v28, %v2896_v55  ;;  %v2899_v21 = vpop.f32.mrb[2].mxu1 }
 0x170   : > { %v2900_v38 = vpop.f32.mrb[3].mxu1 }
 0x171   : > { %v3811_v47 = vadd.f32 %v2900_v38, %v2899_v21 }
 0x179   : > { %v2830_v46 = vpop.f32.mrb[4].mxu0 }
 0x17a   : > { %v2831_v7 = vpop.f32.mrb[5].mxu0 }
 0x17b   : > { %v2832_v32 = vadd.f32 %v2831_v7, %v2830_v46  ;;  %v2833_v48 = vpop.f32.mrb[6].mxu0 }
 0x17c   : > { %v2834_v43 = vpop.f32.mrb[7].mxu0 }
 0x17d   : > { %v2835_v41 = vadd.f32 %v2834_v43, %v2833_v48  ;;  %v1653_v34 = vadd.f32 %v2832_v32, %v3828_v56 }
 0x17f   : > { %v1656_v13 = vadd.f32 %v2835_v41, %v3828_v56 }
 0x185   : > { %v2902_v59 = vpop.f32.mrb[4].mxu1 }
 0x186   : > { %v2903_v6 = vpop.f32.mrb[5].mxu1 }
 0x187   : > { %v3813_v23 = vadd.f32 %v2903_v6, %v2902_v59  ;;  %v2905_v30 = vpop.f32.mrb[6].mxu1 }
 0x188   : > { %v2906_v31 = vpop.f32.mrb[7].mxu1 }
 0x189   : > { %v3815_v45 = vadd.f32 %v2906_v31, %v2905_v30 }
 0x191   : > { %v2836_v39 = vpop.f32.mrb[8].mxu0 }
 0x192   : > { %v2837_v52 = vpop.f32.mrb[9].mxu0 }
 0x193   : > { %v2838_v24 = vadd.f32 %v2837_v52, %v2836_v39  ;;  %v2839_v14 = vpop.f32.mrb[10].mxu0 }
 0x194   : > { %v2840_v4 = vpop.f32.mrb[11].mxu0 }
 0x195   : > { %v2841_v11 = vadd.f32 %v2840_v4, %v2839_v14  ;;  %v1661_v10 = vadd.f32 %v2838_v24, %v3828_v56 }
 0x197   : > { %v1664_v7 = vadd.f32 %v2841_v11, %v3828_v56 }
 0x19d   : > { %v2908_v51 = vpop.f32.mrb[8].mxu1 }
 0x19e   : > { %v2909_v42 = vpop.f32.mrb[9].mxu1 }
 0x19f   : > { %v3817_v25 = vadd.f32 %v2909_v42, %v2908_v51  ;;  %v2911_v50 = vpop.f32.mrb[10].mxu1 }
 0x1a0   : > { %v2912_v9 = vpop.f32.mrb[11].mxu1 }
 0x1a1   : > { %v3819_v3 = vadd.f32 %v2912_v9, %v2911_v50 }
 0x1a9   : > { %v2842_v0 = vpop.f32.mrb[12].mxu0 }
 0x1aa   : > { %v2843_v40 = vpop.f32.mrb[13].mxu0 }
 0x1ab   : > { %v2844_v53 = vadd.f32 %v2843_v40, %v2842_v0  ;;  %v2845_v16 = vpop.f32.mrb[14].mxu0 }
 0x1ac   : > { %v2846_v27 = vpop.f32.mrb[15].mxu0 }
 0x1ad   : > { %v2847_v36 = vadd.f32 %v2846_v27, %v2845_v16  ;;  %v1669_v29 = vadd.f32 %v2844_v53, %v3828_v56 }
 0x1af   : > { %v1672_v21 = vadd.f32 %v2847_v36, %v3828_v56 }
 0x1b5   : > { %v2914_v1 = vpop.f32.mrb[12].mxu1 }
 0x1b6   : > { %v2915_v57 = vpop.f32.mrb[13].mxu1 }
 0x1b7   : > { %v3821_v20 = vadd.f32 %v2915_v57, %v2914_v1  ;;  %v2917_v61 = vpop.f32.mrb[14].mxu1 }
 0x1b8   : > { %v2918_v12 = vpop.f32.mrb[15].mxu1 }
 0x1b9   : > { %v3823_v33 = vadd.f32 %v2918_v12, %v2917_v61 }
 0x1bd   : > { %v2944_v58 = vpop.f32.mrb[16].mxu1 }
 0x1be   : > { %v3832_v35 = vadd.f32 %v2944_v58, %v1653_v34  ;;  %v1805_v2 = vpop.f32.mrb[17].mxu1 }
 0x1bf   : > { %v3835_v17 = vadd.f32 %v1805_v2, %v1645_v22  ;;  %v2945_v54 = vpop.f32.mrb[18].mxu1 }
 0x1c0   : > { %v3838_v37 = vadd.f32 %v2945_v54, %v1656_v13  ;;  %2220 = vrot.lane.b32.xlu0 %v3832_v35, %s3082_s1  ;;  %v1808_v8 = vpop.f32.mrb[19].mxu1 }
 0x1c1   : > { %v3842_v19 = vadd.f32 %v1808_v8, %v1648_v15  ;;  %v2848_v5 = vpop.f32.mrb[16].mxu0 }
 0x1c2   : > { %2222 = vrot.lane.b32.xlu1 %v3838_v37, %s3082_s1  ;;  %v2849_v60 = vpop.f32.mrb[17].mxu0 }
 0x1c3   : > { %v2850_v62 = vadd.f32 %v2849_v60, %v2848_v5  ;;  %v2851_v18 = vpop.f32.mrb[18].mxu0 }
 0x1c4   : > { %2216 = vrot.lane.b32.xlu0 %v3835_v17, %s3082_s1  ;;  %v2852_v49 = vpop.f32.mrb[19].mxu0 }
 0x1c5   : > { %v2853_v26 = vadd.f32 %v2852_v49, %v2851_v18  ;;  %v2948_v63 = vpop.f32.mrb[20].mxu1  ;;  %v1677_v6 = vadd.f32 %v2850_v62, %v3828_v56 }
 0x1c6   : > { %v3850_v55 = vadd.f32 %v2948_v63, %v1669_v29  ;;  %v1821_v28 = vpop.f32.mrb[21].mxu1  ;;  %2218 = vrot.lane.b32.xlu1 %v3842_v19, %s3082_s1 }
 0x1c7   : > { %v3855_v38 = vadd.f32 %v1821_v28, %v1661_v10  ;;  %v2949_v46 = vpop.f32.mrb[22].mxu1  ;;  %v1680_v4 = vadd.f32 %v2853_v26, %v3828_v56 }
 0x1c8   : > { %v3858_v32 = vadd.f32 %v2949_v46, %v1672_v21  ;;  %v1824_v48 = vpop.f32.mrb[23].mxu1  ;;  %2228 = vrot.lane.b32.xlu0 %v3850_v55, %s3082_s1 }
 0x1c9   : > { %v3862_v43 = vadd.f32 %v1824_v48, %v1664_v7 }
 0x1ca   : > { %2230 = vrot.lane.b32.xlu1 %v3858_v32, %s3082_s1 }
 0x1cc   : > { %2224 = vrot.lane.b32.xlu0 %v3855_v38, %s3082_s1 }
 0x1cd   : > { %v2854_v41 = vpop.f32.mrb[20].mxu0  ;;  %v2952_v59 = vpop.f32.mrb[24].mxu1 }
 0x1ce   : > { %v1837_v30 = vpop.f32.mrb[25].mxu1  ;;  %2226 = vrot.lane.b32.xlu1 %v3862_v43, %s3082_s1  ;;  %v2855_v31 = vpop.f32.mrb[21].mxu0 }
 0x1cf   : > { %v3871_v39 = vadd.f32 %v1837_v30, %v1677_v6  ;;  %v2856_v52 = vadd.f32 %v2855_v31, %v2854_v41  ;;  %v2857_v24 = vpop.f32.mrb[22].mxu0  ;;  %v2953_v14 = vpop.f32.mrb[26].mxu1  ;;  %v1749_v6 = vadd.f32 %v3813_v23, %v3828_v56  ;;  %v1744_v23 = vadd.f32 %v3811_v47, %v3828_v56 }
 0x1d0   : > { %v2858_v11 = vpop.f32.mrb[23].mxu0  ;;  %v1840_v51 = vpop.f32.mrb[27].mxu1  ;;  %v1757_v47 = vadd.f32 %v3817_v25, %v3828_v56 }
 0x1d1   : > { %v1685_v42 = vadd.f32 %v2856_v52, %v3828_v56  ;;  %v2859_v50 = vadd.f32 %v2858_v11, %v2857_v24  ;;  %v3875_v9 = vadd.f32 %v1840_v51, %v1680_v4  ;;  %v1741_v52 = vadd.f32 %v3809_v44, %v3828_v56 }
 0x1d2   : > { %v1752_v4 = vadd.f32 %v3815_v45, %v3828_v56  ;;  %v1765_v45 = vadd.f32 %v3821_v20, %v3828_v56 }
 0x1d3   : > { %v3877_v0 = vadd.f32 %v2952_v59, %v1685_v42  ;;  %v1688_v40 = vadd.f32 %v2859_v50, %v3828_v56 }
 0x1d5   : > { %v3880_v53 = vadd.f32 %v2953_v14, %v1688_v40  ;;  %2236 = vrot.lane.b32.xlu0 %v3877_v0, %s3082_s1  ;;  %v2956_v16 = vpop.f32.mrb[28].mxu1 }
 0x1d6   : > { %v1853_v27 = vpop.f32.mrb[29].mxu1 }
 0x1d7   : > { %2238 = vrot.lane.b32.xlu1 %v3880_v53, %s3082_s1  ;;  %v2957_v36 = vpop.f32.mrb[30].mxu1 }
 0x1d8   : > { %v1856_v1 = vpop.f32.mrb[31].mxu1 }
 0x1d9   : > { %2232 = vrot.lane.b32.xlu0 %v3871_v39, %s3082_s1  ;;  %v2860_v57 = vpop.f32.mrb[24].mxu0 }
 0x1da   : > { %v2861_v61 = vpop.f32.mrb[25].mxu0 }
 0x1db   : > { %v2862_v12 = vadd.f32 %v2861_v61, %v2860_v57  ;;  %2234 = vrot.lane.b32.xlu1 %v3875_v9, %s3082_s1  ;;  %v2863_v34 = vpop.f32.mrb[26].mxu0 }
 0x1dc   : > { %v2864_v58 = vpop.f32.mrb[27].mxu0 }
 0x1dd   : > { %v2865_v22 = vadd.f32 %v2864_v58, %v2863_v34  ;;  %v1693_v2 = vadd.f32 %v2862_v12, %v3828_v56  ;;  %v3891_v13 = vpop.f32.mrb[32].mxu1 }
 0x1de   : > { %v1869_v54 = vpop.f32.mrb[33].mxu1 }
 0x1df   : > { %v3893_v15 = vadd.f32 %v1853_v27, %v1693_v2  ;;  %v1696_v8 = vadd.f32 %v2865_v22, %v3828_v56  ;;  %v3896_v5 = vpop.f32.mrb[34].mxu1  ;;  %v1768_v22 = vadd.f32 %v3823_v33, %v3828_v56 }
 0x1e0   : > { %v1872_v60 = vpop.f32.mrb[35].mxu1 }
 0x1e1   : > { %v3898_v62 = vadd.f32 %v1856_v1, %v1696_v8  ;;  %2240 = vrot.lane.b32.xlu0 %v3893_v15, %s3082_s1 }
 0x1e3   : > { %2242 = vrot.lane.b32.xlu1 %v3898_v62, %s3082_s1 }
 0x1e5   : > { %v2866_v18 = vpop.f32.mrb[28].mxu0  ;;  %v3904_v49 = vpop.f32.mrb[36].mxu1 }
 0x1e6   : > { %v2867_v29 = vpop.f32.mrb[29].mxu0  ;;  %v3906_v26 = vpop.f32.mrb[37].mxu1 }
 0x1e7   : > { %v2868_v63 = vadd.f32 %v2867_v29, %v2866_v18  ;;  %v2869_v10 = vpop.f32.mrb[30].mxu0  ;;  %v3908_v28 = vpop.f32.mrb[38].mxu1  ;;  %v1760_v29 = vadd.f32 %v3819_v3, %v3828_v56 }
 0x1e8   : > { %v2870_v21 = vpop.f32.mrb[31].mxu0  ;;  %v3910_v46 = vpop.f32.mrb[39].mxu1 }
 0x1e9   : > { %v1701_v7 = vadd.f32 %v2868_v63, %v3828_v56  ;;  %v2871_v48 = vadd.f32 %v2870_v21, %v2869_v10 }
 0x1eb   : > { %v3913_v41 = vadd.f32 %v2956_v16, %v1701_v7  ;;  %v1704_v59 = vadd.f32 %v2871_v48, %v3828_v56 }
 0x1ed   : > { %v3918_v30 = vadd.f32 %v2957_v36, %v1704_v59  ;;  %v2968_v31 = vpop.f32.mrb[40].mxu1  ;;  %2244 = vrot.lane.b32.xlu0 %v3913_v41, %s3082_s1 }
 0x1ee   : > { %v3924_v24 = vadd.f32 %v2968_v31, %v1749_v6  ;;  %v1901_v14 = vpop.f32.mrb[41].mxu1 }
 0x1ef   : > { %v3928_v11 = vadd.f32 %v1901_v14, %v1741_v52  ;;  %v2969_v51 = vpop.f32.mrb[42].mxu1  ;;  %2246 = vrot.lane.b32.xlu1 %v3918_v30, %s3082_s1 }
 0x1f0   : > { %v3934_v42 = vadd.f32 %v2969_v51, %v1752_v4  ;;  %v1904_v50 = vpop.f32.mrb[43].mxu1 }
 0x1f1   : > { %v3936_v40 = vadd.f32 %v1904_v50, %v1744_v23  ;;  %v2872_v44 = vpop.f32.mrb[32].mxu0 }
 0x1f2   : > { %v2873_v16 = vpop.f32.mrb[33].mxu0 }
 0x1f3   : > { %v2874_v27 = vadd.f32 %v2873_v16, %v2872_v44  ;;  %v2875_v36 = vpop.f32.mrb[34].mxu0 }
 0x1f4   : > { %v2876_v1 = vpop.f32.mrb[35].mxu0 }
 0x1f5   : > { %v1709_v57 = vadd.f32 %v2874_v27, %v3828_v56  ;;  %v2877_v61 = vadd.f32 %v2876_v1, %v2875_v36  ;;  %v2972_v12 = vpop.f32.mrb[44].mxu1 }
 0x1f6   : > { %v3943_v34 = vadd.f32 %v2972_v12, %v1765_v45  ;;  %v1917_v58 = vpop.f32.mrb[45].mxu1 }
 0x1f7   : > { %v3947_v2 = vadd.f32 %v1869_v54, %v1709_v57  ;;  %v1712_v8 = vadd.f32 %v2877_v61, %v3828_v56  ;;  %v3950_v18 = vadd.f32 %v1917_v58, %v1757_v47  ;;  %v2973_v20 = vpop.f32.mrb[46].mxu1 }
 0x1f8   : > { %v3954_v63 = vadd.f32 %v2973_v20, %v1768_v22  ;;  %v1920_v10 = vpop.f32.mrb[47].mxu1  ;;  %v1935_v22 = vld [vmem:[%s4009_s16 + $0x18] sm:$0xff]  ;;  %v1932_v20 = vld [vmem:[%s4009_s16] sm:$0xff] }
 0x1f9   : > { %v3956_v25 = vadd.f32 %v1872_v60, %v1712_v8  ;;  %v3958_v21 = vadd.f32 %v1920_v10, %v1760_v29  ;;  %2248 = vrot.lane.b32.xlu0 %v3947_v2, %s3082_s1  ;;  %v4031_v8 = vld [vmem:[%s4321_s7] ss:$0 sm:$0xff]  ;;  %v1933_v10 = vld [vmem:[%s4009_s16 + $0x8] sm:$0xff] }
 0x1fb   : > { %2250 = vrot.lane.b32.xlu1 %v3956_v25, %s3082_s1 }
 0x1fd   : > { %v2878_v33 = vpop.f32.mrb[36].mxu0 }
 0x1fe   : > { %v2879_v54 = vpop.f32.mrb[37].mxu0 }
 0x1ff   : > { %v2880_v7 = vadd.f32 %v2879_v54, %v2878_v33  ;;  %v2881_v48 = vpop.f32.mrb[38].mxu0 }
 0x200   : > { %v2882_v59 = vpop.f32.mrb[39].mxu0 }
 0x201   : > { %v1717_v3 = vadd.f32 %v2880_v7, %v3828_v56  ;;  %v2883_v6 = vadd.f32 %v2882_v59, %v2881_v48  ;;  %v1938_v7 = vld [vmem:[%s4009_s16 + $0x30] sm:$0xff]  ;;  %v4044_v48 = vld [vmem:[%s4322_s8] ss:$0 sm:$0xff] }
 0x203   : > { %v3966_v31 = vadd.f32 %v3891_v13, %v1717_v3  ;;  %v1720_v60 = vadd.f32 %v2883_v6, %v3828_v56  ;;  %v1939_v6 = vld [vmem:[%s4009_s16 + $0x38] sm:$0xff] }
 0x205   : > { %v3970_v52 = vadd.f32 %v3896_v5, %v1720_v60  ;;  %2252 = vrot.lane.b32.xlu0 %v3966_v31, %s3082_s1 }
 0x207   : > { %2254 = vrot.lane.b32.xlu1 %v3970_v52, %s3082_s1 }
 0x209   : > { %2268 = vrot.lane.b32.xlu0 %v3924_v24, %s3082_s1  ;;  %v2884_v14 = vpop.f32.mrb[40].mxu0 }
 0x20a   : > { %v2885_v4 = vpop.f32.mrb[41].mxu0 }
 0x20b   : > { %v2886_v51 = vadd.f32 %v2885_v4, %v2884_v14  ;;  %2270 = vrot.lane.b32.xlu1 %v3934_v42, %s3082_s1  ;;  %v2887_v13 = vpop.f32.mrb[42].mxu0 }
 0x20c   : > { %v2888_v23 = vpop.f32.mrb[43].mxu0 }
 0x20d   : > { %v1725_v5 = vadd.f32 %v2886_v51, %v3828_v56  ;;  %v2889_v50 = vadd.f32 %v2888_v23, %v2887_v13  ;;  %2264 = vrot.lane.b32.xlu0 %v3928_v11, %s3082_s1  ;;  %v1936_v51 = vld [vmem:[%s4009_s16 + $0x20] sm:$0xff] }
 0x20e   : > { %v4056_v13 = vld [vmem:[%s4323_s9] ss:$0 sm:$0xff] }
 0x20f   : > { %v3984_v44 = vadd.f32 %v3906_v26, %v1725_v5  ;;  %v1728_v16 = vadd.f32 %v2889_v50, %v3828_v56  ;;  %2266 = vrot.lane.b32.xlu1 %v3936_v40, %s3082_s1 }
 0x211   : > { %v3990_v27 = vadd.f32 %v3910_v46, %v1728_v16  ;;  %2256 = vrot.lane.b32.xlu0 %v3984_v44, %s3082_s1  ;;  %v1937_v16 = vld [vmem:[%s4009_s16 + $0x28] sm:$0xff] }
 0x213   : > { %2258 = vrot.lane.b32.xlu1 %v3990_v27, %s3082_s1 }
 0x215   : > { %2272 = vrot.lane.b32.xlu0 %v3950_v18, %s3082_s1  ;;  %v2890_v36 = vpop.f32.mrb[44].mxu0 }
 0x216   : > { %v2891_v26 = vpop.f32.mrb[45].mxu0 }
 0x217   : > { %v2892_v1 = vadd.f32 %v2891_v26, %v2890_v36  ;;  %2274 = vrot.lane.b32.xlu1 %v3958_v21, %s3082_s1  ;;  %v2893_v45 = vpop.f32.mrb[46].mxu0 }
 0x218   : > { %v2894_v57 = vpop.f32.mrb[47].mxu0 }
 0x219   : > { %v1733_v46 = vadd.f32 %v2892_v1, %v3828_v56  ;;  %v2895_v61 = vadd.f32 %v2894_v57, %v2893_v45  ;;  %v2122_v1 = vadd.f32 1.0, %v3832_v35 }
 0x21b   : > { %v4003_v12 = vadd.f32 %v3904_v49, %v1733_v46  ;;  %v1736_v47 = vadd.f32 %v2895_v61, %v3828_v56  ;;  %v1934_v49 = vld [vmem:[%s4009_s16 + $0x10] sm:$0xff]  ;;  %v4020_v56 = vld [vmem:[%s4320_s6] ss:$0 sm:$0xff] }
 0x21c   : > { %v1974_v29 = vmul.f32 %v4020_v56, %v1935_v22  ;;  %v1971_v54 = vmul.f32 %v4020_v56, %v1932_v20  ;;  %v1972_v3 = vmul.f32 %v4020_v56, %v1933_v10  ;;  %v1977_v60 = vmul.f32 %v4020_v56, %v1938_v7 }
 0x21d   : > { %v4012_v58 = vadd.f32 %v3908_v28, %v1736_v47  ;;  %2260 = vrot.lane.b32.xlu0 %v4003_v12, %s3082_s1  ;;  %v1973_v28 = vmul.f32 %v4020_v56, %v1934_v49  ;;  %v1978_v23 = vmul.f32 %v4020_v56, %v1939_v6  ;;  %v1975_v26 = vmul.f32 %v4020_v56, %v1936_v51 }
 0x21e   : > { %v2013_v59 = vadd.f32 %v4031_v8, %v1974_v29  ;;  %v2010_v4 = vadd.f32 %v4031_v8, %v1971_v54  ;;  %v2011_v50 = vadd.f32 %v4031_v8, %v1972_v3  ;;  %v2016_v36 = vadd.f32 %v4031_v8, %v1977_v60  ;;  %v1942_v60 = vld [vmem:[%s4009_s16 + $0x50] sm:$0xff] }
 0x21f   : > { %2262 = vrot.lane.b32.xlu1 %v4012_v58, %s3082_s1  ;;  %v2012_v33 = vadd.f32 %v4031_v8, %v1973_v28  ;;  %v2017_v46 = vadd.f32 %v4031_v8, %v1978_v23  ;;  %v1976_v61 = vmul.f32 %v4020_v56, %v1937_v16  ;;  %v2123_v47 = vadd.f32 1.0, %v3838_v37 }
 0x220   : > { %v2052_v5 = vmul.f32 %v4044_v48, %v2013_v59  ;;  %v2049_v57 = vmul.f32 %v4044_v48, %v2010_v4  ;;  %v2050_v22 = vmul.f32 %v4044_v48, %v2011_v50  ;;  %v2055_v28 = vmul.f32 %v4044_v48, %v2016_v36  ;;  %v1943_v50 = vld [vmem:[%s4009_s16 + $0x58] sm:$0xff] }
 0x221   : > { %2276 = vrot.lane.b32.xlu0 %v3943_v34, %s3082_s1  ;;  %v2051_v14 = vmul.f32 %v4044_v48, %v2012_v33  ;;  %v2014_v35 = vadd.f32 %v4031_v8, %v1975_v26  ;;  %v2120_v20 = vadd.f32 1.0, %v3835_v17  ;;  %v2056_v54 = vmul.f32 %v4044_v48, %v2017_v46 }
 0x222   : > { %v2091_v49 = vadd.f32 %v4056_v13, %v2052_v5  ;;  %v2088_v10 = vadd.f32 %v4056_v13, %v2049_v57  ;;  %v2015_v37 = vadd.f32 %v4031_v8, %v1976_v61  ;;  %v2121_v7 = vadd.f32 1.0, %v3842_v19 }
 0x223   : > { %2278 = vrot.lane.b32.xlu1 %v3954_v63, %s3082_s1  ;;  %v2090_v45 = vadd.f32 %v4056_v13, %v2051_v14  ;;  %v2089_v6 = vadd.f32 %v4056_v13, %v2050_v22  ;;  %v2094_v14 = vadd.f32 %v4056_v13, %v2055_v28  ;;  %v2053_v4 = vmul.f32 %v4044_v48, %v2014_v35 }
 0x224   : > { %v2155_v3 = vmul.f32 %v2123_v47, %v2091_v49  ;;  %v2126_v19 = vadd.f32 1.0, %v3850_v55  ;;  %v2152_v5 = vmul.f32 %v2120_v20, %v2088_v10  ;;  %v2095_v36 = vadd.f32 %v4056_v13, %v2056_v54  ;;  %v1940_v55 = vld [vmem:[%s4009_s16 + $0x40] sm:$0xff]  ;;  %v1941_v47 = vld [vmem:[%s4009_s16 + $0x48] sm:$0xff] }
 0x225   : > { %v2154_v29 = vmul.f32 %v2122_v1, %v2090_v45  ;;  %v2054_v26 = vmul.f32 %v4044_v48, %v2015_v37  ;;  %v1981_v1 = vmul.f32 %v4020_v56, %v1942_v60  ;;  %v2127_v45 = vadd.f32 1.0, %v3858_v32 }
 0x226   : > { %v2153_v61 = vmul.f32 %v2121_v7, %v2089_v6  ;;  %v2092_v22 = vadd.f32 %v4056_v13, %v2053_v4  ;;  %v1982_v28 = vmul.f32 %v4020_v56, %v1943_v50  ;;  %v2124_v35 = vadd.f32 1.0, %v3855_v38 }
 0x227   : > { %v2020_v54 = vadd.f32 %v4031_v8, %v1981_v1  ;;  %v1979_v37 = vmul.f32 %v4020_v56, %v1940_v55  ;;  %v1980_v7 = vmul.f32 %v4020_v56, %v1941_v47  ;;  %v2159_v6 = vmul.f32 %v2127_v45, %v2095_v36  ;;  %v1945_v55 = vld [vmem:[%s4009_s16 + $0x68] sm:$0xff] }
 0x232   : > { %v2221_v33 = vpop.permute.xlu0 %2220 }
 0x233   : > { %v2314_v59 = vadd.f32 %v2221_v33, %v2154_v29  ;;  %v2158_v29 = vmul.f32 %v2126_v19, %v2094_v14  ;;  %v2093_v33 = vadd.f32 %v4056_v13, %v2054_v26  ;;  %v2156_v19 = vmul.f32 %v2124_v35, %v2092_v22 }
 0x234   : > { %v2223_v17 = vpop.permute.xlu1 %2222  ;;  %v2019_v26 = vadd.f32 %v4031_v8, %v1980_v7 }
 0x235   : > { %v2778_v51 = vpack.c.bf16 %v2314_v59, %v2314_v59  ;;  %v2315_v23 = vadd.f32 %v2223_v17, %v2155_v3  ;;  %v2125_v59 = vadd.f32 1.0, %v3862_v43  ;;  %v2021_v17 = vadd.f32 %v4031_v8, %v1982_v28 }
 0x236   : > { %v2217_v16 = vpop.permute.xlu0 %2216  ;;  %v2018_v43 = vadd.f32 %v4031_v8, %v1979_v37  ;;  %v2058_v35 = vmul.f32 %v4044_v48, %v2019_v26 }
 0x237   : > { %2475 = vst.msk [vmem:[%s4086_s17 + $0x8] sm:$0xf] %vm2472_vm9, %v2778_v51  ;;  %v2779_v57 = vpack.c.bf16 %v2315_v23, %v2315_v23  ;;  %v2312_v46 = vadd.f32 %v2217_v16, %v2152_v5  ;;  %v2059_v23 = vmul.f32 %v4044_v48, %v2020_v54  ;;  %v1944_v5 = vld [vmem:[%s4009_s16 + $0x60] sm:$0xff]  ;;  %v2157_v36 = vmul.f32 %v2125_v59, %v2093_v33 }
 0x238   : > { %v2219_v49 = vpop.permute.xlu1 %2218  ;;  %v2060_v45 = vmul.f32 %v4044_v48, %v2021_v17  ;;  %v2057_v22 = vmul.f32 %v4044_v48, %v2018_v43  ;;  %v2097_v7 = vadd.f32 %v4056_v13, %v2058_v35  ;;  %v2129_v59 = vadd.f32 1.0, %v3875_v9 }
 0x239   : > { %2476 = vst.msk [vmem:[%s4086_s17 + $0xc] sm:$0xf] %vm2472_vm9, %v2779_v57  ;;  %v2776_v20 = vpack.c.bf16 %v2312_v46, %v2312_v46  ;;  %v2313_v32 = vadd.f32 %v2219_v49, %v2153_v61  ;;  %v1983_v61 = vmul.f32 %v4020_v56, %v1944_v5  ;;  %v2098_v47 = vadd.f32 %v4056_v13, %v2059_v23 }
 0x23a   : > { %v2229_v10 = vpop.permute.xlu0 %2228  ;;  %v2130_v49 = vadd.f32 1.0, %v3877_v0  ;;  %v2128_v0 = vadd.f32 1.0, %v3871_v39  ;;  %v2096_v54 = vadd.f32 %v4056_v13, %v2057_v22  ;;  %v2161_v9 = vmul.f32 %v2129_v59, %v2097_v7 }
 0x23b   : > { %2473 = vst.msk [vmem:[%s4086_s17] sm:$0xf] %vm2472_vm9, %v2776_v20  ;;  %v2777_v38 = vpack.c.bf16 %v2313_v32, %v2313_v32  ;;  %v2318_v3 = vadd.f32 %v2229_v10, %v2158_v29  ;;  %v2099_v20 = vadd.f32 %v4056_v13, %v2060_v45  ;;  %v2131_v32 = vadd.f32 1.0, %v3880_v53 }
 0x23c   : > { %v2231_v60 = vpop.permute.xlu1 %2230  ;;  %v1984_v29 = vmul.f32 %v4020_v56, %v1945_v55  ;;  %v2022_v10 = vadd.f32 %v4031_v8, %v1983_v61  ;;  %v2162_v33 = vmul.f32 %v2130_v49, %v2098_v47  ;;  %v2134_v7 = vadd.f32 1.0, %v3913_v41 }
 0x23d   : > { %2474 = vst.msk [vmem:[%s4086_s17 + $0x4] sm:$0xf] %vm2472_vm9, %v2777_v38  ;;  %v2782_v14 = vpack.c.bf16 %v2318_v3, %v2318_v3  ;;  %v2319_v4 = vadd.f32 %v2231_v60, %v2159_v6  ;;  %v2163_v53 = vmul.f32 %v2131_v32, %v2099_v20 }
 0x23e   : > { %v2225_v51 = vpop.permute.xlu0 %2224  ;;  %v2023_v3 = vadd.f32 %v4031_v8, %v1984_v29  ;;  %v2061_v60 = vmul.f32 %v4044_v48, %v2022_v10  ;;  %v1948_v10 = vld [vmem:[%s4009_s16 + $0x80] sm:$0xff] }
 0x23f   : > { %2479 = vst.msk [vmem:[%s4086_s17 + $0x18] sm:$0xf] %vm2472_vm9, %v2782_v14  ;;  %v2783_v50 = vpack.c.bf16 %v2319_v4, %v2319_v4  ;;  %v2316_v16 = vadd.f32 %v2225_v51, %v2156_v19  ;;  %v2160_v14 = vmul.f32 %v2128_v0, %v2096_v54  ;;  %v1946_v19 = vld [vmem:[%s4009_s16 + $0x70] sm:$0xff]  ;;  %v1949_v54 = vld [vmem:[%s4009_s16 + $0x88] sm:$0xff]  ;;  %v1987_v59 = vmul.f32 %v4020_v56, %v1948_v10 }
 0x240   : > { %v2227_v1 = vpop.permute.xlu1 %2226  ;;  %v2062_v43 = vmul.f32 %v4044_v48, %v2023_v3  ;;  %v1985_v45 = vmul.f32 %v4020_v56, %v1946_v19  ;;  %v1988_v3 = vmul.f32 %v4020_v56, %v1949_v54 }
 0x241   : > { %2480 = vst.msk [vmem:[%s4086_s17 + $0x1c] sm:$0xf] %vm2472_vm9, %v2783_v50  ;;  %v2780_v57 = vpack.c.bf16 %v2316_v16, %v2316_v16  ;;  %v2317_v46 = vadd.f32 %v2227_v1, %v2157_v36  ;;  %v2100_v50 = vadd.f32 %v4056_v13, %v2061_v60  ;;  %v1947_v16 = vld [vmem:[%s4009_s16 + $0x78] sm:$0xff]  ;;  %v2132_v36 = vadd.f32 1.0, %v3893_v15 }
 0x242   : > { %v2101_v61 = vadd.f32 %v4056_v13, %v2062_v43  ;;  %v1986_v55 = vmul.f32 %v4020_v56, %v1947_v16  ;;  %v2024_v47 = vadd.f32 %v4031_v8, %v1985_v45  ;;  %v2026_v60 = vadd.f32 %v4031_v8, %v1987_v59 }
 0x243   : > { %2477 = vst.msk [vmem:[%s4086_s17 + $0x10] sm:$0xf] %vm2472_vm9, %v2780_v57  ;;  %v2781_v28 = vpack.c.bf16 %v2317_v46, %v2317_v46  ;;  %v2133_v57 = vadd.f32 1.0, %v3898_v62  ;;  %v2164_v15 = vmul.f32 %v2132_v36, %v2100_v50  ;;  %v2027_v41 = vadd.f32 %v4031_v8, %v1988_v3 }
 0x244   : > { %v2025_v62 = vadd.f32 %v4031_v8, %v1986_v55  ;;  %v2063_v29 = vmul.f32 %v4044_v48, %v2024_v47  ;;  %v2136_v16 = vadd.f32 1.0, %v3947_v2  ;;  %v2137_v45 = vadd.f32 1.0, %v3956_v25  ;;  %v1956_v47 = vld [vmem:[%s4009_s16 + $0xc0] sm:$0xff]  ;;  %v1957_v25 = vld [vmem:[%s4009_s16 + $0xc8] sm:$0xff] }
 0x245   : > { %2478 = vst.msk [vmem:[%s4086_s17 + $0x14] sm:$0xf] %vm2472_vm9, %v2781_v28  ;;  %v2165_v28 = vmul.f32 %v2133_v57, %v2101_v61  ;;  %v2066_v43 = vmul.f32 %v4044_v48, %v2027_v41  ;;  %v1996_v54 = vmul.f32 %v4020_v56, %v1957_v25 }
 0x247   : > { %v2237_v37 = vpop.permute.xlu0 %2236 }
 0x248   : > { %v2322_v38 = vadd.f32 %v2237_v37, %v2162_v33  ;;  %v2064_v33 = vmul.f32 %v4044_v48, %v2025_v62  ;;  %v2102_v37 = vadd.f32 %v4056_v13, %v2063_v29 }
 0x249   : > { %v2239_v6 = vpop.permute.xlu1 %2238 }
 0x24a   : > { %v2786_v17 = vpack.c.bf16 %v2322_v38, %v2322_v38  ;;  %v2323_v39 = vadd.f32 %v2239_v6, %v2163_v53  ;;  %v2103_v38 = vadd.f32 %v4056_v13, %v2064_v33  ;;  %v2135_v53 = vadd.f32 1.0, %v3918_v30  ;;  %v1950_v30 = vld [vmem:[%s4009_s16 + $0x90] sm:$0xff]  ;;  %v1952_v33 = vld [vmem:[%s4009_s16 + $0xa0] sm:$0xff] }
 0x24b   : > { %v2233_v4 = vpop.permute.xlu0 %2232  ;;  %v2166_v6 = vmul.f32 %v2134_v7, %v2102_v37  ;;  %v1989_v36 = vmul.f32 %v4020_v56, %v1950_v30  ;;  %v1991_v3 = vmul.f32 %v4020_v56, %v1952_v33 }
 0x24c   : > { %2483 = vst.msk [vmem:[%s4086_s17 + $0x28] sm:$0xf] %vm2472_vm9, %v2786_v17  ;;  %v2787_v51 = vpack.c.bf16 %v2323_v39, %v2323_v39  ;;  %v2320_v23 = vadd.f32 %v2233_v4, %v2160_v14  ;;  %v2167_v14 = vmul.f32 %v2135_v53, %v2103_v38  ;;  %v1953_v38 = vld [vmem:[%s4009_s16 + $0xa8] sm:$0xff] }
 0x24d   : > { %v2235_v5 = vpop.permute.xlu1 %2234  ;;  %v2028_v55 = vadd.f32 %v4031_v8, %v1989_v36  ;;  %v1992_v41 = vmul.f32 %v4020_v56, %v1953_v38  ;;  %v2140_v38 = vadd.f32 1.0, %v3984_v44 }
 0x24e   : > { %2484 = vst.msk [vmem:[%s4086_s17 + $0x2c] sm:$0xf] %vm2472_vm9, %v2787_v51  ;;  %v2784_v26 = vpack.c.bf16 %v2320_v23, %v2320_v23  ;;  %v2321_v1 = vadd.f32 %v2235_v5, %v2161_v9  ;;  %v2065_v23 = vmul.f32 %v4044_v48, %v2026_v60  ;;  %v1951_v5 = vld [vmem:[%s4009_s16 + $0x98] sm:$0xff]  ;;  %v2138_v60 = vadd.f32 1.0, %v3966_v31 }
 0x24f   : > { %v1990_v57 = vmul.f32 %v4020_v56, %v1951_v5  ;;  %v2067_v10 = vmul.f32 %v4044_v48, %v2028_v55 }
 0x250   : > { %2481 = vst.msk [vmem:[%s4086_s17 + $0x20] sm:$0xf] %vm2472_vm9, %v2784_v26  ;;  %v2785_v46 = vpack.c.bf16 %v2321_v1, %v2321_v1  ;;  %v2104_v50 = vadd.f32 %v4056_v13, %v2065_v23  ;;  %v1958_v26 = vld [vmem:[%s4009_s16 + $0xd0] sm:$0xff]  ;;  %v2105_v1 = vadd.f32 %v4056_v13, %v2066_v43  ;;  %v1961_v23 = vld [vmem:[%s4009_s16 + $0xe8] sm:$0xff]  ;;  %v2146_v43 = vadd.f32 1.0, %v3924_v24 }
 0x252   : > { %2482 = vst.msk [vmem:[%s4086_s17 + $0x24] sm:$0xf] %vm2472_vm9, %v2785_v46  ;;  %v1959_v46 = vld [vmem:[%s4009_s16 + $0xd8] sm:$0xff]  ;;  %v2168_v61 = vmul.f32 %v2136_v16, %v2104_v50 }
 0x253   : > { %v2241_v49 = vpop.permute.xlu0 %2240  ;;  %v1998_v62 = vmul.f32 %v4020_v56, %v1959_v46 }
 0x254   : > { %v2324_v22 = vadd.f32 %v2241_v49, %v2164_v15  ;;  %v1997_v15 = vmul.f32 %v4020_v56, %v1958_v26  ;;  %v2000_v26 = vmul.f32 %v4020_v56, %v1961_v23 }
 0x255   : > { %v2243_v35 = vpop.permute.xlu1 %2242  ;;  %v2037_v59 = vadd.f32 %v4031_v8, %v1998_v62 }
 0x256   : > { %v2788_v20 = vpack.c.bf16 %v2324_v22, %v2324_v22  ;;  %v2325_v32 = vadd.f32 %v2243_v35, %v2165_v28  ;;  %v2169_v22 = vmul.f32 %v2137_v45, %v2105_v1  ;;  %v2029_v28 = vadd.f32 %v4031_v8, %v1990_v57 }
 0x257   : > { %v2147_v1 = vadd.f32 1.0, %v3934_v42  ;;  %v1954_v42 = vld [vmem:[%s4009_s16 + $0xb0] sm:$0xff] }
 0x258   : > { %2485 = vst.msk [vmem:[%s4086_s17 + $0x30] sm:$0xf] %vm2472_vm9, %v2788_v20  ;;  %v2789_v0 = vpack.c.bf16 %v2325_v32, %v2325_v32  ;;  %v1995_v20 = vmul.f32 %v4020_v56, %v1956_v47  ;;  %v2068_v7 = vmul.f32 %v4044_v48, %v2029_v28  ;;  %v2144_v47 = vadd.f32 1.0, %v3928_v11 }
 0x25a   : > { %2486 = vst.msk [vmem:[%s4086_s17 + $0x34] sm:$0xf] %vm2472_vm9, %v2789_v0  ;;  %v2036_v0 = vadd.f32 %v4031_v8, %v1997_v15  ;;  %v2034_v53 = vadd.f32 %v4031_v8, %v1995_v20  ;;  %v2145_v20 = vadd.f32 1.0, %v3936_v40 }
 0x25c   : > { %v2073_v30 = vmul.f32 %v4044_v48, %v2034_v53  ;;  %v1962_v53 = vld [vmem:[%s4009_s16 + $0xf0] sm:$0xff] }
 0x25e   : > { %v2112_v24 = vadd.f32 %v4056_v13, %v2073_v30  ;;  %v2001_v30 = vmul.f32 %v4020_v56, %v1962_v53 }
 0x25f   : > { %v2245_v17 = vpop.permute.xlu0 %2244 }
 0x260   : > { %v2326_v39 = vadd.f32 %v2245_v17, %v2166_v6  ;;  %v2106_v6 = vadd.f32 %v4056_v13, %v2067_v10  ;;  %v2075_v17 = vmul.f32 %v4044_v48, %v2036_v0  ;;  %v1955_v10 = vld [vmem:[%s4009_s16 + $0xb8] sm:$0xff]  ;;  %v2176_v40 = vmul.f32 %v2144_v47, %v2112_v24 }
 0x261   : > { %v2247_v4 = vpop.permute.xlu1 %2246 }
 0x262   : > { %v2790_v19 = vpack.c.bf16 %v2326_v39, %v2326_v39  ;;  %v2327_v51 = vadd.f32 %v2247_v4, %v2167_v14  ;;  %v1960_v39 = vld [vmem:[%s4009_s16 + $0xe0] sm:$0xff]  ;;  %v2035_v14 = vadd.f32 %v4031_v8, %v1996_v54  ;;  %v2107_v4 = vadd.f32 %v4056_v13, %v2068_v7 }
 0x263   : > { %v1999_v31 = vmul.f32 %v4020_v56, %v1960_v39  ;;  %v2170_v5 = vmul.f32 %v2138_v60, %v2106_v6  ;;  %v2114_v50 = vadd.f32 %v4056_v13, %v2075_v17  ;;  %v1994_v17 = vmul.f32 %v4020_v56, %v1955_v10 }
 0x264   : > { %2487 = vst.msk [vmem:[%s4086_s17 + $0x38] sm:$0xf] %vm2472_vm9, %v2790_v19  ;;  %v2791_v9 = vpack.c.bf16 %v2327_v51, %v2327_v51  ;;  %v2139_v19 = vadd.f32 1.0, %v3970_v52  ;;  %v2076_v51 = vmul.f32 %v4044_v48, %v2037_v59  ;;  %v2074_v36 = vmul.f32 %v4044_v48, %v2035_v14 }
 0x265   : > { %v2031_v52 = vadd.f32 %v4031_v8, %v1992_v41  ;;  %v2038_v15 = vadd.f32 %v4031_v8, %v1999_v31 }
 0x266   : > { %2488 = vst.msk [vmem:[%s4086_s17 + $0x3c] sm:$0xf] %vm2472_vm9, %v2791_v9  ;;  %v2030_v9 = vadd.f32 %v4031_v8, %v1991_v3  ;;  %v2171_v57 = vmul.f32 %v2139_v19, %v2107_v4  ;;  %v2115_v46 = vadd.f32 %v4056_v13, %v2076_v51  ;;  %v2113_v62 = vadd.f32 %v4056_v13, %v2074_v36  ;;  %v1963_v19 = vld [vmem:[%s4009_s16 + $0xf8] sm:$0xff] }
 0x267   : > { %v2070_v25 = vmul.f32 %v4044_v48, %v2031_v52  ;;  %v2077_v54 = vmul.f32 %v4044_v48, %v2038_v15  ;;  %v2141_v4 = vadd.f32 1.0, %v3990_v27  ;;  %v2002_v36 = vmul.f32 %v4020_v56, %v1963_v19 }
 0x268   : > { %v2069_v55 = vmul.f32 %v4044_v48, %v2030_v9  ;;  %v2179_v11 = vmul.f32 %v2147_v1, %v2115_v46  ;;  %v2177_v41 = vmul.f32 %v2145_v20, %v2113_v62  ;;  %v2148_v9 = vadd.f32 1.0, %v3950_v18 }
 0x269   : > { %v2109_v6 = vadd.f32 %v4056_v13, %v2070_v25  ;;  %v2116_v44 = vadd.f32 %v4056_v13, %v2077_v54  ;;  %v2149_v52 = vadd.f32 1.0, %v3958_v21  ;;  %v2041_v21 = vadd.f32 %v4031_v8, %v2002_v36 }
 0x26a   : > { %v2108_v33 = vadd.f32 %v4056_v13, %v2069_v55 }
 0x26b   : > { %v2249_v2 = vpop.permute.xlu0 %2248  ;;  %v2173_v1 = vmul.f32 %v2141_v4, %v2109_v6  ;;  %v2180_v24 = vmul.f32 %v2148_v9, %v2116_v44 }
 0x26c   : > { %v2328_v49 = vadd.f32 %v2249_v2, %v2168_v61 }
 0x26d   : > { %v2251_v35 = vpop.permute.xlu1 %2250 }
 0x26e   : > { %v2792_v32 = vpack.c.bf16 %v2328_v49, %v2328_v49  ;;  %v2329_v29 = vadd.f32 %v2251_v35, %v2169_v22  ;;  %v2178_v22 = vmul.f32 %v2146_v43, %v2114_v50  ;;  %v2039_v35 = vadd.f32 %v4031_v8, %v2000_v26 }
 0x270   : > { %2489 = vst.msk [vmem:[%s4086_s17 + $0x40] sm:$0xf] %vm2472_vm9, %v2792_v32  ;;  %v2793_v37 = vpack.c.bf16 %v2329_v29, %v2329_v29  ;;  %v2078_v60 = vmul.f32 %v4044_v48, %v2039_v35  ;;  %v2142_v35 = vadd.f32 1.0, %v4003_v12  ;;  %v2151_v12 = vadd.f32 1.0, %v3954_v63 }
 0x272   : > { %2490 = vst.msk [vmem:[%s4086_s17 + $0x44] sm:$0xf] %vm2472_vm9, %v2793_v37  ;;  %v1993_v37 = vmul.f32 %v4020_v56, %v1954_v42  ;;  %v2117_v27 = vadd.f32 %v4056_v13, %v2078_v60 }
 0x274   : > { %v2032_v23 = vadd.f32 %v4031_v8, %v1993_v37 }
 0x276   : > { %v2071_v55 = vmul.f32 %v4044_v48, %v2032_v23 }
 0x277   : > { %v2253_v16 = vpop.permute.xlu0 %2252 }
 0x278   : > { %v2330_v45 = vadd.f32 %v2253_v16, %v2170_v5  ;;  %v2172_v5 = vmul.f32 %v2140_v38, %v2108_v33  ;;  %v2033_v16 = vadd.f32 %v4031_v8, %v1994_v17  ;;  %v2110_v25 = vadd.f32 %v4056_v13, %v2071_v55 }
 0x279   : > { %v2255_v61 = vpop.permute.xlu1 %2254 }
 0x27a   : > { %v2794_v2 = vpack.c.bf16 %v2330_v45, %v2330_v45  ;;  %v2331_v49 = vadd.f32 %v2255_v61, %v2171_v57  ;;  %v2040_v57 = vadd.f32 %v4031_v8, %v2001_v30  ;;  %v2174_v10 = vmul.f32 %v2142_v35, %v2110_v25 }
 0x27b   : > { %v2269_v28 = vpop.permute.xlu0 %2268 }
 0x27c   : > { %2491 = vst.msk [vmem:[%s4086_s17 + $0x48] sm:$0xf] %vm2472_vm9, %v2794_v2  ;;  %v2795_v32 = vpack.c.bf16 %v2331_v49, %v2331_v49  ;;  %v2338_v29 = vadd.f32 %v2269_v28, %v2178_v22  ;;  %v2181_v2 = vmul.f32 %v2149_v52, %v2117_v27  ;;  %v2072_v49 = vmul.f32 %v4044_v48, %v2033_v16 }
 0x27d   : > { %v2271_v0 = vpop.permute.xlu1 %2270  ;;  %v2079_v42 = vmul.f32 %v4044_v48, %v2040_v57 }
 0x27e   : > { %2492 = vst.msk [vmem:[%s4086_s17 + $0x4c] sm:$0xf] %vm2472_vm9, %v2795_v32  ;;  %v2802_v7 = vpack.c.bf16 %v2338_v29, %v2338_v29  ;;  %v2339_v59 = vadd.f32 %v2271_v0, %v2179_v11  ;;  %v2111_v20 = vadd.f32 %v4056_v13, %v2072_v49  ;;  %v2143_v32 = vadd.f32 1.0, %v4012_v58 }
 0x27f   : > { %v2265_v3 = vpop.permute.xlu0 %2264  ;;  %v2080_v29 = vmul.f32 %v4044_v48, %v2041_v21  ;;  %v2150_v11 = vadd.f32 1.0, %v3943_v34  ;;  %v2118_v0 = vadd.f32 %v4056_v13, %v2079_v42 }
 0x280   : > { %2499 = vst.msk [vmem:[%s4086_s17 + $0x68] sm:$0xf] %vm2472_vm9, %v2802_v7  ;;  %v2803_v39 = vpack.c.bf16 %v2339_v59, %v2339_v59  ;;  %v2336_v14 = vadd.f32 %v2265_v3, %v2176_v40  ;;  %v2175_v37 = vmul.f32 %v2143_v32, %v2111_v20 }
 0x281   : > { %v2267_v51 = vpop.permute.xlu1 %2266  ;;  %v2119_v7 = vadd.f32 %v4056_v13, %v2080_v29  ;;  %v2182_v40 = vmul.f32 %v2150_v11, %v2118_v0 }
 0x282   : > { %2500 = vst.msk [vmem:[%s4086_s17 + $0x6c] sm:$0xf] %vm2472_vm9, %v2803_v39  ;;  %v2800_v31 = vpack.c.bf16 %v2336_v14, %v2336_v14  ;;  %v2337_v43 = vadd.f32 %v2267_v51, %v2177_v41 }
 0x283   : > { %v2257_v50 = vpop.permute.xlu0 %2256  ;;  %v2183_v3 = vmul.f32 %v2151_v12, %v2119_v7 }
 0x284   : > { %2497 = vst.msk [vmem:[%s4086_s17 + $0x60] sm:$0xf] %vm2472_vm9, %v2800_v31  ;;  %v2801_v26 = vpack.c.bf16 %v2337_v43, %v2337_v43  ;;  %v2332_v18 = vadd.f32 %v2257_v50, %v2172_v5 }
 0x285   : > { %v2259_v45 = vpop.permute.xlu1 %2258 }
 0x286   : > { %2498 = vst.msk [vmem:[%s4086_s17 + $0x64] sm:$0xf] %vm2472_vm9, %v2801_v26  ;;  %v2796_v46 = vpack.c.bf16 %v2332_v18, %v2332_v18  ;;  %v2333_v61 = vadd.f32 %v2259_v45, %v2173_v1 }
 0x287   : > { %v2273_v56 = vpop.permute.xlu0 %2272 }
 0x288   : > { %2493 = vst.msk [vmem:[%s4086_s17 + $0x50] sm:$0xf] %vm2472_vm9, %v2796_v46  ;;  %v2797_v15 = vpack.c.bf16 %v2333_v61, %v2333_v61  ;;  %v2340_v47 = vadd.f32 %v2273_v56, %v2180_v24 }
 0x289   : > { %v2275_v22 = vpop.permute.xlu1 %2274 }
 0x28a   : > { %2494 = vst.msk [vmem:[%s4086_s17 + $0x54] sm:$0xf] %vm2472_vm9, %v2797_v15  ;;  %v2804_v28 = vpack.c.bf16 %v2340_v47, %v2340_v47  ;;  %v2341_v62 = vadd.f32 %v2275_v22, %v2181_v2 }
 0x28c   : > { %2501 = vst.msk [vmem:[%s4086_s17 + $0x70] sm:$0xf] %vm2472_vm9, %v2804_v28  ;;  %v2805_v8 = vpack.c.bf16 %v2341_v62, %v2341_v62 }
 0x28e   : > { %2502 = vst.msk [vmem:[%s4086_s17 + $0x74] sm:$0xf] %vm2472_vm9, %v2805_v8 }
 0x28f   : > { %v2261_v33 = vpop.permute.xlu0 %2260 }
 0x290   : > { %v2334_v54 = vadd.f32 %v2261_v33, %v2174_v10 }
 0x291   : > { %v2263_v58 = vpop.permute.xlu1 %2262 }
 0x292   : > { %v2798_v59 = vpack.c.bf16 %v2334_v54, %v2334_v54  ;;  %v2335_v48 = vadd.f32 %v2263_v58, %v2175_v37 }
 0x293   : > { %v2277_v34 = vpop.permute.xlu0 %2276 }
 0x294   : > { %2495 = vst.msk [vmem:[%s4086_s17 + $0x58] sm:$0xf] %vm2472_vm9, %v2798_v59  ;;  %v2799_v38 = vpack.c.bf16 %v2335_v48, %v2335_v48  ;;  %v2342_v53 = vadd.f32 %v2277_v34, %v2182_v40 }
 0x295   : > { %v2279_v6 = vpop.permute.xlu1 %2278 }
 0x296   : > { %2496 = vst.msk [vmem:[%s4086_s17 + $0x5c] sm:$0xf] %vm2472_vm9, %v2799_v38  ;;  %v2806_v63 = vpack.c.bf16 %v2342_v53, %v2342_v53  ;;  %v2343_v60 = vadd.f32 %v2279_v6, %v2183_v3 }
 0x298   : > { %2503 = vst.msk [vmem:[%s4086_s17 + $0x78] sm:$0xf] %vm2472_vm9, %v2806_v63  ;;  %v2807_v17 = vpack.c.bf16 %v2343_v60, %v2343_v60 }
 0x29a   : > { %2504 = vst.msk [vmem:[%s4086_s17 + $0x7c] sm:$0xf] %vm2472_vm9, %v2807_v17 }
 0x29b PF: > { %s20_s13 = sadd.s32 1, %s3076_s13   ;;  %s4329_s11 = smov %s3072_s12 }
 0x29c   : > { %p17_p5 = scmp.ge.s32.totalorder %s20_s13, 4   ;;  %s4330_s12 = smov %s4332_s14 }
 0x29e   :  { %19 = sbr.rel (!%p17_p5) target bundleno = 2 (0x2), region = 99 }

// kernel: resnet_block.13
= control target key start
LH: loop header
LB: loop body
LE: loop exit
PB: predicated region body
PF: predicated region fallthrough
CT: control target
= control target key end

     0   :  { %vm286_vm0 = vcmask 64512   ;;  %vm420_vm1 = vcmask 57344   ;;  %s1968_s0 = inlined_call_operand.vmem [shape: f32[512,8], index: 0, kind: input, shape index: {}]   ;;  %s1969_s1 = inlined_call_operand.vmem [shape: f32[1,8], index: 1, kind: input, shape index: {}]   ;;  %s1970_s2 = inlined_call_operand.vmem [shape: f32[1,8], index: 2, kind: input, shape index: {}]   ;;  %s1971_s3 = inlined_call_operand.vmem [shape: f32[1,1,8], index: 3, kind: output, shape index: {0}]   ;;  %s1972_s4 = inlined_call_operand.vmem [shape: f32[1,1,8], index: 4, kind: output, shape index: {1}]  }
   0x1   :  { %v49_v0 = vld [vmem:[%s1968_s0 + $0x108] sm:$0xff]  ;;  %v50_v1 = vld [vmem:[%s1968_s0 + $0x110] sm:$0xff]  ;;  %v51_v2 = vld [vmem:[%s1968_s0 + $0x118] sm:$0xff] }
   0x2   :  { %v52_v3 = vld [vmem:[%s1968_s0 + $0x120] sm:$0xff]  ;;  %v53_v4 = vld [vmem:[%s1968_s0 + $0x128] sm:$0xff]  ;;  %v54_v5 = vld [vmem:[%s1968_s0 + $0x130] sm:$0xff] }
   0x3   :  { %v55_v6 = vld [vmem:[%s1968_s0 + $0x138] sm:$0xff]  ;;  %v56_v7 = vld [vmem:[%s1968_s0 + $0x140] sm:$0xff]  ;;  %v57_v8 = vld [vmem:[%s1968_s0 + $0x148] sm:$0xff] }
   0x4   :  { %v58_v9 = vld [vmem:[%s1968_s0 + $0x150] sm:$0xff]  ;;  %v59_v10 = vld [vmem:[%s1968_s0 + $0x158] sm:$0xff]  ;;  %v60_v11 = vld [vmem:[%s1968_s0 + $0x160] sm:$0xff] }
   0x5   :  { %v61_v12 = vld [vmem:[%s1968_s0 + $0x168] sm:$0xff]  ;;  %v62_v13 = vld [vmem:[%s1968_s0 + $0x170] sm:$0xff]  ;;  %v63_v14 = vld [vmem:[%s1968_s0 + $0x178] sm:$0xff] }
   0x6   :  { %v64_v15 = vld [vmem:[%s1968_s0 + $0x180] sm:$0xff]  ;;  %v65_v17 = vld [vmem:[%s1968_s0 + $0x188] sm:$0xff]  ;;  %v66_v18 = vld [vmem:[%s1968_s0 + $0x190] sm:$0xff] }
   0x7   :  { %v706_v16 = vld [vmem:[%s1969_s1] ss:$0 sm:$0xff]  ;;  %v67_v19 = vld [vmem:[%s1968_s0 + $0x198] sm:$0xff]  ;;  %v69_v24 = vld [vmem:[%s1968_s0 + $0x1a8] sm:$0xff] }
   0x8   :  { %v718_v20 = vmul.f32 %v706_v16, %v49_v0  ;;  %v721_v21 = vmul.f32 %v706_v16, %v50_v1  ;;  %v724_v22 = vmul.f32 %v706_v16, %v51_v2  ;;  %v68_v23 = vld [vmem:[%s1968_s0 + $0x1a0] sm:$0xff]  ;;  %v70_v25 = vld [vmem:[%s1968_s0 + $0x1b0] sm:$0xff]  ;;  %v736_v26 = vmul.f32 %v706_v16, %v52_v3  ;;  %v71_v30 = vld [vmem:[%s1968_s0 + $0x1b8] sm:$0xff] }
   0x9   :  { %v739_v27 = vmul.f32 %v706_v16, %v53_v4  ;;  %v742_v28 = vmul.f32 %v706_v16, %v54_v5  ;;  %v745_v29 = vmul.f32 %v706_v16, %v55_v6  ;;  %v72_v31 = vld [vmem:[%s1968_s0 + $0x1c0] sm:$0xff]  ;;  %v73_v32 = vld [vmem:[%s1968_s0 + $0x1c8] sm:$0xff]  ;;  %v757_v33 = vmul.f32 %v706_v16, %v56_v7  ;;  %v74_v37 = vld [vmem:[%s1968_s0 + $0x1d0] sm:$0xff] }
   0xa   :  { %v760_v34 = vmul.f32 %v706_v16, %v57_v8  ;;  %v763_v35 = vmul.f32 %v706_v16, %v58_v9  ;;  %v766_v36 = vmul.f32 %v706_v16, %v59_v10  ;;  %v75_v38 = vld [vmem:[%s1968_s0 + $0x1d8] sm:$0xff]  ;;  %v76_v39 = vld [vmem:[%s1968_s0 + $0x1e0] sm:$0xff]  ;;  %v778_v40 = vmul.f32 %v706_v16, %v60_v11  ;;  %v77_v44 = vld [vmem:[%s1968_s0 + $0x1e8] sm:$0xff] }
   0xb   :  { %v781_v41 = vmul.f32 %v706_v16, %v61_v12  ;;  %v784_v42 = vmul.f32 %v706_v16, %v62_v13  ;;  %v787_v43 = vmul.f32 %v706_v16, %v63_v14  ;;  %v78_v45 = vld [vmem:[%s1968_s0 + $0x1f0] sm:$0xff]  ;;  %v79_v46 = vld [vmem:[%s1968_s0 + $0x1f8] sm:$0xff]  ;;  %v799_v47 = vmul.f32 %v706_v16, %v64_v15  ;;  %v16_v51 = vld [vmem:[%s1968_s0] sm:$0xff] }
   0xc   :  { %v802_v48 = vmul.f32 %v706_v16, %v65_v17  ;;  %v805_v49 = vmul.f32 %v706_v16, %v66_v18  ;;  %v808_v50 = vmul.f32 %v706_v16, %v67_v19  ;;  %v17_v52 = vld [vmem:[%s1968_s0 + $0x8] sm:$0xff]  ;;  %v817_v53 = vmul.f32 %v706_v16, %v68_v23  ;;  %v18_v57 = vld [vmem:[%s1968_s0 + $0x10] sm:$0xff]  ;;  %v19_v58 = vld [vmem:[%s1968_s0 + $0x18] sm:$0xff] }
   0xd   :  { %v820_v54 = vmul.f32 %v706_v16, %v69_v24  ;;  %v823_v55 = vmul.f32 %v706_v16, %v70_v25  ;;  %v826_v56 = vmul.f32 %v706_v16, %v71_v30  ;;  %v20_v59 = vld [vmem:[%s1968_s0 + $0x20] sm:$0xff]  ;;  %v838_v60 = vmul.f32 %v706_v16, %v72_v31  ;;  %v21_v0 = vld [vmem:[%s1968_s0 + $0x28] sm:$0xff]  ;;  %v22_v1 = vld [vmem:[%s1968_s0 + $0x30] sm:$0xff] }
   0xe   :  { %v841_v61 = vmul.f32 %v706_v16, %v73_v32  ;;  %v844_v62 = vmul.f32 %v706_v16, %v74_v37  ;;  %v847_v63 = vmul.f32 %v706_v16, %v75_v38  ;;  %v23_v2 = vld [vmem:[%s1968_s0 + $0x38] sm:$0xff]  ;;  %v859_v3 = vmul.f32 %v706_v16, %v76_v39  ;;  %v24_v7 = vld [vmem:[%s1968_s0 + $0x40] sm:$0xff]  ;;  %v25_v8 = vld [vmem:[%s1968_s0 + $0x48] sm:$0xff] }
   0xf   :  { %v862_v4 = vmul.f32 %v706_v16, %v77_v44  ;;  %v865_v5 = vmul.f32 %v706_v16, %v78_v45  ;;  %v868_v6 = vmul.f32 %v706_v16, %v79_v46  ;;  %v26_v9 = vld [vmem:[%s1968_s0 + $0x50] sm:$0xff]  ;;  %v27_v10 = vld [vmem:[%s1968_s0 + $0x58] sm:$0xff]  ;;  %v28_v11 = vld [vmem:[%s1968_s0 + $0x60] sm:$0xff]  ;;  %v898_v17 = vmul.f32 %v706_v16, %v16_v51 }
  0x10   :  { %v29_v12 = vld [vmem:[%s1968_s0 + $0x68] sm:$0xff]  ;;  %v30_v13 = vld [vmem:[%s1968_s0 + $0x70] sm:$0xff]  ;;  %v31_v14 = vld [vmem:[%s1968_s0 + $0x78] sm:$0xff]  ;;  %v901_v18 = vmul.f32 %v706_v16, %v17_v52  ;;  %v904_v19 = vmul.f32 %v706_v16, %v18_v57  ;;  %v916_v30 = vmul.f32 %v706_v16, %v19_v58  ;;  %v919_v31 = vmul.f32 %v706_v16, %v20_v59 }
  0x11   :  { %v32_v15 = vld [vmem:[%s1968_s0 + $0x80] sm:$0xff]  ;;  %v33_v23 = vld [vmem:[%s1968_s0 + $0x88] sm:$0xff]  ;;  %v34_v24 = vld [vmem:[%s1968_s0 + $0x90] sm:$0xff]  ;;  %v922_v32 = vmul.f32 %v706_v16, %v21_v0  ;;  %v925_v37 = vmul.f32 %v706_v16, %v22_v1  ;;  %v937_v45 = vmul.f32 %v706_v16, %v23_v2  ;;  %v940_v46 = vmul.f32 %v706_v16, %v24_v7 }
  0x12   :  { %v35_v25 = vld [vmem:[%s1968_s0 + $0x98] sm:$0xff]  ;;  %v36_v38 = vld [vmem:[%s1968_s0 + $0xa0] sm:$0xff]  ;;  %v37_v39 = vld [vmem:[%s1968_s0 + $0xa8] sm:$0xff]  ;;  %v943_v51 = vmul.f32 %v706_v16, %v25_v8  ;;  %v946_v52 = vmul.f32 %v706_v16, %v26_v9  ;;  %v952_v58 = vmul.f32 %v706_v16, %v27_v10  ;;  %v955_v59 = vmul.f32 %v706_v16, %v28_v11 }
  0x13   :  { %v38_v44 = vld [vmem:[%s1968_s0 + $0xb0] sm:$0xff]  ;;  %v39_v57 = vld [vmem:[%s1968_s0 + $0xb8] sm:$0xff]  ;;  %v958_v0 = vmul.f32 %v706_v16, %v29_v12  ;;  %v961_v1 = vmul.f32 %v706_v16, %v30_v13  ;;  %v964_v2 = vmul.f32 %v706_v16, %v31_v14  ;;  %v967_v7 = vmul.f32 %v706_v16, %v32_v15  ;;  %v990_v14 = vld [vmem:[%s1970_s2] ss:$0 sm:$0xff] }
  0x14   :  { %v970_v8 = vmul.f32 %v706_v16, %v33_v23  ;;  %v973_v9 = vmul.f32 %v706_v16, %v34_v24  ;;  %v976_v10 = vmul.f32 %v706_v16, %v35_v25  ;;  %v979_v11 = vmul.f32 %v706_v16, %v36_v38 }
  0x15   :  { %v982_v12 = vmul.f32 %v706_v16, %v37_v39  ;;  %v985_v13 = vmul.f32 %v706_v16, %v38_v44  ;;  %v993_v15 = vmul.f32 %v706_v16, %v39_v57  ;;  %v997_v23 = vadd.f32 %v990_v14, %v718_v20  ;;  %v42_v57 = vld [vmem:[%s1968_s0 + $0xd0] sm:$0xff] }
  0x16   :  { %v1001_v24 = vadd.f32 %v990_v14, %v721_v21  ;;  %v1005_v25 = vadd.f32 %v990_v14, %v724_v22  ;;  %v1009_v38 = vadd.f32 %v990_v14, %v736_v26  ;;  %v1013_v39 = vadd.f32 %v990_v14, %v739_v27 }
  0x17   :  { %v1017_v20 = vadd.f32 %v990_v14, %v742_v28  ;;  %v1021_v21 = vadd.f32 %v990_v14, %v745_v29  ;;  %v1025_v22 = vadd.f32 %v990_v14, %v757_v33  ;;  %v1029_v26 = vadd.f32 %v990_v14, %v760_v34 }
  0x18   :  { %v1033_v27 = vadd.f32 %v990_v14, %v763_v35  ;;  %v1037_v28 = vadd.f32 %v990_v14, %v766_v36  ;;  %v1041_v29 = vadd.f32 %v990_v14, %v778_v40  ;;  %v1045_v33 = vadd.f32 %v990_v14, %v781_v41  ;;  %v40_v36 = vld [vmem:[%s1968_s0 + $0xc0] sm:$0xff]  ;;  %v41_v40 = vld [vmem:[%s1968_s0 + $0xc8] sm:$0xff] }
  0x19   :  { %v1049_v34 = vadd.f32 %v990_v14, %v784_v42  ;;  %v1053_v35 = vadd.f32 %v990_v14, %v787_v43  ;;  %v1063_v41 = vadd.f32 %v990_v14, %v799_v47  ;;  %v1067_v42 = vadd.f32 %v990_v14, %v802_v48  ;;  %v43_v47 = vld [vmem:[%s1968_s0 + $0xd8] sm:$0xff]  ;;  %v44_v48 = vld [vmem:[%s1968_s0 + $0xe0] sm:$0xff] }
  0x1a   :  { %v1071_v43 = vadd.f32 %v990_v14, %v805_v49  ;;  %v1075_v44 = vadd.f32 %v990_v14, %v808_v50  ;;  %v1088_v49 = vadd.f32 %v990_v14, %v817_v53  ;;  %v1092_v50 = vadd.f32 %v990_v14, %v820_v54  ;;  %v46_v53 = vld [vmem:[%s1968_s0 + $0xf0] sm:$0xff]  ;;  %v47_v54 = vld [vmem:[%s1968_s0 + $0xf8] sm:$0xff] }
  0x1b   :  { %2000 = vst [vmem:[#allocation2_spill] sm:$0xff] %v1067_v42  ;;  %v45_v42 = vld [vmem:[%s1968_s0 + $0xe8] sm:$0xff] }
  0x1c   :  { %2001 = vst [vmem:[#allocation3_spill] sm:$0xff] %v1071_v43  ;;  %2002 = vst [vmem:[#allocation4_spill] sm:$0xff] %v1075_v44  ;;  %v1096_v44 = vadd.f32 %v990_v14, %v823_v55  ;;  %v1100_v43 = vadd.f32 %v990_v14, %v826_v56  ;;  %v1113_v55 = vadd.f32 %v990_v14, %v838_v60 }
  0x1d   :  { %2003 = vst [vmem:[#allocation5_spill] sm:$0xff] %v1092_v50  ;;  %v1117_v56 = vadd.f32 %v990_v14, %v841_v61  ;;  %v48_v50 = vld [vmem:[%s1968_s0 + $0x100] sm:$0xff]  ;;  %v1132_v60 = vadd.f32 %v990_v14, %v859_v3  ;;  %v1136_v61 = vadd.f32 %v990_v14, %v862_v4  ;;  %v114_v3 = vmul.f32 %v706_v16, %v43_v47 }
  0x1e   :  { %2004 = vst [vmem:[#allocation6_spill] sm:$0xff] %v1096_v44  ;;  %2005 = vst [vmem:[#allocation7_spill] sm:$0xff] %v1100_v43  ;;  %v1121_v43 = vadd.f32 %v990_v14, %v844_v62  ;;  %v1125_v44 = vadd.f32 %v990_v14, %v847_v63  ;;  %v1140_v62 = vadd.f32 %v990_v14, %v865_v5 }
  0x1f   :  { %2006 = vst [vmem:[#allocation8_spill] sm:$0xff] %v1117_v56  ;;  %2009 = vst [vmem:[#allocation11_spill] sm:$0xff] %v1132_v60  ;;  %v1144_v63 = vadd.f32 %v990_v14, %v868_v6  ;;  %v113_v56 = vmul.f32 %v706_v16, %v42_v57  ;;  %v115_v60 = vmul.f32 %v706_v16, %v44_v48 }
  0x20   :  { %2007 = vst [vmem:[#allocation9_spill] sm:$0xff] %v1121_v43  ;;  %2008 = vst [vmem:[#allocation10_spill] sm:$0xff] %v1125_v44  ;;  %v111_v44 = vmul.f32 %v706_v16, %v40_v36  ;;  %v112_v43 = vmul.f32 %v706_v16, %v41_v40  ;;  %v116_v4 = vmul.f32 %v706_v16, %v45_v42 }
  0x21   :  { %2010 = vst [vmem:[#allocation12_spill] sm:$0xff] %v1136_v61  ;;  %2011 = vst [vmem:[#allocation13_spill] sm:$0xff] %v1140_v62  ;;  %v117_v61 = vmul.f32 %v706_v16, %v46_v53  ;;  %v118_v5 = vmul.f32 %v706_v16, %v47_v54  ;;  %v119_v62 = vmul.f32 %v706_v16, %v48_v50 }
  0x22   :  { %v158_v6 = vadd.f32 %v990_v14, %v898_v17  ;;  %v159_v36 = vadd.f32 %v990_v14, %v901_v18  ;;  %v160_v40 = vadd.f32 %v990_v14, %v904_v19  ;;  %v161_v57 = vadd.f32 %v990_v14, %v916_v30 }
  0x23   :  { %v162_v42 = vadd.f32 %v990_v14, %v919_v31  ;;  %v163_v47 = vadd.f32 %v990_v14, %v922_v32  ;;  %v164_v16 = vadd.f32 %v990_v14, %v925_v37  ;;  %v165_v17 = vadd.f32 %v990_v14, %v937_v45 }
  0x24   :  { %v166_v18 = vadd.f32 %v990_v14, %v940_v46  ;;  %v167_v19 = vadd.f32 %v990_v14, %v943_v51  ;;  %v168_v30 = vadd.f32 %v990_v14, %v946_v52  ;;  %v169_v31 = vadd.f32 %v990_v14, %v952_v58 }
  0x25   :  { %v170_v32 = vadd.f32 %v990_v14, %v955_v59  ;;  %v1183_v37 = vadd.f32 %v990_v14, %v958_v0  ;;  %v1187_v45 = vadd.f32 %v990_v14, %v961_v1  ;;  %v1191_v46 = vadd.f32 %v990_v14, %v964_v2 }
  0x26   :  { %v1195_v51 = vadd.f32 %v990_v14, %v967_v7  ;;  %v1199_v52 = vadd.f32 %v990_v14, %v970_v8  ;;  %v1203_v58 = vadd.f32 %v990_v14, %v973_v9  ;;  %v1207_v59 = vadd.f32 %v990_v14, %v976_v10 }
  0x27   :  { %v1211_v0 = vadd.f32 %v990_v14, %v979_v11  ;;  %v1215_v1 = vadd.f32 %v990_v14, %v982_v12  ;;  %v1219_v2 = vadd.f32 %v990_v14, %v985_v13  ;;  %v1223_v7 = vadd.f32 %v990_v14, %v993_v15 }
  0x28   :  { %v1226_v8 = vadd.f32 %v990_v14, %v111_v44  ;;  %v1229_v9 = vadd.f32 %v990_v14, %v112_v43  ;;  %v1232_v10 = vadd.f32 %v990_v14, %v113_v56  ;;  %v1235_v11 = vadd.f32 %v990_v14, %v114_v3 }
  0x29   :  { %v1238_v12 = vadd.f32 %v990_v14, %v115_v60  ;;  %v1241_v13 = vadd.f32 %v990_v14, %v116_v4  ;;  %v1244_v15 = vadd.f32 %v990_v14, %v117_v61  ;;  %v1247_v44 = vadd.f32 %v990_v14, %v118_v5 }
  0x2a   :  { %2012 = vst [vmem:[#allocation14_spill] sm:$0xff] %v1235_v11  ;;  %v1250_v43 = vadd.f32 %v990_v14, %v119_v62  ;;  %v1252_v48 = vmax.f32 %v158_v6, 0.0  ;;  %v1254_v50 = vmax.f32 %v159_v36, 0.0  ;;  %v1256_v53 = vmax.f32 %v160_v40, 0.0 }
  0x2b   :  { %2013 = vst [vmem:[#allocation15_spill] sm:$0xff] %v1238_v12  ;;  %2014 = vst [vmem:[#allocation16_spill] sm:$0xff] %v1241_v13  ;;  %v1258_v54 = vmax.f32 %v161_v57, 0.0  ;;  %v1260_v56 = vmax.f32 %v162_v42, 0.0  ;;  %v1262_v60 = vmax.f32 %v163_v47, 0.0  ;;  %v1264_v61 = vmax.f32 %v164_v16, 0.0 }
  0x2c   :  { %2015 = vst [vmem:[#allocation17_spill] sm:$0xff] %v1244_v15  ;;  %2016 = vst [vmem:[#allocation18_spill] sm:$0xff] %v1247_v44  ;;  %v1266_v3 = vmax.f32 %v165_v17, 0.0  ;;  %v1268_v4 = vmax.f32 %v166_v18, 0.0  ;;  %v1270_v14 = vmax.f32 %v167_v19, 0.0  ;;  %v1272_v62 = vmax.f32 %v168_v30, 0.0 }
  0x2d   :  { %2017 = vst [vmem:[#allocation19_spill] sm:$0xff] %v1250_v43  ;;  %2018 = vst [vmem:[#allocation20_spill] sm:$0xff] %v1252_v48  ;;  %v1274_v5 = vmax.f32 %v169_v31, 0.0  ;;  %v1276_v6 = vmax.f32 %v170_v32, 0.0  ;;  %v1279_v36 = vmax.f32 %v997_v23, 0.0  ;;  %v1282_v40 = vmax.f32 %v1001_v24, 0.0 }
  0x2e   :  { %2019 = vst [vmem:[#allocation21_spill] sm:$0xff] %v1254_v50  ;;  %2020 = vst [vmem:[#allocation22_spill] sm:$0xff] %v1256_v53  ;;  %v1285_v57 = vmax.f32 %v1005_v25, 0.0  ;;  %v1288_v42 = vmax.f32 %v1009_v38, 0.0  ;;  %v1291_v47 = vmax.f32 %v1013_v39, 0.0  ;;  %v1294_v16 = vmax.f32 %v1017_v20, 0.0 }
  0x2f   :  { %2021 = vst [vmem:[#allocation23_spill] sm:$0xff] %v1258_v54  ;;  %2022 = vst [vmem:[#allocation24_spill] sm:$0xff] %v1260_v56  ;;  %v1297_v17 = vmax.f32 %v1021_v21, 0.0  ;;  %v1300_v23 = vmax.f32 %v1025_v22, 0.0  ;;  %v1303_v24 = vmax.f32 %v1029_v26, 0.0  ;;  %v1306_v25 = vmax.f32 %v1033_v27, 0.0 }
  0x30   :  { %2023 = vst [vmem:[#allocation25_spill] sm:$0xff] %v1268_v4  ;;  %v287_v38 = vsel %vm286_vm0, %v1252_v48, 0.0  ;;  %v288_v39 = vsel %vm286_vm0, %v1254_v50, 0.0  ;;  %v290_v20 = vsel %vm286_vm0, %v1256_v53, 0.0  ;;  %v1315_v21 = vmax.f32 %v1037_v28, 0.0  ;;  %v2024_v31 = vld [vmem:[#allocation2_spill] sm:$0xff] }
  0x31   :  { %v1318_v22 = vmax.f32 %v1041_v29, 0.0  ;;  %v1321_v26 = vmax.f32 %v1045_v33, 0.0  ;;  %v289_v27 = vadd.f32 %v288_v39, %v287_v38  ;;  %v1324_v18 = vmax.f32 %v1049_v34, 0.0  ;;  %v2025_v29 = vld [vmem:[#allocation3_spill] sm:$0xff]  ;;  %v2026_v33 = vld [vmem:[#allocation4_spill] sm:$0xff] }
  0x32   :  { %v1327_v19 = vmax.f32 %v1053_v35, 0.0  ;;  %v1330_v30 = vmax.f32 %v1063_v41, 0.0  ;;  %v292_v28 = vsel %vm286_vm0, %v1258_v54, 0.0  ;;  %v1335_v32 = vmax.f32 %v2024_v31, 0.0  ;;  %v2027_v35 = vld [vmem:[#allocation5_spill] sm:$0xff]  ;;  %v2028_v41 = vld [vmem:[#allocation6_spill] sm:$0xff] }
  0x33   :  { %v1338_v43 = vmax.f32 %v2025_v29, 0.0  ;;  %v1341_v38 = vmax.f32 %v2026_v33, 0.0  ;;  %v291_v34 = vadd.f32 %v290_v20, %v289_v27  ;;  %v1344_v39 = vmax.f32 %v1088_v49, 0.0  ;;  %v2029_v54 = vld [vmem:[#allocation7_spill] sm:$0xff]  ;;  %v2030_v33 = vld [vmem:[#allocation8_spill] sm:$0xff]  ;;  %v2031_v27 = vld [vmem:[#allocation9_spill] sm:$0xff] }
  0x34   :  { %v1347_v53 = vmax.f32 %v2027_v35, 0.0  ;;  %v1350_v50 = vmax.f32 %v2028_v41, 0.0  ;;  %v294_v31 = vsel %vm286_vm0, %v1260_v56, 0.0  ;;  %v1355_v48 = vmax.f32 %v2029_v54, 0.0  ;;  %v2032_v35 = vld [vmem:[#allocation10_spill] sm:$0xff]  ;;  %v2033_v41 = vld [vmem:[#allocation11_spill] sm:$0xff] }
  0x35   :  { %v1358_v29 = vmax.f32 %v1113_v55, 0.0  ;;  %v1361_v20 = vmax.f32 %v2030_v33, 0.0  ;;  %v293_v49 = vadd.f32 %v292_v28, %v291_v34  ;;  %v1364_v44 = vmax.f32 %v2031_v27, 0.0  ;;  %v2035_v56 = vld [vmem:[#allocation12_spill] sm:$0xff]  ;;  %v2037_v55 = vld [vmem:[#allocation13_spill] sm:$0xff] }
  0x36   :  { %v1367_v15 = vmax.f32 %v2032_v35, 0.0  ;;  %v1370_v13 = vmax.f32 %v2033_v41, 0.0  ;;  %v296_v54 = vsel %vm286_vm0, %v1262_v60, 0.0  ;;  %v1375_v12 = vmax.f32 %v2035_v56, 0.0 }
  0x37   :  { %v1378_v11 = vmax.f32 %v2037_v55, 0.0  ;;  %v1381_v28 = vmax.f32 %v1144_v63, 0.0  ;;  %v295_v34 = vadd.f32 %v294_v31, %v293_v49  ;;  %v298_v33 = vsel %vm286_vm0, %v1264_v61, 0.0 }
  0x38   :  { %2034 = vst [vmem:[#allocation2_spill] sm:$0xff] %v1370_v13  ;;  %2036 = vst [vmem:[#allocation3_spill] sm:$0xff] %v1375_v12  ;;  %v300_v27 = vsel %vm286_vm0, %v1266_v3, 0.0  ;;  %v302_v35 = vsel %vm286_vm0, %v1268_v4, 0.0  ;;  %v304_v56 = vsel %vm286_vm0, %v1270_v14, 0.0  ;;  %v306_v55 = vsel %vm286_vm0, %v1272_v62, 0.0 }
  0x39   :  { %2038 = vst [vmem:[#allocation4_spill] sm:$0xff] %v1378_v11  ;;  %2039 = vst [vmem:[#allocation5_spill] sm:$0xff] %v1381_v28  ;;  %v297_v41 = vadd.f32 %v296_v54, %v295_v34  ;;  %v1395_v63 = vsel %vm286_vm0, %v1279_v36, 0.0  ;;  %v1399_v31 = vsel %vm286_vm0, %v1282_v40, 0.0  ;;  %v1403_v49 = vsel %vm286_vm0, %v1285_v57, 0.0 }
  0x3a   :  { %2040 = vst [vmem:[#allocation6_spill] sm:$0xff] %v1395_v63  ;;  %2041 = vst [vmem:[#allocation7_spill] sm:$0xff] %v1399_v31  ;;  %v1407_v4 = vsel %vm286_vm0, %v1288_v42, 0.0  ;;  %v1411_v54 = vsel %vm286_vm0, %v1291_v47, 0.0  ;;  %v1415_v34 = vsel %vm286_vm0, %v1294_v16, 0.0  ;;  %v1419_v31 = vsel %vm286_vm0, %v1297_v17, 0.0 }
  0x3b   :  { %2042 = vst [vmem:[#allocation8_spill] sm:$0xff] %v1403_v49  ;;  %2043 = vst [vmem:[#allocation9_spill] sm:$0xff] %v1407_v4  ;;  %v299_v63 = vadd.f32 %v298_v33, %v297_v41  ;;  %v1423_v49 = vsel %vm286_vm0, %v1300_v23, 0.0  ;;  %v1427_v4 = vsel %vm286_vm0, %v1303_v24, 0.0  ;;  %v1439_v33 = vsel %vm286_vm0, %v1318_v22, 0.0 }
  0x3c   :  { %2044 = vst [vmem:[#allocation10_spill] sm:$0xff] %v1411_v54  ;;  %2045 = vst [vmem:[#allocation11_spill] sm:$0xff] %v1415_v34  ;;  %v1431_v54 = vsel %vm286_vm0, %v1306_v25, 0.0  ;;  %v1435_v34 = vsel %vm286_vm0, %v1315_v21, 0.0  ;;  %v1443_v41 = vsel %vm286_vm0, %v1321_v26, 0.0 }
  0x3d   :  { %2046 = vst [vmem:[#allocation12_spill] sm:$0xff] %v1419_v31  ;;  %2047 = vst [vmem:[#allocation13_spill] sm:$0xff] %v1423_v49  ;;  %v301_v49 = vadd.f32 %v300_v27, %v299_v63  ;;  %v1467_v27 = vsel %vm286_vm0, %v1341_v38, 0.0  ;;  %v1471_v63 = vsel %vm286_vm0, %v1344_v39, 0.0 }
  0x3e   :  { %2048 = vst [vmem:[#allocation26_spill] sm:$0xff] %v1427_v4  ;;  %2049 = vst [vmem:[#allocation27_spill] sm:$0xff] %v1431_v54  ;;  %v1447_v4 = vsel %vm286_vm0, %v1324_v18, 0.0  ;;  %v1451_v54 = vsel %vm286_vm0, %v1327_v19, 0.0 }
  0x3f   :  { %2050 = vst [vmem:[#allocation28_spill] sm:$0xff] %v1435_v34  ;;  %2051 = vst [vmem:[#allocation29_spill] sm:$0xff] %v1439_v33  ;;  %v1455_v34 = vsel %vm286_vm0, %v1330_v30, 0.0  ;;  %v1459_v33 = vsel %vm286_vm0, %v1335_v32, 0.0 }
  0x40   :  { %2052 = vst [vmem:[#allocation30_spill] sm:$0xff] %v1443_v41  ;;  %2053 = vst [vmem:[#allocation31_spill] sm:$0xff] %v1447_v4  ;;  %v1463_v41 = vsel %vm286_vm0, %v1338_v43, 0.0  ;;  %v1537_v4 = vmax.f32 %v1211_v0, 0.0  ;;  %v1557_v0 = vmax.f32 %v1232_v10, 0.0 }
  0x41   :  { %2054 = vst [vmem:[#allocation32_spill] sm:$0xff] %v1451_v54  ;;  %2055 = vst [vmem:[#allocation33_spill] sm:$0xff] %v1455_v34  ;;  %v303_v54 = vadd.f32 %v302_v35, %v301_v49  ;;  %v1475_v34 = vsel %vm286_vm0, %v1347_v53, 0.0  ;;  %v1495_v35 = vsel %vm286_vm0, %v1364_v44, 0.0  ;;  %v1499_v49 = vsel %vm286_vm0, %v1367_v15, 0.0 }
  0x42   :  { %2056 = vst [vmem:[#allocation34_spill] sm:$0xff] %v1459_v33  ;;  %2057 = vst [vmem:[#allocation35_spill] sm:$0xff] %v1463_v41  ;;  %v1479_v33 = vsel %vm286_vm0, %v1350_v50, 0.0  ;;  %v1483_v41 = vsel %vm286_vm0, %v1355_v48, 0.0 }
  0x43   :  { %2058 = vst [vmem:[#allocation36_spill] sm:$0xff] %v1467_v27  ;;  %2059 = vst [vmem:[#allocation37_spill] sm:$0xff] %v1471_v63  ;;  %v1487_v27 = vsel %vm286_vm0, %v1358_v29, 0.0  ;;  %v1491_v63 = vsel %vm286_vm0, %v1361_v20, 0.0 }
  0x44   :  { %2060 = vst [vmem:[#allocation38_spill] sm:$0xff] %v1475_v34  ;;  %2061 = vst [vmem:[#allocation39_spill] sm:$0xff] %v1479_v33  ;;  %v305_v33 = vadd.f32 %v304_v56, %v303_v54  ;;  %v235_v34 = vmax.f32 %v1183_v37, 0.0  ;;  %v1519_v56 = vsel %vm286_vm0, %v1381_v28, 0.0  ;;  %v1522_v54 = vmax.f32 %v1191_v46, 0.0 }
  0x45   :  { %2062 = vst [vmem:[#allocation40_spill] sm:$0xff] %v1483_v41  ;;  %2063 = vst [vmem:[#allocation41_spill] sm:$0xff] %v1487_v27  ;;  %v1503_v41 = vsel %vm286_vm0, %v1370_v13, 0.0  ;;  %v1507_v27 = vsel %vm286_vm0, %v1375_v12, 0.0  ;;  %v1531_v37 = vmax.f32 %v1203_v58, 0.0  ;;  %v310_v46 = vsel %vm286_vm0, %v1276_v6, 0.0 }
  0x46   :  { %2064 = vst [vmem:[#allocation42_spill] sm:$0xff] %v1491_v63  ;;  %2065 = vst [vmem:[#allocation43_spill] sm:$0xff] %v1495_v35  ;;  %v1511_v63 = vsel %vm286_vm0, %v1378_v11, 0.0  ;;  %v236_v35 = vmax.f32 %v1187_v45, 0.0  ;;  %v1534_v45 = vmax.f32 %v1207_v59, 0.0  ;;  %v1554_v59 = vmax.f32 %v1229_v9, 0.0 }
  0x47   :  { %2066 = vst [vmem:[#allocation44_spill] sm:$0xff] %v1499_v49  ;;  %2067 = vst [vmem:[#allocation45_spill] sm:$0xff] %v1503_v41  ;;  %v308_v49 = vsel %vm286_vm0, %v1274_v5, 0.0  ;;  %v1528_v41 = vmax.f32 %v1199_v52, 0.0  ;;  %v1548_v52 = vmax.f32 %v1223_v7, 0.0  ;;  %v2087_v7 = vld [vmem:[#allocation16_spill] sm:$0xff] }
  0x48   :  { %2068 = vst [vmem:[#allocation46_spill] sm:$0xff] %v1507_v27  ;;  %2069 = vst [vmem:[#allocation47_spill] sm:$0xff] %v1511_v63  ;;  %v1525_v27 = vmax.f32 %v1195_v51, 0.0  ;;  %v307_v63 = vadd.f32 %v306_v55, %v305_v33  ;;  %v1545_v51 = vmax.f32 %v1219_v2, 0.0  ;;  %v1551_v55 = vmax.f32 %v1226_v8, 0.0  ;;  %v2085_v2 = vld [vmem:[#allocation15_spill] sm:$0xff] }
  0x49   :  { %2070 = vst [vmem:[#allocation48_spill] sm:$0xff] %v1519_v56  ;;  %2071 = vst [vmem:[#allocation49_spill] sm:$0xff] %v1522_v54  ;;  %v1542_v56 = vmax.f32 %v1215_v1, 0.0  ;;  %v312_v33 = vsel %vm286_vm0, %v235_v34, 0.0  ;;  %v2083_v1 = vld [vmem:[#allocation14_spill] sm:$0xff]  ;;  %v1564_v28 = vmax.f32 %v2085_v2, 0.0 }
  0x4a   :  { %2072 = vst [vmem:[#allocation50_spill] sm:$0xff] %v1525_v27  ;;  %2073 = vst [vmem:[#allocation51_spill] sm:$0xff] %v1528_v41  ;;  %v309_v58 = vadd.f32 %v308_v49, %v307_v63  ;;  %v1561_v31 = vmax.f32 %v2083_v1, 0.0  ;;  %v1567_v11 = vmax.f32 %v2087_v7, 0.0  ;;  %v2089_v8 = vld [vmem:[#allocation17_spill] sm:$0xff]  ;;  %v2091_v9 = vld [vmem:[#allocation18_spill] sm:$0xff] }
  0x4b   :  { %2074 = vst [vmem:[#allocation52_spill] sm:$0xff] %v1531_v37  ;;  %2075 = vst [vmem:[#allocation53_spill] sm:$0xff] %v1534_v45  ;;  %v1570_v49 = vmax.f32 %v2089_v8, 0.0  ;;  %v1573_v12 = vmax.f32 %v2091_v9, 0.0  ;;  %v314_v10 = vsel %vm286_vm0, %v236_v35, 0.0  ;;  %v316_v13 = vsel %vm286_vm0, %v1522_v54, 0.0 }
  0x4c   :  { %2076 = vst [vmem:[#allocation54_spill] sm:$0xff] %v1537_v4  ;;  %2077 = vst [vmem:[#allocation55_spill] sm:$0xff] %v1542_v56  ;;  %v311_v63 = vadd.f32 %v310_v46, %v309_v58  ;;  %v318_v2 = vsel %vm286_vm0, %v1525_v27, 0.0  ;;  %v320_v7 = vsel %vm286_vm0, %v1528_v41, 0.0  ;;  %v322_v46 = vsel %vm286_vm0, %v1531_v37, 0.0  ;;  %v2097_v27 = vld [vmem:[#allocation22_spill] sm:$0xff] }
  0x4d   :  { %2078 = vst [vmem:[#allocation56_spill] sm:$0xff] %v1545_v51  ;;  %2079 = vst [vmem:[#allocation57_spill] sm:$0xff] %v1548_v52  ;;  %v324_v58 = vsel %vm286_vm0, %v1534_v45, 0.0  ;;  %v326_v8 = vsel %vm286_vm0, %v1537_v4, 0.0  ;;  %v328_v9 = vsel %vm286_vm0, %v1542_v56, 0.0  ;;  %v1596_v41 = vsel %vm286_vm0, %v1548_v52, 0.0 }
  0x4e   :  { %2080 = vst [vmem:[#allocation58_spill] sm:$0xff] %v1551_v55  ;;  %2081 = vst [vmem:[#allocation59_spill] sm:$0xff] %v1554_v59  ;;  %v313_v1 = vadd.f32 %v312_v33, %v311_v63  ;;  %v1592_v33 = vsel %vm286_vm0, %v1545_v51, 0.0  ;;  %v1600_v37 = vsel %vm286_vm0, %v1551_v55, 0.0  ;;  %v1604_v45 = vsel %vm286_vm0, %v1554_v59, 0.0  ;;  %v2095_v52 = vld [vmem:[#allocation20_spill] sm:$0xff] }
  0x4f   :  { %2082 = vst [vmem:[#allocation60_spill] sm:$0xff] %v1557_v0  ;;  %2084 = vst [vmem:[#allocation14_spill] sm:$0xff] %v1561_v31  ;;  %v1608_v56 = vsel %vm286_vm0, %v1557_v0, 0.0  ;;  %v1612_v51 = vsel %vm286_vm0, %v1561_v31, 0.0  ;;  %v1624_v59 = vsel %vm286_vm0, %v1570_v49, 0.0  ;;  %v422_v0 = vmul.f32 %v2095_v52, %v2095_v52  ;;  %v2096_v4 = vld [vmem:[#allocation21_spill] sm:$0xff] }
  0x50   :  { %2086 = vst [vmem:[#allocation15_spill] sm:$0xff] %v1564_v28  ;;  %2088 = vst [vmem:[#allocation16_spill] sm:$0xff] %v1567_v11  ;;  %v315_v63 = vadd.f32 %v314_v10, %v313_v1  ;;  %v1616_v10 = vsel %vm286_vm0, %v1564_v28, 0.0  ;;  %v1620_v1 = vsel %vm286_vm0, %v1567_v11, 0.0  ;;  %v423_v31 = vmul.f32 %v2096_v4, %v2096_v4  ;;  %v2098_v28 = vld [vmem:[#allocation23_spill] sm:$0xff]  ;;  %v2100_v4 = vld [vmem:[#allocation25_spill] sm:$0xff] }
  0x51   :  { %2090 = vst [vmem:[#allocation17_spill] sm:$0xff] %v1570_v49  ;;  %2092 = vst [vmem:[#allocation18_spill] sm:$0xff] %v1573_v12  ;;  %v424_v54 = vmul.f32 %v2097_v27, %v2097_v27  ;;  %v425_v12 = vmul.f32 %v2098_v28, %v2098_v28  ;;  %v428_v49 = vmul.f32 %v1264_v61, %v1264_v61 }
  0x52   :  { %2093 = vst [vmem:[#allocation61_spill] sm:$0xff] %v1616_v10  ;;  %v317_v55 = vadd.f32 %v316_v13, %v315_v63  ;;  %2094 = vst [vmem:[#allocation62_spill] sm:$0xff] %v1624_v59  ;;  %v2099_v10 = vld [vmem:[#allocation24_spill] sm:$0xff]  ;;  %v427_v13 = vmul.f32 %v1262_v60, %v1262_v60  ;;  %v429_v52 = vmul.f32 %v1266_v3, %v1266_v3 }
  0x53   :  { %v426_v11 = vmul.f32 %v2099_v10, %v2099_v10  ;;  %v430_v59 = vmul.f32 %v2100_v4, %v2100_v4  ;;  %v431_v27 = vmul.f32 %v1270_v14, %v1270_v14  ;;  %v432_v28 = vmul.f32 %v1272_v62, %v1272_v62 }
  0x54   :  { %v319_v63 = vadd.f32 %v318_v2, %v317_v55  ;;  %v433_v10 = vmul.f32 %v1274_v5, %v1274_v5  ;;  %v434_v60 = vmul.f32 %v1276_v6, %v1276_v6  ;;  %v1652_v61 = vmul.f32 %v235_v34, %v235_v34 }
  0x55   :  { %v1654_v2 = vmul.f32 %v236_v35, %v236_v35  ;;  %v455_v3 = vmul.f32 %v1279_v36, %v1279_v36  ;;  %v456_v14 = vmul.f32 %v1282_v40, %v1282_v40  ;;  %v457_v62 = vmul.f32 %v1285_v57, %v1285_v57 }
  0x56   :  { %v321_v55 = vadd.f32 %v320_v7, %v319_v63  ;;  %v458_v5 = vmul.f32 %v1288_v42, %v1288_v42  ;;  %v459_v6 = vmul.f32 %v1291_v47, %v1291_v47  ;;  %v460_v34 = vmul.f32 %v1294_v16, %v1294_v16 }
  0x57   :  { %v461_v35 = vmul.f32 %v1297_v17, %v1297_v17  ;;  %v462_v36 = vmul.f32 %v1300_v23, %v1300_v23  ;;  %v463_v40 = vmul.f32 %v1303_v24, %v1303_v24  ;;  %v464_v57 = vmul.f32 %v1306_v25, %v1306_v25 }
  0x58   :  { %v323_v7 = vadd.f32 %v322_v46, %v321_v55  ;;  %v465_v42 = vmul.f32 %v1315_v21, %v1315_v21  ;;  %v486_v47 = vsel %vm286_vm0, %v422_v0, 0.0  ;;  %v466_v16 = vmul.f32 %v1318_v22, %v1318_v22  ;;  %v2101_v55 = vld [vmem:[#allocation2_spill] sm:$0xff] }
  0x59   :  { %v487_v17 = vsel %vm286_vm0, %v423_v31, 0.0  ;;  %v489_v63 = vsel %vm286_vm0, %v424_v54, 0.0  ;;  %v467_v23 = vmul.f32 %v1321_v26, %v1321_v26  ;;  %v468_v24 = vmul.f32 %v1324_v18, %v1324_v18 }
  0x5a   :  { %v325_v46 = vadd.f32 %v324_v58, %v323_v7  ;;  %v469_v25 = vmul.f32 %v1327_v19, %v1327_v19  ;;  %v488_v21 = vadd.f32 %v487_v17, %v486_v47  ;;  %v470_v0 = vmul.f32 %v1330_v30, %v1330_v30  ;;  %v2102_v7 = vld [vmem:[#allocation3_spill] sm:$0xff]  ;;  %v2103_v47 = vld [vmem:[#allocation4_spill] sm:$0xff]  ;;  %v2104_v17 = vld [vmem:[#allocation5_spill] sm:$0xff] }
  0x5b   :  { %v471_v22 = vmul.f32 %v1335_v32, %v1335_v32  ;;  %v491_v31 = vsel %vm286_vm0, %v425_v12, 0.0  ;;  %v472_v54 = vmul.f32 %v1338_v43, %v1338_v43  ;;  %v473_v26 = vmul.f32 %v1341_v38, %v1341_v38 }
  0x5c   :  { %v327_v4 = vadd.f32 %v326_v8, %v325_v46  ;;  %v474_v18 = vmul.f32 %v1344_v39, %v1344_v39  ;;  %v490_v19 = vadd.f32 %v489_v63, %v488_v21  ;;  %v475_v8 = vmul.f32 %v1347_v53, %v1347_v53 }
  0x5d   :  { %v476_v30 = vmul.f32 %v1350_v50, %v1350_v50  ;;  %v493_v32 = vsel %vm286_vm0, %v426_v11, 0.0  ;;  %v477_v12 = vmul.f32 %v1355_v48, %v1355_v48  ;;  %v478_v43 = vmul.f32 %v1358_v29, %v1358_v29 }
  0x5e   :  { %v329_v58 = vadd.f32 %v328_v9, %v327_v4  ;;  %v479_v38 = vmul.f32 %v1361_v20, %v1361_v20  ;;  %v492_v39 = vadd.f32 %v491_v31, %v490_v19  ;;  %v480_v53 = vmul.f32 %v1364_v44, %v1364_v44 }
  0x5f   :  { %v481_v50 = vmul.f32 %v1367_v15, %v1367_v15  ;;  %v495_v11 = vsel %vm286_vm0, %v427_v13, 0.0  ;;  %v482_v48 = vmul.f32 %v2101_v55, %v2101_v55  ;;  %v483_v29 = vmul.f32 %v2102_v7, %v2102_v7 }
  0x60   :  { %v331_v9 = vadd.f32 %v1592_v33, %v329_v58  ;;  %v484_v20 = vmul.f32 %v2103_v47, %v2103_v47  ;;  %v494_v46 = vadd.f32 %v493_v32, %v492_v39  ;;  %v485_v44 = vmul.f32 %v2104_v17, %v2104_v17  ;;  %v2106_v47 = vld [vmem:[#allocation19_spill] sm:$0xff] }
  0x61   :  { %v497_v63 = vsel %vm286_vm0, %v428_v49, 0.0  ;;  %v499_v15 = vsel %vm286_vm0, %v429_v52, 0.0  ;;  %v501_v21 = vsel %vm286_vm0, %v430_v59, 0.0  ;;  %v503_v4 = vsel %vm286_vm0, %v431_v27, 0.0 }
  0x62   :  { %v333_v33 = vadd.f32 %v1596_v41, %v331_v9  ;;  %v496_v13 = vadd.f32 %v495_v11, %v494_v46  ;;  %v505_v31 = vsel %vm286_vm0, %v432_v28, 0.0  ;;  %v507_v58 = vsel %vm286_vm0, %v433_v10, 0.0  ;;  %v2107_v46 = vld [vmem:[#allocation18_spill] sm:$0xff] }
  0x63   :  { %v509_v41 = vsel %vm286_vm0, %v434_v60, 0.0  ;;  %v1735_v32 = vsel %vm286_vm0, %v455_v3, 0.0  ;;  %v1738_v49 = vsel %vm286_vm0, %v456_v14, 0.0  ;;  %v1741_v52 = vsel %vm286_vm0, %v457_v62, 0.0 }
  0x64   :  { %v335_v19 = vadd.f32 %v1600_v37, %v333_v33  ;;  %v498_v39 = vadd.f32 %v497_v63, %v496_v13  ;;  %v1744_v59 = vsel %vm286_vm0, %v458_v5, 0.0  ;;  %v1748_v37 = vsel %vm286_vm0, %v459_v6, 0.0  ;;  %v2109_v63 = vld [vmem:[#allocation49_spill] sm:$0xff]  ;;  %v2110_v13 = vld [vmem:[#allocation50_spill] sm:$0xff] }
  0x65   :  { %v1751_v28 = vsel %vm286_vm0, %v460_v34, 0.0  ;;  %v1754_v10 = vsel %vm286_vm0, %v461_v35, 0.0  ;;  %v1757_v3 = vsel %vm286_vm0, %v462_v36, 0.0  ;;  %v1760_v14 = vsel %vm286_vm0, %v463_v40, 0.0 }
  0x66   :  { %v337_v27 = vadd.f32 %v1604_v45, %v335_v19  ;;  %v500_v60 = vadd.f32 %v499_v15, %v498_v39  ;;  %v1763_v62 = vsel %vm286_vm0, %v464_v57, 0.0  ;;  %v1767_v5 = vsel %vm286_vm0, %v465_v42, 0.0 }
  0x67   :  { %v1770_v6 = vsel %vm286_vm0, %v466_v16, 0.0  ;;  %v1773_v34 = vsel %vm286_vm0, %v467_v23, 0.0  ;;  %v1776_v36 = vsel %vm286_vm0, %v468_v24, 0.0  ;;  %v1779_v40 = vsel %vm286_vm0, %v469_v25, 0.0 }
  0x68   :  { %v339_v45 = vadd.f32 %v1608_v56, %v337_v27  ;;  %v502_v35 = vadd.f32 %v501_v21, %v500_v60  ;;  %v1782_v57 = vsel %vm286_vm0, %v470_v0, 0.0  ;;  %v1786_v42 = vsel %vm286_vm0, %v471_v22, 0.0 }
  0x69   :  { %v1789_v16 = vsel %vm286_vm0, %v472_v54, 0.0  ;;  %v1792_v23 = vsel %vm286_vm0, %v473_v26, 0.0  ;;  %v1795_v24 = vsel %vm286_vm0, %v474_v18, 0.0  ;;  %v1798_v25 = vsel %vm286_vm0, %v475_v8, 0.0 }
  0x6a   :  { %v341_v56 = vadd.f32 %v1612_v51, %v339_v45  ;;  %v504_v9 = vadd.f32 %v503_v4, %v502_v35  ;;  %v1801_v0 = vsel %vm286_vm0, %v476_v30, 0.0  ;;  %v2105_v51 = vld [vmem:[#allocation61_spill] sm:$0xff]  ;;  %v1805_v22 = vsel %vm286_vm0, %v477_v12, 0.0  ;;  %v2113_v35 = vld [vmem:[#allocation52_spill] sm:$0xff] }
  0x6b   :  { %v1808_v54 = vsel %vm286_vm0, %v478_v43, 0.0  ;;  %v1811_v26 = vsel %vm286_vm0, %v479_v38, 0.0  ;;  %v1814_v18 = vsel %vm286_vm0, %v480_v53, 0.0  ;;  %v1817_v8 = vsel %vm286_vm0, %v481_v50, 0.0 }
  0x6c   :  { %v343_v11 = vadd.f32 %v2105_v51, %v341_v56  ;;  %v506_v55 = vadd.f32 %v505_v31, %v504_v9  ;;  %v1820_v30 = vsel %vm286_vm0, %v482_v48, 0.0  ;;  %v1824_v12 = vsel %vm286_vm0, %v483_v29, 0.0  ;;  %v2108_v48 = vld [vmem:[#allocation62_spill] sm:$0xff]  ;;  %v2114_v51 = vld [vmem:[#allocation7_spill] sm:$0xff] }
  0x6d   :  { %v1827_v43 = vsel %vm286_vm0, %v484_v20, 0.0  ;;  %v1830_v38 = vsel %vm286_vm0, %v485_v44, 0.0  ;;  %v1833_v53 = vmax.f32 %v2106_v47, 0.0  ;;  %v348_v50 = vsel %vm286_vm0, %v2107_v46, 0.0 }
  0x6e   :  { %v345_v7 = vadd.f32 %v1620_v1, %v343_v11  ;;  %v508_v33 = vadd.f32 %v507_v58, %v506_v55  ;;  %v437_v1 = vmul.f32 %v2109_v63, %v2109_v63  ;;  %v511_v29 = vsel %vm286_vm0, %v1652_v61, 0.0  ;;  %v2111_v58 = vld [vmem:[#allocation51_spill] sm:$0xff]  ;;  %v2112_v61 = vld [vmem:[#allocation6_spill] sm:$0xff]  ;;  %v2115_v55 = vld [vmem:[#allocation53_spill] sm:$0xff] }
  0x6f   :  { %v350_v20 = vsel %vm286_vm0, %v1833_v53, 0.0  ;;  %v438_v21 = vmul.f32 %v2110_v13, %v2110_v13  ;;  %v513_v4 = vsel %vm286_vm0, %v1654_v2, 0.0  ;;  %v439_v39 = vmul.f32 %v2111_v58, %v2111_v58 }
  0x70   :  { %v347_v17 = vadd.f32 %v2108_v48, %v345_v7  ;;  %v510_v44 = vadd.f32 %v509_v41, %v508_v33  ;;  %v515_v27 = vsel %vm286_vm0, %v437_v1, 0.0  ;;  %v440_v41 = vmul.f32 %v2113_v35, %v2113_v35  ;;  %v2117_v48 = vld [vmem:[#allocation54_spill] sm:$0xff] }
  0x71   :  { %v517_v56 = vsel %vm286_vm0, %v438_v21, 0.0  ;;  %v441_v2 = vmul.f32 %v2115_v55, %v2115_v55  ;;  %v519_v7 = vsel %vm286_vm0, %v439_v39, 0.0 }
  0x72   :  { %v349_v15 = vadd.f32 %v348_v50, %v347_v17  ;;  %v512_v31 = vadd.f32 %v511_v29, %v510_v44  ;;  %v2116_v50 = vld [vmem:[#allocation8_spill] sm:$0xff]  ;;  %v442_v17 = vmul.f32 %v2117_v48, %v2117_v48  ;;  %v521_v63 = vsel %vm286_vm0, %v440_v41, 0.0  ;;  %v2118_v29 = vld [vmem:[#allocation9_spill] sm:$0xff]  ;;  %v2119_v44 = vld [vmem:[#allocation55_spill] sm:$0xff] }
  0x73   :  { %v523_v13 = vsel %vm286_vm0, %v441_v2, 0.0 }
  0x74   :  { %v351_v19 = vadd.f32 %v350_v20, %v349_v15  ;;  %v514_v60 = vadd.f32 %v513_v4, %v512_v31  ;;  %v443_v15 = vmul.f32 %v2119_v44, %v2119_v44  ;;  %v2120_v4 = vld [vmem:[#allocation10_spill] sm:$0xff]  ;;  %v525_v39 = vsel %vm286_vm0, %v442_v17, 0.0 }
  0x76   :  { %v353_v45 = vadd.f32 %v2112_v61, %v351_v19  ;;  %v516_v9 = vadd.f32 %v515_v27, %v514_v60  ;;  %v2121_v19 = vld [vmem:[#allocation56_spill] sm:$0xff]  ;;  %v2122_v60 = vld [vmem:[#allocation11_spill] sm:$0xff]  ;;  %v527_v41 = vsel %vm286_vm0, %v443_v15, 0.0 }
  0x77   :  { %v444_v58 = vmul.f32 %v2121_v19, %v2121_v19 }
  0x78   :  { %v355_v11 = vadd.f32 %v2114_v51, %v353_v45  ;;  %v518_v47 = vadd.f32 %v517_v56, %v516_v9  ;;  %v2123_v45 = vld [vmem:[#allocation57_spill] sm:$0xff]  ;;  %v2124_v9 = vld [vmem:[#allocation12_spill] sm:$0xff] }
  0x79   :  { %v445_v35 = vmul.f32 %v2123_v45, %v2123_v45  ;;  %v529_v2 = vsel %vm286_vm0, %v444_v58, 0.0 }
  0x7a   :  { %v357_v33 = vadd.f32 %v2116_v50, %v355_v11  ;;  %v520_v1 = vadd.f32 %v519_v7, %v518_v47  ;;  %v2125_v11 = vld [vmem:[#allocation58_spill] sm:$0xff]  ;;  %v2126_v47 = vld [vmem:[#allocation13_spill] sm:$0xff] }
  0x7b   :  { %v446_v55 = vmul.f32 %v2125_v11, %v2125_v11  ;;  %v531_v17 = vsel %vm286_vm0, %v445_v35, 0.0 }
  0x7c   :  { %v359_v20 = vadd.f32 %v2118_v29, %v357_v33  ;;  %v522_v21 = vadd.f32 %v521_v63, %v520_v1  ;;  %v2127_v33 = vld [vmem:[#allocation59_spill] sm:$0xff]  ;;  %v2128_v1 = vld [vmem:[#allocation26_spill] sm:$0xff] }
  0x7d   :  { %v447_v48 = vmul.f32 %v2127_v33, %v2127_v33  ;;  %v533_v15 = vsel %vm286_vm0, %v446_v55, 0.0 }
  0x7e   :  { %v361_v31 = vadd.f32 %v2120_v4, %v359_v20  ;;  %v524_v27 = vadd.f32 %v523_v13, %v522_v21  ;;  %v2129_v20 = vld [vmem:[#allocation60_spill] sm:$0xff]  ;;  %v2130_v21 = vld [vmem:[#allocation27_spill] sm:$0xff] }
  0x7f   :  { %v448_v44 = vmul.f32 %v2129_v20, %v2129_v20  ;;  %v535_v58 = vsel %vm286_vm0, %v447_v48, 0.0 }
  0x80   :  { %v363_v61 = vadd.f32 %v2122_v60, %v361_v31  ;;  %v526_v56 = vadd.f32 %v525_v39, %v524_v27  ;;  %v2131_v31 = vld [vmem:[#allocation14_spill] sm:$0xff]  ;;  %v2132_v27 = vld [vmem:[#allocation28_spill] sm:$0xff] }
  0x81   :  { %v449_v19 = vmul.f32 %v2131_v31, %v2131_v31  ;;  %v537_v35 = vsel %vm286_vm0, %v448_v44, 0.0 }
  0x82   :  { %v365_v51 = vadd.f32 %v2124_v9, %v363_v61  ;;  %v528_v7 = vadd.f32 %v527_v41, %v526_v56  ;;  %v2133_v61 = vld [vmem:[#allocation15_spill] sm:$0xff]  ;;  %v2134_v56 = vld [vmem:[#allocation29_spill] sm:$0xff] }
  0x83   :  { %v450_v45 = vmul.f32 %v2133_v61, %v2133_v61  ;;  %v539_v55 = vsel %vm286_vm0, %v449_v19, 0.0  ;;  %v2140_v19 = vld [vmem:[#allocation33_spill] sm:$0xff] }
  0x84   :  { %v367_v50 = vadd.f32 %v2126_v47, %v365_v51  ;;  %v530_v63 = vadd.f32 %v529_v2, %v528_v7  ;;  %v2135_v51 = vld [vmem:[#allocation16_spill] sm:$0xff]  ;;  %v2136_v7 = vld [vmem:[#allocation30_spill] sm:$0xff] }
  0x85   :  { %v451_v11 = vmul.f32 %v2135_v51, %v2135_v51  ;;  %v541_v48 = vsel %vm286_vm0, %v450_v45, 0.0 }
  0x86   :  { %v369_v29 = vadd.f32 %v2128_v1, %v367_v50  ;;  %v532_v13 = vadd.f32 %v531_v17, %v530_v63  ;;  %v2137_v50 = vld [vmem:[#allocation17_spill] sm:$0xff]  ;;  %v2138_v63 = vld [vmem:[#allocation31_spill] sm:$0xff] }
  0x87   :  { %v452_v33 = vmul.f32 %v2137_v50, %v2137_v50  ;;  %v543_v20 = vsel %vm286_vm0, %v451_v11, 0.0  ;;  %v2144_v11 = vld [vmem:[#allocation37_spill] sm:$0xff] }
  0x88   :  { %v371_v4 = vadd.f32 %v2130_v21, %v369_v29  ;;  %v534_v39 = vadd.f32 %v533_v15, %v532_v13  ;;  %v453_v29 = vmul.f32 %v2107_v46, %v2107_v46  ;;  %v2139_v15 = vld [vmem:[#allocation32_spill] sm:$0xff]  ;;  %v454_v21 = vmul.f32 %v1833_v53, %v1833_v53 }
  0x8a   :  { %v373_v60 = vadd.f32 %v2132_v27, %v371_v4  ;;  %v536_v41 = vadd.f32 %v535_v58, %v534_v39  ;;  %v545_v4 = vsel %vm286_vm0, %v452_v33, 0.0  ;;  %v547_v39 = vsel %vm286_vm0, %v453_v29, 0.0  ;;  %v2146_v33 = vld [vmem:[#allocation39_spill] sm:$0xff] }
  0x8b   :  { %v549_v46 = vsel %vm286_vm0, %v454_v21, 0.0  ;;  %v2150_v21 = vld [vmem:[#allocation43_spill] sm:$0xff] }
  0x8c   :  { %v375_v9 = vadd.f32 %v2134_v56, %v373_v60  ;;  %v538_v2 = vadd.f32 %v537_v35, %v536_v41  ;;  %v2141_v60 = vld [vmem:[#allocation34_spill] sm:$0xff]  ;;  %v2142_v35 = vld [vmem:[#allocation35_spill] sm:$0xff] }
  0x8e   :  { %v377_v47 = vadd.f32 %v2136_v7, %v375_v9  ;;  %v540_v17 = vadd.f32 %v539_v55, %v538_v2  ;;  %v2143_v9 = vld [vmem:[#allocation36_spill] sm:$0xff]  ;;  %v2145_v7 = vld [vmem:[#allocation38_spill] sm:$0xff] }
  0x90   :  { %v379_v1 = vadd.f32 %v2138_v63, %v377_v47  ;;  %v542_v44 = vadd.f32 %v541_v48, %v540_v17  ;;  %v2147_v63 = vld [vmem:[#allocation40_spill] sm:$0xff] }
  0x92   :  { %v381_v13 = vadd.f32 %v2139_v15, %v379_v1  ;;  %v544_v31 = vadd.f32 %v543_v20, %v542_v44  ;;  %v2148_v20 = vld [vmem:[#allocation41_spill] sm:$0xff]  ;;  %v2149_v15 = vld [vmem:[#allocation42_spill] sm:$0xff] }
  0x94   :  { %v383_v58 = vadd.f32 %v2140_v19, %v381_v13  ;;  %v546_v27 = vadd.f32 %v545_v4, %v544_v31  ;;  %v2151_v31 = vld [vmem:[#allocation44_spill] sm:$0xff] }
  0x96   :  { %v385_v61 = vadd.f32 %v2141_v60, %v383_v58  ;;  %v548_v45 = vadd.f32 %v547_v39, %v546_v27  ;;  %v2152_v58 = vld [vmem:[#allocation45_spill] sm:$0xff]  ;;  %v2153_v27 = vld [vmem:[#allocation46_spill] sm:$0xff] }
  0x98   :  { %v387_v41 = vadd.f32 %v2142_v35, %v385_v61  ;;  %v550_v56 = vadd.f32 %v549_v46, %v548_v45  ;;  %v2154_v61 = vld [vmem:[#allocation47_spill] sm:$0xff]  ;;  %v2155_v45 = vld [vmem:[#allocation48_spill] sm:$0xff] }
  0x9a   :  { %v389_v51 = vadd.f32 %v2143_v9, %v387_v41  ;;  %v552_v53 = vadd.f32 %v1735_v32, %v550_v56 }
  0x9c   :  { %v391_v55 = vadd.f32 %v2144_v11, %v389_v51  ;;  %v554_v2 = vadd.f32 %v1738_v49, %v552_v53 }
  0x9e   :  { %v393_v47 = vadd.f32 %v2145_v7, %v391_v55  ;;  %v556_v50 = vadd.f32 %v1741_v52, %v554_v2 }
  0xa0   :  { %v395_v48 = vadd.f32 %v2146_v33, %v393_v47  ;;  %v558_v17 = vadd.f32 %v1744_v59, %v556_v50 }
  0xa2   :  { %v397_v1 = vadd.f32 %v2147_v63, %v395_v48  ;;  %v560_v29 = vadd.f32 %v1748_v37, %v558_v17 }
  0xa4   :  { %v399_v44 = vadd.f32 %v2148_v20, %v397_v1  ;;  %v562_v32 = vadd.f32 %v1751_v28, %v560_v29 }
  0xa6   :  { %v401_v13 = vadd.f32 %v2149_v15, %v399_v44  ;;  %v564_v49 = vadd.f32 %v1754_v10, %v562_v32 }
  0xa8   :  { %v403_v4 = vadd.f32 %v2150_v21, %v401_v13  ;;  %v566_v52 = vadd.f32 %v1757_v3, %v564_v49 }
  0xaa   :  { %v405_v19 = vadd.f32 %v2151_v31, %v403_v4  ;;  %v568_v59 = vadd.f32 %v1760_v14, %v566_v52 }
  0xac   :  { %v407_v39 = vadd.f32 %v2152_v58, %v405_v19  ;;  %v570_v37 = vadd.f32 %v1763_v62, %v568_v59 }
  0xae   :  { %v409_v60 = vadd.f32 %v2153_v27, %v407_v39  ;;  %v572_v28 = vadd.f32 %v1767_v5, %v570_v37 }
  0xb0   :  { %v411_v46 = vadd.f32 %v2154_v61, %v409_v60  ;;  %v574_v10 = vadd.f32 %v1770_v6, %v572_v28 }
  0xb2   :  { %v413_v35 = vadd.f32 %v2155_v45, %v411_v46  ;;  %v576_v3 = vadd.f32 %v1773_v34, %v574_v10 }
  0xb4   :  { %v414_v41 = vrot.slane %v413_v35, 4  ;;  %v578_v56 = vadd.f32 %v1776_v36, %v576_v3 }
  0xb6   :  { %v415_v14 = vadd.f32 %v414_v41, %v413_v35  ;;  %v580_v9 = vadd.f32 %v1779_v40, %v578_v56 }
  0xb8   :  { %v416_v51 = vrot.slane %v415_v14, 2  ;;  %v582_v62 = vadd.f32 %v1782_v57, %v580_v9 }
  0xba   :  { %v417_v53 = vadd.f32 %v416_v51, %v415_v14  ;;  %v584_v5 = vadd.f32 %v1786_v42, %v582_v62 }
  0xbc   :  { %v418_v11 = vrot.slane %v417_v53, 1  ;;  %v586_v6 = vadd.f32 %v1789_v16, %v584_v5 }
  0xbe   :  { %v419_v55 = vadd.f32 %v418_v11, %v417_v53  ;;  %v588_v2 = vadd.f32 %v1792_v23, %v586_v6 }
  0xc0   :  { %421 = vst.msk [vmem:[%s1971_s3] sm:$0x1] %vm420_vm1, %v419_v55  ;;  %v590_v34 = vadd.f32 %v1795_v24, %v588_v2 }
  0xc2   :  { %v592_v36 = vadd.f32 %v1798_v25, %v590_v34 }
  0xc4   :  { %v594_v40 = vadd.f32 %v1801_v0, %v592_v36 }
  0xc6   :  { %v596_v57 = vadd.f32 %v1805_v22, %v594_v40 }
  0xc8   :  { %v598_v42 = vadd.f32 %v1808_v54, %v596_v57 }
  0xca   :  { %v600_v16 = vadd.f32 %v1811_v26, %v598_v42 }
  0xcc   :  { %v602_v7 = vadd.f32 %v1814_v18, %v600_v16 }
  0xce   :  { %v604_v23 = vadd.f32 %v1817_v8, %v602_v7 }
  0xd0   :  { %v606_v47 = vadd.f32 %v1820_v30, %v604_v23 }
  0xd2   :  { %v608_v50 = vadd.f32 %v1824_v12, %v606_v47 }
  0xd4   :  { %v610_v24 = vadd.f32 %v1827_v43, %v608_v50 }
  0xd6   :  { %v612_v25 = vadd.f32 %v1830_v38, %v610_v24 }
  0xd8   :  { %v613_v33 = vrot.slane %v612_v25, 4 }
  0xda   :  { %v614_v0 = vadd.f32 %v613_v33, %v612_v25 }
  0xdc   :  { %v615_v48 = vrot.slane %v614_v0, 2 }
  0xde   :  { %v616_v22 = vadd.f32 %v615_v48, %v614_v0 }
  0xe0   :  { %v617_v17 = vrot.slane %v616_v22, 1 }
  0xe2   :  { %v618_v54 = vadd.f32 %v617_v17, %v616_v22 }
  0xe4   :  { %619 = vst.msk [vmem:[%s1972_s4] sm:$0x1] %vm420_vm1, %v618_v54 }

// kernel: resnet_block.17
= control target key start
LH: loop header
LB: loop body
LE: loop exit
PB: predicated region body
PF: predicated region fallthrough
CT: control target
= control target key end

     0   :  { %vm351_vm0 = vcmask 64512   ;;  %s1225_s0 = inlined_call_operand.vmem [shape: f32[512,8], index: 0, kind: input, shape index: {}]   ;;  %s1226_s1 = inlined_call_operand.vmem [shape: f32[1,8], index: 1, kind: input, shape index: {}]   ;;  %s1227_s2 = inlined_call_operand.vmem [shape: f32[1,8], index: 2, kind: input, shape index: {}]   ;;  %s1228_s3 = inlined_call_operand.vmem [shape: f32[512,8], index: 3, kind: input, shape index: {}]   ;;  %s1229_s4 = inlined_call_operand.vmem [shape: f32[512,8], index: 4, kind: output, shape index: {}]  }
   0x1   :  { %v17_v0 = vld [vmem:[%s1228_s3] sm:$0xff]  ;;  %v18_v5 = vld [vmem:[%s1228_s3 + $0x8] sm:$0xff]  ;;  %v19_v8 = vld [vmem:[%s1228_s3 + $0x10] sm:$0xff] }
   0x2   :  { %v81_v1 = vld [vmem:[%s1225_s0] sm:$0xff]  ;;  %v82_v6 = vld [vmem:[%s1225_s0 + $0x8] sm:$0xff]  ;;  %v83_v9 = vld [vmem:[%s1225_s0 + $0x10] sm:$0xff] }
   0x3   :  { %v456_v2 = vld [vmem:[%s1226_s1] ss:$0 sm:$0xff]  ;;  %v20_v10 = vld [vmem:[%s1228_s3 + $0x18] sm:$0xff]  ;;  %v22_v19 = vld [vmem:[%s1228_s3 + $0x28] sm:$0xff] }
   0x4   :  { %v152_v3 = vmul.f32 %v456_v2, %v81_v1  ;;  %v462_v4 = vld [vmem:[%s1227_s2] ss:$0 sm:$0xff]  ;;  %v153_v7 = vmul.f32 %v456_v2, %v82_v6  ;;  %v154_v12 = vmul.f32 %v456_v2, %v83_v9  ;;  %v84_v13 = vld [vmem:[%s1225_s0 + $0x18] sm:$0xff]  ;;  %v86_v20 = vld [vmem:[%s1225_s0 + $0x28] sm:$0xff] }
   0x5   :  { %v21_v14 = vld [vmem:[%s1228_s3 + $0x20] sm:$0xff]  ;;  %v155_v17 = vmul.f32 %v456_v2, %v84_v13  ;;  %v157_v23 = vmul.f32 %v456_v2, %v86_v20  ;;  %v23_v24 = vld [vmem:[%s1228_s3 + $0x30] sm:$0xff]  ;;  %v88_v26 = vld [vmem:[%s1225_s0 + $0x38] sm:$0xff] }
   0x6   :  { %v216_v11 = vadd.f32 %v152_v3, %v17_v0  ;;  %v85_v15 = vld [vmem:[%s1225_s0 + $0x20] sm:$0xff]  ;;  %v217_v16 = vadd.f32 %v153_v7, %v18_v5  ;;  %v218_v22 = vadd.f32 %v154_v12, %v19_v8  ;;  %v87_v25 = vld [vmem:[%s1225_s0 + $0x30] sm:$0xff]  ;;  %v24_v31 = vld [vmem:[%s1228_s3 + $0x38] sm:$0xff]  ;;  %v159_v36 = vmul.f32 %v456_v2, %v88_v26 }
   0x7   :  { %v156_v18 = vmul.f32 %v456_v2, %v85_v15  ;;  %v219_v28 = vadd.f32 %v155_v17, %v20_v10  ;;  %v158_v30 = vmul.f32 %v456_v2, %v87_v25  ;;  %v25_v32 = vld [vmem:[%s1228_s3 + $0x40] sm:$0xff]  ;;  %v221_v35 = vadd.f32 %v157_v23, %v22_v19  ;;  %v26_v38 = vld [vmem:[%s1228_s3 + $0x48] sm:$0xff]  ;;  %v91_v40 = vld [vmem:[%s1225_s0 + $0x50] sm:$0xff] }
   0x8   :  { %v287_v21 = vadd.f32 %v462_v4, %v216_v11  ;;  %v288_v27 = vadd.f32 %v462_v4, %v217_v16  ;;  %v89_v33 = vld [vmem:[%s1225_s0 + $0x40] sm:$0xff]  ;;  %v289_v34 = vadd.f32 %v462_v4, %v218_v22  ;;  %v90_v39 = vld [vmem:[%s1225_s0 + $0x48] sm:$0xff]  ;;  %v27_v45 = vld [vmem:[%s1228_s3 + $0x50] sm:$0xff]  ;;  %v223_v49 = vadd.f32 %v159_v36, %v24_v31 }
   0x9   :  { %v220_v29 = vadd.f32 %v156_v18, %v21_v14  ;;  %v160_v37 = vmul.f32 %v456_v2, %v89_v33  ;;  %v290_v41 = vadd.f32 %v462_v4, %v219_v28  ;;  %v222_v43 = vadd.f32 %v158_v30, %v23_v24  ;;  %v28_v46 = vld [vmem:[%s1228_s3 + $0x58] sm:$0xff]  ;;  %v29_v52 = vld [vmem:[%s1228_s3 + $0x60] sm:$0xff]  ;;  %v94_v54 = vld [vmem:[%s1225_s0 + $0x68] sm:$0xff] }
   0xa   :  { %352 = vst.msk [vmem:[%s1229_s4] sm:$0xff] %vm351_vm0, %v287_v21  ;;  %353 = vst.msk [vmem:[%s1229_s4 + $0x8] sm:$0xff] %vm351_vm0, %v288_v27  ;;  %v161_v44 = vmul.f32 %v456_v2, %v90_v39  ;;  %v92_v47 = vld [vmem:[%s1225_s0 + $0x58] sm:$0xff]  ;;  %v292_v48 = vadd.f32 %v462_v4, %v221_v35  ;;  %v162_v51 = vmul.f32 %v456_v2, %v91_v40  ;;  %v93_v53 = vld [vmem:[%s1225_s0 + $0x60] sm:$0xff] }
   0xb   :  { %v291_v42 = vadd.f32 %v462_v4, %v220_v29  ;;  %354 = vst.msk [vmem:[%s1229_s4 + $0x10] sm:$0xff] %vm351_vm0, %v289_v34  ;;  %v224_v50 = vadd.f32 %v160_v37, %v25_v32  ;;  %355 = vst.msk [vmem:[%s1229_s4 + $0x18] sm:$0xff] %vm351_vm0, %v290_v41  ;;  %v293_v55 = vadd.f32 %v462_v4, %v222_v43  ;;  %v30_v59 = vld [vmem:[%s1228_s3 + $0x68] sm:$0xff]  ;;  %v95_v60 = vld [vmem:[%s1225_s0 + $0x70] sm:$0xff] }
   0xc   :  { %v225_v56 = vadd.f32 %v161_v44, %v26_v38  ;;  %v163_v57 = vmul.f32 %v456_v2, %v92_v47  ;;  %v164_v58 = vmul.f32 %v456_v2, %v93_v53  ;;  %357 = vst.msk [vmem:[%s1229_s4 + $0x28] sm:$0xff] %vm351_vm0, %v292_v48  ;;  %v294_v61 = vadd.f32 %v462_v4, %v223_v49  ;;  %v31_v1 = vld [vmem:[%s1228_s3 + $0x70] sm:$0xff]  ;;  %v96_v3 = vld [vmem:[%s1225_s0 + $0x78] sm:$0xff]  ;;  %v97_v5 = vld [vmem:[%s1225_s0 + $0x80] sm:$0xff] }
   0xd   :  { %356 = vst.msk [vmem:[%s1229_s4 + $0x20] sm:$0xff] %vm351_vm0, %v291_v42  ;;  %v295_v62 = vadd.f32 %v462_v4, %v224_v50  ;;  %v226_v63 = vadd.f32 %v162_v51, %v27_v45  ;;  %v165_v0 = vmul.f32 %v456_v2, %v94_v54  ;;  %358 = vst.msk [vmem:[%s1229_s4 + $0x30] sm:$0xff] %vm351_vm0, %v293_v55  ;;  %v32_v10 = vld [vmem:[%s1228_s3 + $0x78] sm:$0xff]  ;;  %v33_v11 = vld [vmem:[%s1228_s3 + $0x80] sm:$0xff] }
   0xe   :  { %v296_v6 = vadd.f32 %v462_v4, %v225_v56  ;;  %v227_v7 = vadd.f32 %v163_v57, %v28_v46  ;;  %v228_v8 = vadd.f32 %v164_v58, %v29_v52  ;;  %v166_v9 = vmul.f32 %v456_v2, %v95_v60  ;;  %v98_v12 = vld [vmem:[%s1225_s0 + $0x88] sm:$0xff]  ;;  %359 = vst.msk [vmem:[%s1229_s4 + $0x38] sm:$0xff] %vm351_vm0, %v294_v61  ;;  %v99_v18 = vld [vmem:[%s1225_s0 + $0x90] sm:$0xff]  ;;  %v100_v19 = vld [vmem:[%s1225_s0 + $0x98] sm:$0xff] }
   0xf   :  { %360 = vst.msk [vmem:[%s1229_s4 + $0x40] sm:$0xff] %vm351_vm0, %v295_v62  ;;  %v297_v13 = vadd.f32 %v462_v4, %v226_v63  ;;  %v229_v14 = vadd.f32 %v165_v0, %v30_v59  ;;  %v167_v15 = vmul.f32 %v456_v2, %v96_v3  ;;  %v168_v16 = vmul.f32 %v456_v2, %v97_v5  ;;  %v34_v17 = vld [vmem:[%s1228_s3 + $0x88] sm:$0xff]  ;;  %v35_v24 = vld [vmem:[%s1228_s3 + $0x90] sm:$0xff]  ;;  %v36_v25 = vld [vmem:[%s1228_s3 + $0x98] sm:$0xff] }
  0x10   :  { %361 = vst.msk [vmem:[%s1229_s4 + $0x48] sm:$0xff] %vm351_vm0, %v296_v6  ;;  %v298_v20 = vadd.f32 %v462_v4, %v227_v7  ;;  %v299_v21 = vadd.f32 %v462_v4, %v228_v8  ;;  %v230_v22 = vadd.f32 %v166_v9, %v31_v1  ;;  %v169_v23 = vmul.f32 %v456_v2, %v98_v12  ;;  %v101_v26 = vld [vmem:[%s1225_s0 + $0xa0] sm:$0xff]  ;;  %v102_v32 = vld [vmem:[%s1225_s0 + $0xa8] sm:$0xff]  ;;  %v103_v33 = vld [vmem:[%s1225_s0 + $0xb0] sm:$0xff] }
  0x11   :  { %362 = vst.msk [vmem:[%s1229_s4 + $0x50] sm:$0xff] %vm351_vm0, %v297_v13  ;;  %v300_v27 = vadd.f32 %v462_v4, %v229_v14  ;;  %v231_v28 = vadd.f32 %v167_v15, %v32_v10  ;;  %v232_v29 = vadd.f32 %v168_v16, %v33_v11  ;;  %v170_v30 = vmul.f32 %v456_v2, %v99_v18  ;;  %v37_v31 = vld [vmem:[%s1228_s3 + $0xa0] sm:$0xff]  ;;  %v38_v38 = vld [vmem:[%s1228_s3 + $0xa8] sm:$0xff]  ;;  %v104_v39 = vld [vmem:[%s1225_s0 + $0xb8] sm:$0xff] }
  0x12   :  { %363 = vst.msk [vmem:[%s1229_s4 + $0x58] sm:$0xff] %vm351_vm0, %v298_v20  ;;  %364 = vst.msk [vmem:[%s1229_s4 + $0x60] sm:$0xff] %vm351_vm0, %v299_v21  ;;  %v301_v34 = vadd.f32 %v462_v4, %v230_v22  ;;  %v233_v35 = vadd.f32 %v169_v23, %v34_v17  ;;  %v171_v36 = vmul.f32 %v456_v2, %v100_v19  ;;  %v39_v44 = vld [vmem:[%s1228_s3 + $0xb0] sm:$0xff]  ;;  %v105_v45 = vld [vmem:[%s1225_s0 + $0xc0] sm:$0xff] }
  0x13   :  { %v172_v37 = vmul.f32 %v456_v2, %v101_v26  ;;  %365 = vst.msk [vmem:[%s1229_s4 + $0x68] sm:$0xff] %vm351_vm0, %v300_v27  ;;  %v302_v40 = vadd.f32 %v462_v4, %v231_v28  ;;  %v303_v41 = vadd.f32 %v462_v4, %v232_v29  ;;  %v234_v42 = vadd.f32 %v170_v30, %v35_v24  ;;  %v106_v46 = vld [vmem:[%s1225_s0 + $0xc8] sm:$0xff]  ;;  %v40_v51 = vld [vmem:[%s1228_s3 + $0xb8] sm:$0xff]  ;;  %v41_v52 = vld [vmem:[%s1228_s3 + $0xc0] sm:$0xff] }
  0x14   :  { %v173_v43 = vmul.f32 %v456_v2, %v102_v32  ;;  %366 = vst.msk [vmem:[%s1229_s4 + $0x70] sm:$0xff] %vm351_vm0, %v301_v34  ;;  %v304_v47 = vadd.f32 %v462_v4, %v233_v35  ;;  %v235_v48 = vadd.f32 %v171_v36, %v36_v25  ;;  %v174_v50 = vmul.f32 %v456_v2, %v103_v33  ;;  %v107_v53 = vld [vmem:[%s1225_s0 + $0xd0] sm:$0xff]  ;;  %v42_v58 = vld [vmem:[%s1228_s3 + $0xc8] sm:$0xff]  ;;  %v108_v59 = vld [vmem:[%s1225_s0 + $0xd8] sm:$0xff] }
  0x15   :  { %v236_v49 = vadd.f32 %v172_v37, %v37_v31  ;;  %367 = vst.msk [vmem:[%s1229_s4 + $0x78] sm:$0xff] %vm351_vm0, %v302_v40  ;;  %368 = vst.msk [vmem:[%s1229_s4 + $0x80] sm:$0xff] %vm351_vm0, %v303_v41  ;;  %v305_v54 = vadd.f32 %v462_v4, %v234_v42  ;;  %v175_v56 = vmul.f32 %v456_v2, %v104_v39  ;;  %v109_v60 = vld [vmem:[%s1225_s0 + $0xe0] sm:$0xff]  ;;  %v43_v1 = vld [vmem:[%s1228_s3 + $0xd0] sm:$0xff] }
  0x16   :  { %v237_v55 = vadd.f32 %v173_v43, %v38_v38  ;;  %v176_v57 = vmul.f32 %v456_v2, %v105_v45  ;;  %369 = vst.msk [vmem:[%s1229_s4 + $0x88] sm:$0xff] %vm351_vm0, %v304_v47  ;;  %v306_v61 = vadd.f32 %v462_v4, %v235_v48  ;;  %v238_v63 = vadd.f32 %v174_v50, %v39_v44  ;;  %v110_v3 = vld [vmem:[%s1225_s0 + $0xe8] sm:$0xff]  ;;  %v44_v9 = vld [vmem:[%s1228_s3 + $0xd8] sm:$0xff]  ;;  %v45_v10 = vld [vmem:[%s1228_s3 + $0xe0] sm:$0xff] }
  0x17   :  { %v307_v62 = vadd.f32 %v462_v4, %v236_v49  ;;  %v177_v0 = vmul.f32 %v456_v2, %v106_v46  ;;  %370 = vst.msk [vmem:[%s1229_s4 + $0x90] sm:$0xff] %vm351_vm0, %v305_v54  ;;  %v239_v6 = vadd.f32 %v175_v56, %v40_v51  ;;  %v178_v8 = vmul.f32 %v456_v2, %v107_v53  ;;  %v111_v11 = vld [vmem:[%s1225_s0 + $0xf0] sm:$0xff]  ;;  %v46_v16 = vld [vmem:[%s1228_s3 + $0xe8] sm:$0xff]  ;;  %v112_v17 = vld [vmem:[%s1225_s0 + $0xf8] sm:$0xff] }
  0x18   :  { %v308_v5 = vadd.f32 %v462_v4, %v237_v55  ;;  %v240_v7 = vadd.f32 %v176_v57, %v41_v52  ;;  %371 = vst.msk [vmem:[%s1229_s4 + $0x98] sm:$0xff] %vm351_vm0, %v306_v61  ;;  %v309_v12 = vadd.f32 %v462_v4, %v238_v63  ;;  %v179_v14 = vmul.f32 %v456_v2, %v108_v59  ;;  %v113_v18 = vld [vmem:[%s1225_s0 + $0x100] sm:$0xff]  ;;  %v47_v23 = vld [vmem:[%s1228_s3 + $0xf0] sm:$0xff]  ;;  %v114_v24 = vld [vmem:[%s1225_s0 + $0x108] sm:$0xff] }
  0x19   :  { %372 = vst.msk [vmem:[%s1229_s4 + $0xa0] sm:$0xff] %vm351_vm0, %v307_v62  ;;  %v241_v13 = vadd.f32 %v177_v0, %v42_v58  ;;  %v180_v15 = vmul.f32 %v456_v2, %v109_v60  ;;  %v310_v19 = vadd.f32 %v462_v4, %v239_v6  ;;  %v242_v21 = vadd.f32 %v178_v8, %v43_v1  ;;  %v48_v29 = vld [vmem:[%s1228_s3 + $0xf8] sm:$0xff]  ;;  %v49_v30 = vld [vmem:[%s1228_s3 + $0x100] sm:$0xff]  ;;  %v115_v31 = vld [vmem:[%s1225_s0 + $0x110] sm:$0xff] }
  0x1a   :  { %373 = vst.msk [vmem:[%s1229_s4 + $0xa8] sm:$0xff] %vm351_vm0, %v308_v5  ;;  %v311_v20 = vadd.f32 %v462_v4, %v240_v7  ;;  %v181_v22 = vmul.f32 %v456_v2, %v110_v3  ;;  %374 = vst.msk [vmem:[%s1229_s4 + $0xb0] sm:$0xff] %vm351_vm0, %v309_v12  ;;  %v243_v26 = vadd.f32 %v179_v14, %v44_v9  ;;  %v50_v36 = vld [vmem:[%s1228_s3 + $0x108] sm:$0xff]  ;;  %v116_v37 = vld [vmem:[%s1225_s0 + $0x118] sm:$0xff] }
  0x1b   :  { %v312_v25 = vadd.f32 %v462_v4, %v241_v13  ;;  %v244_v27 = vadd.f32 %v180_v15, %v45_v10  ;;  %v182_v28 = vmul.f32 %v456_v2, %v111_v11  ;;  %375 = vst.msk [vmem:[%s1229_s4 + $0xb8] sm:$0xff] %vm351_vm0, %v310_v19  ;;  %v313_v32 = vadd.f32 %v462_v4, %v242_v21  ;;  %v117_v38 = vld [vmem:[%s1225_s0 + $0x120] sm:$0xff]  ;;  %v51_v43 = vld [vmem:[%s1228_s3 + $0x110] sm:$0xff]  ;;  %v118_v44 = vld [vmem:[%s1225_s0 + $0x128] sm:$0xff] }
  0x1c   :  { %376 = vst.msk [vmem:[%s1229_s4 + $0xc0] sm:$0xff] %vm351_vm0, %v311_v20  ;;  %v245_v33 = vadd.f32 %v181_v22, %v46_v16  ;;  %v183_v34 = vmul.f32 %v456_v2, %v112_v17  ;;  %v184_v35 = vmul.f32 %v456_v2, %v113_v18  ;;  %v314_v39 = vadd.f32 %v462_v4, %v243_v26  ;;  %v52_v49 = vld [vmem:[%s1228_s3 + $0x118] sm:$0xff]  ;;  %v53_v50 = vld [vmem:[%s1228_s3 + $0x120] sm:$0xff]  ;;  %v119_v51 = vld [vmem:[%s1225_s0 + $0x130] sm:$0xff] }
  0x1d   :  { %377 = vst.msk [vmem:[%s1229_s4 + $0xc8] sm:$0xff] %vm351_vm0, %v312_v25  ;;  %v315_v40 = vadd.f32 %v462_v4, %v244_v27  ;;  %v246_v41 = vadd.f32 %v182_v28, %v47_v23  ;;  %v185_v42 = vmul.f32 %v456_v2, %v114_v24  ;;  %378 = vst.msk [vmem:[%s1229_s4 + $0xd0] sm:$0xff] %vm351_vm0, %v313_v32  ;;  %v54_v56 = vld [vmem:[%s1228_s3 + $0x128] sm:$0xff]  ;;  %v120_v57 = vld [vmem:[%s1225_s0 + $0x138] sm:$0xff] }
  0x1e   :  { %v316_v45 = vadd.f32 %v462_v4, %v245_v33  ;;  %v247_v46 = vadd.f32 %v183_v34, %v48_v29  ;;  %v248_v47 = vadd.f32 %v184_v35, %v49_v30  ;;  %v186_v48 = vmul.f32 %v456_v2, %v115_v31  ;;  %379 = vst.msk [vmem:[%s1229_s4 + $0xd8] sm:$0xff] %vm351_vm0, %v314_v39  ;;  %v121_v58 = vld [vmem:[%s1225_s0 + $0x140] sm:$0xff]  ;;  %v55_v63 = vld [vmem:[%s1228_s3 + $0x130] sm:$0xff]  ;;  %v122_v0 = vld [vmem:[%s1225_s0 + $0x148] sm:$0xff] }
  0x1f   :  { %380 = vst.msk [vmem:[%s1229_s4 + $0xe0] sm:$0xff] %vm351_vm0, %v315_v40  ;;  %v317_v52 = vadd.f32 %v462_v4, %v246_v41  ;;  %v249_v53 = vadd.f32 %v185_v42, %v50_v36  ;;  %v187_v54 = vmul.f32 %v456_v2, %v116_v37  ;;  %v188_v55 = vmul.f32 %v456_v2, %v117_v38  ;;  %v56_v7 = vld [vmem:[%s1228_s3 + $0x138] sm:$0xff]  ;;  %v57_v8 = vld [vmem:[%s1228_s3 + $0x140] sm:$0xff]  ;;  %v123_v9 = vld [vmem:[%s1225_s0 + $0x150] sm:$0xff] }
  0x20   :  { %381 = vst.msk [vmem:[%s1229_s4 + $0xe8] sm:$0xff] %vm351_vm0, %v316_v45  ;;  %v318_v59 = vadd.f32 %v462_v4, %v247_v46  ;;  %v319_v60 = vadd.f32 %v462_v4, %v248_v47  ;;  %v250_v61 = vadd.f32 %v186_v48, %v51_v43  ;;  %v189_v62 = vmul.f32 %v456_v2, %v118_v44  ;;  %v58_v14 = vld [vmem:[%s1228_s3 + $0x148] sm:$0xff]  ;;  %v124_v15 = vld [vmem:[%s1225_s0 + $0x158] sm:$0xff]  ;;  %v125_v16 = vld [vmem:[%s1225_s0 + $0x160] sm:$0xff] }
  0x21   :  { %382 = vst.msk [vmem:[%s1229_s4 + $0xf0] sm:$0xff] %vm351_vm0, %v317_v52  ;;  %v320_v1 = vadd.f32 %v462_v4, %v249_v53  ;;  %v251_v3 = vadd.f32 %v187_v54, %v52_v49  ;;  %v252_v5 = vadd.f32 %v188_v55, %v53_v50  ;;  %v190_v6 = vmul.f32 %v456_v2, %v119_v51  ;;  %v59_v21 = vld [vmem:[%s1228_s3 + $0x150] sm:$0xff]  ;;  %v126_v22 = vld [vmem:[%s1225_s0 + $0x168] sm:$0xff]  ;;  %v60_v27 = vld [vmem:[%s1228_s3 + $0x158] sm:$0xff] }
  0x22   :  { %383 = vst.msk [vmem:[%s1229_s4 + $0xf8] sm:$0xff] %vm351_vm0, %v318_v59  ;;  %384 = vst.msk [vmem:[%s1229_s4 + $0x100] sm:$0xff] %vm351_vm0, %v319_v60  ;;  %v321_v10 = vadd.f32 %v462_v4, %v250_v61  ;;  %v253_v11 = vadd.f32 %v189_v62, %v54_v56  ;;  %v191_v12 = vmul.f32 %v456_v2, %v120_v57  ;;  %v61_v28 = vld [vmem:[%s1228_s3 + $0x160] sm:$0xff]  ;;  %v127_v29 = vld [vmem:[%s1225_s0 + $0x170] sm:$0xff] }
  0x23   :  { %v192_v13 = vmul.f32 %v456_v2, %v121_v58  ;;  %385 = vst.msk [vmem:[%s1229_s4 + $0x108] sm:$0xff] %vm351_vm0, %v320_v1  ;;  %v322_v17 = vadd.f32 %v462_v4, %v251_v3  ;;  %v323_v18 = vadd.f32 %v462_v4, %v252_v5  ;;  %v254_v19 = vadd.f32 %v190_v6, %v55_v63  ;;  %v62_v34 = vld [vmem:[%s1228_s3 + $0x168] sm:$0xff]  ;;  %v128_v35 = vld [vmem:[%s1225_s0 + $0x178] sm:$0xff]  ;;  %v129_v36 = vld [vmem:[%s1225_s0 + $0x180] sm:$0xff] }
  0x24   :  { %v193_v20 = vmul.f32 %v456_v2, %v122_v0  ;;  %386 = vst.msk [vmem:[%s1229_s4 + $0x110] sm:$0xff] %vm351_vm0, %v321_v10  ;;  %v324_v23 = vadd.f32 %v462_v4, %v253_v11  ;;  %v255_v24 = vadd.f32 %v191_v12, %v56_v7  ;;  %v194_v26 = vmul.f32 %v456_v2, %v123_v9  ;;  %v63_v41 = vld [vmem:[%s1228_s3 + $0x170] sm:$0xff]  ;;  %v130_v42 = vld [vmem:[%s1225_s0 + $0x188] sm:$0xff]  ;;  %v64_v47 = vld [vmem:[%s1228_s3 + $0x178] sm:$0xff] }
  0x25   :  { %v256_v25 = vadd.f32 %v192_v13, %v57_v8  ;;  %387 = vst.msk [vmem:[%s1229_s4 + $0x118] sm:$0xff] %vm351_vm0, %v322_v17  ;;  %388 = vst.msk [vmem:[%s1229_s4 + $0x120] sm:$0xff] %vm351_vm0, %v323_v18  ;;  %v325_v30 = vadd.f32 %v462_v4, %v254_v19  ;;  %v195_v32 = vmul.f32 %v456_v2, %v124_v15  ;;  %v65_v48 = vld [vmem:[%s1228_s3 + $0x180] sm:$0xff]  ;;  %v131_v49 = vld [vmem:[%s1225_s0 + $0x190] sm:$0xff] }
  0x26   :  { %v257_v31 = vadd.f32 %v193_v20, %v58_v14  ;;  %v196_v33 = vmul.f32 %v456_v2, %v125_v16  ;;  %389 = vst.msk [vmem:[%s1229_s4 + $0x128] sm:$0xff] %vm351_vm0, %v324_v23  ;;  %v326_v37 = vadd.f32 %v462_v4, %v255_v24  ;;  %v258_v39 = vadd.f32 %v194_v26, %v59_v21  ;;  %v66_v54 = vld [vmem:[%s1228_s3 + $0x188] sm:$0xff]  ;;  %v132_v55 = vld [vmem:[%s1225_s0 + $0x198] sm:$0xff]  ;;  %v133_v56 = vld [vmem:[%s1225_s0 + $0x1a0] sm:$0xff] }
  0x27   :  { %v327_v38 = vadd.f32 %v462_v4, %v256_v25  ;;  %v197_v40 = vmul.f32 %v456_v2, %v126_v22  ;;  %390 = vst.msk [vmem:[%s1229_s4 + $0x130] sm:$0xff] %vm351_vm0, %v325_v30  ;;  %v259_v44 = vadd.f32 %v195_v32, %v60_v27  ;;  %v198_v46 = vmul.f32 %v456_v2, %v127_v29  ;;  %v67_v61 = vld [vmem:[%s1228_s3 + $0x190] sm:$0xff]  ;;  %v134_v62 = vld [vmem:[%s1225_s0 + $0x1a8] sm:$0xff]  ;;  %v68_v5 = vld [vmem:[%s1228_s3 + $0x198] sm:$0xff] }
  0x28   :  { %v328_v43 = vadd.f32 %v462_v4, %v257_v31  ;;  %v260_v45 = vadd.f32 %v196_v33, %v61_v28  ;;  %391 = vst.msk [vmem:[%s1229_s4 + $0x138] sm:$0xff] %vm351_vm0, %v326_v37  ;;  %v329_v50 = vadd.f32 %v462_v4, %v258_v39  ;;  %v199_v52 = vmul.f32 %v456_v2, %v128_v35  ;;  %v69_v6 = vld [vmem:[%s1228_s3 + $0x1a0] sm:$0xff]  ;;  %v135_v7 = vld [vmem:[%s1225_s0 + $0x1b0] sm:$0xff]  ;;  %v70_v12 = vld [vmem:[%s1228_s3 + $0x1a8] sm:$0xff] }
  0x29   :  { %392 = vst.msk [vmem:[%s1229_s4 + $0x140] sm:$0xff] %vm351_vm0, %v327_v38  ;;  %v261_v51 = vadd.f32 %v197_v40, %v62_v34  ;;  %v200_v53 = vmul.f32 %v456_v2, %v129_v36  ;;  %v330_v57 = vadd.f32 %v462_v4, %v259_v44  ;;  %v262_v59 = vadd.f32 %v198_v46, %v63_v41  ;;  %v136_v13 = vld [vmem:[%s1225_s0 + $0x1b8] sm:$0xff]  ;;  %v137_v14 = vld [vmem:[%s1225_s0 + $0x1c0] sm:$0xff]  ;;  %v71_v19 = vld [vmem:[%s1228_s3 + $0x1b0] sm:$0xff] }
  0x2a   :  { %393 = vst.msk [vmem:[%s1229_s4 + $0x148] sm:$0xff] %vm351_vm0, %v328_v43  ;;  %v331_v58 = vadd.f32 %v462_v4, %v260_v45  ;;  %v201_v60 = vmul.f32 %v456_v2, %v130_v42  ;;  %394 = vst.msk [vmem:[%s1229_s4 + $0x150] sm:$0xff] %vm351_vm0, %v329_v50  ;;  %v263_v0 = vadd.f32 %v199_v52, %v64_v47  ;;  %v138_v20 = vld [vmem:[%s1225_s0 + $0x1c8] sm:$0xff]  ;;  %v72_v25 = vld [vmem:[%s1228_s3 + $0x1b8] sm:$0xff] }
  0x2b   :  { %v332_v63 = vadd.f32 %v462_v4, %v261_v51  ;;  %v264_v1 = vadd.f32 %v200_v53, %v65_v48  ;;  %v202_v3 = vmul.f32 %v456_v2, %v131_v49  ;;  %395 = vst.msk [vmem:[%s1229_s4 + $0x158] sm:$0xff] %vm351_vm0, %v330_v57  ;;  %v333_v8 = vadd.f32 %v462_v4, %v262_v59  ;;  %v73_v26 = vld [vmem:[%s1228_s3 + $0x1c0] sm:$0xff]  ;;  %v139_v27 = vld [vmem:[%s1225_s0 + $0x1d0] sm:$0xff]  ;;  %v74_v32 = vld [vmem:[%s1228_s3 + $0x1c8] sm:$0xff] }
  0x2c   :  { %396 = vst.msk [vmem:[%s1229_s4 + $0x160] sm:$0xff] %vm351_vm0, %v331_v58  ;;  %v265_v9 = vadd.f32 %v201_v60, %v66_v54  ;;  %v203_v10 = vmul.f32 %v456_v2, %v132_v55  ;;  %v204_v11 = vmul.f32 %v456_v2, %v133_v56  ;;  %v334_v15 = vadd.f32 %v462_v4, %v263_v0  ;;  %v140_v33 = vld [vmem:[%s1225_s0 + $0x1d8] sm:$0xff]  ;;  %v141_v34 = vld [vmem:[%s1225_s0 + $0x1e0] sm:$0xff]  ;;  %v75_v39 = vld [vmem:[%s1228_s3 + $0x1d0] sm:$0xff] }
  0x2d   :  { %397 = vst.msk [vmem:[%s1229_s4 + $0x168] sm:$0xff] %vm351_vm0, %v332_v63  ;;  %v335_v16 = vadd.f32 %v462_v4, %v264_v1  ;;  %v266_v17 = vadd.f32 %v202_v3, %v67_v61  ;;  %v205_v18 = vmul.f32 %v456_v2, %v134_v62  ;;  %398 = vst.msk [vmem:[%s1229_s4 + $0x170] sm:$0xff] %vm351_vm0, %v333_v8  ;;  %v142_v40 = vld [vmem:[%s1225_s0 + $0x1e8] sm:$0xff]  ;;  %v76_v45 = vld [vmem:[%s1228_s3 + $0x1d8] sm:$0xff] }
  0x2e   :  { %v336_v21 = vadd.f32 %v462_v4, %v265_v9  ;;  %v267_v22 = vadd.f32 %v203_v10, %v68_v5  ;;  %v268_v23 = vadd.f32 %v204_v11, %v69_v6  ;;  %v206_v24 = vmul.f32 %v456_v2, %v135_v7  ;;  %399 = vst.msk [vmem:[%s1229_s4 + $0x178] sm:$0xff] %vm351_vm0, %v334_v15  ;;  %v77_v46 = vld [vmem:[%s1228_s3 + $0x1e0] sm:$0xff]  ;;  %v143_v47 = vld [vmem:[%s1225_s0 + $0x1f0] sm:$0xff]  ;;  %v78_v52 = vld [vmem:[%s1228_s3 + $0x1e8] sm:$0xff] }
  0x2f   :  { %400 = vst.msk [vmem:[%s1229_s4 + $0x180] sm:$0xff] %vm351_vm0, %v335_v16  ;;  %v337_v28 = vadd.f32 %v462_v4, %v266_v17  ;;  %v269_v29 = vadd.f32 %v205_v18, %v70_v12  ;;  %v207_v30 = vmul.f32 %v456_v2, %v136_v13  ;;  %v208_v31 = vmul.f32 %v456_v2, %v137_v14  ;;  %v144_v53 = vld [vmem:[%s1225_s0 + $0x1f8] sm:$0xff]  ;;  %v79_v58 = vld [vmem:[%s1228_s3 + $0x1f0] sm:$0xff] }
  0x30   :  { %401 = vst.msk [vmem:[%s1229_s4 + $0x188] sm:$0xff] %vm351_vm0, %v336_v21  ;;  %v338_v35 = vadd.f32 %v462_v4, %v267_v22  ;;  %v339_v36 = vadd.f32 %v462_v4, %v268_v23  ;;  %v270_v37 = vadd.f32 %v206_v24, %v71_v19  ;;  %v209_v38 = vmul.f32 %v456_v2, %v138_v20  ;;  %v80_v63 = vld [vmem:[%s1228_s3 + $0x1f8] sm:$0xff] }
  0x31   :  { %402 = vst.msk [vmem:[%s1229_s4 + $0x190] sm:$0xff] %vm351_vm0, %v337_v28  ;;  %v340_v41 = vadd.f32 %v462_v4, %v269_v29  ;;  %v271_v42 = vadd.f32 %v207_v30, %v72_v25  ;;  %v272_v43 = vadd.f32 %v208_v31, %v73_v26  ;;  %v210_v44 = vmul.f32 %v456_v2, %v139_v27 }
  0x32   :  { %403 = vst.msk [vmem:[%s1229_s4 + $0x198] sm:$0xff] %vm351_vm0, %v338_v35  ;;  %404 = vst.msk [vmem:[%s1229_s4 + $0x1a0] sm:$0xff] %vm351_vm0, %v339_v36  ;;  %v341_v48 = vadd.f32 %v462_v4, %v270_v37  ;;  %v273_v49 = vadd.f32 %v209_v38, %v74_v32  ;;  %v211_v50 = vmul.f32 %v456_v2, %v140_v33 }
  0x33   :  { %v212_v51 = vmul.f32 %v456_v2, %v141_v34  ;;  %405 = vst.msk [vmem:[%s1229_s4 + $0x1a8] sm:$0xff] %vm351_vm0, %v340_v41  ;;  %v342_v54 = vadd.f32 %v462_v4, %v271_v42  ;;  %v343_v55 = vadd.f32 %v462_v4, %v272_v43  ;;  %v274_v56 = vadd.f32 %v210_v44, %v75_v39 }
  0x34   :  { %v213_v57 = vmul.f32 %v456_v2, %v142_v40  ;;  %406 = vst.msk [vmem:[%s1229_s4 + $0x1b0] sm:$0xff] %vm351_vm0, %v341_v48  ;;  %v344_v59 = vadd.f32 %v462_v4, %v273_v49  ;;  %v275_v60 = vadd.f32 %v211_v50, %v76_v45  ;;  %v214_v62 = vmul.f32 %v456_v2, %v143_v47 }
  0x35   :  { %v276_v61 = vadd.f32 %v212_v51, %v77_v46  ;;  %407 = vst.msk [vmem:[%s1229_s4 + $0x1b8] sm:$0xff] %vm351_vm0, %v342_v54  ;;  %408 = vst.msk [vmem:[%s1229_s4 + $0x1c0] sm:$0xff] %vm351_vm0, %v343_v55  ;;  %v345_v0 = vadd.f32 %v462_v4, %v274_v56  ;;  %v215_v3 = vmul.f32 %v456_v2, %v144_v53 }
  0x36   :  { %v277_v1 = vadd.f32 %v213_v57, %v78_v52  ;;  %409 = vst.msk [vmem:[%s1229_s4 + $0x1c8] sm:$0xff] %vm351_vm0, %v344_v59  ;;  %v346_v5 = vadd.f32 %v462_v4, %v275_v60  ;;  %v278_v7 = vadd.f32 %v214_v62, %v79_v58 }
  0x37   :  { %v347_v6 = vadd.f32 %v462_v4, %v276_v61  ;;  %410 = vst.msk [vmem:[%s1229_s4 + $0x1d0] sm:$0xff] %vm351_vm0, %v345_v0  ;;  %v279_v9 = vadd.f32 %v215_v3, %v80_v63 }
  0x38   :  { %v348_v8 = vadd.f32 %v462_v4, %v277_v1  ;;  %411 = vst.msk [vmem:[%s1229_s4 + $0x1d8] sm:$0xff] %vm351_vm0, %v346_v5  ;;  %v349_v2 = vadd.f32 %v462_v4, %v278_v7 }
  0x39   :  { %412 = vst.msk [vmem:[%s1229_s4 + $0x1e0] sm:$0xff] %vm351_vm0, %v347_v6  ;;  %v350_v10 = vadd.f32 %v462_v4, %v279_v9 }
  0x3a   :  { %413 = vst.msk [vmem:[%s1229_s4 + $0x1e8] sm:$0xff] %vm351_vm0, %v348_v8  ;;  %414 = vst.msk [vmem:[%s1229_s4 + $0x1f0] sm:$0xff] %vm351_vm0, %v349_v2 }
  0x3b   :  { %415 = vst.msk [vmem:[%s1229_s4 + $0x1f8] sm:$0xff] %vm351_vm0, %v350_v10 }

// kernel: resnet_block.15
= control target key start
LH: loop header
LB: loop body
LE: loop exit
PB: predicated region body
PF: predicated region fallthrough
CT: control target
= control target key end

     0   :  { %s3170_s11 = smov 0   ;;  %s3172_s12 = smov 0   ;;  %s4346_s0 = inlined_call_operand.vmem [shape: bf16[2,16,16,32], index: 0, kind: input, shape index: {}, may-alias: {0,1,2}]   ;;  %s4347_s1 = inlined_call_operand.vmem [shape: bf16[2,16,16,32], index: 1, kind: input, shape index: {}, may-alias: {0,1,2}]   ;;  %s4348_s2 = inlined_call_operand.vmem [shape: bf16[2,16,16,32], index: 2, kind: input, shape index: {}, may-alias: {0,1,2}]   ;;  %s4349_s3 = inlined_call_operand.vmem [shape: bf16[288,16], index: 3, kind: input, shape index: {}]   ;;  %s4350_s4 = inlined_call_operand.vmem [shape: f32[1,16], index: 4, kind: input, shape index: {}]   ;;  %s4351_s5 = inlined_call_operand.vmem [shape: f32[2,16,16,8], index: 5, kind: input, shape index: {}]   ;;  %s4352_s6 = inlined_call_operand.vmem [shape: f32[1,8], index: 6, kind: input, shape index: {}]   ;;  %s4353_s7 = inlined_call_operand.vmem [shape: f32[1,8], index: 7, kind: input, shape index: {}]   ;;  %s4354_s8 = inlined_call_operand.vmem [shape: f32[1,8], index: 8, kind: input, shape index: {}]   ;;  %s4355_s9 = inlined_call_operand.vmem [shape: f32[1,8], index: 9, kind: input, shape index: {}]   ;;  %s4356_s10 = inlined_call_operand.vmem [shape: bf16[2,16,16,8], index: 10, kind: output, shape index: {}]  }
   0x1   :  { %s3174_s13 = smov 0  }
   0x2 LB: > { %s32_s14 = sadd.s32 1, %s3104_s12  ;;  %p2700_p0 = scmp.ge.s32.totalorder %s3108_s13, 1  ;;  %s3108_s13 = sphi %s3174_s13, %s20_s13   ;;  %s3104_s12 = sphi %s3172_s12, %s4362_s12   ;;  %s3100_s11 = sphi %s3170_s11, %s4361_s11  }
   0x3   : > { %p34_p1 = scmp.ge.s32.totalorder %s32_s14, 2  ;;  %p416_p2 = scmp.lt.s32.totalorder %s3108_s13, 3 }
   0x5   : > { %s4364_s14 = smov (%p34_p1, %s32_s14), 0  ;;  %p417_p3 = pnand %p2700_p0, %p416_p2 }
   0x6   : > { %p501_p4 = scmp.lt.s32.totalorder (!%p417_p3), %s3100_s11, 1  ;;  %vm887_vm0 = vcmask (!%p417_p3), 1047552   ;;  %vm888_vm1 = vsmask.f32 (!%p417_p3), 7424  ;;  %v3110_v0 = vmov (!%p417_p3), 0   ;;  %v3061_v2 = vld [vmem:[%s4349_s3 + $0x40] sm:$0xff] (!%p417_p3)  }
   0x7   : > { %420 = sbr.rel (%p417_p3) target bundleno = 667 (0x29b), region = 60  ;;  %v3188_v1 = vcombine.low (!%p417_p3), %v3110_v0, %v3110_v0  ;;  %vm821_vm2 = vsmask.f32 (!%p417_p3), 256  ;;  %s3111_s17 = smov (!%p417_p3), 32   ;;  %vm3199_vm3 = vmand (!%p417_p3), %vm887_vm0, %vm888_vm1  ;;  %2840 = vmatprep.subr.bf16.mxu0 (!%p417_p3), %v3061_v2  ;;  %v3062_v6 = vld [vmem:[%s4349_s3] sm:$0xff] (!%p417_p3)   ;;  %3006 = vmatprep.subr.bf16.mxu1 (!%p417_p3), %v3061_v2  ;;  %v3064_v9 = vld [vmem:[%s4349_s3 + $0x48] sm:$0xff] (!%p417_p3)  }
   0x8   : > { %v3065_v10 = vld [vmem:[%s4349_s3 + $0x8] sm:$0xff] (!%p417_p3)   ;;  %2841 = vmatpush3.bf16.msra.mxu0 (!%p417_p3), %v3062_v6  ;;  %3014 = vmatpush3.bf16.msra.mxu1 (!%p417_p3), %v3062_v6  ;;  %vm820_vm4 = vcmask (!%p417_p3), 1040384   ;;  %s3112_s1 = smov (!%p417_p3), 96   ;;  %s3113_s28 = smov (!%p417_p3), 64   ;;  %v3066_v53 = vld [vmem:[%s4349_s3 + $0x50] sm:$0xff] (!%p417_p3)   ;;  %v3068_v57 = vld [vmem:[%s4349_s3 + $0x58] sm:$0xff] (!%p417_p3)  }
   0x9   : > { %942 = vrot.lane.b32.xlu0 (!%p417_p3), %v3188_v1, %s3111_s17  ;;  %v693_v3 = vshrl.u32 (!%p417_p3), %v3188_v1, 16  ;;  %v696_v4 = vshll.u32 (!%p417_p3), %v3188_v1, 16  ;;  %2842 = vmatprep.subr.bf16.mxu0 (!%p417_p3), %v3064_v9  ;;  %vm3255_vm5 = vmand (!%p417_p3), %vm820_vm4, %vm821_vm2  ;;  %v3067_v54 = vld [vmem:[%s4349_s3 + $0x10] sm:$0xff] (!%p417_p3)   ;;  %v3069_v61 = vld [vmem:[%s4349_s3 + $0x18] sm:$0xff] (!%p417_p3)   ;;  %vm1168_vm6 = vcmask (!%p417_p3), 261120   ;;  %vm1217_vm7 = vcmask (!%p417_p3), 523264  }
   0xa   : > { %3007 = vmatprep.subr.bf16.mxu1 (!%p417_p3), %v3064_v9  ;;  %v3073_v9 = vld [vmem:[%s4349_s3 + $0x68] sm:$0xff] (!%p417_p3)   ;;  %vm1250_vm8 = vcmask (!%p417_p3), 785408   ;;  %vm2504_vm9 = vcmask (!%p417_p3), 60416  }
   0xb   : > { %v839_v7 = vrot.slane (!%p417_p3), %v696_v4, 1  ;;  %v695_v8 = vrot.slane (!%p417_p3), %v693_v3, 7 }
   0xc   : > { %2843 = vmatpush3.bf16.msra.mxu0 (!%p417_p3), %v3065_v10  ;;  %3015 = vmatpush3.bf16.msra.mxu1 (!%p417_p3), %v3065_v10 }
   0xd   : > { %v840_v13 = vor.u32 (!%p417_p3), %v839_v7, %v693_v3  ;;  %v3226_v14 = vor.u32 (!%p417_p3), %v696_v4, %v695_v8  ;;  %2844 = vmatprep.subr.bf16.mxu0 (!%p417_p3), %v3066_v53  ;;  %3008 = vmatprep.subr.bf16.mxu1 (!%p417_p3), %v3066_v53  ;;  %v3071_v4 = vld [vmem:[%s4349_s3 + $0x60] sm:$0xff] (!%p417_p3)  }
   0xe   : > { %s4366_s11 = smov (!%p501_p4, %s3100_s11), 1  ;;  %v3072_v7 = vld [vmem:[%s4349_s3 + $0x20] sm:$0xff]  }
   0xf   : > { %s2802_s18 = sshll.u32 %s4366_s11, 7  ;;  %v3237_v16 = vsel %vm3199_vm3, %v840_v13, 0  ;;  %v3324_v62 = vsel %vm3255_vm5, 0, %v3226_v14  ;;  %v3074_v14 = vld [vmem:[%s4349_s3 + $0x28] sm:$0xff]  }
  0x10   : > { %s3212_s23 = scalar_lea.vmem %s4346_s0, %s2802_s18  ;;  %2845 = vmatpush3.bf16.msra.mxu0 %v3067_v54  ;;  %3016 = vmatpush3.bf16.msra.mxu1 %v3067_v54 }
  0x11   : > { %v3221_v11 = vld [vmem:[%s3212_s23 + $0x58] sm:$0xff]   ;;  %v3224_v12 = vld [vmem:[%s3212_s23 + $0x8] sm:$0xff]   ;;  %v3231_v15 = vld [vmem:[%s3212_s23] sm:$0xff]   ;;  %2846 = vmatprep.subr.bf16.mxu0 %v3068_v57  ;;  %3009 = vmatprep.subr.bf16.mxu1 %v3068_v57 }
  0x12   : > { %966 = vrot.lane.b32.xlu1 %v3221_v11, %s3111_s17  ;;  %1136 = vrot.lane.b32.xlu0 %v3224_v12, %s3112_s1  ;;  %v707_v17 = vshrl.u32 %v3224_v12, 16  ;;  %v710_v18 = vshll.u32 %v3224_v12, 16  ;;  %v3242_v19 = vld [vmem:[%s3212_s23 + $0x60] sm:$0xff]   ;;  %v700_v20 = vshrl.u32 %v3231_v15, 16  ;;  %v703_v21 = vshll.u32 %v3231_v15, 16  ;;  %v3249_v25 = vld [vmem:[%s3212_s23 + $0x68] sm:$0xff]  }
  0x13   : > { %v784_v23 = vshrl.u32 %v3242_v19, 16  ;;  %v787_v24 = vshll.u32 %v3242_v19, 16  ;;  %v780_v29 = vshll.u32 %v3221_v11, 16  ;;  %v791_v32 = vshrl.u32 %v3249_v25, 16  ;;  %v3283_v47 = vld [vmem:[%s3212_s23 + $0x10] sm:$0xff]   ;;  %v3441_v53 = vld [vmem:[%s3212_s23 + $0x20] sm:$0xff]  }
  0x14   : > { %v709_v22 = vrot.slane %v707_v17, 7  ;;  %v841_v26 = vrot.slane %v703_v21, 1  ;;  %v702_v28 = vrot.slane %v700_v20, 7  ;;  %v777_v33 = vshrl.u32 %v3221_v11, 16  ;;  %2847 = vmatpush3.bf16.msra.mxu0 %v3069_v61  ;;  %v3335_v3 = vld [vmem:[%s3212_s23 + $0x70] sm:$0xff]   ;;  %3017 = vmatpush3.bf16.msra.mxu1 %v3069_v61 }
  0x15   : > { %v865_v31 = vrot.slane %v787_v24, 1  ;;  %v794_v36 = vshll.u32 %v3249_v25, 16  ;;  %v863_v37 = vrot.slane %v780_v29, 1  ;;  %v793_v40 = vrot.slane %v791_v32, 7  ;;  %2848 = vmatprep.subr.bf16.mxu0 %v3071_v4  ;;  %3010 = vmatprep.subr.bf16.mxu1 %v3071_v4 }
  0x16   : > { %990 = vrot.lane.b32.xlu1 %v3237_v16, %s3113_s28  ;;  %v712_v30 = vor.u32 %v710_v18, %v709_v22  ;;  %v842_v34 = vor.u32 %v841_v26, %v700_v20  ;;  %v705_v35 = vor.u32 %v703_v21, %v702_v28  ;;  %v786_v44 = vrot.slane %v784_v23, 7  ;;  %v3076_v22 = vld [vmem:[%s4349_s3 + $0x30] sm:$0xff]   ;;  %v3386_v28 = vld [vmem:[%s3212_s23 + $0x18] sm:$0xff]  }
  0x17   : > { %v866_v39 = vor.u32 %v865_v31, %v784_v23  ;;  %v864_v43 = vor.u32 %v863_v37, %v777_v33  ;;  %v796_v46 = vor.u32 %v794_v36, %v793_v40  ;;  %v843_v51 = vrot.slane %v710_v18, 1  ;;  %v3078_v23 = vld [vmem:[%s4349_s3 + $0x78] sm:$0xff]  }
  0x18   : > { %v3265_v38 = vsel %vm3255_vm5, 0, %v712_v30  ;;  %v891_v41 = vsel %vm3199_vm3, %v842_v34, 0  ;;  %v3276_v42 = vsel %vm3255_vm5, 0, %v705_v35  ;;  %v789_v49 = vor.u32 %v787_v24, %v786_v44  ;;  %2849 = vmatpush3.bf16.msra.mxu0 %v3072_v7  ;;  %3018 = vmatpush3.bf16.msra.mxu1 %v3072_v7  ;;  %v3479_v7 = vld [vmem:[%s4349_s3 + $0x80] sm:$0xff]  }
  0x19   : > { %1071 = vrot.lane.b32.xlu0 %v891_v41, %s3111_s17  ;;  %v3280_v45 = vsel %vm3199_vm3, %v866_v39, 0  ;;  %v3291_v48 = vsel %vm3199_vm3, %v864_v43, 0  ;;  %v3295_v50 = vsel %vm3255_vm5, 0, %v796_v46  ;;  %v714_v52 = vshrl.u32 %v3283_v47, 16  ;;  %2850 = vmatprep.subr.bf16.mxu0 %v3073_v9  ;;  %v3416_v39 = vld [vmem:[%s3212_s23 + $0x78] sm:$0xff]  }
  0x1a   : > { %1104 = vrot.lane.b32.xlu1 %v3265_v38, %s3113_s28  ;;  %v779_v55 = vrot.slane %v777_v33, 7  ;;  %v3310_v56 = vsel %vm3255_vm5, 0, %v789_v49  ;;  %v844_v58 = vor.u32 %v843_v51, %v707_v17  ;;  %v717_v60 = vshll.u32 %v3283_v47, 16  ;;  %v3075_v17 = vld [vmem:[%s4349_s3 + $0x70] sm:$0xff]   ;;  %3011 = vmatprep.subr.bf16.mxu1 %v3073_v9 }
  0x1b   : > { %v716_v59 = vrot.slane %v714_v52, 7  ;;  %v867_v6 = vrot.slane %v794_v36, 1  ;;  %v798_v13 = vshrl.u32 %v3335_v3, 16  ;;  %v801_v18 = vshll.u32 %v3335_v3, 16 }
  0x1c   : > { %v782_v63 = vor.u32 %v780_v29, %v779_v55  ;;  %v3332_v0 = vsel %vm3199_vm3, %v844_v58, 0  ;;  %2851 = vmatpush3.bf16.msra.mxu0 %v3074_v14  ;;  %3019 = vmatpush3.bf16.msra.mxu1 %v3074_v14  ;;  %v3079_v29 = vld [vmem:[%s4349_s3 + $0x38] sm:$0xff]   ;;  %v845_v31 = vrot.slane %v717_v60, 1  ;;  %v724_v35 = vshll.u32 %v3386_v28, 16 }
  0x1d   : > { %1095 = vrot.lane.b32.xlu0 %v3280_v45, %s3111_s17  ;;  %v719_v2 = vor.u32 %v717_v60, %v716_v59  ;;  %v868_v20 = vor.u32 %v867_v6, %v791_v32  ;;  %v800_v21 = vrot.slane %v798_v13, 7  ;;  %2852 = vmatprep.subr.bf16.mxu0 %v3075_v17  ;;  %v721_v32 = vshrl.u32 %v3386_v28, 16 }
  0x1e   : > { %1038 = vrot.lane.b32.xlu1 %v3276_v42, %s3112_s1  ;;  %v3349_v8 = vsel %vm3255_vm5, 0, %v782_v63  ;;  %3012 = vmatprep.subr.bf16.mxu1 %v3075_v17  ;;  %v846_v33 = vor.u32 %v845_v31, %v714_v52  ;;  %v912_v43 = vshrl.u32 %v3416_v39, 16  ;;  %v915_v49 = vshll.u32 %v3416_v39, 16 }
  0x1f   : > { %v3356_v10 = vsel %vm3255_vm5, 0, %v719_v2  ;;  %v3383_v24 = vsel %vm3199_vm3, %v868_v20, 0  ;;  %v803_v26 = vor.u32 %v801_v18, %v800_v21  ;;  %v723_v34 = vrot.slane %v721_v32, 7 }
  0x20   : > { %2853 = vmatpush3.bf16.msra.mxu0 %v3076_v22  ;;  %3020 = vmatpush3.bf16.msra.mxu1 %v3076_v22  ;;  %v3413_v36 = vsel %vm3199_vm3, %v846_v33, 0  ;;  %v914_v46 = vrot.slane %v912_v43, 7  ;;  %v847_v55 = vrot.slane %v724_v35, 1  ;;  %v728_v57 = vshrl.u32 %v3441_v53, 16 }
  0x21   : > { %1128 = vrot.lane.b32.xlu0 %v3295_v50, %s3113_s28  ;;  %2854 = vmatprep.subr.bf16.mxu0 %v3078_v23  ;;  %v3397_v30 = vsel %vm3255_vm5, 0, %v803_v26  ;;  %v726_v37 = vor.u32 %v724_v35, %v723_v34  ;;  %v731_v60 = vshll.u32 %v3441_v53, 16  ;;  %v920_v4 = vrot.slane %v915_v49, 1  ;;  %v3509_v26 = vld [vmem:[%s3212_s23 + $0x30] sm:$0xff]  }
  0x22   : > { %1014 = vrot.lane.b32.xlu1 %v3291_v48, %s3113_s28  ;;  %3013 = vmatprep.subr.bf16.mxu1 %v3078_v23  ;;  %v917_v52 = vor.u32 %v915_v49, %v914_v46  ;;  %v848_v58 = vor.u32 %v847_v55, %v721_v32  ;;  %v730_v59 = vrot.slane %v728_v57, 7  ;;  %v745_v34 = vshll.u32 %v3509_v26, 16 }
  0x23   : > { %v3424_v40 = vsel %vm3255_vm5, 0, %v726_v37  ;;  %v921_v6 = vor.u32 %v920_v4, %v912_v43  ;;  %v849_v14 = vrot.slane %v731_v60, 1  ;;  %v3559_v4 = vld [vmem:[%s3212_s23 + $0x40] sm:$0xff]  }
  0x24   : > { %2855 = vmatpush3.bf16.msra.mxu0 %v3079_v29  ;;  %3021 = vmatpush3.bf16.msra.mxu1 %v3079_v29  ;;  %v919_v54 = vsel %vm3255_vm5, 0, %v917_v52  ;;  %v3460_v61 = vsel %vm3199_vm3, %v848_v58, 0  ;;  %v733_v63 = vor.u32 %v731_v60, %v730_v59 }
  0x25   : > { %1160 = vrot.lane.b32.xlu0 %v3249_v25, %s3112_s1  ;;  %v3485_v9 = vsel %vm3199_vm3, %v921_v6, 0  ;;  %2970 = vmatprep.subr.bf16.mxu1 %v3479_v7 }
  0x26   : > { %1062 = vrot.lane.b32.xlu1 %v3310_v56, %s3112_s1  ;;  %v3468_v2 = vsel %vm3255_vm5, 0, %v733_v63 }
  0x29   : > { %1073 = vrot.lane.b32.xlu0 %v3332_v0, %s3111_s17 }
  0x2a   : > { %944 = vrot.lane.b32.xlu1 %v3231_v15, %s3111_s17 }
  0x2d   : > { %1106 = vrot.lane.b32.xlu0 %v3356_v10, %s3113_s28 }
  0x2e   : > { %992 = vrot.lane.b32.xlu1 %v891_v41, %s3113_s28  ;;  %v869_v41 = vrot.slane %v801_v18, 1  ;;  %v850_v18 = vor.u32 %v849_v14, %v728_v57 }
  0x30   : > { %v870_v44 = vor.u32 %v869_v41, %v798_v13  ;;  %v3488_v13 = vld [vmem:[%s3212_s23 + $0x28] sm:$0xff]   ;;  %v3506_v22 = vsel %vm3199_vm3, %v850_v18, 0  ;;  %v3534_v41 = vld [vmem:[%s3212_s23 + $0x38] sm:$0xff]   ;;  %v756_v18 = vshrl.u32 %v3559_v4, 16 }
  0x31   : > { %1138 = vrot.lane.b32.xlu0 %v3283_v47, %s3112_s1  ;;  %v735_v17 = vshrl.u32 %v3488_v13, 16  ;;  %v738_v21 = vshll.u32 %v3488_v13, 16  ;;  %v749_v46 = vshrl.u32 %v3534_v41, 16  ;;  %v752_v57 = vshll.u32 %v3534_v41, 16 }
  0x32   : > { %1040 = vrot.lane.b32.xlu1 %v3265_v38, %s3112_s1  ;;  %v3438_v51 = vsel %vm3199_vm3, %v870_v44, 0  ;;  %v853_v44 = vrot.slane %v745_v34, 1 }
  0x33   : > { %v737_v20 = vrot.slane %v735_v17, 7  ;;  %v851_v31 = vrot.slane %v738_v21, 1  ;;  %v751_v55 = vrot.slane %v749_v46, 7 }
  0x35   : > { %1097 = vrot.lane.b32.xlu0 %v3383_v24, %s3111_s17  ;;  %v740_v23 = vor.u32 %v738_v21, %v737_v20  ;;  %v852_v32 = vor.u32 %v851_v31, %v735_v17  ;;  %v754_v63 = vor.u32 %v752_v57, %v751_v55  ;;  %v855_v17 = vrot.slane %v752_v57, 1  ;;  %v3592_v57 = vld [vmem:[%s3212_s23 + $0x48] sm:$0xff]  }
  0x36   : > { %968 = vrot.lane.b32.xlu1 %v3242_v19, %s3111_s17 }
  0x37   : > { %v3517_v29 = vsel %vm3255_vm5, 0, %v740_v23  ;;  %v3531_v35 = vsel %vm3199_vm3, %v852_v32, 0  ;;  %v3567_v14 = vsel %vm3255_vm5, 0, %v754_v63 }
  0x39   : > { %1130 = vrot.lane.b32.xlu0 %v3397_v30, %s3113_s28 }
  0x3a   : > { %1016 = vrot.lane.b32.xlu1 %v3280_v45, %s3113_s28 }
  0x3d   : > { %1162 = vrot.lane.b32.xlu0 %v3335_v3, %s3112_s1 }
  0x3e   : > { %1064 = vrot.lane.b32.xlu1 %v3295_v50, %s3112_s1 }
  0x41   : > { %1075 = vrot.lane.b32.xlu0 %v3413_v36, %s3111_s17 }
  0x42   : > { %946 = vrot.lane.b32.xlu1 %v3224_v12, %s3111_s17 }
  0x45   : > { %1108 = vrot.lane.b32.xlu0 %v3424_v40, %s3113_s28 }
  0x46   : > { %994 = vrot.lane.b32.xlu1 %v3332_v0, %s3113_s28 }
  0x49   : > { %1140 = vrot.lane.b32.xlu0 %v3386_v28, %s3112_s1 }
  0x4a   : > { %1042 = vrot.lane.b32.xlu1 %v3356_v10, %s3112_s1 }
  0x4d   : > { %1099 = vrot.lane.b32.xlu0 %v3438_v51, %s3111_s17 }
  0x4e   : > { %970 = vrot.lane.b32.xlu1 %v3249_v25, %s3111_s17 }
  0x51   : > { %1132 = vrot.lane.b32.xlu0 %v919_v54, %s3113_s28 }
  0x52   : > { %1018 = vrot.lane.b32.xlu1 %v3383_v24, %s3113_s28 }
  0x55   : > { %1164 = vrot.lane.b32.xlu0 %v3416_v39, %s3112_s1 }
  0x56   : > { %1066 = vrot.lane.b32.xlu1 %v3397_v30, %s3112_s1 }
  0x59   : > { %1077 = vrot.lane.b32.xlu0 %v3460_v61, %s3111_s17 }
  0x5a   : > { %948 = vrot.lane.b32.xlu1 %v3283_v47, %s3111_s17 }
  0x5d   : > { %1110 = vrot.lane.b32.xlu0 %v3468_v2, %s3113_s28 }
  0x5e   : > { %996 = vrot.lane.b32.xlu1 %v3413_v36, %s3113_s28 }
  0x61   : > { %1142 = vrot.lane.b32.xlu0 %v3441_v53, %s3112_s1 }
  0x62   : > { %1044 = vrot.lane.b32.xlu1 %v3424_v40, %s3112_s1 }
  0x65   : > { %1101 = vrot.lane.b32.xlu0 %v3485_v9, %s3111_s17 }
  0x66   : > { %972 = vrot.lane.b32.xlu1 %v3335_v3, %s3111_s17 }
  0x69   : > { %1134 = vrot.lane.b32.xlu0 %v3324_v62, %s3113_s28 }
  0x6a   : > { %1020 = vrot.lane.b32.xlu1 %v3438_v51, %s3113_s28 }
  0x6d   : > { %1166 = vrot.lane.b32.xlu0 %v3188_v1, %s3112_s1  ;;  %v742_v1 = vshrl.u32 %v3509_v26, 16 }
  0x6e   : > { %1068 = vrot.lane.b32.xlu1 %v919_v54, %s3112_s1 }
  0x6f   : > { %v744_v33 = vrot.slane %v742_v1, 7  ;;  %v854_v54 = vor.u32 %v853_v44, %v742_v1  ;;  %v759_v1 = vshll.u32 %v3559_v4, 16 }
  0x71   : > { %1079 = vrot.lane.b32.xlu0 %v3506_v22, %s3111_s17  ;;  %v747_v37 = vor.u32 %v745_v34, %v744_v33  ;;  %v3556_v60 = vsel %vm3199_vm3, %v854_v54, 0 }
  0x72   : > { %950 = vrot.lane.b32.xlu1 %v3386_v28, %s3111_s17 }
  0x73   : > { %v3542_v43 = vsel %vm3255_vm5, 0, %v747_v37  ;;  %v758_v37 = vrot.slane %v756_v18, 7 }
  0x75   : > { %1112 = vrot.lane.b32.xlu0 %v3517_v29, %s3113_s28  ;;  %v761_v55 = vor.u32 %v759_v1, %v758_v37  ;;  %v766_v37 = vshll.u32 %v3592_v57, 16 }
  0x76   : > { %998 = vrot.lane.b32.xlu1 %v3460_v61, %s3113_s28 }
  0x79   : > { %1144 = vrot.lane.b32.xlu0 %v3488_v13, %s3112_s1 }
  0x7a   : > { %1046 = vrot.lane.b32.xlu1 %v3468_v2, %s3112_s1 }
  0x7b   : > { %v943_v49 = vpop.permute.xlu0 %942 }
  0x7c   : > { %v1171_v23 = vsel %vm1168_vm6, %v3324_v62, %v943_v49 }
  0x7d   : > { %1081 = vrot.lane.b32.xlu0 %v3531_v35, %s3111_s17 }
  0x7e   : > { %952 = vrot.lane.b32.xlu1 %v3441_v53, %s3111_s17 }
  0x81   : > { %1114 = vrot.lane.b32.xlu0 %v3542_v43, %s3113_s28 }
  0x82   : > { %1000 = vrot.lane.b32.xlu1 %v3506_v22, %s3113_s28 }
  0x84   : > { %v967_v52 = vpop.permute.xlu1 %966  ;;  %v1137_v58 = vpop.permute.xlu0 %1136 }
  0x85   : > { %1146 = vrot.lane.b32.xlu0 %v3509_v26, %s3112_s1 }
  0x86   : > { %1048 = vrot.lane.b32.xlu1 %v3517_v29, %s3112_s1 }
  0x88   : > { %v991_v59 = vpop.permute.xlu1 %990 }
  0x89   : > { %1083 = vrot.lane.b32.xlu0 %v3556_v60, %s3111_s17  ;;  %v1219_v32 = vsel %vm1217_vm7, %v1171_v23, %v991_v59  ;;  %v857_v59 = vrot.slane %v759_v1, 1 }
  0x8a   : > { %954 = vrot.lane.b32.xlu1 %v3488_v13, %s3111_s17 }
  0x8b   : > { %v1072_v20 = vpop.permute.xlu0 %1071 }
  0x8c   : > { %v1105_v6 = vpop.permute.xlu1 %1104  ;;  %v1300_v21 = vsel %vm1168_vm6, %v3231_v15, %v1072_v20  ;;  %v856_v15 = vor.u32 %v855_v17, %v749_v46  ;;  %v3605_v20 = vsel %vm3255_vm5, 0, %v761_v55 }
  0x8d   : > { %v1332_v31 = vsel %vm1217_vm7, %v1300_v21, %v1105_v6  ;;  %1116 = vrot.lane.b32.xlu0 %v3567_v14, %s3113_s28  ;;  %v763_v21 = vshrl.u32 %v3592_v57, 16 }
  0x8e   : > { %1002 = vrot.lane.b32.xlu1 %v3531_v35, %s3113_s28  ;;  %v1364_v33 = vsel %vm1250_vm8, %v1332_v31, %v1137_v58  ;;  %v3589_v49 = vsel %vm3199_vm3, %v856_v15, 0  ;;  %v1207_v58 = vsel %vm1168_vm6, %v3349_v8, %v967_v52 }
  0x8f   : > { %1642 = vmatprep.mubr.bf16.mxu0 %v1364_v33  ;;  %v1096_v44 = vpop.permute.xlu0 %1095  ;;  %v765_v15 = vrot.slane %v763_v21, 7 }
  0x90   : > { %v1039_v34 = vpop.permute.xlu1 %1038  ;;  %v1324_v63 = vsel %vm1168_vm6, %v3242_v19, %v1096_v44 }
  0x91   : > { %v1252_v54 = vsel %vm1250_vm8, %v1219_v32, %v1039_v34  ;;  %1148 = vrot.lane.b32.xlu0 %v3534_v41, %s3112_s1  ;;  %v3084_v32 = vld [vmem:[%s4349_s3 + $0x88] sm:$0xff]   ;;  %v858_v34 = vor.u32 %v857_v59, %v756_v18  ;;  %v768_v18 = vor.u32 %v766_v37, %v765_v15 }
  0x92   : > { %1050 = vrot.lane.b32.xlu1 %v3542_v43, %s3112_s1  ;;  %1643 = vmatmul.mubr.bf16.vlgmr.msra.gmra.mrb[0].mxu0 %v1252_v54  ;;  %v3625_v54 = vld [vmem:[%s3212_s23 + $0x50] sm:$0xff]  }
  0x93   : > { %v1129_v46 = vpop.permute.xlu0 %1128  ;;  %v3629_v55 = vsel %vm3199_vm3, %v858_v34, 0  ;;  %v773_v34 = vshll.u32 %v3625_v54, 16 }
  0x94   : > { %v1015_v62 = vpop.permute.xlu1 %1014  ;;  %v1356_v23 = vsel %vm1217_vm7, %v1324_v63, %v1129_v46 }
  0x95   : > { %1085 = vrot.lane.b32.xlu0 %v3589_v49, %s3111_s17  ;;  %v1243_v6 = vsel %vm1217_vm7, %v1207_v58, %v1015_v62  ;;  %v770_v58 = vshrl.u32 %v3625_v54, 16 }
  0x96   : > { %956 = vrot.lane.b32.xlu1 %v3509_v26, %s3111_s17 }
  0x97   : > { %v1161_v31 = vpop.permute.xlu0 %1160 }
  0x98   : > { %v1063_v17 = vpop.permute.xlu1 %1062  ;;  %v1400_v1 = vsel %vm1250_vm8, %v1356_v23, %v1161_v31  ;;  %v859_v23 = vrot.slane %v766_v37, 1 }
  0x99   : > { %v1288_v52 = vsel %vm1250_vm8, %v1243_v6, %v1063_v17  ;;  %1118 = vrot.lane.b32.xlu0 %v3605_v20, %s3113_s28  ;;  %1738 = vmatprep.mubr.bf16.mxu1 %v1400_v1  ;;  %v3643_v17 = vsel %vm3255_vm5, 0, %v768_v18 }
  0x9a   : > { %1004 = vrot.lane.b32.xlu1 %v3556_v60, %s3113_s28  ;;  %1739 = vmatmul.mubr.bf16.vlgmr.msra.gmra.mrb[0].mxu1 %v1288_v52 }
  0x9b   : > { %v1074_v44 = vpop.permute.xlu0 %1073  ;;  %2971 = vmatpush3.bf16.msra.mxu1 %v3479_v7 }
  0x9c   : > { %v945_v33 = vpop.permute.xlu1 %944  ;;  %2972 = vmatprep.subr.bf16.mxu1 %v3084_v32  ;;  %v1302_v59 = vsel %vm1168_vm6, %v3224_v12, %v1074_v44 }
  0x9d   : > { %1150 = vrot.lane.b32.xlu0 %v3559_v4, %s3112_s1  ;;  %v1174_v7 = vsel %vm1168_vm6, %v3276_v42, %v945_v33  ;;  %v772_v33 = vrot.slane %v770_v58, 7 }
  0x9e   : > { %1052 = vrot.lane.b32.xlu1 %v3567_v14, %s3112_s1 }
  0x9f   : > { %v1107_v46 = vpop.permute.xlu0 %1106  ;;  %2973 = vmatpush3.bf16.msra.mxu1 %v3084_v32  ;;  %v860_v32 = vor.u32 %v859_v23, %v763_v21 }
  0xa0   : > { %v993_v62 = vpop.permute.xlu1 %992  ;;  %v1334_v31 = vsel %vm1217_vm7, %v1302_v59, %v1107_v46 }
  0xa1   : > { %1087 = vrot.lane.b32.xlu0 %v3629_v55, %s3111_s17  ;;  %v1221_v63 = vsel %vm1217_vm7, %v1174_v7, %v993_v62  ;;  %v3659_v44 = vsel %vm3199_vm3, %v860_v32, 0  ;;  %v775_v62 = vor.u32 %v773_v34, %v772_v33 }
  0xa2   : > { %958 = vrot.lane.b32.xlu1 %v3534_v41, %s3111_s17 }
  0xa3   : > { %v1139_v52 = vpop.permute.xlu0 %1138 }
  0xa4   : > { %v1041_v6 = vpop.permute.xlu1 %1040  ;;  %v1367_v1 = vsel %vm1250_vm8, %v1334_v31, %v1139_v52 }
  0xa5   : > { %v1255_v42 = vsel %vm1250_vm8, %v1221_v63, %v1041_v6  ;;  %1120 = vrot.lane.b32.xlu0 %v3643_v17, %s3113_s28  ;;  %1650 = vmatprep.mubr.bf16.mxu0 %v1367_v1  ;;  %v3672_v63 = vsel %vm3255_vm5, 0, %v775_v62  ;;  %v861_v6 = vrot.slane %v773_v34, 1 }
  0xa6   : > { %1006 = vrot.lane.b32.xlu1 %v3589_v49, %s3113_s28  ;;  %1651 = vmatmul.mubr.bf16.gmra.mrb[4].mxu0 %v1255_v42 }
  0xa7   : > { %v1098_v15 = vpop.permute.xlu0 %1097  ;;  %v862_v27 = vor.u32 %v861_v6, %v770_v58 }
  0xa8   : > { %v969_v12 = vpop.permute.xlu1 %968  ;;  %v1326_v46 = vsel %vm1168_vm6, %v3249_v25, %v1098_v15 }
  0xa9   : > { %1152 = vrot.lane.b32.xlu0 %v3592_v57, %s3112_s1  ;;  %v1210_v21 = vsel %vm1168_vm6, %v3310_v56, %v969_v12  ;;  %v3687_v32 = vsel %vm3199_vm3, %v862_v27, 0 }
  0xaa   : > { %1054 = vrot.lane.b32.xlu1 %v3605_v20, %s3112_s1 }
  0xab   : > { %v1131_v18 = vpop.permute.xlu0 %1130 }
  0xac   : > { %v1017_v37 = vpop.permute.xlu1 %1016  ;;  %v1358_v23 = vsel %vm1217_vm7, %v1326_v46, %v1131_v18 }
  0xad   : > { %1089 = vrot.lane.b32.xlu0 %v3659_v44, %s3111_s17  ;;  %v1245_v7 = vsel %vm1217_vm7, %v1210_v21, %v1017_v37 }
  0xae   : > { %960 = vrot.lane.b32.xlu1 %v3559_v4, %s3111_s17 }
  0xaf   : > { %v1163_v31 = vpop.permute.xlu0 %1162 }
  0xb0   : > { %v1065_v59 = vpop.permute.xlu1 %1064  ;;  %v1403_v42 = vsel %vm1250_vm8, %v1358_v23, %v1163_v31 }
  0xb1   : > { %v1291_v52 = vsel %vm1250_vm8, %v1245_v7, %v1065_v59  ;;  %1122 = vrot.lane.b32.xlu0 %v3672_v63, %s3113_s28  ;;  %1746 = vmatprep.mubr.bf16.mxu1 %v1403_v42 }
  0xb2   : > { %1008 = vrot.lane.b32.xlu1 %v3629_v55, %s3113_s28  ;;  %1747 = vmatmul.mubr.bf16.gmra.mrb[4].mxu1 %v1291_v52 }
  0xb3   : > { %v1076_v1 = vpop.permute.xlu0 %1075 }
  0xb4   : > { %v947_v25 = vpop.permute.xlu1 %946  ;;  %v1304_v58 = vsel %vm1168_vm6, %v3283_v47, %v1076_v1 }
  0xb5   : > { %1154 = vrot.lane.b32.xlu0 %v3625_v54, %s3112_s1  ;;  %v1177_v34 = vsel %vm1168_vm6, %v3265_v38, %v947_v25 }
  0xb6   : > { %1056 = vrot.lane.b32.xlu1 %v3643_v17, %s3112_s1 }
  0xb7   : > { %v1109_v33 = vpop.permute.xlu0 %1108 }
  0xb8   : > { %v995_v12 = vpop.permute.xlu1 %994  ;;  %v1336_v5 = vsel %vm1217_vm7, %v1304_v58, %v1109_v33 }
  0xb9   : > { %1091 = vrot.lane.b32.xlu0 %v3687_v32, %s3111_s17  ;;  %v1223_v15 = vsel %vm1217_vm7, %v1177_v34, %v995_v12 }
  0xba   : > { %962 = vrot.lane.b32.xlu1 %v3592_v57, %s3111_s17 }
  0xbb   : > { %v1141_v62 = vpop.permute.xlu0 %1140 }
  0xbc   : > { %v1043_v37 = vpop.permute.xlu1 %1042  ;;  %v1370_v21 = vsel %vm1250_vm8, %v1336_v5, %v1141_v62 }
  0xbd   : > { %v1258_v18 = vsel %vm1250_vm8, %v1223_v15, %v1043_v37  ;;  %1124 = vrot.lane.b32.xlu0 %v3349_v8, %s3113_s28  ;;  %1658 = vmatprep.mubr.bf16.mxu0 %v1370_v21 }
  0xbe   : > { %1010 = vrot.lane.b32.xlu1 %v3659_v44, %s3113_s28  ;;  %1659 = vmatmul.mubr.bf16.gmra.mrb[8].mxu0 %v1258_v18 }
  0xbf   : > { %v1100_v47 = vpop.permute.xlu0 %1099 }
  0xc0   : > { %v971_v38 = vpop.permute.xlu1 %970  ;;  %v1328_v6 = vsel %vm1168_vm6, %v3335_v3, %v1100_v47 }
  0xc1   : > { %1156 = vrot.lane.b32.xlu0 %v3221_v11, %s3112_s1  ;;  %v1213_v59 = vsel %vm1168_vm6, %v3295_v50, %v971_v38 }
  0xc2   : > { %1058 = vrot.lane.b32.xlu1 %v3672_v63, %s3112_s1 }
  0xc3   : > { %v1133_v7 = vpop.permute.xlu0 %1132 }
  0xc4   : > { %v1019_v46 = vpop.permute.xlu1 %1018  ;;  %v1360_v52 = vsel %vm1217_vm7, %v1328_v6, %v1133_v7 }
  0xc5   : > { %1093 = vrot.lane.b32.xlu0 %v3291_v48, %s3111_s17  ;;  %v1247_v23 = vsel %vm1217_vm7, %v1213_v59, %v1019_v46 }
  0xc6   : > { %964 = vrot.lane.b32.xlu1 %v3625_v54, %s3111_s17  ;;  %s4121_s17 = scalar_lea.vmem %s4356_s10, %s2802_s18 }
  0xc7   : > { %v1165_v11 = vpop.permute.xlu0 %1164 }
  0xc8   : > { %v1067_v31 = vpop.permute.xlu1 %1066  ;;  %v1406_v25 = vsel %vm1250_vm8, %v1360_v52, %v1165_v11 }
  0xc9   : > { %v1294_v42 = vsel %vm1250_vm8, %v1247_v23, %v1067_v31  ;;  %1126 = vrot.lane.b32.xlu0 %v3310_v56, %s3113_s28  ;;  %1754 = vmatprep.mubr.bf16.mxu1 %v1406_v25 }
  0xca   : > { %1012 = vrot.lane.b32.xlu1 %v3687_v32, %s3113_s28  ;;  %1755 = vmatmul.mubr.bf16.gmra.mrb[8].mxu1 %v1294_v42  ;;  %s2806_s28 = sshll.u32 %s4366_s11, 8 }
  0xcb   : > { %v1078_v3 = vpop.permute.xlu0 %1077  ;;  %s4036_s16 = scalar_lea.vmem %s4351_s5, %s2806_s28 }
  0xcc   : > { %v949_v50 = vpop.permute.xlu1 %948  ;;  %v1306_v33 = vsel %vm1168_vm6, %v3386_v28, %v1078_v3 }
  0xcd   : > { %1158 = vrot.lane.b32.xlu0 %v3242_v19, %s3112_s1  ;;  %v1180_v12 = vsel %vm1168_vm6, %v3356_v10, %v949_v50 }
  0xce   : > { %1060 = vrot.lane.b32.xlu1 %v3349_v8, %s3112_s1  ;;  %s3114_s1 = smov 120  }
  0xcf   : > { %v1111_v1 = vpop.permute.xlu0 %1110 }
  0xd0   : > { %v997_v27 = vpop.permute.xlu1 %996  ;;  %v1338_v58 = vsel %vm1217_vm7, %v1306_v33, %v1111_v1 }
  0xd1   : > { %v1225_v56 = vsel %vm1217_vm7, %v1180_v12, %v997_v27 }
  0xd3   : > { %v1143_v15 = vpop.permute.xlu0 %1142 }
  0xd4   : > { %v1045_v34 = vpop.permute.xlu1 %1044  ;;  %v1373_v8 = vsel %vm1250_vm8, %v1338_v58, %v1143_v15 }
  0xd5   : > { %v1261_v37 = vsel %vm1250_vm8, %v1225_v56, %v1045_v34  ;;  %1666 = vmatprep.mubr.bf16.mxu0 %v1373_v8 }
  0xd6   : > { %1667 = vmatmul.mubr.bf16.gmra.mrb[12].mxu0 %v1261_v37 }
  0xd7   : > { %v1102_v5 = vpop.permute.xlu0 %1101 }
  0xd8   : > { %v973_v19 = vpop.permute.xlu1 %972  ;;  %v1330_v28 = vsel %vm1168_vm6, %v3416_v39, %v1102_v5 }
  0xd9   : > { %v1216_v10 = vsel %vm1168_vm6, %v3397_v30, %v973_v19 }
  0xdb   : > { %v1135_v18 = vpop.permute.xlu0 %1134 }
  0xdc   : > { %v1021_v62 = vpop.permute.xlu1 %1020  ;;  %v1362_v47 = vsel %vm1217_vm7, %v1330_v28, %v1135_v18 }
  0xdd   : > { %v1249_v21 = vsel %vm1217_vm7, %v1216_v10, %v1021_v62 }
  0xdf   : > { %v1167_v46 = vpop.permute.xlu0 %1166 }
  0xe0   : > { %v1069_v38 = vpop.permute.xlu1 %1068  ;;  %v1409_v59 = vsel %vm1250_vm8, %v1362_v47, %v1167_v46 }
  0xe1   : > { %v1297_v7 = vsel %vm1250_vm8, %v1249_v21, %v1069_v38  ;;  %1762 = vmatprep.mubr.bf16.mxu1 %v1409_v59 }
  0xe2   : > { %1763 = vmatmul.mubr.bf16.gmra.mrb[12].mxu1 %v1297_v7 }
  0xe3   : > { %v1080_v23 = vpop.permute.xlu0 %1079  ;;  %2974 = vmatprep.mubr.msk.bf16.mxu1 %vm1168_vm6, %v3332_v0 }
  0xe4   : > { %v951_v6 = vpop.permute.xlu1 %950  ;;  %v1308_v52 = vsel %vm1168_vm6, %v3441_v53, %v1080_v23 }
  0xe5   : > { %v1183_v39 = vsel %vm1168_vm6, %v3424_v40, %v951_v6 }
  0xe7   : > { %v1113_v31 = vpop.permute.xlu0 %1112 }
  0xe8   : > { %v999_v30 = vpop.permute.xlu1 %998  ;;  %v1340_v25 = vsel %vm1217_vm7, %v1308_v52, %v1113_v31 }
  0xe9   : > { %v1227_v11 = vsel %vm1217_vm7, %v1183_v39, %v999_v30 }
  0xea   : > { %2975 = vmatmul.mubr.msk.bf16.vlgmr.msra.gmra.mrb[16].mxu1 %vm1168_vm6, %v3413_v36 }
  0xeb   : > { %v1145_v50 = vpop.permute.xlu0 %1144  ;;  %2978 = vmatprep.mubr.msk.bf16.mxu1 %vm1168_vm6, %v3460_v61 }
  0xec   : > { %v1047_v42 = vpop.permute.xlu1 %1046  ;;  %v1376_v0 = vsel %vm1250_vm8, %v1340_v25, %v1145_v50 }
  0xed   : > { %v1264_v3 = vsel %vm1250_vm8, %v1227_v11, %v1047_v42  ;;  %1674 = vmatprep.mubr.bf16.mxu0 %v1376_v0 }
  0xee   : > { %1675 = vmatmul.mubr.bf16.gmra.mrb[16].mxu0 %v1264_v3 }
  0xef   : > { %v1082_v53 = vpop.permute.xlu0 %1081 }
  0xf0   : > { %v953_v40 = vpop.permute.xlu1 %952  ;;  %v1310_v61 = vsel %vm1168_vm6, %v3488_v13, %v1082_v53 }
  0xf1   : > { %v1186_v1 = vsel %vm1168_vm6, %v3468_v2, %v953_v40 }
  0xf2   : > { %2979 = vmatmul.mubr.msk.bf16.gmra.mrb[20].mxu1 %vm1168_vm6, %v3506_v22 }
  0xf3   : > { %v1115_v36 = vpop.permute.xlu0 %1114  ;;  %2982 = vmatprep.mubr.msk.bf16.mxu1 %vm1168_vm6, %v3531_v35 }
  0xf4   : > { %v1001_v27 = vpop.permute.xlu1 %1000  ;;  %v1342_v56 = vsel %vm1217_vm7, %v1310_v61, %v1115_v36 }
  0xf5   : > { %v1229_v12 = vsel %vm1217_vm7, %v1186_v1, %v1001_v27 }
  0xf7   : > { %v1147_v34 = vpop.permute.xlu0 %1146 }
  0xf8   : > { %v1049_v33 = vpop.permute.xlu1 %1048  ;;  %v1379_v22 = vsel %vm1250_vm8, %v1342_v56, %v1147_v34 }
  0xf9   : > { %v1267_v58 = vsel %vm1250_vm8, %v1229_v12, %v1049_v33  ;;  %1682 = vmatprep.mubr.bf16.mxu0 %v1379_v22 }
  0xfa   : > { %1683 = vmatmul.mubr.bf16.gmra.mrb[20].mxu0 %v1267_v58  ;;  %2983 = vmatmul.mubr.msk.bf16.gmra.mrb[24].mxu1 %vm1168_vm6, %v3556_v60 }
  0xfb   : > { %v1084_v2 = vpop.permute.xlu0 %1083  ;;  %2986 = vmatprep.mubr.msk.bf16.mxu1 %vm1168_vm6, %v3589_v49 }
  0xfc   : > { %v955_v35 = vpop.permute.xlu1 %954  ;;  %v1312_v8 = vsel %vm1168_vm6, %v3509_v26, %v1084_v2 }
  0xfd   : > { %v1189_v37 = vsel %vm1168_vm6, %v3517_v29, %v955_v35 }
  0xff   : > { %v1117_v15 = vpop.permute.xlu0 %1116 }
 0x100   : > { %v1003_v13 = vpop.permute.xlu1 %1002  ;;  %v1344_v60 = vsel %vm1217_vm7, %v1312_v8, %v1117_v15 }
 0x101   : > { %v1231_v19 = vsel %vm1217_vm7, %v1189_v37, %v1003_v13 }
 0x102   : > { %2987 = vmatmul.mubr.msk.bf16.gmra.mrb[28].mxu1 %vm1168_vm6, %v3629_v55 }
 0x103   : > { %v1149_v62 = vpop.permute.xlu0 %1148  ;;  %2990 = vmatprep.mubr.msk.bf16.mxu1 %vm1168_vm6, %v3659_v44 }
 0x104   : > { %v1051_v5 = vpop.permute.xlu1 %1050  ;;  %v1382_v49 = vsel %vm1250_vm8, %v1344_v60, %v1149_v62 }
 0x105   : > { %v1270_v18 = vsel %vm1250_vm8, %v1231_v19, %v1051_v5  ;;  %1690 = vmatprep.mubr.bf16.mxu0 %v1382_v49 }
 0x106   : > { %1691 = vmatmul.mubr.bf16.gmra.mrb[24].mxu0 %v1270_v18 }
 0x107   : > { %v1086_v26 = vpop.permute.xlu0 %1085 }
 0x108   : > { %v957_v29 = vpop.permute.xlu1 %956  ;;  %v1314_v44 = vsel %vm1168_vm6, %v3534_v41, %v1086_v26 }
 0x109   : > { %v1192_v28 = vsel %vm1168_vm6, %v3542_v43, %v957_v29 }
 0x10a   : > { %2991 = vmatmul.mubr.msk.bf16.gmra.mrb[32].mxu1 %vm1168_vm6, %v3687_v32 }
 0x10b   : > { %v1119_v55 = vpop.permute.xlu0 %1118  ;;  %2994 = vmatprep.mubr.msk.bf16.mxu1 %vm1168_vm6, %v3291_v48 }
 0x10c   : > { %v1005_v10 = vpop.permute.xlu1 %1004  ;;  %v1346_v47 = vsel %vm1217_vm7, %v1314_v44, %v1119_v55 }
 0x10d   : > { %v1233_v21 = vsel %vm1217_vm7, %v1192_v28, %v1005_v10 }
 0x10f   : > { %v1151_v46 = vpop.permute.xlu0 %1150 }
 0x110   : > { %v1053_v38 = vpop.permute.xlu1 %1052  ;;  %v1385_v32 = vsel %vm1250_vm8, %v1346_v47, %v1151_v46 }
 0x111   : > { %v1273_v7 = vsel %vm1250_vm8, %v1233_v21, %v1053_v38  ;;  %1698 = vmatprep.mubr.bf16.mxu0 %v1385_v32 }
 0x112   : > { %1699 = vmatmul.mubr.bf16.gmra.mrb[28].mxu0 %v1273_v7  ;;  %2995 = vmatmul.mubr.msk.bf16.gmra.mrb[36].mxu1 %vm1168_vm6, %v3280_v45 }
 0x113   : > { %v1088_v43 = vpop.permute.xlu0 %1087  ;;  %2998 = vmatprep.mubr.msk.bf16.mxu1 %vm1168_vm6, %v3383_v24 }
 0x114   : > { %v959_v48 = vpop.permute.xlu1 %958  ;;  %v1316_v23 = vsel %vm1168_vm6, %v3559_v4, %v1088_v43 }
 0x115   : > { %v1195_v6 = vsel %vm1168_vm6, %v3567_v14, %v959_v48 }
 0x117   : > { %v1121_v59 = vpop.permute.xlu0 %1120 }
 0x118   : > { %v1007_v41 = vpop.permute.xlu1 %1006  ;;  %v1348_v45 = vsel %vm1217_vm7, %v1316_v23, %v1121_v59 }
 0x119   : > { %v1235_v30 = vsel %vm1217_vm7, %v1195_v6, %v1007_v41 }
 0x11a   : > { %2999 = vmatmul.mubr.msk.bf16.gmra.mrb[40].mxu1 %vm1168_vm6, %v3438_v51 }
 0x11b   : > { %v1153_v39 = vpop.permute.xlu0 %1152  ;;  %3002 = vmatprep.mubr.msk.bf16.mxu1 %vm1168_vm6, %v3485_v9 }
 0x11c   : > { %v1055_v31 = vpop.permute.xlu1 %1054  ;;  %v1388_v24 = vsel %vm1250_vm8, %v1348_v45, %v1153_v39 }
 0x11d   : > { %v1276_v52 = vsel %vm1250_vm8, %v1235_v30, %v1055_v31  ;;  %1706 = vmatprep.mubr.bf16.mxu0 %v1388_v24 }
 0x11e   : > { %1707 = vmatmul.mubr.bf16.gmra.mrb[32].mxu0 %v1276_v52 }
 0x11f   : > { %v1090_v4 = vpop.permute.xlu0 %1089 }
 0x120   : > { %v961_v14 = vpop.permute.xlu1 %960  ;;  %v1318_v25 = vsel %vm1168_vm6, %v3592_v57, %v1090_v4 }
 0x121   : > { %v1198_v42 = vsel %vm1168_vm6, %v3605_v20, %v961_v14 }
 0x122   : > { %3003 = vmatmul.mubr.msk.bf16.gmra.mrb[44].mxu1 %vm1168_vm6, %v3237_v16 }
 0x123   : > { %v1123_v51 = vpop.permute.xlu0 %1122 }
 0x124   : > { %v1009_v11 = vpop.permute.xlu1 %1008  ;;  %v1350_v3 = vsel %vm1217_vm7, %v1318_v25, %v1123_v51 }
 0x125   : > { %v1237_v50 = vsel %vm1217_vm7, %v1198_v42, %v1009_v11 }
 0x127   : > { %v1155_v0 = vpop.permute.xlu0 %1154 }
 0x128   : > { %v1057_v9 = vpop.permute.xlu1 %1056  ;;  %v1391_v53 = vsel %vm1250_vm8, %v1350_v3, %v1155_v0 }
 0x129   : > { %v1279_v40 = vsel %vm1250_vm8, %v1237_v50, %v1057_v9  ;;  %1714 = vmatprep.mubr.bf16.mxu0 %v1391_v53 }
 0x12a   : > { %1715 = vmatmul.mubr.bf16.gmra.mrb[36].mxu0 %v1279_v40 }
 0x12b   : > { %v1092_v27 = vpop.permute.xlu0 %1091 }
 0x12c   : > { %v963_v16 = vpop.permute.xlu1 %962  ;;  %v1320_v20 = vsel %vm1168_vm6, %v3625_v54, %v1092_v27  ;;  %v3085_v54 = vld [vmem:[%s3212_s23 + $0x58] sm:$0xff]  }
 0x12d   : > { %v1201_v57 = vsel %vm1168_vm6, %v3643_v17, %v963_v16 }
 0x12f   : > { %v1125_v1 = vpop.permute.xlu0 %1124 }
 0x130   : > { %v1011_v36 = vpop.permute.xlu1 %1010  ;;  %v1352_v33 = vsel %vm1217_vm7, %v1320_v20, %v1125_v1 }
 0x131   : > { %v1239_v61 = vsel %vm1217_vm7, %v1201_v57, %v1011_v36 }
 0x133   : > { %v1157_v56 = vpop.permute.xlu0 %1156 }
 0x134   : > { %v1059_v12 = vpop.permute.xlu1 %1058  ;;  %v1394_v58 = vsel %vm1250_vm8, %v1352_v33, %v1157_v56  ;;  %v3860_v56 = vld [vmem:[%s4350_s4] ss:$0 sm:$0xff] }
 0x135   : > { %v1282_v34 = vsel %vm1250_vm8, %v1239_v61, %v1059_v12  ;;  %1722 = vmatprep.mubr.bf16.mxu0 %v1394_v58 }
 0x136   : > { %1723 = vmatmul.mubr.bf16.gmra.mrb[40].mxu0 %v1282_v34 }
 0x137   : > { %v1094_v35 = vpop.permute.xlu0 %1093 }
 0x138   : > { %v965_v22 = vpop.permute.xlu1 %964  ;;  %v1322_v15 = vsel %vm1168_vm6, %v3085_v54, %v1094_v35 }
 0x139   : > { %v1204_v17 = vsel %vm1168_vm6, %v3672_v63, %v965_v22 }
 0x13b   : > { %v1127_v13 = vpop.permute.xlu0 %1126 }
 0x13c   : > { %v1013_v2 = vpop.permute.xlu1 %1012  ;;  %v1354_v19 = vsel %vm1217_vm7, %v1322_v15, %v1127_v13 }
 0x13d   : > { %v1241_v37 = vsel %vm1217_vm7, %v1204_v17, %v1013_v2 }
 0x13f   : > { %v1159_v5 = vpop.permute.xlu0 %1158 }
 0x140   : > { %v1061_v8 = vpop.permute.xlu1 %1060  ;;  %v1397_v62 = vsel %vm1250_vm8, %v1354_v19, %v1159_v5 }
 0x141   : > { %v1285_v60 = vsel %vm1250_vm8, %v1241_v37, %v1061_v8  ;;  %1730 = vmatprep.mubr.bf16.mxu0 %v1397_v62 }
 0x142   : > { %1731 = vmatmul.mubr.bf16.gmra.mrb[44].mxu0 %v1285_v60 }
 0x165   : > { %v2856_v18 = vpop.f32.mrb[0].mxu0 }
 0x166   : > { %v2857_v49 = vpop.f32.mrb[1].mxu0 }
 0x167   : > { %v2858_v29 = vadd.f32 %v2857_v49, %v2856_v18  ;;  %v2859_v26 = vpop.f32.mrb[2].mxu0 }
 0x168   : > { %v2860_v63 = vpop.f32.mrb[3].mxu0 }
 0x169   : > { %v2861_v10 = vadd.f32 %v2860_v63, %v2859_v26  ;;  %v1645_v22 = vadd.f32 %v2858_v29, %v3860_v56 }
 0x16b   : > { %v1648_v15 = vadd.f32 %v2861_v10, %v3860_v56 }
 0x16d   : > { %v2928_v55 = vpop.f32.mrb[0].mxu1 }
 0x16e   : > { %v2929_v28 = vpop.f32.mrb[1].mxu1 }
 0x16f   : > { %v3841_v44 = vadd.f32 %v2929_v28, %v2928_v55  ;;  %v2931_v21 = vpop.f32.mrb[2].mxu1 }
 0x170   : > { %v2932_v38 = vpop.f32.mrb[3].mxu1 }
 0x171   : > { %v3843_v47 = vadd.f32 %v2932_v38, %v2931_v21 }
 0x179   : > { %v2862_v46 = vpop.f32.mrb[4].mxu0 }
 0x17a   : > { %v2863_v7 = vpop.f32.mrb[5].mxu0 }
 0x17b   : > { %v2864_v32 = vadd.f32 %v2863_v7, %v2862_v46  ;;  %v2865_v48 = vpop.f32.mrb[6].mxu0 }
 0x17c   : > { %v2866_v43 = vpop.f32.mrb[7].mxu0 }
 0x17d   : > { %v2867_v41 = vadd.f32 %v2866_v43, %v2865_v48  ;;  %v1653_v34 = vadd.f32 %v2864_v32, %v3860_v56 }
 0x17f   : > { %v1656_v13 = vadd.f32 %v2867_v41, %v3860_v56 }
 0x185   : > { %v2934_v59 = vpop.f32.mrb[4].mxu1 }
 0x186   : > { %v2935_v6 = vpop.f32.mrb[5].mxu1 }
 0x187   : > { %v3845_v23 = vadd.f32 %v2935_v6, %v2934_v59  ;;  %v2937_v30 = vpop.f32.mrb[6].mxu1 }
 0x188   : > { %v2938_v31 = vpop.f32.mrb[7].mxu1 }
 0x189   : > { %v3847_v45 = vadd.f32 %v2938_v31, %v2937_v30 }
 0x191   : > { %v2868_v39 = vpop.f32.mrb[8].mxu0 }
 0x192   : > { %v2869_v52 = vpop.f32.mrb[9].mxu0 }
 0x193   : > { %v2870_v24 = vadd.f32 %v2869_v52, %v2868_v39  ;;  %v2871_v14 = vpop.f32.mrb[10].mxu0 }
 0x194   : > { %v2872_v4 = vpop.f32.mrb[11].mxu0 }
 0x195   : > { %v2873_v11 = vadd.f32 %v2872_v4, %v2871_v14  ;;  %v1661_v10 = vadd.f32 %v2870_v24, %v3860_v56 }
 0x197   : > { %v1664_v7 = vadd.f32 %v2873_v11, %v3860_v56 }
 0x19d   : > { %v2940_v51 = vpop.f32.mrb[8].mxu1 }
 0x19e   : > { %v2941_v42 = vpop.f32.mrb[9].mxu1 }
 0x19f   : > { %v3849_v25 = vadd.f32 %v2941_v42, %v2940_v51  ;;  %v2943_v50 = vpop.f32.mrb[10].mxu1 }
 0x1a0   : > { %v2944_v9 = vpop.f32.mrb[11].mxu1 }
 0x1a1   : > { %v3851_v3 = vadd.f32 %v2944_v9, %v2943_v50 }
 0x1a9   : > { %v2874_v0 = vpop.f32.mrb[12].mxu0 }
 0x1aa   : > { %v2875_v40 = vpop.f32.mrb[13].mxu0 }
 0x1ab   : > { %v2876_v53 = vadd.f32 %v2875_v40, %v2874_v0  ;;  %v2877_v16 = vpop.f32.mrb[14].mxu0 }
 0x1ac   : > { %v2878_v27 = vpop.f32.mrb[15].mxu0 }
 0x1ad   : > { %v2879_v36 = vadd.f32 %v2878_v27, %v2877_v16  ;;  %v1669_v29 = vadd.f32 %v2876_v53, %v3860_v56 }
 0x1af   : > { %v1672_v21 = vadd.f32 %v2879_v36, %v3860_v56 }
 0x1b5   : > { %v2946_v1 = vpop.f32.mrb[12].mxu1 }
 0x1b6   : > { %v2947_v57 = vpop.f32.mrb[13].mxu1 }
 0x1b7   : > { %v3853_v20 = vadd.f32 %v2947_v57, %v2946_v1  ;;  %v2949_v61 = vpop.f32.mrb[14].mxu1 }
 0x1b8   : > { %v2950_v12 = vpop.f32.mrb[15].mxu1 }
 0x1b9   : > { %v3855_v33 = vadd.f32 %v2950_v12, %v2949_v61 }
 0x1bd   : > { %v2976_v58 = vpop.f32.mrb[16].mxu1 }
 0x1be   : > { %v3864_v35 = vadd.f32 %v2976_v58, %v1653_v34  ;;  %v1805_v2 = vpop.f32.mrb[17].mxu1 }
 0x1bf   : > { %v3867_v17 = vadd.f32 %v1805_v2, %v1645_v22  ;;  %v2977_v54 = vpop.f32.mrb[18].mxu1 }
 0x1c0   : > { %v3870_v37 = vadd.f32 %v2977_v54, %v1656_v13  ;;  %2252 = vrot.lane.b32.xlu0 %v3864_v35, %s3114_s1  ;;  %v1808_v8 = vpop.f32.mrb[19].mxu1 }
 0x1c1   : > { %v3874_v19 = vadd.f32 %v1808_v8, %v1648_v15  ;;  %v2880_v5 = vpop.f32.mrb[16].mxu0 }
 0x1c2   : > { %2254 = vrot.lane.b32.xlu1 %v3870_v37, %s3114_s1  ;;  %v2881_v60 = vpop.f32.mrb[17].mxu0 }
 0x1c3   : > { %v2882_v62 = vadd.f32 %v2881_v60, %v2880_v5  ;;  %v2883_v18 = vpop.f32.mrb[18].mxu0 }
 0x1c4   : > { %2248 = vrot.lane.b32.xlu0 %v3867_v17, %s3114_s1  ;;  %v2884_v49 = vpop.f32.mrb[19].mxu0 }
 0x1c5   : > { %v2885_v26 = vadd.f32 %v2884_v49, %v2883_v18  ;;  %v2980_v63 = vpop.f32.mrb[20].mxu1  ;;  %v1677_v6 = vadd.f32 %v2882_v62, %v3860_v56 }
 0x1c6   : > { %v3882_v55 = vadd.f32 %v2980_v63, %v1669_v29  ;;  %v1821_v28 = vpop.f32.mrb[21].mxu1  ;;  %2250 = vrot.lane.b32.xlu1 %v3874_v19, %s3114_s1 }
 0x1c7   : > { %v3887_v38 = vadd.f32 %v1821_v28, %v1661_v10  ;;  %v2981_v46 = vpop.f32.mrb[22].mxu1  ;;  %v1680_v4 = vadd.f32 %v2885_v26, %v3860_v56 }
 0x1c8   : > { %v3890_v32 = vadd.f32 %v2981_v46, %v1672_v21  ;;  %v1824_v48 = vpop.f32.mrb[23].mxu1  ;;  %2260 = vrot.lane.b32.xlu0 %v3882_v55, %s3114_s1 }
 0x1c9   : > { %v3894_v43 = vadd.f32 %v1824_v48, %v1664_v7 }
 0x1ca   : > { %2262 = vrot.lane.b32.xlu1 %v3890_v32, %s3114_s1 }
 0x1cc   : > { %2256 = vrot.lane.b32.xlu0 %v3887_v38, %s3114_s1 }
 0x1cd   : > { %v2886_v41 = vpop.f32.mrb[20].mxu0  ;;  %v2984_v59 = vpop.f32.mrb[24].mxu1 }
 0x1ce   : > { %v1837_v30 = vpop.f32.mrb[25].mxu1  ;;  %2258 = vrot.lane.b32.xlu1 %v3894_v43, %s3114_s1  ;;  %v2887_v31 = vpop.f32.mrb[21].mxu0 }
 0x1cf   : > { %v3903_v39 = vadd.f32 %v1837_v30, %v1677_v6  ;;  %v2888_v52 = vadd.f32 %v2887_v31, %v2886_v41  ;;  %v2889_v24 = vpop.f32.mrb[22].mxu0  ;;  %v2985_v14 = vpop.f32.mrb[26].mxu1  ;;  %v1749_v6 = vadd.f32 %v3845_v23, %v3860_v56  ;;  %v1744_v23 = vadd.f32 %v3843_v47, %v3860_v56 }
 0x1d0   : > { %v2890_v11 = vpop.f32.mrb[23].mxu0  ;;  %v1840_v51 = vpop.f32.mrb[27].mxu1  ;;  %v1757_v47 = vadd.f32 %v3849_v25, %v3860_v56 }
 0x1d1   : > { %v1685_v42 = vadd.f32 %v2888_v52, %v3860_v56  ;;  %v2891_v50 = vadd.f32 %v2890_v11, %v2889_v24  ;;  %v3907_v9 = vadd.f32 %v1840_v51, %v1680_v4  ;;  %v1741_v52 = vadd.f32 %v3841_v44, %v3860_v56 }
 0x1d2   : > { %v1752_v4 = vadd.f32 %v3847_v45, %v3860_v56  ;;  %v1765_v45 = vadd.f32 %v3853_v20, %v3860_v56 }
 0x1d3   : > { %v3909_v0 = vadd.f32 %v2984_v59, %v1685_v42  ;;  %v1688_v40 = vadd.f32 %v2891_v50, %v3860_v56 }
 0x1d5   : > { %v3912_v53 = vadd.f32 %v2985_v14, %v1688_v40  ;;  %2268 = vrot.lane.b32.xlu0 %v3909_v0, %s3114_s1  ;;  %v2988_v16 = vpop.f32.mrb[28].mxu1 }
 0x1d6   : > { %v1853_v27 = vpop.f32.mrb[29].mxu1 }
 0x1d7   : > { %2270 = vrot.lane.b32.xlu1 %v3912_v53, %s3114_s1  ;;  %v2989_v36 = vpop.f32.mrb[30].mxu1 }
 0x1d8   : > { %v1856_v1 = vpop.f32.mrb[31].mxu1 }
 0x1d9   : > { %2264 = vrot.lane.b32.xlu0 %v3903_v39, %s3114_s1  ;;  %v2892_v57 = vpop.f32.mrb[24].mxu0 }
 0x1da   : > { %v2893_v61 = vpop.f32.mrb[25].mxu0 }
 0x1db   : > { %v2894_v12 = vadd.f32 %v2893_v61, %v2892_v57  ;;  %2266 = vrot.lane.b32.xlu1 %v3907_v9, %s3114_s1  ;;  %v2895_v34 = vpop.f32.mrb[26].mxu0 }
 0x1dc   : > { %v2896_v58 = vpop.f32.mrb[27].mxu0 }
 0x1dd   : > { %v2897_v22 = vadd.f32 %v2896_v58, %v2895_v34  ;;  %v1693_v2 = vadd.f32 %v2894_v12, %v3860_v56  ;;  %v3923_v13 = vpop.f32.mrb[32].mxu1 }
 0x1de   : > { %v1869_v54 = vpop.f32.mrb[33].mxu1 }
 0x1df   : > { %v3925_v15 = vadd.f32 %v1853_v27, %v1693_v2  ;;  %v1696_v8 = vadd.f32 %v2897_v22, %v3860_v56  ;;  %v3928_v5 = vpop.f32.mrb[34].mxu1  ;;  %v1768_v22 = vadd.f32 %v3855_v33, %v3860_v56 }
 0x1e0   : > { %v1872_v60 = vpop.f32.mrb[35].mxu1 }
 0x1e1   : > { %v3930_v62 = vadd.f32 %v1856_v1, %v1696_v8  ;;  %2272 = vrot.lane.b32.xlu0 %v3925_v15, %s3114_s1 }
 0x1e3   : > { %2274 = vrot.lane.b32.xlu1 %v3930_v62, %s3114_s1 }
 0x1e5   : > { %v2898_v18 = vpop.f32.mrb[28].mxu0  ;;  %v3936_v49 = vpop.f32.mrb[36].mxu1 }
 0x1e6   : > { %v2899_v29 = vpop.f32.mrb[29].mxu0  ;;  %v3938_v26 = vpop.f32.mrb[37].mxu1 }
 0x1e7   : > { %v2900_v63 = vadd.f32 %v2899_v29, %v2898_v18  ;;  %v2901_v10 = vpop.f32.mrb[30].mxu0  ;;  %v3940_v28 = vpop.f32.mrb[38].mxu1  ;;  %v1760_v29 = vadd.f32 %v3851_v3, %v3860_v56 }
 0x1e8   : > { %v2902_v21 = vpop.f32.mrb[31].mxu0  ;;  %v3942_v46 = vpop.f32.mrb[39].mxu1 }
 0x1e9   : > { %v1701_v7 = vadd.f32 %v2900_v63, %v3860_v56  ;;  %v2903_v48 = vadd.f32 %v2902_v21, %v2901_v10 }
 0x1eb   : > { %v3945_v41 = vadd.f32 %v2988_v16, %v1701_v7  ;;  %v1704_v59 = vadd.f32 %v2903_v48, %v3860_v56 }
 0x1ed   : > { %v3950_v30 = vadd.f32 %v2989_v36, %v1704_v59  ;;  %v3000_v31 = vpop.f32.mrb[40].mxu1  ;;  %2276 = vrot.lane.b32.xlu0 %v3945_v41, %s3114_s1 }
 0x1ee   : > { %v3956_v24 = vadd.f32 %v3000_v31, %v1749_v6  ;;  %v1901_v14 = vpop.f32.mrb[41].mxu1 }
 0x1ef   : > { %v3960_v11 = vadd.f32 %v1901_v14, %v1741_v52  ;;  %v3001_v51 = vpop.f32.mrb[42].mxu1  ;;  %2278 = vrot.lane.b32.xlu1 %v3950_v30, %s3114_s1 }
 0x1f0   : > { %v3966_v42 = vadd.f32 %v3001_v51, %v1752_v4  ;;  %v1904_v50 = vpop.f32.mrb[43].mxu1 }
 0x1f1   : > { %v3968_v40 = vadd.f32 %v1904_v50, %v1744_v23  ;;  %v2904_v44 = vpop.f32.mrb[32].mxu0 }
 0x1f2   : > { %v2905_v16 = vpop.f32.mrb[33].mxu0 }
 0x1f3   : > { %v2906_v27 = vadd.f32 %v2905_v16, %v2904_v44  ;;  %v2907_v36 = vpop.f32.mrb[34].mxu0 }
 0x1f4   : > { %v2908_v1 = vpop.f32.mrb[35].mxu0 }
 0x1f5   : > { %v1709_v57 = vadd.f32 %v2906_v27, %v3860_v56  ;;  %v2909_v61 = vadd.f32 %v2908_v1, %v2907_v36  ;;  %v3004_v12 = vpop.f32.mrb[44].mxu1 }
 0x1f6   : > { %v3975_v34 = vadd.f32 %v3004_v12, %v1765_v45  ;;  %v1917_v58 = vpop.f32.mrb[45].mxu1  ;;  %v1934_v12 = vld [vmem:[%s4036_s16 + $0x10] sm:$0xff] }
 0x1f7   : > { %v3979_v2 = vadd.f32 %v1869_v54, %v1709_v57  ;;  %v1712_v8 = vadd.f32 %v2909_v61, %v3860_v56  ;;  %v3982_v18 = vadd.f32 %v1917_v58, %v1757_v47  ;;  %v3005_v20 = vpop.f32.mrb[46].mxu1  ;;  %v4043_v47 = vld [vmem:[%s4352_s6] ss:$0 sm:$0xff] }
 0x1f8   : > { %v3986_v63 = vadd.f32 %v3005_v20, %v1768_v22  ;;  %v1920_v10 = vpop.f32.mrb[47].mxu1 }
 0x1f9   : > { %v3988_v25 = vadd.f32 %v1872_v60, %v1712_v8  ;;  %v3990_v21 = vadd.f32 %v1920_v10, %v1760_v29  ;;  %2280 = vrot.lane.b32.xlu0 %v3979_v2, %s3114_s1  ;;  %v1935_v8 = vld [vmem:[%s4036_s16 + $0x18] sm:$0xff]  ;;  %v1973_v29 = vmul.f32 %v4043_v47, %v1934_v12  ;;  %v4059_v10 = vld [vmem:[%s4353_s7] ss:$0 sm:$0xff] }
 0x1fb   : > { %2282 = vrot.lane.b32.xlu1 %v3988_v25, %s3114_s1 }
 0x1fd   : > { %v2910_v33 = vpop.f32.mrb[36].mxu0 }
 0x1fe   : > { %v2911_v54 = vpop.f32.mrb[37].mxu0 }
 0x1ff   : > { %v2912_v7 = vadd.f32 %v2911_v54, %v2910_v33  ;;  %v2913_v48 = vpop.f32.mrb[38].mxu0  ;;  %v1933_v33 = vld [vmem:[%s4036_s16 + $0x8] sm:$0xff] }
 0x200   : > { %v2914_v59 = vpop.f32.mrb[39].mxu0 }
 0x201   : > { %v1717_v3 = vadd.f32 %v2912_v7, %v3860_v56  ;;  %v2915_v6 = vadd.f32 %v2914_v59, %v2913_v48  ;;  %v1938_v7 = vld [vmem:[%s4036_s16 + $0x30] sm:$0xff]  ;;  %v1972_v59 = vmul.f32 %v4043_v47, %v1933_v33 }
 0x203   : > { %v3998_v31 = vadd.f32 %v3923_v13, %v1717_v3  ;;  %v1720_v60 = vadd.f32 %v2915_v6, %v3860_v56  ;;  %v1939_v3 = vld [vmem:[%s4036_s16 + $0x38] sm:$0xff]  ;;  %v1977_v6 = vmul.f32 %v4043_v47, %v1938_v7 }
 0x205   : > { %v4002_v52 = vadd.f32 %v3928_v5, %v1720_v60  ;;  %2284 = vrot.lane.b32.xlu0 %v3998_v31, %s3114_s1 }
 0x207   : > { %2286 = vrot.lane.b32.xlu1 %v4002_v52, %s3114_s1 }
 0x209   : > { %2300 = vrot.lane.b32.xlu0 %v3956_v24, %s3114_s1  ;;  %v2916_v14 = vpop.f32.mrb[40].mxu0 }
 0x20a   : > { %v2917_v4 = vpop.f32.mrb[41].mxu0 }
 0x20b   : > { %v2918_v51 = vadd.f32 %v2917_v4, %v2916_v14  ;;  %2302 = vrot.lane.b32.xlu1 %v3966_v42, %s3114_s1  ;;  %v2919_v13 = vpop.f32.mrb[42].mxu0  ;;  %v1936_v4 = vld [vmem:[%s4036_s16 + $0x20] sm:$0xff] }
 0x20c   : > { %v2920_v23 = vpop.f32.mrb[43].mxu0 }
 0x20d   : > { %v1725_v5 = vadd.f32 %v2918_v51, %v3860_v56  ;;  %v2921_v50 = vadd.f32 %v2920_v23, %v2919_v13  ;;  %2296 = vrot.lane.b32.xlu0 %v3960_v11, %s3114_s1  ;;  %v4082_v51 = vld [vmem:[%s4354_s8] ss:$0 sm:$0xff]  ;;  %v1978_v13 = vmul.f32 %v4043_v47, %v1939_v3 }
 0x20f   : > { %v4016_v44 = vadd.f32 %v3938_v26, %v1725_v5  ;;  %v1728_v16 = vadd.f32 %v2921_v50, %v3860_v56  ;;  %2298 = vrot.lane.b32.xlu1 %v3968_v40, %s3114_s1  ;;  %v2011_v5 = vadd.f32 %v4059_v10, %v1972_v59  ;;  %v1937_v50 = vld [vmem:[%s4036_s16 + $0x28] sm:$0xff]  ;;  %v1942_v59 = vld [vmem:[%s4036_s16 + $0x50] sm:$0xff] }
 0x211   : > { %v4022_v27 = vadd.f32 %v3942_v46, %v1728_v16  ;;  %2288 = vrot.lane.b32.xlu0 %v4016_v44, %s3114_s1  ;;  %v2016_v16 = vadd.f32 %v4059_v10, %v1977_v6  ;;  %v2043_v12 = vmax.f32 %v2011_v5, 0.0  ;;  %v1981_v5 = vmul.f32 %v4043_v47, %v1942_v59 }
 0x213   : > { %2290 = vrot.lane.b32.xlu1 %v4022_v27, %s3114_s1 }
 0x215   : > { %2304 = vrot.lane.b32.xlu0 %v3982_v18, %s3114_s1  ;;  %v2922_v26 = vpop.f32.mrb[44].mxu0 }
 0x216   : > { %v2923_v36 = vpop.f32.mrb[45].mxu0 }
 0x217   : > { %v2924_v1 = vadd.f32 %v2923_v36, %v2922_v26  ;;  %2306 = vrot.lane.b32.xlu1 %v3990_v21, %s3114_s1  ;;  %v2925_v45 = vpop.f32.mrb[46].mxu0  ;;  %v1975_v26 = vmul.f32 %v4043_v47, %v1936_v4  ;;  %v1943_v4 = vld [vmem:[%s4036_s16 + $0x58] sm:$0xff] }
 0x218   : > { %v2926_v46 = vpop.f32.mrb[47].mxu0 }
 0x219   : > { %v1733_v57 = vadd.f32 %v2924_v1, %v3860_v56  ;;  %v2927_v61 = vadd.f32 %v2926_v46, %v2925_v45  ;;  %v4093_v45 = vld [vmem:[%s4355_s9] ss:$0 sm:$0xff]  ;;  %v2017_v46 = vadd.f32 %v4059_v10, %v1978_v13 }
 0x21b   : > { %v4046_v58 = vadd.f32 %v3936_v49, %v1733_v57  ;;  %v1736_v22 = vadd.f32 %v2927_v61, %v3860_v56  ;;  %v1932_v49 = vld [vmem:[%s4036_s16] sm:$0xff]  ;;  %v1974_v56 = vmul.f32 %v4043_v47, %v1935_v8  ;;  %v1976_v57 = vmul.f32 %v4043_v47, %v1937_v50 }
 0x21c   : > { %v1971_v54 = vmul.f32 %v4043_v47, %v1932_v49  ;;  %v2014_v8 = vadd.f32 %v4059_v10, %v1975_v26  ;;  %v2049_v33 = vmax.f32 %v2017_v46, 0.0  ;;  %v2153_v50 = vadd.f32 1.0, %v3874_v19 }
 0x21d   : > { %v4051_v20 = vadd.f32 %v3940_v28, %v1736_v22  ;;  %2292 = vrot.lane.b32.xlu0 %v4046_v58, %s3114_s1  ;;  %v2012_v28 = vadd.f32 %v4059_v10, %v1973_v29  ;;  %v2013_v48 = vadd.f32 %v4059_v10, %v1974_v56  ;;  %v2048_v22 = vmax.f32 %v2016_v16, 0.0 }
 0x21e   : > { %v2010_v14 = vadd.f32 %v4059_v10, %v1971_v54  ;;  %v2154_v29 = vadd.f32 1.0, %v3864_v35  ;;  %v2155_v54 = vadd.f32 1.0, %v3870_v37  ;;  %v2046_v6 = vmax.f32 %v2014_v8, 0.0 }
 0x21f   : > { %2294 = vrot.lane.b32.xlu1 %v4051_v20, %s3114_s1  ;;  %v2044_v60 = vmax.f32 %v2012_v28, 0.0  ;;  %v2045_v23 = vmax.f32 %v2013_v48, 0.0  ;;  %v2015_v28 = vadd.f32 %v4059_v10, %v1976_v57  ;;  %v2082_v48 = vmul.f32 %v4082_v51, %v2043_v12 }
 0x220   : > { %v2042_v1 = vmax.f32 %v2010_v14, 0.0  ;;  %v2087_v3 = vmul.f32 %v4082_v51, %v2048_v22  ;;  %v2152_v35 = vadd.f32 1.0, %v3867_v17  ;;  %v2085_v57 = vmul.f32 %v4082_v51, %v2046_v6 }
 0x221   : > { %2308 = vrot.lane.b32.xlu0 %v3975_v34, %s3114_s1  ;;  %v2083_v36 = vmul.f32 %v4082_v51, %v2044_v60  ;;  %v2084_v61 = vmul.f32 %v4082_v51, %v2045_v23  ;;  %v2088_v23 = vmul.f32 %v4082_v51, %v2049_v33  ;;  %v2047_v37 = vmax.f32 %v2015_v28, 0.0 }
 0x222   : > { %v2081_v56 = vmul.f32 %v4082_v51, %v2042_v1  ;;  %v1940_v1 = vld [vmem:[%s4036_s16 + $0x40] sm:$0xff]  ;;  %v2126_v46 = vadd.f32 %v4093_v45, %v2087_v3  ;;  %v1982_v19 = vmul.f32 %v4043_v47, %v1943_v4  ;;  %v2020_v28 = vadd.f32 %v4059_v10, %v1981_v5 }
 0x223   : > { %2310 = vrot.lane.b32.xlu1 %v3986_v63, %s3114_s1  ;;  %v2122_v49 = vadd.f32 %v4093_v45, %v2083_v36  ;;  %v2123_v7 = vadd.f32 %v4093_v45, %v2084_v61  ;;  %v2121_v36 = vadd.f32 %v4093_v45, %v2082_v48  ;;  %v2158_v61 = vadd.f32 1.0, %v3882_v55 }
 0x224   : > { %v2120_v14 = vadd.f32 %v4093_v45, %v2081_v56  ;;  %v2127_v56 = vadd.f32 %v4093_v45, %v2088_v23  ;;  %v2086_v33 = vmul.f32 %v4082_v51, %v2047_v37  ;;  %v2124_v6 = vadd.f32 %v4093_v45, %v2085_v57 }
 0x225   : > { %v2186_v60 = vmul.f32 %v2154_v29, %v2122_v49  ;;  %v2187_v26 = vmul.f32 %v2155_v54, %v2123_v7  ;;  %v1941_v29 = vld [vmem:[%s4036_s16 + $0x48] sm:$0xff]  ;;  %v1979_v54 = vmul.f32 %v4043_v47, %v1940_v1  ;;  %v2159_v7 = vadd.f32 1.0, %v3890_v32 }
 0x226   : > { %v2184_v8 = vmul.f32 %v2152_v35, %v2120_v14  ;;  %v2185_v59 = vmul.f32 %v2153_v50, %v2121_v36  ;;  %v2021_v35 = vadd.f32 %v4059_v10, %v1982_v19  ;;  %v2156_v14 = vadd.f32 1.0, %v3887_v38 }
 0x227   : > { %v2125_v37 = vadd.f32 %v4093_v45, %v2086_v33  ;;  %v2052_v5 = vmax.f32 %v2020_v28, 0.0  ;;  %v2018_v50 = vadd.f32 %v4059_v10, %v1979_v54  ;;  %v2191_v1 = vmul.f32 %v2159_v7, %v2127_v56 }
 0x228   : > { %v2053_v57 = vmax.f32 %v2021_v35, 0.0 }
 0x232   : > { %v2253_v13 = vpop.permute.xlu0 %2252 }
 0x233   : > { %v2346_v16 = vadd.f32 %v2253_v13, %v2186_v60  ;;  %v1980_v60 = vmul.f32 %v4043_v47, %v1941_v29  ;;  %v2190_v13 = vmul.f32 %v2158_v61, %v2126_v46  ;;  %v1945_v46 = vld [vmem:[%s4036_s16 + $0x68] sm:$0xff]  ;;  %v2091_v29 = vmul.f32 %v4082_v51, %v2052_v5 }
 0x234   : > { %v2255_v17 = vpop.permute.xlu1 %2254  ;;  %v1984_v54 = vmul.f32 %v4043_v47, %v1945_v46 }
 0x235   : > { %v2810_v12 = vpack.c.bf16 %v2346_v16, %v2346_v16  ;;  %v2347_v22 = vadd.f32 %v2255_v17, %v2187_v26  ;;  %v1944_v16 = vld [vmem:[%s4036_s16 + $0x60] sm:$0xff]  ;;  %v2157_v26 = vadd.f32 1.0, %v3894_v43  ;;  %v2019_v19 = vadd.f32 %v4059_v10, %v1980_v60 }
 0x236   : > { %v2249_v49 = vpop.permute.xlu0 %2248  ;;  %v2130_v35 = vadd.f32 %v4093_v45, %v2091_v29  ;;  %v2162_v60 = vadd.f32 1.0, %v3909_v0 }
 0x237   : > { %2507 = vst.msk [vmem:[%s4121_s17 + $0x8] sm:$0xf] %vm2504_vm9, %v2810_v12  ;;  %v2811_v48 = vpack.c.bf16 %v2347_v22, %v2347_v22  ;;  %v2344_v55 = vadd.f32 %v2249_v49, %v2184_v8  ;;  %v2188_v22 = vmul.f32 %v2156_v14, %v2124_v6  ;;  %v1983_v8 = vmul.f32 %v4043_v47, %v1944_v16 }
 0x238   : > { %v2251_v3 = vpop.permute.xlu1 %2250  ;;  %v2050_v49 = vmax.f32 %v2018_v50, 0.0  ;;  %v2189_v28 = vmul.f32 %v2157_v26, %v2125_v37  ;;  %v2160_v50 = vadd.f32 1.0, %v3903_v39  ;;  %v2194_v0 = vmul.f32 %v2162_v60, %v2130_v35 }
 0x239   : > { %2508 = vst.msk [vmem:[%s4121_s17 + $0xc] sm:$0xf] %vm2504_vm9, %v2811_v48  ;;  %v2808_v4 = vpack.c.bf16 %v2344_v55, %v2344_v55  ;;  %v2345_v32 = vadd.f32 %v2251_v3, %v2185_v59  ;;  %v2092_v48 = vmul.f32 %v4082_v51, %v2053_v57  ;;  %v2051_v55 = vmax.f32 %v2019_v19, 0.0 }
 0x23a   : > { %v2261_v23 = vpop.permute.xlu0 %2260  ;;  %v2022_v6 = vadd.f32 %v4059_v10, %v1983_v8  ;;  %v2089_v14 = vmul.f32 %v4082_v51, %v2050_v49 }
 0x23b   : > { %2505 = vst.msk [vmem:[%s4121_s17] sm:$0xf] %vm2504_vm9, %v2808_v4  ;;  %v2809_v38 = vpack.c.bf16 %v2345_v32, %v2345_v32  ;;  %v2350_v36 = vadd.f32 %v2261_v23, %v2190_v13  ;;  %v2023_v32 = vadd.f32 %v4059_v10, %v1984_v54  ;;  %v2131_v13 = vadd.f32 %v4093_v45, %v2092_v48 }
 0x23c   : > { %v2263_v17 = vpop.permute.xlu1 %2262  ;;  %v2163_v23 = vadd.f32 1.0, %v3912_v53  ;;  %v2090_v37 = vmul.f32 %v4082_v51, %v2051_v55  ;;  %v2054_v5 = vmax.f32 %v2022_v6, 0.0  ;;  %v2128_v16 = vadd.f32 %v4093_v45, %v2089_v14 }
 0x23d   : > { %2506 = vst.msk [vmem:[%s4121_s17 + $0x4] sm:$0xf] %vm2504_vm9, %v2809_v38  ;;  %v2814_v61 = vpack.c.bf16 %v2350_v36, %v2350_v36  ;;  %v2351_v12 = vadd.f32 %v2263_v17, %v2191_v1  ;;  %v2055_v38 = vmax.f32 %v2023_v32, 0.0  ;;  %v1946_v36 = vld [vmem:[%s4036_s16 + $0x70] sm:$0xff]  ;;  %v2161_v1 = vadd.f32 1.0, %v3907_v9  ;;  %v1948_v32 = vld [vmem:[%s4036_s16 + $0x80] sm:$0xff] }
 0x23e   : > { %v2257_v43 = vpop.permute.xlu0 %2256  ;;  %v2195_v57 = vmul.f32 %v2163_v23, %v2131_v13  ;;  %v2129_v53 = vadd.f32 %v4093_v45, %v2090_v37  ;;  %v2093_v46 = vmul.f32 %v4082_v51, %v2054_v5  ;;  %v1985_v8 = vmul.f32 %v4043_v47, %v1946_v36 }
 0x23f   : > { %2511 = vst.msk [vmem:[%s4121_s17 + $0x18] sm:$0xf] %vm2504_vm9, %v2814_v61  ;;  %v2815_v56 = vpack.c.bf16 %v2351_v12, %v2351_v12  ;;  %v2348_v33 = vadd.f32 %v2257_v43, %v2188_v22  ;;  %v1947_v61 = vld [vmem:[%s4036_s16 + $0x78] sm:$0xff]  ;;  %v2192_v22 = vmul.f32 %v2160_v50, %v2128_v16  ;;  %v2094_v29 = vmul.f32 %v4082_v51, %v2055_v38 }
 0x240   : > { %v2259_v7 = vpop.permute.xlu1 %2258  ;;  %v2132_v54 = vadd.f32 %v4093_v45, %v2093_v46  ;;  %v2167_v46 = vadd.f32 1.0, %v3950_v30 }
 0x241   : > { %2512 = vst.msk [vmem:[%s4121_s17 + $0x1c] sm:$0xf] %vm2504_vm9, %v2815_v56  ;;  %v2812_v59 = vpack.c.bf16 %v2348_v33, %v2348_v33  ;;  %v2349_v3 = vadd.f32 %v2259_v7, %v2189_v28  ;;  %v2193_v56 = vmul.f32 %v2161_v1, %v2129_v53  ;;  %v1986_v33 = vmul.f32 %v4043_v47, %v1947_v61 }
 0x242   : > { %v2164_v7 = vadd.f32 1.0, %v3925_v15  ;;  %v2133_v35 = vadd.f32 %v4093_v45, %v2094_v29 }
 0x243   : > { %2509 = vst.msk [vmem:[%s4121_s17 + $0x10] sm:$0xf] %vm2504_vm9, %v2812_v59  ;;  %v2813_v4 = vpack.c.bf16 %v2349_v3, %v2349_v3  ;;  %v2024_v59 = vadd.f32 %v4059_v10, %v1985_v8  ;;  %v2165_v3 = vadd.f32 1.0, %v3930_v62  ;;  %v2025_v60 = vadd.f32 %v4059_v10, %v1986_v33  ;;  %v1949_v62 = vld [vmem:[%s4036_s16 + $0x88] sm:$0xff]  ;;  %v1950_v8 = vld [vmem:[%s4036_s16 + $0x90] sm:$0xff] }
 0x244   : > { %v2196_v15 = vmul.f32 %v2164_v7, %v2132_v54  ;;  %v1988_v1 = vmul.f32 %v4043_v47, %v1949_v62  ;;  %v1989_v30 = vmul.f32 %v4043_v47, %v1950_v8  ;;  %v1958_v54 = vld [vmem:[%s4036_s16 + $0xd0] sm:$0xff] }
 0x245   : > { %2510 = vst.msk [vmem:[%s4121_s17 + $0x14] sm:$0xf] %vm2504_vm9, %v2813_v4  ;;  %v2056_v14 = vmax.f32 %v2024_v59, 0.0  ;;  %v2197_v23 = vmul.f32 %v2165_v3, %v2133_v35  ;;  %v2057_v37 = vmax.f32 %v2025_v60, 0.0  ;;  %v1959_v59 = vld [vmem:[%s4036_s16 + $0xd8] sm:$0xff]  ;;  %v1997_v60 = vmul.f32 %v4043_v47, %v1958_v54 }
 0x246   : > { %v2027_v61 = vadd.f32 %v4059_v10, %v1988_v1  ;;  %v2028_v35 = vadd.f32 %v4059_v10, %v1989_v30  ;;  %v1953_v1 = vld [vmem:[%s4036_s16 + $0xa8] sm:$0xff]  ;;  %v2170_v30 = vadd.f32 1.0, %v3998_v31  ;;  %v2178_v31 = vadd.f32 1.0, %v3956_v24 }
 0x247   : > { %v2269_v26 = vpop.permute.xlu0 %2268  ;;  %v2095_v16 = vmul.f32 %v4082_v51, %v2056_v14  ;;  %v2096_v36 = vmul.f32 %v4082_v51, %v2057_v37  ;;  %v1992_v8 = vmul.f32 %v4043_v47, %v1953_v1 }
 0x248   : > { %v2354_v17 = vadd.f32 %v2269_v26, %v2194_v0  ;;  %v1987_v26 = vmul.f32 %v4043_v47, %v1948_v32  ;;  %v2060_v62 = vmax.f32 %v2028_v35, 0.0 }
 0x249   : > { %v2271_v19 = vpop.permute.xlu1 %2270 }
 0x24a   : > { %v2818_v12 = vpack.c.bf16 %v2354_v17, %v2354_v17  ;;  %v2355_v39 = vadd.f32 %v2271_v19, %v2195_v57  ;;  %v2134_v17 = vadd.f32 %v4093_v45, %v2095_v16  ;;  %v2166_v57 = vadd.f32 1.0, %v3945_v41 }
 0x24b   : > { %v2265_v43 = vpop.permute.xlu0 %2264  ;;  %v2026_v53 = vadd.f32 %v4059_v10, %v1987_v26  ;;  %v2135_v19 = vadd.f32 %v4093_v45, %v2096_v36 }
 0x24c   : > { %2515 = vst.msk [vmem:[%s4121_s17 + $0x28] sm:$0xf] %vm2504_vm9, %v2818_v12  ;;  %v2819_v9 = vpack.c.bf16 %v2355_v39, %v2355_v39  ;;  %v2352_v49 = vadd.f32 %v2265_v43, %v2192_v22  ;;  %v2198_v12 = vmul.f32 %v2166_v57, %v2134_v17 }
 0x24d   : > { %v2267_v28 = vpop.permute.xlu1 %2266  ;;  %v2058_v39 = vmax.f32 %v2026_v53, 0.0  ;;  %v2199_v29 = vmul.f32 %v2167_v46, %v2135_v19 }
 0x24e   : > { %2516 = vst.msk [vmem:[%s4121_s17 + $0x2c] sm:$0xf] %vm2504_vm9, %v2819_v9  ;;  %v2816_v48 = vpack.c.bf16 %v2352_v49, %v2352_v49  ;;  %v2353_v55 = vadd.f32 %v2267_v28, %v2193_v56  ;;  %v2059_v9 = vmax.f32 %v2027_v61, 0.0  ;;  %v1951_v49 = vld [vmem:[%s4036_s16 + $0x98] sm:$0xff]  ;;  %v2099_v61 = vmul.f32 %v4082_v51, %v2060_v62 }
 0x24f   : > { %v2097_v28 = vmul.f32 %v4082_v51, %v2058_v39  ;;  %v1960_v39 = vld [vmem:[%s4036_s16 + $0xe0] sm:$0xff] }
 0x250   : > { %2513 = vst.msk [vmem:[%s4121_s17 + $0x20] sm:$0xf] %vm2504_vm9, %v2816_v48  ;;  %v2817_v6 = vpack.c.bf16 %v2353_v55, %v2353_v55  ;;  %v2098_v48 = vmul.f32 %v4082_v51, %v2059_v9  ;;  %v1990_v55 = vmul.f32 %v4043_v47, %v1951_v49 }
 0x251   : > { %v2136_v3 = vadd.f32 %v4093_v45, %v2097_v28  ;;  %v2138_v28 = vadd.f32 %v4093_v45, %v2099_v61 }
 0x252   : > { %2514 = vst.msk [vmem:[%s4121_s17 + $0x24] sm:$0xf] %vm2504_vm9, %v2817_v6  ;;  %v2168_v6 = vadd.f32 1.0, %v3979_v2  ;;  %v2137_v14 = vadd.f32 %v4093_v45, %v2098_v48  ;;  %v2029_v32 = vadd.f32 %v4059_v10, %v1990_v55  ;;  %v2036_v2 = vadd.f32 %v4059_v10, %v1997_v60 }
 0x253   : > { %v2273_v4 = vpop.permute.xlu0 %2272  ;;  %v2031_v48 = vadd.f32 %v4059_v10, %v1992_v8 }
 0x254   : > { %v2356_v13 = vadd.f32 %v2273_v4, %v2196_v15  ;;  %v1956_v15 = vld [vmem:[%s4036_s16 + $0xc0] sm:$0xff]  ;;  %v2169_v4 = vadd.f32 1.0, %v3988_v25  ;;  %v2061_v25 = vmax.f32 %v2029_v32, 0.0  ;;  %v1954_v32 = vld [vmem:[%s4036_s16 + $0xb0] sm:$0xff] }
 0x255   : > { %v2275_v5 = vpop.permute.xlu1 %2274  ;;  %v1995_v37 = vmul.f32 %v4043_v47, %v1956_v15 }
 0x256   : > { %v2820_v50 = vpack.c.bf16 %v2356_v13, %v2356_v13  ;;  %v2357_v0 = vadd.f32 %v2275_v5, %v2197_v23  ;;  %v1998_v13 = vmul.f32 %v4043_v47, %v1959_v59  ;;  %v1957_v23 = vld [vmem:[%s4036_s16 + $0xc8] sm:$0xff]  ;;  %v2200_v5 = vmul.f32 %v2168_v6, %v2136_v3 }
 0x257   : > { %v1996_v16 = vmul.f32 %v4043_v47, %v1957_v23  ;;  %v2034_v57 = vadd.f32 %v4059_v10, %v1995_v37  ;;  %v2171_v3 = vadd.f32 1.0, %v4002_v52  ;;  %v2063_v37 = vmax.f32 %v2031_v48, 0.0 }
 0x258   : > { %2517 = vst.msk [vmem:[%s4121_s17 + $0x30] sm:$0xf] %vm2504_vm9, %v2820_v50  ;;  %v2821_v38 = vpack.c.bf16 %v2357_v0, %v2357_v0  ;;  %v1952_v50 = vld [vmem:[%s4036_s16 + $0xa0] sm:$0xff]  ;;  %v2037_v36 = vadd.f32 %v4059_v10, %v1998_v13 }
 0x259   : > { %v1991_v53 = vmul.f32 %v4043_v47, %v1952_v50  ;;  %v2066_v49 = vmax.f32 %v2034_v57, 0.0  ;;  %v1962_v57 = vld [vmem:[%s4036_s16 + $0xf0] sm:$0xff] }
 0x25a   : > { %2518 = vst.msk [vmem:[%s4121_s17 + $0x34] sm:$0xf] %vm2504_vm9, %v2821_v38  ;;  %v2201_v38 = vmul.f32 %v2169_v4, %v2137_v14  ;;  %v2069_v9 = vmax.f32 %v2037_v36, 0.0  ;;  %v2202_v14 = vmul.f32 %v2170_v30, %v2138_v28  ;;  %v2176_v36 = vadd.f32 1.0, %v3960_v11 }
 0x25b   : > { %v2105_v35 = vmul.f32 %v4082_v51, %v2066_v49  ;;  %v2172_v30 = vadd.f32 1.0, %v4016_v44 }
 0x25c   : > { %v2108_v6 = vmul.f32 %v4082_v51, %v2069_v9 }
 0x25d   : > { %v2144_v24 = vadd.f32 %v4093_v45, %v2105_v35 }
 0x25e   : > { %v2147_v50 = vadd.f32 %v4093_v45, %v2108_v6 }
 0x25f   : > { %v2277_v22 = vpop.permute.xlu0 %2276  ;;  %v2208_v28 = vmul.f32 %v2176_v36, %v2144_v24 }
 0x260   : > { %v2358_v43 = vadd.f32 %v2277_v22, %v2198_v12  ;;  %v2068_v12 = vmax.f32 %v2036_v2, 0.0  ;;  %v2035_v22 = vadd.f32 %v4059_v10, %v1996_v16 }
 0x261   : > { %v2279_v41 = vpop.permute.xlu1 %2278 }
 0x262   : > { %v2822_v56 = vpack.c.bf16 %v2358_v43, %v2358_v43  ;;  %v2359_v33 = vadd.f32 %v2279_v41, %v2199_v29  ;;  %v2100_v29 = vmul.f32 %v4082_v51, %v2061_v25  ;;  %v1961_v41 = vld [vmem:[%s4036_s16 + $0xe8] sm:$0xff]  ;;  %v2107_v54 = vmul.f32 %v4082_v51, %v2068_v12 }
 0x263   : > { %v2000_v55 = vmul.f32 %v4043_v47, %v1961_v41  ;;  %v1993_v25 = vmul.f32 %v4043_v47, %v1954_v32 }
 0x264   : > { %2519 = vst.msk [vmem:[%s4121_s17 + $0x38] sm:$0xf] %vm2504_vm9, %v2822_v56  ;;  %v2823_v7 = vpack.c.bf16 %v2359_v33, %v2359_v33  ;;  %v2030_v56 = vadd.f32 %v4059_v10, %v1991_v53  ;;  %v1999_v33 = vmul.f32 %v4043_v47, %v1960_v39  ;;  %v2139_v59 = vadd.f32 %v4093_v45, %v2100_v29 }
 0x265   : > { %v2146_v4 = vadd.f32 %v4093_v45, %v2107_v54  ;;  %v2039_v52 = vadd.f32 %v4059_v10, %v2000_v55  ;;  %v2177_v39 = vadd.f32 1.0, %v3968_v40  ;;  %v2032_v49 = vadd.f32 %v4059_v10, %v1993_v25 }
 0x266   : > { %2520 = vst.msk [vmem:[%s4121_s17 + $0x3c] sm:$0xf] %vm2504_vm9, %v2823_v7  ;;  %v2067_v7 = vmax.f32 %v2035_v22, 0.0  ;;  %v2062_v60 = vmax.f32 %v2030_v56, 0.0  ;;  %v2038_v15 = vadd.f32 %v4059_v10, %v1999_v33  ;;  %v2203_v2 = vmul.f32 %v2171_v3, %v2139_v59 }
 0x267   : > { %v2071_v61 = vmax.f32 %v2039_v52, 0.0  ;;  %v2001_v56 = vmul.f32 %v4043_v47, %v1962_v57 }
 0x268   : > { %v2106_v23 = vmul.f32 %v4082_v51, %v2067_v7 }
 0x269   : > { %v2110_v48 = vmul.f32 %v4082_v51, %v2071_v61  ;;  %v2174_v61 = vadd.f32 1.0, %v4046_v58  ;;  %v2183_v58 = vadd.f32 1.0, %v3986_v63 }
 0x26b   : > { %v2281_v0 = vpop.permute.xlu0 %2280 }
 0x26c   : > { %v2360_v26 = vadd.f32 %v2281_v0, %v2200_v5  ;;  %v2179_v5 = vadd.f32 1.0, %v3966_v42  ;;  %v1955_v0 = vld [vmem:[%s4036_s16 + $0xb8] sm:$0xff]  ;;  %v2210_v42 = vmul.f32 %v2178_v31, %v2146_v4  ;;  %v2064_v31 = vmax.f32 %v2032_v49, 0.0 }
 0x26d   : > { %v2283_v17 = vpop.permute.xlu1 %2282  ;;  %v1994_v12 = vmul.f32 %v4043_v47, %v1955_v0  ;;  %v2180_v4 = vadd.f32 1.0, %v3982_v18 }
 0x26e   : > { %v2824_v19 = vpack.c.bf16 %v2360_v26, %v2360_v26  ;;  %v2361_v46 = vadd.f32 %v2283_v17, %v2201_v38  ;;  %v2101_v26 = vmul.f32 %v4082_v51, %v2062_v60  ;;  %v2070_v38 = vmax.f32 %v2038_v15, 0.0 }
 0x26f   : > { %v2211_v11 = vmul.f32 %v2179_v5, %v2147_v50  ;;  %v2033_v55 = vadd.f32 %v4059_v10, %v1994_v12  ;;  %v2173_v60 = vadd.f32 1.0, %v4022_v27  ;;  %v2181_v5 = vadd.f32 1.0, %v3990_v21 }
 0x270   : > { %2521 = vst.msk [vmem:[%s4121_s17 + $0x40] sm:$0xf] %vm2504_vm9, %v2824_v19  ;;  %v2825_v43 = vpack.c.bf16 %v2361_v46, %v2361_v46  ;;  %v2145_v19 = vadd.f32 %v4093_v45, %v2106_v23  ;;  %v2102_v46 = vmul.f32 %v4082_v51, %v2063_v37  ;;  %v2140_v9 = vadd.f32 %v4093_v45, %v2101_v26 }
 0x271   : > { %v2109_v41 = vmul.f32 %v4082_v51, %v2070_v38  ;;  %v2149_v37 = vadd.f32 %v4093_v45, %v2110_v48  ;;  %v2065_v52 = vmax.f32 %v2033_v55, 0.0  ;;  %v2103_v38 = vmul.f32 %v4082_v51, %v2064_v31 }
 0x272   : > { %2522 = vst.msk [vmem:[%s4121_s17 + $0x44] sm:$0xf] %vm2504_vm9, %v2825_v43  ;;  %v1963_v43 = vld [vmem:[%s4036_s16 + $0xf8] sm:$0xff]  ;;  %v2141_v7 = vadd.f32 %v4093_v45, %v2102_v46  ;;  %v2209_v35 = vmul.f32 %v2177_v39, %v2145_v19 }
 0x273   : > { %v2002_v59 = vmul.f32 %v4043_v47, %v1963_v43  ;;  %v2148_v44 = vadd.f32 %v4093_v45, %v2109_v41  ;;  %v2142_v46 = vadd.f32 %v4093_v45, %v2103_v38 }
 0x274   : > { %v2205_v18 = vmul.f32 %v2173_v60, %v2141_v7 }
 0x275   : > { %v2041_v27 = vadd.f32 %v4059_v10, %v2002_v59  ;;  %v2212_v26 = vmul.f32 %v2180_v4, %v2148_v44  ;;  %v2206_v43 = vmul.f32 %v2174_v61, %v2142_v46 }
 0x277   : > { %v2285_v13 = vpop.permute.xlu0 %2284 }
 0x278   : > { %v2362_v62 = vadd.f32 %v2285_v13, %v2202_v14  ;;  %v2040_v14 = vadd.f32 %v4059_v10, %v2001_v56  ;;  %v2204_v13 = vmul.f32 %v2172_v30, %v2140_v9  ;;  %v2073_v10 = vmax.f32 %v2041_v27, 0.0 }
 0x279   : > { %v2287_v16 = vpop.permute.xlu1 %2286 }
 0x27a   : > { %v2826_v1 = vpack.c.bf16 %v2362_v62, %v2362_v62  ;;  %v2363_v17 = vadd.f32 %v2287_v16, %v2203_v2  ;;  %v2072_v0 = vmax.f32 %v2040_v14, 0.0 }
 0x27b   : > { %v2301_v53 = vpop.permute.xlu0 %2300 }
 0x27c   : > { %2523 = vst.msk [vmem:[%s4121_s17 + $0x48] sm:$0xf] %vm2504_vm9, %v2826_v1  ;;  %v2827_v22 = vpack.c.bf16 %v2363_v17, %v2363_v17  ;;  %v2370_v8 = vadd.f32 %v2301_v53, %v2210_v42  ;;  %v2213_v1 = vmul.f32 %v2181_v5, %v2149_v37  ;;  %v2104_v17 = vmul.f32 %v4082_v51, %v2065_v52 }
 0x27d   : > { %v2303_v29 = vpop.permute.xlu1 %2302  ;;  %v2111_v57 = vmul.f32 %v4082_v51, %v2072_v0 }
 0x27e   : > { %2524 = vst.msk [vmem:[%s4121_s17 + $0x4c] sm:$0xf] %vm2504_vm9, %v2827_v22  ;;  %v2834_v33 = vpack.c.bf16 %v2370_v8, %v2370_v8  ;;  %v2371_v40 = vadd.f32 %v2303_v29, %v2211_v11  ;;  %v2143_v39 = vadd.f32 %v4093_v45, %v2104_v17  ;;  %v2175_v22 = vadd.f32 1.0, %v4051_v20 }
 0x27f   : > { %v2297_v54 = vpop.permute.xlu0 %2296  ;;  %v2112_v8 = vmul.f32 %v4082_v51, %v2073_v10  ;;  %v2182_v11 = vadd.f32 1.0, %v3975_v34  ;;  %v2150_v29 = vadd.f32 %v4093_v45, %v2111_v57 }
 0x280   : > { %2531 = vst.msk [vmem:[%s4121_s17 + $0x68] sm:$0xf] %vm2504_vm9, %v2834_v33  ;;  %v2835_v3 = vpack.c.bf16 %v2371_v40, %v2371_v40  ;;  %v2368_v6 = vadd.f32 %v2297_v54, %v2208_v28  ;;  %v2207_v49 = vmul.f32 %v2175_v22, %v2143_v39 }
 0x281   : > { %v2299_v15 = vpop.permute.xlu1 %2298  ;;  %v2151_v56 = vadd.f32 %v4093_v45, %v2112_v8  ;;  %v2214_v40 = vmul.f32 %v2182_v11, %v2150_v29 }
 0x282   : > { %2532 = vst.msk [vmem:[%s4121_s17 + $0x6c] sm:$0xf] %vm2504_vm9, %v2835_v3  ;;  %v2832_v47 = vpack.c.bf16 %v2368_v6, %v2368_v6  ;;  %v2369_v32 = vadd.f32 %v2299_v15, %v2209_v35 }
 0x283   : > { %v2289_v23 = vpop.permute.xlu0 %2288  ;;  %v2215_v54 = vmul.f32 %v2183_v58, %v2151_v56 }
 0x284   : > { %2529 = vst.msk [vmem:[%s4121_s17 + $0x60] sm:$0xf] %vm2504_vm9, %v2832_v47  ;;  %v2833_v62 = vpack.c.bf16 %v2369_v32, %v2369_v32  ;;  %v2364_v2 = vadd.f32 %v2289_v23, %v2204_v13 }
 0x285   : > { %v2291_v50 = vpop.permute.xlu1 %2290 }
 0x286   : > { %2530 = vst.msk [vmem:[%s4121_s17 + $0x64] sm:$0xf] %vm2504_vm9, %v2833_v62  ;;  %v2828_v16 = vpack.c.bf16 %v2364_v2, %v2364_v2  ;;  %v2365_v24 = vadd.f32 %v2291_v50, %v2205_v18 }
 0x287   : > { %v2305_v25 = vpop.permute.xlu0 %2304 }
 0x288   : > { %2525 = vst.msk [vmem:[%s4121_s17 + $0x50] sm:$0xf] %vm2504_vm9, %v2828_v16  ;;  %v2829_v21 = vpack.c.bf16 %v2365_v24, %v2365_v24  ;;  %v2372_v36 = vadd.f32 %v2305_v25, %v2212_v26 }
 0x289   : > { %v2307_v42 = vpop.permute.xlu1 %2306 }
 0x28a   : > { %2526 = vst.msk [vmem:[%s4121_s17 + $0x54] sm:$0xf] %vm2504_vm9, %v2829_v21  ;;  %v2836_v53 = vpack.c.bf16 %v2372_v36, %v2372_v36  ;;  %v2373_v19 = vadd.f32 %v2307_v42, %v2213_v1 }
 0x28c   : > { %2533 = vst.msk [vmem:[%s4121_s17 + $0x70] sm:$0xf] %vm2504_vm9, %v2836_v53  ;;  %v2837_v12 = vpack.c.bf16 %v2373_v19, %v2373_v19 }
 0x28e   : > { %2534 = vst.msk [vmem:[%s4121_s17 + $0x74] sm:$0xf] %vm2504_vm9, %v2837_v12 }
 0x28f   : > { %v2293_v9 = vpop.permute.xlu0 %2292 }
 0x290   : > { %v2366_v41 = vadd.f32 %v2293_v9, %v2206_v43 }
 0x291   : > { %v2295_v20 = vpop.permute.xlu1 %2294 }
 0x292   : > { %v2830_v33 = vpack.c.bf16 %v2366_v41, %v2366_v41  ;;  %v2367_v51 = vadd.f32 %v2295_v20, %v2207_v49 }
 0x293   : > { %v2309_v34 = vpop.permute.xlu0 %2308 }
 0x294   : > { %2527 = vst.msk [vmem:[%s4121_s17 + $0x58] sm:$0xf] %vm2504_vm9, %v2830_v33  ;;  %v2831_v28 = vpack.c.bf16 %v2367_v51, %v2367_v51  ;;  %v2374_v30 = vadd.f32 %v2309_v34, %v2214_v40 }
 0x295   : > { %v2311_v7 = vpop.permute.xlu1 %2310 }
 0x296   : > { %2528 = vst.msk [vmem:[%s4121_s17 + $0x5c] sm:$0xf] %vm2504_vm9, %v2831_v28  ;;  %v2838_v63 = vpack.c.bf16 %v2374_v30, %v2374_v30  ;;  %v2375_v48 = vadd.f32 %v2311_v7, %v2215_v54 }
 0x298   : > { %2535 = vst.msk [vmem:[%s4121_s17 + $0x78] sm:$0xf] %vm2504_vm9, %v2838_v63  ;;  %v2839_v55 = vpack.c.bf16 %v2375_v48, %v2375_v48 }
 0x29a   : > { %2536 = vst.msk [vmem:[%s4121_s17 + $0x7c] sm:$0xf] %vm2504_vm9, %v2839_v55 }
 0x29b PF: > { %s20_s13 = sadd.s32 1, %s3108_s13   ;;  %s4361_s11 = smov %s3104_s12 }
 0x29c   : > { %p17_p5 = scmp.ge.s32.totalorder %s20_s13, 4   ;;  %s4362_s12 = smov %s4364_s14 }
 0x29e   :  { %19 = sbr.rel (!%p17_p5) target bundleno = 2 (0x2), region = 99 }

</bundles_post_ra>
